<compile_context>
chip_gen: v6e
topology: v6e:2x2x1
jax: 0.10.0
libtpu: 0.0.40
codegen_flags: <defaults>
</compile_context>

<pallas_src>
import functools

import jax
import jax.numpy as jnp
from jax import lax
from jax.experimental import pallas as pl
from jax.experimental.pallas import tpu as pltpu


# ----------------------------------------------------------------------------
# Pallas kernel: fused fc1 -> fc2 -> fc3 with int8 weights + f32 epilogue
# ----------------------------------------------------------------------------
def _fc_stack_kernel(x_ref, w1_ref, w2_ref, w3_ref, a1_ref, a2_ref, a3_ref,
                     o_ref, h1_ref, h2_ref, *, t1, t2, tn):
    """One grid step == one output-column tile of one of the three layers.

    steps [0, t1)           : h1[tile] = relu(x  @ W1_tile) * s1 + b1-folded
    steps [t1, t1 + t2)     : h2[tile] = relu(h1 @ W2_tile) ...
    steps [t1 + t2, ...)    : out      =      h2 @ W3_tile  ...

    Weights arrive as int8 blocks and are dequantised with an int8->bf16 cast
    (VPU); the per-output-channel scale is applied to the f32 accumulator
    (scale factors out of the K contraction), so no per-weight multiply is
    needed.  h1/h2 live in VMEM scratch laid out as (num_tiles, M, tn) so
    every access is a static slice or a dynamic leading-index store.
    """
    t = pl.program_id(0)

    @pl.when(t < t1)
    def _layer1():
        w = w1_ref[...].astype(jnp.bfloat16)                  # int8 -> bf16
        acc = jnp.dot(x_ref[...].astype(jnp.bfloat16), w,
                      preferred_element_type=jnp.float32)
        y = jnp.maximum(acc * a1_ref[0:1, :] + a1_ref[1:2, :], 0.0)
        h1_ref[t] = y.astype(jnp.bfloat16)

    @pl.when(jnp.logical_and(t >= t1, t < t1 + t2))
    def _layer2():
        m = o_ref.shape[0]
        acc = jnp.zeros((m, tn), jnp.float32)
        for jj in range(t1):                                  # static unroll over K chunks
            w = w2_ref[jj * tn:(jj + 1) * tn, :].astype(jnp.bfloat16)
            acc += jnp.dot(h1_ref[jj], w, preferred_element_type=jnp.float32)
        y = jnp.maximum(acc * a2_ref[0:1, :] + a2_ref[1:2, :], 0.0)
        h2_ref[t - t1] = y.astype(jnp.bfloat16)

    @pl.when(t >= t1 + t2)
    def _layer3():
        m, ncols = o_ref.shape
        acc = jnp.zeros((m, ncols), jnp.float32)
        for jj in range(t2):
            w = w3_ref[jj * tn:(jj + 1) * tn, :].astype(jnp.bfloat16)
            acc += jnp.dot(h2_ref[jj], w, preferred_element_type=jnp.float32)
        o_ref[...] = (acc * a3_ref[0:1, :] + a3_ref[1:2, :]).astype(o_ref.dtype)


def _clamp(v, lo, hi):
    return jnp.maximum(jnp.minimum(v, hi), lo)


def fused_fc_stack(x_flat, fc, *, tn=1024, vmem_limit_bytes=48 * 1024 * 1024):
    """x_flat: (M, K1) f32 flattened features.

    fc: dict with int8 weights w1/w2/w3 in (K, Nout) layout and packed f32 aux
    arrays a{1,2,3} = [scale; bias] of shape (2, Nout).  Returns (M, N3_padded)
    f32 logits (caller slices off any column padding of the classifier head).
    """
    m, k1 = x_flat.shape
    w1, w2, w3 = fc["w1"], fc["w2"], fc["w3"]
    a1, a2, a3 = fc["a1"], fc["a2"], fc["a3"]
    n1, n2, n3 = w1.shape[1], w2.shape[1], w3.shape[1]

    assert w1.shape[0] == k1
    assert n1 % tn == 0 and n2 % tn == 0, (n1, n2, tn)
    t1, t2 = n1 // tn, n2 // tn
    assert w2.shape[0] == n1 == t1 * tn        # layer-2 K chunks == layer-1 tiles
    assert w3.shape[0] == n2 == t2 * tn        # layer-3 K chunks == layer-2 tiles
    # Narrow classifier head: one column tile (padded to a lane multiple in
    # prepare_params).  TODO(synk): tile the head if num_classes > 2048.
    assert n3 % 128 == 0 and n3 <= 2048, n3
    tn3, t3 = n3, 1
    steps = t1 + t2 + t3

    # Index maps clamp to each layer's own tile range: on grid steps belonging
    # to the other layers the map returns the same block index as the previous
    # step, so Pallas elides the (redundant) DMA — weight streaming is
    # continuous across the whole classifier.
    def w1_map(t):
        return (0, _clamp(t, 0, t1 - 1))

    def w2_map(t):
        return (0, _clamp(t - t1, 0, t2 - 1))

    def w3_map(t):
        return (0, _clamp(t - t1 - t2, 0, t3 - 1))

    kernel = functools.partial(_fc_stack_kernel, t1=t1, t2=t2, tn=tn)
    return pl.pallas_call(
        kernel,
        out_shape=jax.ShapeDtypeStruct((m, n3), jnp.float32),
        grid=(steps,),
        in_specs=[
            pl.BlockSpec((m, k1), lambda t: (0, 0)),       # x: resident in VMEM
            pl.BlockSpec((k1, tn), w1_map),                # int8 weight tiles
            pl.BlockSpec((n1, tn), w2_map),
            pl.BlockSpec((n2, tn3), w3_map),
            pl.BlockSpec((2, tn), w1_map),                 # packed [scale; bias]
            pl.BlockSpec((2, tn), w2_map),
            pl.BlockSpec((2, tn3), w3_map),
        ],
        out_specs=pl.BlockSpec((m, tn3), w3_map),
        scratch_shapes=[
            pltpu.VMEM((t1, m, tn), jnp.bfloat16),         # h1 activations
            pltpu.VMEM((t2, m, tn), jnp.bfloat16),         # h2 activations
        ],
        compiler_params=pltpu.CompilerParams(
            # Layers are sequentially dependent -> single "arbitrary" grid axis.
            dimension_semantics=("arbitrary",),
            # Explicit budget: safe on v5e/v6e (128 MiB physical) and within
            # the <=48 MiB guidance for v7x's 64 MiB VMEM.
            vmem_limit_bytes=vmem_limit_bytes,
        ),
    )(x_flat, w1, w2, w3, a1, a2, a3)


# ----------------------------------------------------------------------------
# Feature stack: tiny, launch-latency dominated -> plain XLA (per perf review)
# ----------------------------------------------------------------------------
_CONV_LAYOUT = ("NHWC", "HWIO", "NHWC")


def _conv_relu_bn(x, layer, *, stride, pad):
    """Conv2d -> ReLU -> BatchNorm2d(eval), channels-last, exact 2-D semantics."""
    y = lax.conv_general_dilated(
        x, layer["w"],
        window_strides=(stride, stride),
        padding=((pad, pad), (pad, pad)),
        dimension_numbers=_CONV_LAYOUT)
    y = jnp.maximum(y + layer["b"], 0.0)        # bias + ReLU (order per module)
    return y * layer["s"] + layer["t"]          # folded BatchNorm (eval)


def _maxpool_3x3_s2_p1(x):
    """MaxPool2d(kernel=3, stride=2, padding=1); -inf padding never wins a max
    (matches PyTorch's exclusion of padding)."""
    return lax.reduce_window(
        x, -jnp.inf, lax.max,
        window_dimensions=(1, 3, 3, 1),
        window_strides=(1, 2, 2, 1),
        padding=((0, 0), (1, 1), (1, 1), (0, 0)))


_CONV_CFG = (
    ("conv1", 4, 5, True),
    ("conv2", 1, 2, True),
    ("conv3", 1, 1, False),
    ("conv4", 1, 0, False),
    ("conv5", 1, 0, True),
)


def alexnet2d_forward(x_nchw, params):
    n = x_nchw.shape[0]
    x = jnp.transpose(x_nchw, (0, 2, 3, 1))                 # NCHW -> NHWC
    for name, stride, pad, pool in _CONV_CFG:
        x = _conv_relu_bn(x, params[name], stride=stride, pad=pad)
        if pool:
            x = _maxpool_3x3_s2_p1(x)
    # torch.flatten(x, 1) flattens the NCHW feature map channel-major.
    feat = jnp.transpose(x, (0, 3, 1, 2)).reshape(n, -1)
    fc = params["fc"]
    assert feat.shape[1] == fc["w1"].shape[0], (feat.shape, fc["w1"].shape)
    logits = fused_fc_stack(feat, fc)
    return logits[:, :fc["num_classes"]]


# ----------------------------------------------------------------------------
# One-time parameter preparation (outside the forward pass)
# ----------------------------------------------------------------------------
def _quantize_per_channel(w):
    """w: (K, Nout) f32 -> (int8 weights, (1, Nout) f32 per-output-column scale)."""
    amax = jnp.max(jnp.abs(w), axis=0, keepdims=True)
    scale = jnp.maximum(amax, 1e-30) / 127.0
    wq = jnp.clip(jnp.round(w / scale), -127.0, 127.0).astype(jnp.int8)
    return wq, scale.astype(jnp.float32)


def prepare_params(raw):
    """Fold BatchNorm (eval), move conv weights to HWIO, quantise the FC stack
    to int8 with per-output-channel scales, pack [scale; bias] per FC layer,
    and pad the classifier head to a multiple of 128 lanes."""
    out = {}
    for i, name in enumerate(("conv1", "conv2", "conv3", "conv4", "conv5"), 1):
        w, b = raw[name]                                     # (Cout, Cin, kH, kW)
        gamma, beta, mean, var, eps = raw[f"bn{i}"]
        scale = gamma / jnp.sqrt(var + eps)
        shift = beta - mean * scale
        out[name] = dict(
            w=jnp.transpose(w, (2, 3, 1, 0)).astype(jnp.float32),   # HWIO
            b=b.astype(jnp.float32),
            s=scale.astype(jnp.float32),
            t=shift.astype(jnp.float32),
        )

    fc = {}
    for i, name in enumerate(("fc1", "fc2", "fc3"), 1):
        w, b = raw[name]                                     # torch layout (Nout, K)
        wq, s = _quantize_per_channel(jnp.transpose(w).astype(jnp.float32))
        fc[f"w{i}"] = wq                                      # (K, Nout) int8
        fc[f"a{i}"] = jnp.concatenate(
            [s, b.reshape(1, -1).astype(jnp.float32)], axis=0)  # (2, Nout) f32

    ncls = fc["w3"].shape[1]
    ncls_pad = ((ncls + 127) // 128) * 128
    if ncls_pad != ncls:
        fc["w3"] = jnp.pad(fc["w3"], ((0, 0), (0, ncls_pad - ncls)))
        fc["a3"] = jnp.pad(fc["a3"], ((0, 0), (0, ncls_pad - ncls)))
    fc["num_classes"] = int(ncls)
    out["fc"] = fc
    return out


# ----------------------------------------------------------------------------
# Deterministic parameter initialization (matches the module's shapes)
# ----------------------------------------------------------------------------
def init_params(key, in_channels, num_classes, in_width):
    keys = iter(jax.random.split(key, 64))

    def conv(cin, cout, k):
        w = jax.random.normal(next(keys), (cout, cin, k, k), jnp.float32)
        w = w * (1.0 / (k * k * cin) ** 0.5)
        b = jax.random.normal(next(keys), (cout,), jnp.float32) * 0.01
        return w, b

    def bn(c):
        gamma = jax.random.uniform(next(keys), (c,), jnp.float32, 0.5, 1.5)
        beta = jax.random.normal(next(keys), (c,), jnp.float32) * 0.1
        mean = jax.random.normal(next(keys), (c,), jnp.float32) * 0.1
        var = jax.random.uniform(next(keys), (c,), jnp.float32, 0.5, 1.5)
        return (gamma, beta, mean, var, 1e-5)

    def lin(cin, cout):
        w = jax.random.normal(next(keys), (cout, cin), jnp.float32) * (1.0 / cin ** 0.5)
        b = jax.random.normal(next(keys), (cout,), jnp.float32) * 0.01
        return w, b

    # same width arithmetic as the PyTorch __init__
    w_ = (in_width - 1) // 4 + 1
    w_ = (w_ - 1) // 2 + 1
    w_ = (w_ - 1) // 2 + 1
    w_ = (w_ - 1) // 2 + 1

    return {
        "conv1": conv(in_channels, 96, 11), "bn1": bn(96),
        "conv2": conv(96, 256, 5),          "bn2": bn(256),
        "conv3": conv(256, 384, 3),         "bn3": bn(384),
        "conv4": conv(384, 384, 1),         "bn4": bn(384),
        "conv5": conv(384, 256, 1),         "bn5": bn(256),
        "fc1": lin(w_ * 256, 4096),
        "fc2": lin(4096, 4096),
        "fc3": lin(4096, num_classes),
    }


if __name__ == "__main__":
    key = jax.random.PRNGKey(0)
    kx, kp = jax.random.split(key)

    N, Cin, H, W = 2, 4, 16, 16
    num_classes = 128

    x = jax.random.normal(kx, (N, Cin, H, W), jnp.float32)   # NCHW
    raw_params = init_params(kp, Cin, num_classes, in_width=W)
    params = prepare_params(raw_params)   # one-time: fold BN, int8-quantise, pack

    fwd = jax.jit(lambda xx: alexnet2d_forward(xx, params))
    out = fwd(x)
    jax.block_until_ready(out)
    assert out.shape == (N, num_classes), out.shape
    assert bool(jnp.all(jnp.isfinite(out)))
    print("KERNEL_OK")
</pallas_src>

<mosaic_0001>
module attributes {stable_mosaic.version = 11 : i64} {
  func.func @_fc_stack_kernel(%arg0: i32, %arg1: memref<2x256xf32, #tpu.memory_space<vmem>>, %arg2: memref<256x1024xi8, #tpu.memory_space<vmem>>, %arg3: memref<4096x1024xi8, #tpu.memory_space<vmem>>, %arg4: memref<4096x128xi8, #tpu.memory_space<vmem>>, %arg5: memref<2x1024xf32, #tpu.memory_space<vmem>>, %arg6: memref<2x1024xf32, #tpu.memory_space<vmem>>, %arg7: memref<2x128xf32, #tpu.memory_space<vmem>>, %arg8: memref<2x128xf32, #tpu.memory_space<vmem>>, %arg9: memref<4x2x1024xbf16, #tpu.memory_space<vmem>>, %arg10: memref<4x2x1024xbf16, #tpu.memory_space<vmem>>) attributes {dimension_semantics = [#tpu.dimension_semantics<arbitrary>], iteration_bounds = array<i64: 9>, scalar_prefetch = 0 : i64, scratch_operands = 2 : i64, tpu.core_type = #tpu.core_type<tc>, window_params = [{pipeline_mode = #tpu.pipeline_mode<synchronous>, transform_indices = @transform_0, window_bounds = array<i64: 2, 256>}, {transform_indices = @transform_1, window_bounds = array<i64: 256, 1024>}, {transform_indices = @transform_2, window_bounds = array<i64: 4096, 1024>}, {transform_indices = @transform_3, window_bounds = array<i64: 4096, 128>}, {transform_indices = @transform_4, window_bounds = array<i64: 2, 1024>}, {transform_indices = @transform_5, window_bounds = array<i64: 2, 1024>}, {transform_indices = @transform_6, window_bounds = array<i64: 2, 128>}, {transform_indices = @transform_7, window_bounds = array<i64: 2, 128>}]} {
    %c4_i32 = arith.constant 4 : i32
    %0 = arith.cmpi slt, %arg0, %c4_i32 : i32
    %1 = arith.extui %0 : i1 to i32
    %c0_i32 = arith.constant 0 : i32
    %2 = arith.cmpi ne, %1, %c0_i32 : i32
    scf.if %2 {
      %c0 = arith.constant 0 : index
      %c0_4 = arith.constant 0 : index
      %11 = vector.load %arg2[%c0, %c0_4] : memref<256x1024xi8, #tpu.memory_space<vmem>>, vector<256x1024xi8>
      %12 = arith.sitofp %11 : vector<256x1024xi8> to vector<256x1024xbf16>
      %c0_5 = arith.constant 0 : index
      %c0_6 = arith.constant 0 : index
      %13 = vector.load %arg1[%c0_5, %c0_6] : memref<2x256xf32, #tpu.memory_space<vmem>>, vector<2x256xf32>
      %14 = arith.truncf %13 : vector<2x256xf32> to vector<2x256xbf16>
      %cst = arith.constant dense<0.000000e+00> : vector<2x1024xf32>
      %15 = tpu.matmul %14, %12, %cst {dimension_numbers = #tpu.dot_dimension_numbers<[1], [0], [0], [1], [0, 0, 1, 1], [], []>} : vector<2x256xbf16>, vector<256x1024xbf16>, vector<2x1024xf32> -> vector<2x1024xf32>
      %c0_7 = arith.constant 0 : index
      %c0_8 = arith.constant 0 : index
      %16 = vector.load %arg5[%c0_7, %c0_8] : memref<2x1024xf32, #tpu.memory_space<vmem>>, vector<1x1024xf32>
      %17 = vector.broadcast %16 : vector<1x1024xf32> to vector<2x1024xf32>
      %18 = arith.mulf %15, %17 : vector<2x1024xf32>
      %c1 = arith.constant 1 : index
      %c0_9 = arith.constant 0 : index
      %19 = vector.load %arg5[%c1, %c0_9] : memref<2x1024xf32, #tpu.memory_space<vmem>>, vector<1x1024xf32>
      %20 = vector.broadcast %19 : vector<1x1024xf32> to vector<2x1024xf32>
      %21 = arith.addf %18, %20 : vector<2x1024xf32>
      %cst_10 = arith.constant 0.000000e+00 : f32
      %22 = vector.broadcast %cst_10 : f32 to vector<2x1024xf32>
      %23 = arith.maximumf %21, %22 : vector<2x1024xf32>
      %24 = arith.truncf %23 : vector<2x1024xf32> to vector<2x1024xbf16>
      %25 = arith.index_cast %arg0 : i32 to index
      %c0_11 = arith.constant 0 : index
      %c0_12 = arith.constant 0 : index
      %26 = vector.load %arg9[%25, %c0_11, %c0_12] : memref<4x2x1024xbf16, #tpu.memory_space<vmem>>, vector<1x2x1024xbf16>
      %27 = vector.shape_cast %26 : vector<1x2x1024xbf16> to vector<2x1024xbf16>
      %28 = vector.shape_cast %24 : vector<2x1024xbf16> to vector<1x2x1024xbf16>
      tpu.vector_store %arg9[%25, %c0_11, %c0_12], %28 {strides = array<i32>} : memref<4x2x1024xbf16, #tpu.memory_space<vmem>>, vector<1x2x1024xbf16>,
    } else {
    }
    %c4_i32_0 = arith.constant 4 : i32
    %3 = arith.cmpi sge, %arg0, %c4_i32_0 : i32
    %c8_i32 = arith.constant 8 : i32
    %4 = arith.cmpi slt, %arg0, %c8_i32 : i32
    %5 = arith.andi %3, %4 : i1
    %6 = arith.extui %5 : i1 to i32
    %c0_i32_1 = arith.constant 0 : i32
    %7 = arith.cmpi ne, %6, %c0_i32_1 : i32
    scf.if %7 {
      %cst = arith.constant 0.000000e+00 : f32
      %11 = vector.broadcast %cst : f32 to vector<2x1024xf32>
      %c0 = arith.constant 0 : index
      %c0_4 = arith.constant 0 : index
      %12 = vector.load %arg3[%c0, %c0_4] : memref<4096x1024xi8, #tpu.memory_space<vmem>>, vector<1024x1024xi8>
      %13 = arith.sitofp %12 : vector<1024x1024xi8> to vector<1024x1024xbf16>
      %c0_5 = arith.constant 0 : index
      %c0_6 = arith.constant 0 : index
      %c0_7 = arith.constant 0 : index
      %14 = vector.load %arg9[%c0_5, %c0_6, %c0_7] : memref<4x2x1024xbf16, #tpu.memory_space<vmem>>, vector<1x2x1024xbf16>
      %15 = vector.shape_cast %14 : vector<1x2x1024xbf16> to vector<2x1024xbf16>
      %cst_8 = arith.constant dense<0.000000e+00> : vector<2x1024xf32>
      %16 = tpu.matmul %15, %13, %cst_8 {dimension_numbers = #tpu.dot_dimension_numbers<[1], [0], [0], [1], [0, 0, 1, 1], [], []>} : vector<2x1024xbf16>, vector<1024x1024xbf16>, vector<2x1024xf32> -> vector<2x1024xf32>
      %17 = arith.addf %11, %16 : vector<2x1024xf32>
      %c1024 = arith.constant 1024 : index
      %c0_9 = arith.constant 0 : index
      %18 = vector.load %arg3[%c1024, %c0_9] : memref<4096x1024xi8, #tpu.memory_space<vmem>>, vector<1024x1024xi8>
      %19 = arith.sitofp %18 : vector<1024x1024xi8> to vector<1024x1024xbf16>
      %c1 = arith.constant 1 : index
      %c0_10 = arith.constant 0 : index
      %c0_11 = arith.constant 0 : index
      %20 = vector.load %arg9[%c1, %c0_10, %c0_11] : memref<4x2x1024xbf16, #tpu.memory_space<vmem>>, vector<1x2x1024xbf16>
      %21 = vector.shape_cast %20 : vector<1x2x1024xbf16> to vector<2x1024xbf16>
      %cst_12 = arith.constant dense<0.000000e+00> : vector<2x1024xf32>
      %22 = tpu.matmul %21, %19, %cst_12 {dimension_numbers = #tpu.dot_dimension_numbers<[1], [0], [0], [1], [0, 0, 1, 1], [], []>} : vector<2x1024xbf16>, vector<1024x1024xbf16>, vector<2x1024xf32> -> vector<2x1024xf32>
      %23 = arith.addf %17, %22 : vector<2x1024xf32>
      %c2048 = arith.constant 2048 : index
      %c0_13 = arith.constant 0 : index
      %24 = vector.load %arg3[%c2048, %c0_13] : memref<4096x1024xi8, #tpu.memory_space<vmem>>, vector<1024x1024xi8>
      %25 = arith.sitofp %24 : vector<1024x1024xi8> to vector<1024x1024xbf16>
      %c2 = arith.constant 2 : index
      %c0_14 = arith.constant 0 : index
      %c0_15 = arith.constant 0 : index
      %26 = vector.load %arg9[%c2, %c0_14, %c0_15] : memref<4x2x1024xbf16, #tpu.memory_space<vmem>>, vector<1x2x1024xbf16>
      %27 = vector.shape_cast %26 : vector<1x2x1024xbf16> to vector<2x1024xbf16>
      %cst_16 = arith.constant dense<0.000000e+00> : vector<2x1024xf32>
      %28 = tpu.matmul %27, %25, %cst_16 {dimension_numbers = #tpu.dot_dimension_numbers<[1], [0], [0], [1], [0, 0, 1, 1], [], []>} : vector<2x1024xbf16>, vector<1024x1024xbf16>, vector<2x1024xf32> -> vector<2x1024xf32>
      %29 = arith.addf %23, %28 : vector<2x1024xf32>
      %c3072 = arith.constant 3072 : index
      %c0_17 = arith.constant 0 : index
      %30 = vector.load %arg3[%c3072, %c0_17] : memref<4096x1024xi8, #tpu.memory_space<vmem>>, vector<1024x1024xi8>
      %31 = arith.sitofp %30 : vector<1024x1024xi8> to vector<1024x1024xbf16>
      %c3 = arith.constant 3 : index
      %c0_18 = arith.constant 0 : index
      %c0_19 = arith.constant 0 : index
      %32 = vector.load %arg9[%c3, %c0_18, %c0_19] : memref<4x2x1024xbf16, #tpu.memory_space<vmem>>, vector<1x2x1024xbf16>
      %33 = vector.shape_cast %32 : vector<1x2x1024xbf16> to vector<2x1024xbf16>
      %cst_20 = arith.constant dense<0.000000e+00> : vector<2x1024xf32>
      %34 = tpu.matmul %33, %31, %cst_20 {dimension_numbers = #tpu.dot_dimension_numbers<[1], [0], [0], [1], [0, 0, 1, 1], [], []>} : vector<2x1024xbf16>, vector<1024x1024xbf16>, vector<2x1024xf32> -> vector<2x1024xf32>
      %35 = arith.addf %29, %34 : vector<2x1024xf32>
      %c0_21 = arith.constant 0 : index
      %c0_22 = arith.constant 0 : index
      %36 = vector.load %arg6[%c0_21, %c0_22] : memref<2x1024xf32, #tpu.memory_space<vmem>>, vector<1x1024xf32>
      %37 = vector.broadcast %36 : vector<1x1024xf32> to vector<2x1024xf32>
      %38 = arith.mulf %35, %37 : vector<2x1024xf32>
      %c1_23 = arith.constant 1 : index
      %c0_24 = arith.constant 0 : index
      %39 = vector.load %arg6[%c1_23, %c0_24] : memref<2x1024xf32, #tpu.memory_space<vmem>>, vector<1x1024xf32>
      %40 = vector.broadcast %39 : vector<1x1024xf32> to vector<2x1024xf32>
      %41 = arith.addf %38, %40 : vector<2x1024xf32>
      %cst_25 = arith.constant 0.000000e+00 : f32
      %42 = vector.broadcast %cst_25 : f32 to vector<2x1024xf32>
      %43 = arith.maximumf %41, %42 : vector<2x1024xf32>
      %44 = arith.truncf %43 : vector<2x1024xf32> to vector<2x1024xbf16>
      %c4_i32_26 = arith.constant 4 : i32
      %45 = arith.subi %arg0, %c4_i32_26 : i32
      %46 = arith.index_cast %45 : i32 to index
      %c0_27 = arith.constant 0 : index
      %c0_28 = arith.constant 0 : index
      %47 = vector.load %arg10[%46, %c0_27, %c0_28] : memref<4x2x1024xbf16, #tpu.memory_space<vmem>>, vector<1x2x1024xbf16>
      %48 = vector.shape_cast %47 : vector<1x2x1024xbf16> to vector<2x1024xbf16>
      %49 = vector.shape_cast %44 : vector<2x1024xbf16> to vector<1x2x1024xbf16>
      tpu.vector_store %arg10[%46, %c0_27, %c0_28], %49 {strides = array<i32>} : memref<4x2x1024xbf16, #tpu.memory_space<vmem>>, vector<1x2x1024xbf16>,
    } else {
    }
    %c8_i32_2 = arith.constant 8 : i32
    %8 = arith.cmpi sge, %arg0, %c8_i32_2 : i32
    %9 = arith.extui %8 : i1 to i32
    %c0_i32_3 = arith.constant 0 : i32
    %10 = arith.cmpi ne, %9, %c0_i32_3 : i32
    scf.if %10 {
      %cst = arith.constant 0.000000e+00 : f32
      %11 = vector.broadcast %cst : f32 to vector<2x128xf32>
      %c0 = arith.constant 0 : index
      %c0_4 = arith.constant 0 : index
      %12 = vector.load %arg4[%c0, %c0_4] : memref<4096x128xi8, #tpu.memory_space<vmem>>, vector<1024x128xi8>
      %13 = arith.sitofp %12 : vector<1024x128xi8> to vector<1024x128xbf16>
      %c0_5 = arith.constant 0 : index
      %c0_6 = arith.constant 0 : index
      %c0_7 = arith.constant 0 : index
      %14 = vector.load %arg10[%c0_5, %c0_6, %c0_7] : memref<4x2x1024xbf16, #tpu.memory_space<vmem>>, vector<1x2x1024xbf16>
      %15 = vector.shape_cast %14 : vector<1x2x1024xbf16> to vector<2x1024xbf16>
      %cst_8 = arith.constant dense<0.000000e+00> : vector<2x128xf32>
      %16 = tpu.matmul %15, %13, %cst_8 {dimension_numbers = #tpu.dot_dimension_numbers<[1], [0], [0], [1], [0, 0, 1, 1], [], []>} : vector<2x1024xbf16>, vector<1024x128xbf16>, vector<2x128xf32> -> vector<2x128xf32>
      %17 = arith.addf %11, %16 : vector<2x128xf32>
      %c1024 = arith.constant 1024 : index
      %c0_9 = arith.constant 0 : index
      %18 = vector.load %arg4[%c1024, %c0_9] : memref<4096x128xi8, #tpu.memory_space<vmem>>, vector<1024x128xi8>
      %19 = arith.sitofp %18 : vector<1024x128xi8> to vector<1024x128xbf16>
      %c1 = arith.constant 1 : index
      %c0_10 = arith.constant 0 : index
      %c0_11 = arith.constant 0 : index
      %20 = vector.load %arg10[%c1, %c0_10, %c0_11] : memref<4x2x1024xbf16, #tpu.memory_space<vmem>>, vector<1x2x1024xbf16>
      %21 = vector.shape_cast %20 : vector<1x2x1024xbf16> to vector<2x1024xbf16>
      %cst_12 = arith.constant dense<0.000000e+00> : vector<2x128xf32>
      %22 = tpu.matmul %21, %19, %cst_12 {dimension_numbers = #tpu.dot_dimension_numbers<[1], [0], [0], [1], [0, 0, 1, 1], [], []>} : vector<2x1024xbf16>, vector<1024x128xbf16>, vector<2x128xf32> -> vector<2x128xf32>
      %23 = arith.addf %17, %22 : vector<2x128xf32>
      %c2048 = arith.constant 2048 : index
      %c0_13 = arith.constant 0 : index
      %24 = vector.load %arg4[%c2048, %c0_13] : memref<4096x128xi8, #tpu.memory_space<vmem>>, vector<1024x128xi8>
      %25 = arith.sitofp %24 : vector<1024x128xi8> to vector<1024x128xbf16>
      %c2 = arith.constant 2 : index
      %c0_14 = arith.constant 0 : index
      %c0_15 = arith.constant 0 : index
      %26 = vector.load %arg10[%c2, %c0_14, %c0_15] : memref<4x2x1024xbf16, #tpu.memory_space<vmem>>, vector<1x2x1024xbf16>
      %27 = vector.shape_cast %26 : vector<1x2x1024xbf16> to vector<2x1024xbf16>
      %cst_16 = arith.constant dense<0.000000e+00> : vector<2x128xf32>
      %28 = tpu.matmul %27, %25, %cst_16 {dimension_numbers = #tpu.dot_dimension_numbers<[1], [0], [0], [1], [0, 0, 1, 1], [], []>} : vector<2x1024xbf16>, vector<1024x128xbf16>, vector<2x128xf32> -> vector<2x128xf32>
      %29 = arith.addf %23, %28 : vector<2x128xf32>
      %c3072 = arith.constant 3072 : index
      %c0_17 = arith.constant 0 : index
      %30 = vector.load %arg4[%c3072, %c0_17] : memref<4096x128xi8, #tpu.memory_space<vmem>>, vector<1024x128xi8>
      %31 = arith.sitofp %30 : vector<1024x128xi8> to vector<1024x128xbf16>
      %c3 = arith.constant 3 : index
      %c0_18 = arith.constant 0 : index
      %c0_19 = arith.constant 0 : index
      %32 = vector.load %arg10[%c3, %c0_18, %c0_19] : memref<4x2x1024xbf16, #tpu.memory_space<vmem>>, vector<1x2x1024xbf16>
      %33 = vector.shape_cast %32 : vector<1x2x1024xbf16> to vector<2x1024xbf16>
      %cst_20 = arith.constant dense<0.000000e+00> : vector<2x128xf32>
      %34 = tpu.matmul %33, %31, %cst_20 {dimension_numbers = #tpu.dot_dimension_numbers<[1], [0], [0], [1], [0, 0, 1, 1], [], []>} : vector<2x1024xbf16>, vector<1024x128xbf16>, vector<2x128xf32> -> vector<2x128xf32>
      %35 = arith.addf %29, %34 : vector<2x128xf32>
      %c0_21 = arith.constant 0 : index
      %c0_22 = arith.constant 0 : index
      %36 = vector.load %arg7[%c0_21, %c0_22] : memref<2x128xf32, #tpu.memory_space<vmem>>, vector<1x128xf32>
      %37 = vector.broadcast %36 : vector<1x128xf32> to vector<2x128xf32>
      %38 = arith.mulf %35, %37 : vector<2x128xf32>
      %c1_23 = arith.constant 1 : index
      %c0_24 = arith.constant 0 : index
      %39 = vector.load %arg7[%c1_23, %c0_24] : memref<2x128xf32, #tpu.memory_space<vmem>>, vector<1x128xf32>
      %40 = vector.broadcast %39 : vector<1x128xf32> to vector<2x128xf32>
      %41 = arith.addf %38, %40 : vector<2x128xf32>
      %c0_25 = arith.constant 0 : index
      %c0_26 = arith.constant 0 : index
      %42 = vector.load %arg8[%c0_25, %c0_26] : memref<2x128xf32, #tpu.memory_space<vmem>>, vector<2x128xf32>
      tpu.vector_store %arg8[%c0_25, %c0_26], %41 {strides = array<i32>} : memref<2x128xf32, #tpu.memory_space<vmem>>, vector<2x128xf32>,
    } else {
    }
    return
  }
  func.func @transform_0(%arg0: i32) -> (i32, i32) {
    %c0_i32 = arith.constant 0 : i32
    %c0_i32_0 = arith.constant 0 : i32
    %c0_i32_1 = arith.constant 0 : i32
    return %c0_i32, %c0_i32_0 : i32, i32
  }
  func.func @transform_1(%arg0: i32) -> (i32, i32) {
    %c3_i32 = arith.constant 3 : i32
    %0 = arith.minsi %arg0, %c3_i32 : i32
    %c0_i32 = arith.constant 0 : i32
    %1 = arith.maxsi %0, %c0_i32 : i32
    %c0_i32_0 = arith.constant 0 : i32
    %c0_i32_1 = arith.constant 0 : i32
    return %c0_i32_0, %1 : i32, i32
  }
  func.func @transform_2(%arg0: i32) -> (i32, i32) {
    %c4_i32 = arith.constant 4 : i32
    %0 = arith.subi %arg0, %c4_i32 : i32
    %c3_i32 = arith.constant 3 : i32
    %1 = arith.minsi %0, %c3_i32 : i32
    %c0_i32 = arith.constant 0 : i32
    %2 = arith.maxsi %1, %c0_i32 : i32
    %c0_i32_0 = arith.constant 0 : i32
    %c0_i32_1 = arith.constant 0 : i32
    return %c0_i32_0, %2 : i32, i32
  }
  func.func @transform_3(%arg0: i32) -> (i32, i32) {
    %c4_i32 = arith.constant 4 : i32
    %0 = arith.subi %arg0, %c4_i32 : i32
    %c4_i32_0 = arith.constant 4 : i32
    %1 = arith.subi %0, %c4_i32_0 : i32
    %c0_i32 = arith.constant 0 : i32
    %2 = arith.minsi %1, %c0_i32 : i32
    %c0_i32_1 = arith.constant 0 : i32
    %3 = arith.maxsi %2, %c0_i32_1 : i32
    %c0_i32_2 = arith.constant 0 : i32
    %c0_i32_3 = arith.constant 0 : i32
    return %c0_i32_2, %3 : i32, i32
  }
  func.func @transform_4(%arg0: i32) -> (i32, i32) {
    %c3_i32 = arith.constant 3 : i32
    %0 = arith.minsi %arg0, %c3_i32 : i32
    %c0_i32 = arith.constant 0 : i32
    %1 = arith.maxsi %0, %c0_i32 : i32
    %c0_i32_0 = arith.constant 0 : i32
    %c0_i32_1 = arith.constant 0 : i32
    return %c0_i32_0, %1 : i32, i32
  }
  func.func @transform_5(%arg0: i32) -> (i32, i32) {
    %c4_i32 = arith.constant 4 : i32
    %0 = arith.subi %arg0, %c4_i32 : i32
    %c3_i32 = arith.constant 3 : i32
    %1 = arith.minsi %0, %c3_i32 : i32
    %c0_i32 = arith.constant 0 : i32
    %2 = arith.maxsi %1, %c0_i32 : i32
    %c0_i32_0 = arith.constant 0 : i32
    %c0_i32_1 = arith.constant 0 : i32
    return %c0_i32_0, %2 : i32, i32
  }
  func.func @transform_6(%arg0: i32) -> (i32, i32) {
    %c4_i32 = arith.constant 4 : i32
    %0 = arith.subi %arg0, %c4_i32 : i32
    %c4_i32_0 = arith.constant 4 : i32
    %1 = arith.subi %0, %c4_i32_0 : i32
    %c0_i32 = arith.constant 0 : i32
    %2 = arith.minsi %1, %c0_i32 : i32
    %c0_i32_1 = arith.constant 0 : i32
    %3 = arith.maxsi %2, %c0_i32_1 : i32
    %c0_i32_2 = arith.constant 0 : i32
    %c0_i32_3 = arith.constant 0 : i32
    return %c0_i32_2, %3 : i32, i32
  }
  func.func @transform_7(%arg0: i32) -> (i32, i32) {
    %c4_i32 = arith.constant 4 : i32
    %0 = arith.subi %arg0, %c4_i32 : i32
    %c4_i32_0 = arith.constant 4 : i32
    %1 = arith.subi %0, %c4_i32_0 : i32
    %c0_i32 = arith.constant 0 : i32
    %2 = arith.minsi %1, %c0_i32 : i32
    %c0_i32_1 = arith.constant 0 : i32
    %3 = arith.maxsi %2, %c0_i32_1 : i32
    %c0_i32_2 = arith.constant 0 : i32
    %c0_i32_3 = arith.constant 0 : i32
    return %c0_i32_2, %3 : i32, i32
  }
}

</mosaic_0001>

<bundles_post_ra>
// kernel: _lambda_.1
= control target key start
LH: loop header
LB: loop body
LE: loop exit
PB: predicated region body
PF: predicated region fallthrough
CT: control target
= control target key end

     0   :  { %s12043_s0 = inlined_call_operand.vmem [shape: f32[2,256], index: 0, kind: input, shape index: {}]   ;;  %s12044_s1 = inlined_call_operand.vmem [shape: s8[256,4096], index: 1, kind: input, shape index: {}]   ;;  %s12045_s2 = inlined_call_operand.hbm [shape: s8[4096,4096], index: 2, kind: input, shape index: {}]   ;;  %s12046_s3 = inlined_call_operand.vmem [shape: s8[4096,128], index: 3, kind: input, shape index: {}]   ;;  %s12047_s4 = inlined_call_operand.vmem [shape: f32[2,4096], index: 4, kind: input, shape index: {}]   ;;  %s12048_s5 = inlined_call_operand.vmem [shape: f32[2,4096], index: 5, kind: input, shape index: {}]   ;;  %s12049_s6 = inlined_call_operand.vmem [shape: f32[2,128], index: 6, kind: input, shape index: {}]   ;;  %s12050_s7 = inlined_call_operand.hbm [shape: f32[2,128], index: 7, kind: output, shape index: {}]  }
   0x1   :  { %12051 = sst [smem:[#allocation11_spill]] %s12044_s1 }
   0x2   :  { %12052 = sst [smem:[#allocation12_spill]] %s12045_s2 }
   0x3   :  { %12 = vsyncpa [#allocation6], 0 }
   0x4   :  { %14 = vsyncpa [#allocation6 + $0x1], 0 }
   0x5   :  { %15 = vsyncpa [#allocation7], 0 }
   0x6   :  { %17 = vsyncpa [#allocation7 + $0x1], 0  ;;  %s9624_s24 = smov 0   ;;  %s9626_s25 = smov 0  }
   0x7   :  { %s9628_s26 = smov 0   ;;  %s9630_s27 = smov 0  }
   0x8   :  { %s9632_s28 = smov 0   ;;  %s9634_s29 = smov 0  }
   0x9 LB: > { %s9655_s30 = sadd.s32 4294967295, %s9574_s29   ;;  %s8857_s8 = sadd.s32 4294967294, %s9574_s29   ;;  %s9574_s29 = sphi %s9634_s29, %s12067_s29   ;;  %s9570_s28 = sphi %s9632_s28, %s12066_s28   ;;  %s9566_s27 = sphi %s9630_s27, %s12065_s27   ;;  %s9562_s26 = sphi %s9628_s26, %s12064_s26   ;;  %s9558_s25 = sphi %s9626_s25, %s12063_s25   ;;  %s9554_s24 = sphi %s9624_s24, %s12062_s24  }
   0xa   : > { %s9659_s9 = sadd.s32 1, %s9574_s29   ;;  %p48_p0 = scmp.lt.s32.totalorder %s9574_s29, 3 }
   0xb   : > { %p8858_p1 = scmp.gt.s32.totalorder %s9574_s29, 0  ;;  %p52_p2 = scmp.lt.s32.totalorder %s9659_s9, 3 }
   0xc   : > { %s49_s10 = scalar_select %p48_p0, %s9574_s29, 3 }
   0xd   : > { %s53_s11 = scalar_select %p52_p2, %s9659_s9, 3 }
   0xe   : > { %s12069_s10 = smov (!%p8858_p1, %s49_s10), 0  ;;  %p8863_p3 = scmp.gt.s32.totalorder %s9659_s9, 0 }
   0xf   : > { %s59_s12 = sadd.s32 1, %s9570_s28  ;;  %p66_p4 = scmp.ne.s32.totalorder %s9570_s28, %s9566_s27 }
  0x10   : > { %p67_p5 = scmp.eq.s32.totalorder %s9574_s29, 0  ;;  %s12071_s11 = smov (!%p8863_p3, %s53_s11), 0 }
  0x11   : > { %s8868_s14 = sadd.s32 4294967292, %s9574_s29  ;;  %s56_s15 = ssub.s32 %s12069_s10, %s12071_s11 }
  0x12   : > { %p9675_p6 = por %p67_p5, %p66_p4  ;;  %p83_p7 = scmp.lt.s32.totalorder %s8868_s14, 3 }
  0x13   : > { %p57_p8 = scmp.eq.s32.totalorder %s56_s15, 0  ;;  %p8869_p9 = scmp.gt.s32.totalorder %s8868_s14, 0 }
  0x14   : > { %s12073_s14 = smov (!%p83_p7, %s8868_s14), 3  ;;  %s8874_s17 = sadd.s32 4294967292, %s9659_s9 }
  0x15   : > { %s9682_s16 = scalar_select %p57_p8, %s9570_s28, %s59_s12  }
  0x16   : > { %s12075_s14 = smov (!%p8869_p9, %s12073_s14), 0  ;;  %s95_s18 = sadd.s32 1, %s9562_s26 }
  0x17   : > { %p88_p10 = scmp.lt.s32.totalorder %s8874_s17, 3  ;;  %p8875_p11 = scmp.gt.s32.totalorder %s8874_s17, 0 }
  0x18   : > { %p102_p12 = scmp.ne.s32.totalorder %s9562_s26, %s9558_s25  ;;  %p108_p13 = scmp.ne.s32.totalorder %s9558_s25, %s9554_s24 }
  0x19   : > { %s12077_s17 = smov (!%p88_p10, %s8874_s17), 3  ;;  %p109_p1 = scmp.eq.s32.totalorder %s9655_s30, 0 }
  0x1a   : > { %p9694_p0 = por %p102_p12, %p67_p5  ;;  %s12079_s17 = smov (!%p8875_p11, %s12077_s17), 0 }
  0x1b   : > { %p9699_p2 = por %p109_p1, %p108_p13  ;;  %s92_s21 = ssub.s32 %s12075_s14, %s12079_s17 }
  0x1c   : > { %p9707_p4 = scmp.eq.s32.totalorder %s8857_s8, 8  ;;  %p93_p7 = scmp.eq.s32.totalorder %s92_s21, 0 }
  0x1d   : > { %p8939_p5 = scmp.ge.s32.totalorder %s9574_s29, 9 }
  0x1e   : > { %s12056_s22 = scalar_select %p9707_p4, 1, 0 }
  0x1f   : > { %s9712_s23 = scalar_select %p93_p7, %s9562_s26, %s95_s18  }
  0x20   : > { %309 = sbr.rel (%p8939_p5) target bundleno = 110 (0x6e), region = 20 }
  0x25   : > { %312 = sbr.rel (!%p9675_p6) target bundleno = 79 (0x4f), region = 24  ;;  %s314_s24 = sand.u32 (%p9675_p6), 1, %s9570_s28  }
  0x26   : > { %s9036_s11 = sshll.u32 (%p9675_p6), %s12069_s10, 6  ;;  %s8940_s12 = sshll.u32 (%p9675_p6), %s314_s24, 9 }
  0x27   : > { %s12057_s1 = sld [smem:[#allocation11_spill]] (%p9675_p6)  ;;  %s9727_s13 = scalar_lea.vmem (%p9675_p6), [#allocation4], %s8940_s12 }
  0x2d   : > { %s9722_s8 = scalar_lea.vmem %s12057_s1, %s9036_s11 }
  0x2e   : > { %v336_v0 = vld [vmem:[%s9722_s8] sm:$0xff]  ;;  %v338_v1 = vld [vmem:[%s9722_s8 + $0x8] sm:$0xff]  ;;  %v340_v2 = vld [vmem:[%s9722_s8 + $0x10] sm:$0xff] }
  0x2f   : > { %337 = vst [vmem:[%s9727_s13] sm:$0xff] %v336_v0  ;;  %339 = vst [vmem:[%s9727_s13 + $0x8] sm:$0xff] %v338_v1  ;;  %v342_v3 = vld [vmem:[%s9722_s8 + $0x18] sm:$0xff]  ;;  %v344_v4 = vld [vmem:[%s9722_s8 + $0x20] sm:$0xff] }
  0x30   : > { %341 = vst [vmem:[%s9727_s13 + $0x10] sm:$0xff] %v340_v2  ;;  %v346_v5 = vld [vmem:[%s9722_s8 + $0x28] sm:$0xff]  ;;  %343 = vst [vmem:[%s9727_s13 + $0x18] sm:$0xff] %v342_v3  ;;  %v348_v6 = vld [vmem:[%s9722_s8 + $0x30] sm:$0xff] }
  0x31   : > { %345 = vst [vmem:[%s9727_s13 + $0x20] sm:$0xff] %v344_v4  ;;  %347 = vst [vmem:[%s9727_s13 + $0x28] sm:$0xff] %v346_v5  ;;  %v350_v7 = vld [vmem:[%s9722_s8 + $0x38] sm:$0xff]  ;;  %v352_v8 = vld [vmem:[%s9722_s8 + $0x100] sm:$0xff] }
  0x32   : > { %349 = vst [vmem:[%s9727_s13 + $0x30] sm:$0xff] %v348_v6  ;;  %351 = vst [vmem:[%s9727_s13 + $0x38] sm:$0xff] %v350_v7  ;;  %v354_v9 = vld [vmem:[%s9722_s8 + $0x108] sm:$0xff]  ;;  %v356_v10 = vld [vmem:[%s9722_s8 + $0x110] sm:$0xff] }
  0x33   : > { %353 = vst [vmem:[%s9727_s13 + $0x40] sm:$0xff] %v352_v8  ;;  %v358_v11 = vld [vmem:[%s9722_s8 + $0x118] sm:$0xff]  ;;  %355 = vst [vmem:[%s9727_s13 + $0x48] sm:$0xff] %v354_v9  ;;  %v360_v12 = vld [vmem:[%s9722_s8 + $0x120] sm:$0xff] }
  0x34   : > { %357 = vst [vmem:[%s9727_s13 + $0x50] sm:$0xff] %v356_v10  ;;  %359 = vst [vmem:[%s9727_s13 + $0x58] sm:$0xff] %v358_v11  ;;  %v362_v13 = vld [vmem:[%s9722_s8 + $0x128] sm:$0xff]  ;;  %v364_v14 = vld [vmem:[%s9722_s8 + $0x130] sm:$0xff] }
  0x35   : > { %361 = vst [vmem:[%s9727_s13 + $0x60] sm:$0xff] %v360_v12  ;;  %363 = vst [vmem:[%s9727_s13 + $0x68] sm:$0xff] %v362_v13  ;;  %v366_v15 = vld [vmem:[%s9722_s8 + $0x138] sm:$0xff]  ;;  %v368_v16 = vld [vmem:[%s9722_s8 + $0x200] sm:$0xff] }
  0x36   : > { %365 = vst [vmem:[%s9727_s13 + $0x70] sm:$0xff] %v364_v14  ;;  %v370_v17 = vld [vmem:[%s9722_s8 + $0x208] sm:$0xff]  ;;  %367 = vst [vmem:[%s9727_s13 + $0x78] sm:$0xff] %v366_v15  ;;  %v372_v18 = vld [vmem:[%s9722_s8 + $0x210] sm:$0xff] }
  0x37   : > { %369 = vst [vmem:[%s9727_s13 + $0x80] sm:$0xff] %v368_v16  ;;  %371 = vst [vmem:[%s9727_s13 + $0x88] sm:$0xff] %v370_v17  ;;  %v374_v19 = vld [vmem:[%s9722_s8 + $0x218] sm:$0xff]  ;;  %v376_v20 = vld [vmem:[%s9722_s8 + $0x220] sm:$0xff] }
  0x38   : > { %373 = vst [vmem:[%s9727_s13 + $0x90] sm:$0xff] %v372_v18  ;;  %375 = vst [vmem:[%s9727_s13 + $0x98] sm:$0xff] %v374_v19  ;;  %v378_v21 = vld [vmem:[%s9722_s8 + $0x228] sm:$0xff]  ;;  %v380_v22 = vld [vmem:[%s9722_s8 + $0x230] sm:$0xff] }
  0x39   : > { %377 = vst [vmem:[%s9727_s13 + $0xa0] sm:$0xff] %v376_v20  ;;  %v382_v23 = vld [vmem:[%s9722_s8 + $0x238] sm:$0xff]  ;;  %379 = vst [vmem:[%s9727_s13 + $0xa8] sm:$0xff] %v378_v21  ;;  %v384_v24 = vld [vmem:[%s9722_s8 + $0x300] sm:$0xff] }
  0x3a   : > { %381 = vst [vmem:[%s9727_s13 + $0xb0] sm:$0xff] %v380_v22  ;;  %383 = vst [vmem:[%s9727_s13 + $0xb8] sm:$0xff] %v382_v23  ;;  %v386_v25 = vld [vmem:[%s9722_s8 + $0x308] sm:$0xff]  ;;  %v388_v26 = vld [vmem:[%s9722_s8 + $0x310] sm:$0xff] }
  0x3b   : > { %385 = vst [vmem:[%s9727_s13 + $0xc0] sm:$0xff] %v384_v24  ;;  %387 = vst [vmem:[%s9727_s13 + $0xc8] sm:$0xff] %v386_v25  ;;  %v390_v27 = vld [vmem:[%s9722_s8 + $0x318] sm:$0xff]  ;;  %v392_v28 = vld [vmem:[%s9722_s8 + $0x320] sm:$0xff] }
  0x3c   : > { %389 = vst [vmem:[%s9727_s13 + $0xd0] sm:$0xff] %v388_v26  ;;  %v394_v29 = vld [vmem:[%s9722_s8 + $0x328] sm:$0xff]  ;;  %391 = vst [vmem:[%s9727_s13 + $0xd8] sm:$0xff] %v390_v27  ;;  %v396_v30 = vld [vmem:[%s9722_s8 + $0x330] sm:$0xff] }
  0x3d   : > { %393 = vst [vmem:[%s9727_s13 + $0xe0] sm:$0xff] %v392_v28  ;;  %395 = vst [vmem:[%s9727_s13 + $0xe8] sm:$0xff] %v394_v29  ;;  %v398_v31 = vld [vmem:[%s9722_s8 + $0x338] sm:$0xff]  ;;  %v400_v32 = vld [vmem:[%s9722_s8 + $0x400] sm:$0xff] }
  0x3e   : > { %397 = vst [vmem:[%s9727_s13 + $0xf0] sm:$0xff] %v396_v30  ;;  %399 = vst [vmem:[%s9727_s13 + $0xf8] sm:$0xff] %v398_v31  ;;  %v402_v33 = vld [vmem:[%s9722_s8 + $0x408] sm:$0xff]  ;;  %v404_v34 = vld [vmem:[%s9722_s8 + $0x410] sm:$0xff] }
  0x3f   : > { %401 = vst [vmem:[%s9727_s13 + $0x100] sm:$0xff] %v400_v32  ;;  %v406_v35 = vld [vmem:[%s9722_s8 + $0x418] sm:$0xff]  ;;  %403 = vst [vmem:[%s9727_s13 + $0x108] sm:$0xff] %v402_v33  ;;  %v408_v36 = vld [vmem:[%s9722_s8 + $0x420] sm:$0xff] }
  0x40   : > { %405 = vst [vmem:[%s9727_s13 + $0x110] sm:$0xff] %v404_v34  ;;  %407 = vst [vmem:[%s9727_s13 + $0x118] sm:$0xff] %v406_v35  ;;  %v410_v37 = vld [vmem:[%s9722_s8 + $0x428] sm:$0xff]  ;;  %v412_v38 = vld [vmem:[%s9722_s8 + $0x430] sm:$0xff] }
  0x41   : > { %409 = vst [vmem:[%s9727_s13 + $0x120] sm:$0xff] %v408_v36  ;;  %411 = vst [vmem:[%s9727_s13 + $0x128] sm:$0xff] %v410_v37  ;;  %v414_v39 = vld [vmem:[%s9722_s8 + $0x438] sm:$0xff]  ;;  %v416_v40 = vld [vmem:[%s9722_s8 + $0x500] sm:$0xff] }
  0x42   : > { %413 = vst [vmem:[%s9727_s13 + $0x130] sm:$0xff] %v412_v38  ;;  %v418_v41 = vld [vmem:[%s9722_s8 + $0x508] sm:$0xff]  ;;  %415 = vst [vmem:[%s9727_s13 + $0x138] sm:$0xff] %v414_v39  ;;  %v420_v42 = vld [vmem:[%s9722_s8 + $0x510] sm:$0xff] }
  0x43   : > { %417 = vst [vmem:[%s9727_s13 + $0x140] sm:$0xff] %v416_v40  ;;  %419 = vst [vmem:[%s9727_s13 + $0x148] sm:$0xff] %v418_v41  ;;  %v422_v43 = vld [vmem:[%s9722_s8 + $0x518] sm:$0xff]  ;;  %v424_v44 = vld [vmem:[%s9722_s8 + $0x520] sm:$0xff] }
  0x44   : > { %421 = vst [vmem:[%s9727_s13 + $0x150] sm:$0xff] %v420_v42  ;;  %423 = vst [vmem:[%s9727_s13 + $0x158] sm:$0xff] %v422_v43  ;;  %v426_v45 = vld [vmem:[%s9722_s8 + $0x528] sm:$0xff]  ;;  %v428_v46 = vld [vmem:[%s9722_s8 + $0x530] sm:$0xff] }
  0x45   : > { %425 = vst [vmem:[%s9727_s13 + $0x160] sm:$0xff] %v424_v44  ;;  %v430_v47 = vld [vmem:[%s9722_s8 + $0x538] sm:$0xff]  ;;  %427 = vst [vmem:[%s9727_s13 + $0x168] sm:$0xff] %v426_v45  ;;  %v432_v48 = vld [vmem:[%s9722_s8 + $0x600] sm:$0xff] }
  0x46   : > { %429 = vst [vmem:[%s9727_s13 + $0x170] sm:$0xff] %v428_v46  ;;  %431 = vst [vmem:[%s9727_s13 + $0x178] sm:$0xff] %v430_v47  ;;  %v434_v49 = vld [vmem:[%s9722_s8 + $0x608] sm:$0xff]  ;;  %v436_v50 = vld [vmem:[%s9722_s8 + $0x610] sm:$0xff] }
  0x47   : > { %433 = vst [vmem:[%s9727_s13 + $0x180] sm:$0xff] %v432_v48  ;;  %435 = vst [vmem:[%s9727_s13 + $0x188] sm:$0xff] %v434_v49  ;;  %v438_v51 = vld [vmem:[%s9722_s8 + $0x618] sm:$0xff]  ;;  %v440_v52 = vld [vmem:[%s9722_s8 + $0x620] sm:$0xff] }
  0x48   : > { %437 = vst [vmem:[%s9727_s13 + $0x190] sm:$0xff] %v436_v50  ;;  %v442_v53 = vld [vmem:[%s9722_s8 + $0x628] sm:$0xff]  ;;  %439 = vst [vmem:[%s9727_s13 + $0x198] sm:$0xff] %v438_v51  ;;  %v444_v54 = vld [vmem:[%s9722_s8 + $0x630] sm:$0xff] }
  0x49   : > { %441 = vst [vmem:[%s9727_s13 + $0x1a0] sm:$0xff] %v440_v52  ;;  %443 = vst [vmem:[%s9727_s13 + $0x1a8] sm:$0xff] %v442_v53  ;;  %v446_v55 = vld [vmem:[%s9722_s8 + $0x638] sm:$0xff]  ;;  %v448_v56 = vld [vmem:[%s9722_s8 + $0x700] sm:$0xff] }
  0x4a   : > { %445 = vst [vmem:[%s9727_s13 + $0x1b0] sm:$0xff] %v444_v54  ;;  %447 = vst [vmem:[%s9727_s13 + $0x1b8] sm:$0xff] %v446_v55  ;;  %v450_v57 = vld [vmem:[%s9722_s8 + $0x708] sm:$0xff]  ;;  %v452_v58 = vld [vmem:[%s9722_s8 + $0x710] sm:$0xff] }
  0x4b   : > { %449 = vst [vmem:[%s9727_s13 + $0x1c0] sm:$0xff] %v448_v56  ;;  %v454_v59 = vld [vmem:[%s9722_s8 + $0x718] sm:$0xff]  ;;  %451 = vst [vmem:[%s9727_s13 + $0x1c8] sm:$0xff] %v450_v57  ;;  %v456_v60 = vld [vmem:[%s9722_s8 + $0x720] sm:$0xff] }
  0x4c   : > { %453 = vst [vmem:[%s9727_s13 + $0x1d0] sm:$0xff] %v452_v58  ;;  %455 = vst [vmem:[%s9727_s13 + $0x1d8] sm:$0xff] %v454_v59  ;;  %v458_v61 = vld [vmem:[%s9722_s8 + $0x728] sm:$0xff]  ;;  %v460_v62 = vld [vmem:[%s9722_s8 + $0x730] sm:$0xff] }
  0x4d   : > { %457 = vst [vmem:[%s9727_s13 + $0x1e0] sm:$0xff] %v456_v60  ;;  %459 = vst [vmem:[%s9727_s13 + $0x1e8] sm:$0xff] %v458_v61  ;;  %v462_v63 = vld [vmem:[%s9722_s8 + $0x738] sm:$0xff] }
  0x4e   : > { %461 = vst [vmem:[%s9727_s13 + $0x1f0] sm:$0xff] %v460_v62  ;;  %463 = vst [vmem:[%s9727_s13 + $0x1f8] sm:$0xff] %v462_v63 }
  0x4f PF: > { %s470_s10 = sand.u32 1, %s9562_s26   ;;  %s9039_s18 = sshll.u32 %s12075_s14, 10 }
  0x50   : > { %s8948_s21 = sshll.u32 %s470_s10, 13  ;;  %s12058_s2 = sld [smem:[#allocation12_spill]] }
  0x51   : > { %s474_s15 = scalar_lea.vmem [#allocation5], %s8948_s21  ;;  %s9863_s8 = scalar_lea.sflag [#allocation6], %s470_s10 }
  0x52   : > { %s486_s17 = sshll.u32 %s474_s15, 4  ;;  %s9861_s17 = int_to_ptr.vmem [resolvable:$true] %s486_s17 }
  0x56   : > { %s9859_s12 = scalar_lea.hbm %s12058_s2, %s9039_s18  ;;  %s9474_s24 = scalar_lea.hbm %s12058_s2, 524288 }
  0x57   : > { %s9470_s13 = scalar_lea.hbm %s9859_s12, 131072  ;;  %p9475_p10 = scmp.lt.s32.totalorder %s9859_s12, %s12058_s2 }
  0x58   : > { %p9471_p6 = scmp.ne.s32.totalorder %s9859_s12, %s9470_s13  ;;  %p9476_p11 = scmp.lt.s32.totalorder %s9474_s24, %s9470_s13 }
  0x5a   : > { %p9472_p8 = pnand %p9471_p6, %p9694_p0  ;;  %p9477_p12 = por %p9476_p11, %p9475_p10 }
  0x5c   : > { %p9473_p9 = pneg %p9472_p8 }
  0x5e   : > { %p9478_p13 = pnand %p9477_p12, %p9473_p9 }
  0x60   : > { %9481 = shalt.err (!%p9478_p13)
}
  0x61   : > { %s9482_s10 = scalar_lea.vmem %s9861_s17, 131072  ;;  %s9576_s21 = smov [#allocation5]  }
  0x62   : > { %p9483_p1 = scmp.ne.s32.totalorder %s9861_s17, %s9482_s10  ;;  %s9486_s1 = sshll.u32 %s9576_s21, 4  ;;  %s9487_s1 = int_to_ptr.vmem [resolvable:$false] %s9486_s1 }
  0x63   : > { %s9488_s15 = scalar_lea.vmem %s9487_s1, 262144  ;;  %p9489_p6 = scmp.lt.s32.totalorder %s9861_s17, %s9487_s1 }
  0x64   : > { %p9484_p7 = pnand %p9483_p1, %p9694_p0  ;;  %p9490_p8 = scmp.lt.s32.totalorder %s9488_s15, %s9482_s10 }
  0x66   : > { %p9485_p5 = pneg %p9484_p7  ;;  %p9491_p3 = por %p9490_p8, %p9489_p6 }
  0x68   : > { %p9492_p4 = pnand %p9491_p3, %p9485_p5 }
  0x6a   : > { %9495 = shalt.err (!%p9492_p4)
}
  0x6b   : > { %s9577_s13 = smov 4096   ;;  %s9578_s14 = smov 1024  }
  0x6c   : > { %s9579_s24 = smov 64  }
  0x6d   : > { %9396 = dma.hbm_to_vmem [thread:$0]  (%p9694_p0), %s9859_s12, 131072, %s9861_s17, %s9863_s8, %s9577_s13, %s9578_s14, %s9579_s24  }
  0x6e PF: > { %p8957_p9 = scmp.ge.s32.totalorder %s9574_s29, 1  ;;  %p564_p10 = scmp.lt.s32.totalorder %s9574_s29, 10 }
  0x70   : > { %p565_p11 = pnand %p8957_p9, %p564_p10 }
  0x71   : > { %s571_s18 = sand.u32 (!%p565_p11), 1, %s9566_s27   ;;  %s577_s11 = sand.u32 (!%p565_p11), 1, %s9558_s25  }
  0x72   : > { %568 = sbr.rel (%p565_p11) target bundleno = 3244 (0xcac), region = 67  ;;  %s8958_s10 = sshll.u32 (!%p565_p11), %s571_s18, 9 }
  0x73   : > { %s8959_s21 = sshll.u32 (!%p565_p11), %s577_s11, 13  ;;  %s9890_s1 = scalar_lea.vmem (!%p565_p11), [#allocation4], %s8958_s10 }
  0x74   : > { %s578_s15 = scalar_lea.sflag (!%p565_p11), [#allocation6], %s577_s11  ;;  %s9892_s2 = scalar_lea.vmem (!%p565_p11), [#allocation5], %s8959_s21 }
  0x77   : > { %9545 = dma.done.wait (%p9699_p2), %s578_s15, 131072  }
  0x78   : > { %9547 = vsyncadd (%p9699_p2), %s578_s15, 4294836224  ;;  %p678_p0 = scmp.lt.s32.totalorder %s9655_s30, 3  ;;  %p8968_p3 = scmp.gt.s32.totalorder %s9655_s30, 0 }
  0x79   : > { %s9901_s27 = sadd.s32 4294967292, %s9655_s30  ;;  %p8990_p1 = scmp.ge.s32.totalorder %s9655_s30, 4 }
  0x7a   : > { %s679_s19 = scalar_select %p678_p0, %s9655_s30, 3 }
  0x7b   : > { %p693_p4 = scmp.lt.s32.totalorder %s9901_s27, 3  ;;  %p8976_p12 = scmp.gt.s32.totalorder %s9901_s27, 0 }
  0x7c   : > { %s12081_s19 = smov (!%p8968_p3, %s679_s19), 0 }
  0x7d   : > { %s694_s12 = scalar_select %p693_p4, %s9901_s27, 3 }
  0x7e   : > { %s8973_s17 = sshll.u32 %s12081_s19, 3 }
  0x7f   : > { %p683_p13 = scmp.lt.s32.totalorder %s8973_s17, 31  ;;  %s12083_s12 = smov (!%p8976_p12, %s694_s12), 0 }
  0x80   : > { %s8981_s20 = sshll.u32 %s12083_s12, 3 }
  0x81   : > { %s12085_s17 = smov (!%p683_p13, %s8973_s17), 31  ;;  %p698_p2 = scmp.lt.s32.totalorder %s8981_s20, 31 }
  0x82   : > { %s8974_s8 = sshll.u32 %s12085_s17, 1  ;;  %731 = sbr.rel (%p8990_p1) target bundleno = 478 (0x1de), region = 79 }
  0x83   : > { %s9910_s24 = scalar_lea.vmem %s12047_s4, %s8974_s8  ;;  %s12087_s20 = smov (!%p698_p2, %s8981_s20), 31 }
  0x84   : > { %s8982_s18 = sshll.u32 %s12087_s20, 1 }
  0x85   : > { %s9915_s21 = scalar_lea.vmem %s12048_s5, %s8982_s18 }
  0x87   : > { %v757_v0 = vld [vmem:[%s9890_s1 + $0xc8] sm:$0xff]  ;;  %v759_v1 = vld [vmem:[%s9890_s1 + $0xd8] sm:$0xff]  ;;  %v756_v2 = vld [vmem:[%s9890_s1 + $0xc0] sm:$0xff] }
  0x88   : > { %v845_v3 = vunpack.c.l.s8.bf16 %v757_v0  ;;  %v853_v4 = vunpack.c.h.s8.bf16 %v757_v0  ;;  %v847_v5 = vunpack.c.l.s8.bf16 %v759_v1  ;;  %v855_v6 = vunpack.c.h.s8.bf16 %v759_v1  ;;  %v758_v7 = vld [vmem:[%s9890_s1 + $0xd0] sm:$0xff]  ;;  %v749_v10 = vld [vmem:[%s9890_s1 + $0x88] sm:$0xff]  ;;  %v751_v11 = vld [vmem:[%s9890_s1 + $0x98] sm:$0xff] }
  0x89   : > { %v852_v8 = vunpack.c.h.s8.bf16 %v756_v2  ;;  %v854_v9 = vunpack.c.h.s8.bf16 %v758_v7  ;;  %v844_v12 = vunpack.c.l.s8.bf16 %v756_v2  ;;  %v846_v13 = vunpack.c.l.s8.bf16 %v758_v7  ;;  %v748_v16 = vld [vmem:[%s9890_s1 + $0x80] sm:$0xff]  ;;  %v750_v17 = vld [vmem:[%s9890_s1 + $0x90] sm:$0xff]  ;;  %v741_v22 = vld [vmem:[%s9890_s1 + $0x48] sm:$0xff] }
  0x8a   : > { %938 = vmatprep.subr.bf16.mxu0 %v853_v4  ;;  %979 = vmatprep.subr.bf16.mxu1 %v855_v6  ;;  %v837_v14 = vunpack.c.h.s8.bf16 %v749_v10  ;;  %v839_v15 = vunpack.c.h.s8.bf16 %v751_v11  ;;  %v836_v18 = vunpack.c.h.s8.bf16 %v748_v16  ;;  %v838_v19 = vunpack.c.h.s8.bf16 %v750_v17  ;;  %v743_v23 = vld [vmem:[%s9890_s1 + $0x58] sm:$0xff]  ;;  %v740_v28 = vld [vmem:[%s9890_s1 + $0x40] sm:$0xff]  ;;  %v742_v29 = vld [vmem:[%s9890_s1 + $0x50] sm:$0xff] }
  0x8b   : > { %939 = vmatpush1.bf16.msra.mxu0 %v852_v8  ;;  %980 = vmatpush1.bf16.msra.mxu1 %v854_v9  ;;  %v829_v20 = vunpack.c.l.s8.bf16 %v749_v10  ;;  %v831_v21 = vunpack.c.l.s8.bf16 %v751_v11  ;;  %v828_v24 = vunpack.c.l.s8.bf16 %v748_v16  ;;  %v830_v25 = vunpack.c.l.s8.bf16 %v750_v17  ;;  %v9935_v30 = vld.sshfl [vmem:[%s12043_s0] sm:$0x33 pattern:$0x76325410]  ;;  %v733_v36 = vld [vmem:[%s9890_s1 + $0x8] sm:$0xff]  ;;  %v735_v37 = vld [vmem:[%s9890_s1 + $0x18] sm:$0xff] }
  0x8c   : > { %940 = vmatprep.subr.bf16.mxu0 %v845_v3  ;;  %981 = vmatprep.subr.bf16.mxu1 %v847_v5  ;;  %v821_v26 = vunpack.c.h.s8.bf16 %v741_v22  ;;  %v823_v27 = vunpack.c.h.s8.bf16 %v743_v23  ;;  %v820_v31 = vunpack.c.h.s8.bf16 %v740_v28  ;;  %v822_v32 = vunpack.c.h.s8.bf16 %v742_v29  ;;  %v732_v43 = vld [vmem:[%s9890_s1] sm:$0xff]  ;;  %v734_v44 = vld [vmem:[%s9890_s1 + $0x10] sm:$0xff]  ;;  %v789_v49 = vld [vmem:[%s9890_s1 + $0x1c8] sm:$0xff] }
  0x8d   : > { %v813_v33 = vunpack.c.l.s8.bf16 %v741_v22  ;;  %v815_v34 = vunpack.c.l.s8.bf16 %v743_v23  ;;  %v933_v35 = vcombine.high %v9935_v30, %v9935_v30  ;;  %v812_v39 = vunpack.c.l.s8.bf16 %v740_v28  ;;  %v791_v50 = vld [vmem:[%s9890_s1 + $0x1d8] sm:$0xff]  ;;  %v788_v55 = vld [vmem:[%s9890_s1 + $0x1c0] sm:$0xff]  ;;  %v790_v56 = vld [vmem:[%s9890_s1 + $0x1d0] sm:$0xff] }
  0x8e   : > { %v814_v40 = vunpack.c.l.s8.bf16 %v742_v29  ;;  %v805_v41 = vunpack.c.h.s8.bf16 %v733_v36  ;;  %v807_v42 = vunpack.c.h.s8.bf16 %v735_v37  ;;  %v804_v45 = vunpack.c.h.s8.bf16 %v732_v43  ;;  %v781_v61 = vld [vmem:[%s9890_s1 + $0x188] sm:$0xff]  ;;  %v783_v62 = vld [vmem:[%s9890_s1 + $0x198] sm:$0xff]  ;;  %v780_v3 = vld [vmem:[%s9890_s1 + $0x180] sm:$0xff] }
  0x8f   : > { %941 = vmatpush1.bf16.msra.mxu0 %v844_v12  ;;  %982 = vmatpush1.bf16.msra.mxu1 %v846_v13  ;;  %v9941_v38 = vpack.c.bf16 %v933_v35, %v933_v35  ;;  %v806_v46 = vunpack.c.h.s8.bf16 %v734_v44  ;;  %v797_v47 = vunpack.c.l.s8.bf16 %v733_v36  ;;  %v799_v48 = vunpack.c.l.s8.bf16 %v735_v37  ;;  %v782_v4 = vld [vmem:[%s9890_s1 + $0x190] sm:$0xff]  ;;  %v773_v9 = vld [vmem:[%s9890_s1 + $0x148] sm:$0xff]  ;;  %v775_v10 = vld [vmem:[%s9890_s1 + $0x158] sm:$0xff] }
  0x90   : > { %942 = vmatprep.subr.bf16.mxu0 %v837_v14  ;;  %983 = vmatprep.subr.bf16.mxu1 %v839_v15  ;;  %v796_v51 = vunpack.c.l.s8.bf16 %v732_v43  ;;  %v798_v52 = vunpack.c.l.s8.bf16 %v734_v44  ;;  %v917_v53 = vunpack.c.h.s8.bf16 %v789_v49  ;;  %v919_v54 = vunpack.c.h.s8.bf16 %v791_v50  ;;  %v772_v15 = vld [vmem:[%s9890_s1 + $0x140] sm:$0xff]  ;;  %v774_v16 = vld [vmem:[%s9890_s1 + $0x150] sm:$0xff]  ;;  %v767_v22 = vld [vmem:[%s9890_s1 + $0x118] sm:$0xff] }
  0x91   : > { %970 = vmatprep.mubr.bf16.mxu0 %v9941_v38  ;;  %1011 = vmatprep.mubr.bf16.mxu1 %v9941_v38  ;;  %v916_v57 = vunpack.c.h.s8.bf16 %v788_v55  ;;  %v918_v58 = vunpack.c.h.s8.bf16 %v790_v56  ;;  %v909_v59 = vunpack.c.l.s8.bf16 %v789_v49  ;;  %v911_v60 = vunpack.c.l.s8.bf16 %v791_v50  ;;  %v766_v28 = vld [vmem:[%s9890_s1 + $0x110] sm:$0xff]  ;;  %v763_v35 = vld [vmem:[%s9890_s1 + $0xf8] sm:$0xff] }
  0x92   : > { %v908_v63 = vunpack.c.l.s8.bf16 %v788_v55  ;;  %v910_v0 = vunpack.c.l.s8.bf16 %v790_v56  ;;  %v901_v1 = vunpack.c.h.s8.bf16 %v781_v61  ;;  %v903_v2 = vunpack.c.h.s8.bf16 %v783_v62  ;;  %v755_v49 = vld [vmem:[%s9890_s1 + $0xb8] sm:$0xff] }
  0x93   : > { %943 = vmatpush1.bf16.msra.mxu0 %v836_v18  ;;  %984 = vmatpush1.bf16.msra.mxu1 %v838_v19  ;;  %v900_v5 = vunpack.c.h.s8.bf16 %v780_v3  ;;  %v902_v6 = vunpack.c.h.s8.bf16 %v782_v4  ;;  %v893_v7 = vunpack.c.l.s8.bf16 %v781_v61  ;;  %v895_v8 = vunpack.c.l.s8.bf16 %v783_v62 }
  0x94   : > { %944 = vmatprep.subr.bf16.mxu0 %v829_v20  ;;  %985 = vmatprep.subr.bf16.mxu1 %v831_v21  ;;  %v892_v11 = vunpack.c.l.s8.bf16 %v780_v3  ;;  %v894_v12 = vunpack.c.l.s8.bf16 %v782_v4  ;;  %v885_v13 = vunpack.c.h.s8.bf16 %v773_v9  ;;  %v887_v14 = vunpack.c.h.s8.bf16 %v775_v10  ;;  %v765_v21 = vld [vmem:[%s9890_s1 + $0x108] sm:$0xff] }
  0x95   : > { %v884_v17 = vunpack.c.h.s8.bf16 %v772_v15  ;;  %v886_v18 = vunpack.c.h.s8.bf16 %v774_v16  ;;  %v877_v19 = vunpack.c.l.s8.bf16 %v773_v9  ;;  %v879_v20 = vunpack.c.l.s8.bf16 %v775_v10 }
  0x96   : > { %v876_v23 = vunpack.c.l.s8.bf16 %v772_v15  ;;  %v862_v37 = vunpack.c.l.s8.bf16 %v766_v28  ;;  %v9969_v43 = vpack.c.bf16 %v9935_v30, %v9935_v30 }
  0x97   : > { %945 = vmatpush1.bf16.msra.mxu0 %v828_v24  ;;  %986 = vmatpush1.bf16.msra.mxu1 %v830_v25  ;;  %v878_v24 = vunpack.c.l.s8.bf16 %v774_v16  ;;  %v869_v25 = vunpack.c.h.s8.bf16 %v765_v21 }
  0x98   : > { %946 = vmatprep.subr.bf16.mxu0 %v821_v26  ;;  %987 = vmatprep.subr.bf16.mxu1 %v823_v27  ;;  %v871_v26 = vunpack.c.h.s8.bf16 %v767_v22  ;;  %v764_v27 = vld [vmem:[%s9890_s1 + $0x100] sm:$0xff] }
  0x99   : > { %v868_v29 = vunpack.c.h.s8.bf16 %v764_v27  ;;  %v860_v36 = vunpack.c.l.s8.bf16 %v764_v27 }
  0x9b   : > { %947 = vmatpush1.bf16.msra.mxu0 %v820_v31  ;;  %988 = vmatpush1.bf16.msra.mxu1 %v822_v32  ;;  %v870_v31 = vunpack.c.h.s8.bf16 %v766_v28  ;;  %v861_v32 = vunpack.c.l.s8.bf16 %v765_v21 }
  0x9c   : > { %948 = vmatprep.subr.bf16.mxu0 %v813_v33  ;;  %989 = vmatprep.subr.bf16.mxu1 %v815_v34  ;;  %v863_v33 = vunpack.c.l.s8.bf16 %v767_v22  ;;  %v761_v34 = vld [vmem:[%s9890_s1 + $0xe8] sm:$0xff] }
  0x9f   : > { %949 = vmatpush1.bf16.msra.mxu0 %v812_v39  ;;  %990 = vmatpush1.bf16.msra.mxu1 %v814_v40  ;;  %v857_v39 = vunpack.c.h.s8.bf16 %v761_v34  ;;  %v859_v40 = vunpack.c.h.s8.bf16 %v763_v35 }
  0xa0   : > { %950 = vmatprep.subr.bf16.mxu0 %v805_v41  ;;  %991 = vmatprep.subr.bf16.mxu1 %v807_v42  ;;  %v760_v41 = vld [vmem:[%s9890_s1 + $0xe0] sm:$0xff]  ;;  %v762_v42 = vld [vmem:[%s9890_s1 + $0xf0] sm:$0xff] }
  0xa1   : > { %v856_v44 = vunpack.c.h.s8.bf16 %v760_v41  ;;  %v848_v30 = vunpack.c.l.s8.bf16 %v760_v41  ;;  %v850_v50 = vunpack.c.l.s8.bf16 %v762_v42 }
  0xa3   : > { %951 = vmatpush1.bf16.msra.mxu0 %v804_v45  ;;  %992 = vmatpush1.bf16.msra.mxu1 %v806_v46  ;;  %v858_v45 = vunpack.c.h.s8.bf16 %v762_v42  ;;  %v849_v46 = vunpack.c.l.s8.bf16 %v761_v34 }
  0xa4   : > { %952 = vmatprep.subr.bf16.mxu0 %v797_v47  ;;  %993 = vmatprep.subr.bf16.mxu1 %v799_v48  ;;  %v851_v47 = vunpack.c.l.s8.bf16 %v763_v35  ;;  %v753_v48 = vld [vmem:[%s9890_s1 + $0xa8] sm:$0xff] }
  0xa7   : > { %953 = vmatpush1.bf16.msra.mxu0 %v796_v51  ;;  %994 = vmatpush1.bf16.msra.mxu1 %v798_v52  ;;  %v841_v51 = vunpack.c.h.s8.bf16 %v753_v48  ;;  %v843_v52 = vunpack.c.h.s8.bf16 %v755_v49 }
  0xa8   : > { %954 = vmatprep.subr.bf16.mxu0 %v917_v53  ;;  %995 = vmatprep.subr.bf16.mxu1 %v919_v54  ;;  %v752_v53 = vld [vmem:[%s9890_s1 + $0xa0] sm:$0xff]  ;;  %v754_v54 = vld [vmem:[%s9890_s1 + $0xb0] sm:$0xff] }
  0xa9   : > { %v840_v55 = vunpack.c.h.s8.bf16 %v752_v53  ;;  %v842_v56 = vunpack.c.h.s8.bf16 %v754_v54  ;;  %v832_v61 = vunpack.c.l.s8.bf16 %v752_v53  ;;  %v834_v62 = vunpack.c.l.s8.bf16 %v754_v54 }
  0xab   : > { %955 = vmatpush2.bf16.msra.mxu0 %v916_v57  ;;  %996 = vmatpush2.bf16.msra.mxu1 %v918_v58  ;;  %v833_v57 = vunpack.c.l.s8.bf16 %v753_v48  ;;  %v835_v58 = vunpack.c.l.s8.bf16 %v755_v49 }
  0xac   : > { %956 = vmatprep.subr.bf16.mxu0 %v909_v59  ;;  %997 = vmatprep.subr.bf16.mxu1 %v911_v60  ;;  %v745_v59 = vld [vmem:[%s9890_s1 + $0x68] sm:$0xff]  ;;  %v747_v60 = vld [vmem:[%s9890_s1 + $0x78] sm:$0xff] }
  0xad   : > { %v817_v4 = vunpack.c.l.s8.bf16 %v745_v59 }
  0xaf   : > { %957 = vmatpush2.bf16.msra.mxu0 %v908_v63  ;;  %998 = vmatpush2.bf16.msra.mxu1 %v910_v0  ;;  %v827_v63 = vunpack.c.h.s8.bf16 %v747_v60  ;;  %v744_v0 = vld [vmem:[%s9890_s1 + $0x60] sm:$0xff] }
  0xb0   : > { %958 = vmatprep.subr.bf16.mxu0 %v901_v1  ;;  %999 = vmatprep.subr.bf16.mxu1 %v903_v2  ;;  %v746_v1 = vld [vmem:[%s9890_s1 + $0x70] sm:$0xff]  ;;  %v824_v2 = vunpack.c.h.s8.bf16 %v744_v0 }
  0xb1   : > { %v826_v3 = vunpack.c.h.s8.bf16 %v746_v1  ;;  %v818_v9 = vunpack.c.l.s8.bf16 %v746_v1 }
  0xb3   : > { %959 = vmatpush2.bf16.msra.mxu0 %v900_v5  ;;  %1000 = vmatpush2.bf16.msra.mxu1 %v902_v6  ;;  %v819_v5 = vunpack.c.l.s8.bf16 %v747_v60  ;;  %v737_v6 = vld [vmem:[%s9890_s1 + $0x28] sm:$0xff] }
  0xb4   : > { %960 = vmatprep.subr.bf16.mxu0 %v893_v7  ;;  %1001 = vmatprep.subr.bf16.mxu1 %v895_v8  ;;  %v739_v7 = vld [vmem:[%s9890_s1 + $0x38] sm:$0xff]  ;;  %v816_v8 = vunpack.c.l.s8.bf16 %v744_v0  ;;  %v809_v10 = vunpack.c.h.s8.bf16 %v737_v6  ;;  %v801_v16 = vunpack.c.l.s8.bf16 %v737_v6 }
  0xb7   : > { %961 = vmatpush2.bf16.msra.mxu0 %v892_v11  ;;  %1002 = vmatpush2.bf16.msra.mxu1 %v894_v12  ;;  %v811_v11 = vunpack.c.h.s8.bf16 %v739_v7  ;;  %v736_v12 = vld [vmem:[%s9890_s1 + $0x20] sm:$0xff] }
  0xb8   : > { %962 = vmatprep.subr.bf16.mxu0 %v885_v13  ;;  %1003 = vmatprep.subr.bf16.mxu1 %v887_v14  ;;  %v738_v13 = vld [vmem:[%s9890_s1 + $0x30] sm:$0xff]  ;;  %v808_v14 = vunpack.c.h.s8.bf16 %v736_v12 }
  0xb9   : > { %v810_v15 = vunpack.c.h.s8.bf16 %v738_v13  ;;  %v802_v21 = vunpack.c.l.s8.bf16 %v738_v13 }
  0xbb   : > { %963 = vmatpush2.bf16.msra.mxu0 %v884_v17  ;;  %1004 = vmatpush2.bf16.msra.mxu1 %v886_v18  ;;  %v803_v17 = vunpack.c.l.s8.bf16 %v739_v7  ;;  %v793_v18 = vld [vmem:[%s9890_s1 + $0x1e8] sm:$0xff] }
  0xbc   : > { %964 = vmatprep.subr.bf16.mxu0 %v877_v19  ;;  %1005 = vmatprep.subr.bf16.mxu1 %v879_v20  ;;  %v795_v19 = vld [vmem:[%s9890_s1 + $0x1f8] sm:$0xff]  ;;  %v800_v20 = vunpack.c.l.s8.bf16 %v736_v12  ;;  %v921_v22 = vunpack.c.h.s8.bf16 %v793_v18  ;;  %v913_v28 = vunpack.c.l.s8.bf16 %v793_v18  ;;  %v8992_v12 = vld [vmem:[%s9910_s24 + $0x1] ss:$2 sm:$0xff] }
  0xbf   : > { %965 = vmatpush2.bf16.msra.mxu0 %v876_v23  ;;  %1006 = vmatpush2.bf16.msra.mxu1 %v878_v24  ;;  %v923_v23 = vunpack.c.h.s8.bf16 %v795_v19  ;;  %v792_v24 = vld [vmem:[%s9890_s1 + $0x1e0] sm:$0xff] }
  0xc0   : > { %966 = vmatprep.subr.bf16.mxu0 %v869_v25  ;;  %1007 = vmatprep.subr.bf16.mxu1 %v871_v26  ;;  %v794_v25 = vld [vmem:[%s9890_s1 + $0x1f0] sm:$0xff]  ;;  %v920_v26 = vunpack.c.h.s8.bf16 %v792_v24 }
  0xc1   : > { %v922_v27 = vunpack.c.h.s8.bf16 %v794_v25  ;;  %v914_v34 = vunpack.c.l.s8.bf16 %v794_v25 }
  0xc3   : > { %967 = vmatpush2.bf16.msra.mxu0 %v868_v29  ;;  %1008 = vmatpush2.bf16.msra.mxu1 %v870_v31  ;;  %v915_v29 = vunpack.c.l.s8.bf16 %v795_v19  ;;  %v785_v31 = vld [vmem:[%s9890_s1 + $0x1a8] sm:$0xff] }
  0xc4   : > { %968 = vmatprep.subr.bf16.mxu0 %v861_v32  ;;  %1009 = vmatprep.subr.bf16.mxu1 %v863_v33  ;;  %v787_v32 = vld [vmem:[%s9890_s1 + $0x1b8] sm:$0xff]  ;;  %v912_v33 = vunpack.c.l.s8.bf16 %v792_v24  ;;  %v905_v35 = vunpack.c.h.s8.bf16 %v785_v31  ;;  %v897_v42 = vunpack.c.l.s8.bf16 %v785_v31 }
  0xc7   : > { %969 = vmatpush2.bf16.msra.mxu0 %v860_v36  ;;  %1010 = vmatpush2.bf16.msra.mxu1 %v862_v37  ;;  %v907_v36 = vunpack.c.h.s8.bf16 %v787_v32  ;;  %v784_v37 = vld [vmem:[%s9890_s1 + $0x1a0] sm:$0xff] }
  0xc8   : > { %1020 = vmatprep.subr.bf16.mxu0 %v857_v39  ;;  %1061 = vmatprep.subr.bf16.mxu1 %v859_v40  ;;  %v786_v39 = vld [vmem:[%s9890_s1 + $0x1b0] sm:$0xff]  ;;  %v904_v40 = vunpack.c.h.s8.bf16 %v784_v37 }
  0xc9   : > { %v906_v41 = vunpack.c.h.s8.bf16 %v786_v39  ;;  %v898_v48 = vunpack.c.l.s8.bf16 %v786_v39 }
  0xca   : > { %971 = vmatmul.mubr.bf16.vlgmr.msra.gmra.mxu0 %v9969_v43  ;;  %1012 = vmatmul.mubr.bf16.vlgmr.msra.gmra.mxu1 %v9969_v43 }
  0xcb   : > { %1021 = vmatpush1.bf16.msra.mxu0 %v856_v44  ;;  %1062 = vmatpush1.bf16.msra.mxu1 %v858_v45  ;;  %v899_v44 = vunpack.c.l.s8.bf16 %v787_v32  ;;  %v777_v45 = vld [vmem:[%s9890_s1 + $0x168] sm:$0xff] }
  0xcc   : > { %1022 = vmatprep.subr.bf16.mxu0 %v849_v46  ;;  %1063 = vmatprep.subr.bf16.mxu1 %v851_v47  ;;  %v779_v46 = vld [vmem:[%s9890_s1 + $0x178] sm:$0xff]  ;;  %v896_v47 = vunpack.c.l.s8.bf16 %v784_v37  ;;  %v889_v49 = vunpack.c.h.s8.bf16 %v777_v45  ;;  %v881_v54 = vunpack.c.l.s8.bf16 %v777_v45 }
  0xcd   : > { %1052 = vmatprep.mubr.bf16.mxu0 %v9941_v38  ;;  %1093 = vmatprep.mubr.bf16.mxu1 %v9941_v38  ;;  %v825_v38 = vunpack.c.h.s8.bf16 %v745_v59 }
  0xcf   : > { %1023 = vmatpush1.bf16.msra.mxu0 %v848_v30  ;;  %1064 = vmatpush1.bf16.msra.mxu1 %v850_v50  ;;  %v891_v30 = vunpack.c.h.s8.bf16 %v779_v46  ;;  %v776_v50 = vld [vmem:[%s9890_s1 + $0x160] sm:$0xff] }
  0xd0   : > { %1024 = vmatprep.subr.bf16.mxu0 %v841_v51  ;;  %1065 = vmatprep.subr.bf16.mxu1 %v843_v52  ;;  %v778_v51 = vld [vmem:[%s9890_s1 + $0x170] sm:$0xff]  ;;  %v888_v52 = vunpack.c.h.s8.bf16 %v776_v50 }
  0xd1   : > { %v890_v53 = vunpack.c.h.s8.bf16 %v778_v51  ;;  %v882_v59 = vunpack.c.l.s8.bf16 %v778_v51 }
  0xd3   : > { %1025 = vmatpush1.bf16.msra.mxu0 %v840_v55  ;;  %1066 = vmatpush1.bf16.msra.mxu1 %v842_v56  ;;  %v883_v55 = vunpack.c.l.s8.bf16 %v779_v46  ;;  %v769_v56 = vld [vmem:[%s9890_s1 + $0x128] sm:$0xff] }
  0xd4   : > { %1026 = vmatprep.subr.bf16.mxu0 %v833_v57  ;;  %1067 = vmatprep.subr.bf16.mxu1 %v835_v58  ;;  %v771_v57 = vld [vmem:[%s9890_s1 + $0x138] sm:$0xff]  ;;  %v880_v58 = vunpack.c.l.s8.bf16 %v776_v50  ;;  %v873_v60 = vunpack.c.h.s8.bf16 %v769_v56  ;;  %v865_v1 = vunpack.c.l.s8.bf16 %v769_v56 }
  0xd7   : > { %1027 = vmatpush1.bf16.msra.mxu0 %v832_v61  ;;  %1068 = vmatpush1.bf16.msra.mxu1 %v834_v62  ;;  %v875_v61 = vunpack.c.h.s8.bf16 %v771_v57  ;;  %v768_v62 = vld [vmem:[%s9890_s1 + $0x120] sm:$0xff] }
  0xd8   : > { %1028 = vmatprep.subr.bf16.mxu0 %v825_v38  ;;  %1069 = vmatprep.subr.bf16.mxu1 %v827_v63  ;;  %v770_v38 = vld [vmem:[%s9890_s1 + $0x130] sm:$0xff]  ;;  %v872_v63 = vunpack.c.h.s8.bf16 %v768_v62  ;;  %s8997_s1 = sshll.u32 %s9655_s30, 3 }
  0xd9   : > { %v874_v0 = vunpack.c.h.s8.bf16 %v770_v38  ;;  %s1278_s12 = scalar_lea.vmem [#allocation2], %s8997_s1 }
  0xdb   : > { %1029 = vmatpush1.bf16.msra.mxu0 %v824_v2  ;;  %1070 = vmatpush1.bf16.msra.mxu1 %v826_v3  ;;  %v867_v2 = vunpack.c.l.s8.bf16 %v771_v57  ;;  %v864_v3 = vunpack.c.l.s8.bf16 %v768_v62 }
  0xdc   : > { %1030 = vmatprep.subr.bf16.mxu0 %v817_v4  ;;  %1071 = vmatprep.subr.bf16.mxu1 %v819_v5  ;;  %v866_v4 = vunpack.c.l.s8.bf16 %v770_v38  ;;  %v1104_v5 = vlaneseq }
  0xde   : > { %v1105_v6 = vshrl.u32 %v1104_v5, 7 }
  0xdf   : > { %1031 = vmatpush1.bf16.msra.mxu0 %v816_v8  ;;  %1072 = vmatpush1.bf16.msra.mxu1 %v818_v9  ;;  %v1102_v9 = vld [vmem:[%s9910_s24] ss:$2 sm:$0xff] }
  0xe0   : > { %1032 = vmatprep.subr.bf16.mxu0 %v809_v10  ;;  %1073 = vmatprep.subr.bf16.mxu1 %v811_v11  ;;  %v1106_v7 = vsub.s32 0, %v1105_v6  ;;  %v1114_v8 = vsub.s32 2, %v1105_v6  ;;  %v1110_v10 = vsub.s32 1, %v1105_v6  ;;  %v1118_v11 = vsub.s32 3, %v1105_v6 }
  0xe1   : > { %v1122_v51 = vsub.s32 4, %v1105_v6 }
  0xe2   : > { %v1107_v13 = vrot.slane %v1102_v9, %v1106_v7  ;;  %v1166_v18 = vrot.slane %v8992_v12, %v1114_v8  ;;  %v1111_v19 = vrot.slane %v1102_v9, %v1110_v10  ;;  %v1162_v24 = vrot.slane %v8992_v12, %v1110_v10 }
  0xe3   : > { %1033 = vmatpush1.bf16.msra.mxu0 %v808_v14  ;;  %1074 = vmatpush1.bf16.msra.mxu1 %v810_v15  ;;  %v1115_v14 = vrot.slane %v1102_v9, %v1114_v8  ;;  %v9580_v15 = vmov 1966171168   ;;  %v1170_v25 = vrot.slane %v8992_v12, %v1118_v11  ;;  %v1174_v57 = vrot.slane %v8992_v12, %v1122_v51 }
  0xe4   : > { %1034 = vmatprep.subr.bf16.mxu0 %v801_v16  ;;  %1075 = vmatprep.subr.bf16.mxu1 %v803_v17  ;;  %v1232_v16 = vunpack.c.l.s4 %v9580_v15  ;;  %v1158_v17 = vrot.slane %v8992_v12, %v1106_v7 }
  0xe7   : > { %1035 = vmatpush1.bf16.msra.mxu0 %v800_v20  ;;  %1076 = vmatpush1.bf16.msra.mxu1 %v802_v21  ;;  %v1119_v20 = vrot.slane %v1102_v9, %v1118_v11 }
  0xe8   : > { %1036 = vmatprep.subr.bf16.mxu0 %v921_v22  ;;  %1077 = vmatprep.subr.bf16.mxu1 %v923_v23 }
  0xeb   : > { %1037 = vmatpush2.bf16.msra.mxu0 %v920_v26  ;;  %1078 = vmatpush2.bf16.msra.mxu1 %v922_v27  ;;  %v1233_v27 = vunpack.c.0.s8 %v1232_v16 }
  0xec   : > { %1038 = vmatprep.subr.bf16.mxu0 %v913_v28  ;;  %1079 = vmatprep.subr.bf16.mxu1 %v915_v29 }
  0xed   : > { %v1236_v45 = vsub.s32 %v1233_v27, %v1105_v6 }
  0xef   : > { %1039 = vmatpush2.bf16.msra.mxu0 %v912_v33  ;;  %1080 = vmatpush2.bf16.msra.mxu1 %v914_v34 }
  0xf0   : > { %1040 = vmatprep.subr.bf16.mxu0 %v905_v35  ;;  %1081 = vmatprep.subr.bf16.mxu1 %v907_v36 }
  0xf3   : > { %1041 = vmatpush2.bf16.msra.mxu0 %v904_v40  ;;  %1082 = vmatpush2.bf16.msra.mxu1 %v906_v41 }
  0xf4   : > { %1042 = vmatprep.subr.bf16.mxu0 %v897_v42  ;;  %1083 = vmatprep.subr.bf16.mxu1 %v899_v44 }
  0xf7   : > { %1043 = vmatpush2.bf16.msra.mxu0 %v896_v47  ;;  %1084 = vmatpush2.bf16.msra.mxu1 %v898_v48 }
  0xf8   : > { %1044 = vmatprep.subr.bf16.mxu0 %v889_v49  ;;  %1085 = vmatprep.subr.bf16.mxu1 %v891_v30 }
  0xfb   : > { %1045 = vmatpush2.bf16.msra.mxu0 %v888_v52  ;;  %1086 = vmatpush2.bf16.msra.mxu1 %v890_v53  ;;  %v1130_v52 = vsub.s32 6, %v1105_v6  ;;  %v1126_v53 = vsub.s32 5, %v1105_v6 }
  0xfc   : > { %1046 = vmatprep.subr.bf16.mxu0 %v881_v54  ;;  %1087 = vmatprep.subr.bf16.mxu1 %v883_v55  ;;  %v1134_v54 = vsub.s32 7, %v1105_v6  ;;  %v1123_v55 = vrot.slane %v1102_v9, %v1122_v51 }
  0xfd   : > { %v1131_v56 = vrot.slane %v1102_v9, %v1130_v52 }
  0xff   : > { %1047 = vmatpush2.bf16.msra.mxu0 %v880_v58  ;;  %1088 = vmatpush2.bf16.msra.mxu1 %v882_v59  ;;  %v1182_v58 = vrot.slane %v8992_v12, %v1130_v52  ;;  %v1127_v59 = vrot.slane %v1102_v9, %v1126_v53 }
 0x100   : > { %1048 = vmatprep.subr.bf16.mxu0 %v873_v60  ;;  %1089 = vmatprep.subr.bf16.mxu1 %v875_v61  ;;  %v1135_v60 = vrot.slane %v1102_v9, %v1134_v54 }
 0x103   : > { %1049 = vmatpush2.bf16.msra.mxu0 %v872_v63  ;;  %1090 = vmatpush2.bf16.msra.mxu1 %v874_v0  ;;  %v1178_v0 = vrot.slane %v8992_v12, %v1126_v53 }
 0x104   : > { %1050 = vmatprep.subr.bf16.mxu0 %v865_v1  ;;  %1091 = vmatprep.subr.bf16.mxu1 %v867_v2  ;;  %v1186_v1 = vrot.slane %v8992_v12, %v1134_v54 }
 0x107   : > { %1051 = vmatpush2.bf16.msra.mxu0 %v864_v3  ;;  %1092 = vmatpush2.bf16.msra.mxu1 %v866_v4 }
 0x10a   : > { %1053 = vmatmul.mubr.bf16.vlgmr.msra.gmra.mxu0 %v9969_v43  ;;  %1094 = vmatmul.mubr.bf16.vlgmr.msra.gmra.mxu1 %v9969_v43 }
 0x18a   : > { %v972_v21 = vpop.f32.mrf.mxu0  ;;  %v1013_v22 = vpop.f32.mrf.mxu1 }
 0x18b   : > { %v1144_v23 = vmul.f32 %v1107_v13, %v972_v21  ;;  %v1146_v43 = vmul.f32 %v1115_v14, %v1013_v22 }
 0x18c   : > { %v974_v26 = vpop.f32.mrf.mxu0  ;;  %v1015_v28 = vpop.f32.mrf.mxu1 }
 0x18d   : > { %v1195_v29 = vadd.f32 %v1158_v17, %v1144_v23  ;;  %v1197_v31 = vadd.f32 %v1166_v18, %v1146_v43  ;;  %v1145_v32 = vmul.f32 %v1111_v19, %v974_v26  ;;  %v1147_v33 = vmul.f32 %v1119_v20, %v1015_v28 }
 0x18e   : > { %v976_v34 = vpop.f32.mrf.mxu0  ;;  %v1017_v35 = vpop.f32.mrf.mxu1 }
 0x18f   : > { %v1203_v36 = vmax.f32 %v1195_v29, 0.0  ;;  %v1205_v37 = vmax.f32 %v1197_v31, 0.0  ;;  %v1196_v39 = vadd.f32 %v1162_v24, %v1145_v32  ;;  %v1198_v40 = vadd.f32 %v1170_v25, %v1147_v33 }
 0x190   : > { %v977_v41 = vpop.f32.mrf.mxu0  ;;  %v1018_v42 = vpop.f32.mrf.mxu1 }
 0x191   : > { %v1204_v44 = vmax.f32 %v1196_v39, 0.0  ;;  %v1206_v46 = vmax.f32 %v1198_v40, 0.0 }
 0x193   : > { %v8993_v47 = vpack.c.bf16 %v1204_v44, %v1203_v36  ;;  %v8994_v48 = vpack.c.bf16 %v1206_v46, %v1205_v37 }
 0x195   : > { %v1237_v49 = vrot.slane %v8993_v47, %v1236_v45  ;;  %v1244_v30 = vrot.slane %v8994_v48, %v1236_v45 }
 0x197   : > { %v1259_v50 = vcombine.low %v1237_v49, %v1244_v30 }
 0x199   : > { %v1267_v23 = vrot.slane %v1259_v50, %v1236_v45 }
 0x1ca   : > { %v1054_v61 = vpop.f32.mrf.mxu0  ;;  %v1095_v62 = vpop.f32.mrf.mxu1 }
 0x1cb   : > { %v1148_v38 = vmul.f32 %v1123_v55, %v1054_v61  ;;  %v1150_v63 = vmul.f32 %v1131_v56, %v1095_v62 }
 0x1cc   : > { %v1056_v2 = vpop.f32.mrf.mxu0  ;;  %v1097_v3 = vpop.f32.mrf.mxu1 }
 0x1cd   : > { %v1199_v4 = vadd.f32 %v1174_v57, %v1148_v38  ;;  %v1201_v5 = vadd.f32 %v1182_v58, %v1150_v63  ;;  %v1149_v7 = vmul.f32 %v1127_v59, %v1056_v2  ;;  %v1151_v8 = vmul.f32 %v1135_v60, %v1097_v3 }
 0x1ce   : > { %v1058_v6 = vpop.f32.mrf.mxu0  ;;  %v1099_v10 = vpop.f32.mrf.mxu1 }
 0x1cf   : > { %v1200_v11 = vadd.f32 %v1178_v0, %v1149_v7  ;;  %v1202_v13 = vadd.f32 %v1186_v1, %v1151_v8  ;;  %v1207_v9 = vmax.f32 %v1199_v4, 0.0  ;;  %v1209_v16 = vmax.f32 %v1201_v5, 0.0 }
 0x1d0   : > { %v1059_v14 = vpop.f32.mrf.mxu0  ;;  %v1100_v15 = vpop.f32.mrf.mxu1 }
 0x1d1   : > { %v1208_v17 = vmax.f32 %v1200_v11, 0.0  ;;  %v1210_v18 = vmax.f32 %v1202_v13, 0.0 }
 0x1d3   : > { %v8995_v19 = vpack.c.bf16 %v1208_v17, %v1207_v9  ;;  %v8996_v20 = vpack.c.bf16 %v1210_v18, %v1209_v16 }
 0x1d5   : > { %v1251_v12 = vrot.slane %v8995_v19, %v1236_v45  ;;  %v1258_v21 = vrot.slane %v8996_v20, %v1236_v45 }
 0x1d7   : > { %v1260_v22 = vcombine.low %v1251_v12, %v1258_v21 }
 0x1d9   : > { %v1274_v43 = vrot.slane %v1260_v22, %v1236_v45 }
 0x1db   : > { %v1275_v24 = vcombine.low %v1267_v23, %v1274_v43 }
 0x1dd   : > { %1279 = vst [vmem:[%s1278_s12] sm:$0xff] %v1275_v24 }
 0x1de PF: > { %p1281_p7 = scmp.lt.s32.totalorder %s9655_s30, 8 }
 0x1e0   : > { %p1282_p5 = pnand %p8990_p1, %p1281_p7 }
 0x1e2   : > { %1285 = sbr.rel (%p1282_p5) target bundleno = 2756 (0xac4), region = 83 }
 0x1e7   : > { %v2080_v25 = vld [vmem:[%s9892_s2 + $0x8c8] sm:$0xff]  ;;  %v2079_v27 = vld [vmem:[%s9892_s2 + $0x8c0] sm:$0xff]  ;;  %v2830_v57 = vlaneseq  ;;  %v9581_v62 = vmov 1966171168  }
 0x1e8   : > { %v2144_v26 = vld [vmem:[%s9892_s2 + $0xac8] sm:$0xff]  ;;  %v2360_v28 = vunpack.c.l.s8.bf16 %v2080_v25  ;;  %v2368_v29 = vunpack.c.h.s8.bf16 %v2080_v25  ;;  %v2143_v33 = vld [vmem:[%s9892_s2 + $0xac0] sm:$0xff]  ;;  %v2367_v34 = vunpack.c.h.s8.bf16 %v2079_v27  ;;  %v2359_v39 = vunpack.c.l.s8.bf16 %v2079_v27 }
 0x1e9   : > { %v2488_v31 = vunpack.c.l.s8.bf16 %v2144_v26  ;;  %v2496_v32 = vunpack.c.h.s8.bf16 %v2144_v26  ;;  %v2495_v35 = vunpack.c.h.s8.bf16 %v2143_v33  ;;  %v2072_v36 = vld [vmem:[%s9892_s2 + $0x888] sm:$0xff]  ;;  %v2487_v40 = vunpack.c.l.s8.bf16 %v2143_v33  ;;  %v2071_v44 = vld [vmem:[%s9892_s2 + $0x880] sm:$0xff] }
 0x1ea   : > { %v2136_v37 = vld [vmem:[%s9892_s2 + $0xa88] sm:$0xff]  ;;  %2883 = vmatprep.subr.bf16.mxu0 %v2368_v29  ;;  %v2352_v41 = vunpack.c.h.s8.bf16 %v2072_v36  ;;  %v2135_v45 = vld [vmem:[%s9892_s2 + $0xa80] sm:$0xff]  ;;  %v2351_v46 = vunpack.c.h.s8.bf16 %v2071_v44  ;;  %v2344_v48 = vunpack.c.l.s8.bf16 %v2072_v36  ;;  %v2343_v51 = vunpack.c.l.s8.bf16 %v2071_v44 }
 0x1eb   : > { %2924 = vmatprep.subr.bf16.mxu1 %v2496_v32  ;;  %2884 = vmatpush1.bf16.msra.mxu0 %v2367_v34  ;;  %v2480_v42 = vunpack.c.h.s8.bf16 %v2136_v37  ;;  %v2479_v47 = vunpack.c.h.s8.bf16 %v2135_v45  ;;  %v2472_v49 = vunpack.c.l.s8.bf16 %v2136_v37  ;;  %v2064_v30 = vld [vmem:[%s9892_s2 + $0x848] sm:$0xff]  ;;  %v2471_v52 = vunpack.c.l.s8.bf16 %v2135_v45  ;;  %v2063_v55 = vld [vmem:[%s9892_s2 + $0x840] sm:$0xff] }
 0x1ec   : > { %2925 = vmatpush1.bf16.msra.mxu1 %v2495_v35  ;;  %2885 = vmatprep.subr.bf16.mxu0 %v2360_v28  ;;  %v2128_v50 = vld [vmem:[%s9892_s2 + $0xa48] sm:$0xff]  ;;  %v2336_v53 = vunpack.c.h.s8.bf16 %v2064_v30  ;;  %v2127_v56 = vld [vmem:[%s9892_s2 + $0xa40] sm:$0xff]  ;;  %v2335_v58 = vunpack.c.h.s8.bf16 %v2063_v55  ;;  %v2328_v60 = vunpack.c.l.s8.bf16 %v2064_v30  ;;  %v2828_v38 = vunpack.c.l.s4 %v9581_v62 }
 0x1ed   : > { %2926 = vmatprep.subr.bf16.mxu1 %v2488_v31  ;;  %v2464_v54 = vunpack.c.h.s8.bf16 %v2128_v50  ;;  %v2463_v59 = vunpack.c.h.s8.bf16 %v2127_v56  ;;  %v2456_v61 = vunpack.c.l.s8.bf16 %v2128_v50  ;;  %v10025_v63 = vshrl.u32 %v2830_v57, 7  ;;  %v2056_v0 = vld [vmem:[%s9892_s2 + $0x808] sm:$0xff]  ;;  %v2055_v6 = vld [vmem:[%s9892_s2 + $0x800] sm:$0xff] }
 0x1ee   : > { %v2120_v1 = vld [vmem:[%s9892_s2 + $0xa08] sm:$0xff]  ;;  %v2829_v2 = vunpack.c.0.s8 %v2828_v38  ;;  %v2327_v3 = vunpack.c.l.s8.bf16 %v2063_v55  ;;  %v2455_v4 = vunpack.c.l.s8.bf16 %v2127_v56  ;;  %v2320_v7 = vunpack.c.h.s8.bf16 %v2056_v0  ;;  %v2119_v10 = vld [vmem:[%s9892_s2 + $0xa00] sm:$0xff] }
 0x1ef   : > { %2886 = vmatpush1.bf16.msra.mxu0 %v2359_v39  ;;  %v10029_v5 = vld [vmem:[#allocation2 + $0x8] sm:$0xff]  ;;  %v2448_v8 = vunpack.c.h.s8.bf16 %v2120_v1  ;;  %v2319_v14 = vunpack.c.h.s8.bf16 %v2055_v6  ;;  %v2447_v15 = vunpack.c.h.s8.bf16 %v2119_v10  ;;  %v2312_v9 = vunpack.c.l.s8.bf16 %v2056_v0  ;;  %v2111_v43 = vld [vmem:[%s9892_s2 + $0x9c0] sm:$0xff] }
 0x1f0   : > { %2927 = vmatpush1.bf16.msra.mxu1 %v2487_v40  ;;  %2887 = vmatprep.subr.bf16.mxu0 %v2352_v41  ;;  %v10034_v11 = vsub.s32 %v2829_v2, %v10025_v63  ;;  %v2440_v16 = vunpack.c.l.s8.bf16 %v2120_v1  ;;  %v2112_v18 = vld [vmem:[%s9892_s2 + $0x9c8] sm:$0xff]  ;;  %v2311_v12 = vunpack.c.l.s8.bf16 %v2055_v6  ;;  %v2439_v21 = vunpack.c.l.s8.bf16 %v2119_v10  ;;  %v2175_v24 = vld [vmem:[%s9892_s2 + $0xbc0] sm:$0xff] }
 0x1f1   : > { %2928 = vmatprep.subr.bf16.mxu1 %v2480_v42  ;;  %v2176_v19 = vld [vmem:[%s9892_s2 + $0xbc8] sm:$0xff]  ;;  %v2432_v22 = vunpack.c.h.s8.bf16 %v2112_v18  ;;  %v2431_v26 = vunpack.c.h.s8.bf16 %v2111_v43  ;;  %v2559_v27 = vunpack.c.h.s8.bf16 %v2175_v24  ;;  %v2424_v28 = vunpack.c.l.s8.bf16 %v2112_v18  ;;  %v2103_v37 = vld [vmem:[%s9892_s2 + $0x980] sm:$0xff] }
 0x1f2   : > { %v10038_v13 = vrot.slane %v10029_v5, %v10034_v11  ;;  %v2560_v23 = vunpack.c.h.s8.bf16 %v2176_v19  ;;  %v2552_v29 = vunpack.c.l.s8.bf16 %v2176_v19  ;;  %v2104_v31 = vld [vmem:[%s9892_s2 + $0x988] sm:$0xff]  ;;  %v2423_v33 = vunpack.c.l.s8.bf16 %v2111_v43  ;;  %v2167_v39 = vld [vmem:[%s9892_s2 + $0xb80] sm:$0xff] }
 0x1f3   : > { %2888 = vmatpush1.bf16.msra.mxu0 %v2351_v46  ;;  %v2168_v32 = vld [vmem:[%s9892_s2 + $0xb88] sm:$0xff]  ;;  %v2551_v34 = vunpack.c.l.s8.bf16 %v2175_v24  ;;  %v2416_v35 = vunpack.c.h.s8.bf16 %v2104_v31  ;;  %v2415_v40 = vunpack.c.h.s8.bf16 %v2103_v37  ;;  %v2543_v41 = vunpack.c.h.s8.bf16 %v2167_v39  ;;  %v2095_v50 = vld [vmem:[%s9892_s2 + $0x940] sm:$0xff] }
 0x1f4   : > { %2929 = vmatpush1.bf16.msra.mxu1 %v2479_v47  ;;  %2889 = vmatprep.subr.bf16.mxu0 %v2344_v48  ;;  %v2841_v17 = vcombine.high %v10038_v13, %v10038_v13  ;;  %v2544_v36 = vunpack.c.h.s8.bf16 %v2168_v32  ;;  %v2408_v42 = vunpack.c.l.s8.bf16 %v2104_v31  ;;  %v2536_v44 = vunpack.c.l.s8.bf16 %v2168_v32  ;;  %v2096_v45 = vld [vmem:[%s9892_s2 + $0x948] sm:$0xff]  ;;  %v2087_v38 = vld [vmem:[%s9892_s2 + $0x900] sm:$0xff] }
 0x1f5   : > { %2930 = vmatprep.subr.bf16.mxu1 %v2472_v49  ;;  %v2160_v46 = vld [vmem:[%s9892_s2 + $0xb48] sm:$0xff]  ;;  %v2407_v47 = vunpack.c.l.s8.bf16 %v2103_v37  ;;  %v2535_v48 = vunpack.c.l.s8.bf16 %v2167_v39  ;;  %v2400_v49 = vunpack.c.h.s8.bf16 %v2096_v45  ;;  %v2151_v0 = vld [vmem:[%s9892_s2 + $0xb00] sm:$0xff]  ;;  %v2383_v2 = vunpack.c.h.s8.bf16 %v2087_v38 }
 0x1f6   : > { %v10045_v20 = vrot.slane %v2841_v17, %v10034_v11  ;;  %v2528_v30 = vunpack.c.h.s8.bf16 %v2160_v46  ;;  %v2520_v55 = vunpack.c.l.s8.bf16 %v2160_v46  ;;  %v2088_v56 = vld [vmem:[%s9892_s2 + $0x908] sm:$0xff]  ;;  %v10078_v10 = vrot.slane %v10038_v13, %v10034_v11  ;;  %v2207_v17 = vld [vmem:[%s9892_s2 + $0xcc0] sm:$0xff] }
 0x1f7   : > { %2890 = vmatpush1.bf16.msra.mxu0 %v2343_v51  ;;  %v2159_v51 = vld [vmem:[%s9892_s2 + $0xb40] sm:$0xff]  ;;  %v2152_v57 = vld [vmem:[%s9892_s2 + $0xb08] sm:$0xff]  ;;  %v2623_v13 = vunpack.c.h.s8.bf16 %v2207_v17 }
 0x1f8   : > { %2931 = vmatpush1.bf16.msra.mxu1 %v2471_v52  ;;  %2891 = vmatprep.subr.bf16.mxu0 %v2336_v53  ;;  %v10051_v25 = vcombine.high %v10045_v20, %v10045_v20  ;;  %v2399_v52 = vunpack.c.h.s8.bf16 %v2095_v50  ;;  %v2527_v53 = vunpack.c.h.s8.bf16 %v2159_v51  ;;  %v2512_v62 = vunpack.c.h.s8.bf16 %v2152_v57  ;;  %v2271_v18 = vld [vmem:[%s9892_s2 + $0xec0] sm:$0xff]  ;;  %v2200_v43 = vld [vmem:[%s9892_s2 + $0xc88] sm:$0xff] }
 0x1f9   : > { %2932 = vmatprep.subr.bf16.mxu1 %v2464_v54  ;;  %2915 = vmatprep.mubr.bf16.mxu0 %v10045_v20  ;;  %v2392_v54 = vunpack.c.l.s8.bf16 %v2096_v45  ;;  %v2264_v24 = vld [vmem:[%s9892_s2 + $0xe88] sm:$0xff]  ;;  %v2199_v32 = vld [vmem:[%s9892_s2 + $0xc80] sm:$0xff] }
 0x1fa   : > { %2956 = vmatprep.mubr.bf16.mxu1 %v10051_v25  ;;  %v2736_v31 = vunpack.c.h.s8.bf16 %v2264_v24  ;;  %v2728_v37 = vunpack.c.l.s8.bf16 %v2264_v24  ;;  %v2192_v39 = vld [vmem:[%s9892_s2 + $0xc48] sm:$0xff]  ;;  %v2191_v46 = vld [vmem:[%s9892_s2 + $0xc40] sm:$0xff] }
 0x1fb   : > { %2892 = vmatpush1.bf16.msra.mxu0 %v2335_v58  ;;  %v2826_v58 = vcombine.high %v10029_v5, %v10029_v5  ;;  %v2504_v5 = vunpack.c.l.s8.bf16 %v2152_v57  ;;  %v2183_v57 = vld [vmem:[%s9892_s2 + $0xc00] sm:$0xff] }
 0x1fc   : > { %2933 = vmatpush1.bf16.msra.mxu1 %v2463_v59  ;;  %2893 = vmatprep.subr.bf16.mxu0 %v2328_v60  ;;  %v2391_v59 = vunpack.c.l.s8.bf16 %v2095_v50  ;;  %v2519_v60 = vunpack.c.l.s8.bf16 %v2159_v51  ;;  %v2184_v51 = vld [vmem:[%s9892_s2 + $0xc08] sm:$0xff] }
 0x1fd   : > { %2934 = vmatprep.subr.bf16.mxu1 %v2456_v61  ;;  %v2384_v61 = vunpack.c.h.s8.bf16 %v2088_v56  ;;  %v10070_v1 = vrot.slane %v2826_v58, %v10034_v11  ;;  %v2247_v58 = vld [vmem:[%s9892_s2 + $0xe00] sm:$0xff] }
 0x1ff   : > { %2894 = vmatpush1.bf16.msra.mxu0 %v2327_v3  ;;  %v2511_v3 = vunpack.c.h.s8.bf16 %v2151_v0  ;;  %v2842_v6 = vcombine.high %v10070_v1, %v10070_v1 }
 0x200   : > { %2935 = vmatpush1.bf16.msra.mxu1 %v2455_v4  ;;  %2895 = vmatprep.subr.bf16.mxu0 %v2320_v7  ;;  %v2376_v4 = vunpack.c.l.s8.bf16 %v2088_v56  ;;  %v2208_v7 = vld [vmem:[%s9892_s2 + $0xcc8] sm:$0xff] }
 0x201   : > { %2936 = vmatprep.subr.bf16.mxu1 %v2448_v8  ;;  %v2272_v8 = vld [vmem:[%s9892_s2 + $0xec8] sm:$0xff]  ;;  %v10083_v19 = vrot.slane %v2842_v6, %v10034_v11 }
 0x203   : > { %2896 = vmatpush1.bf16.msra.mxu0 %v2319_v14  ;;  %v2375_v14 = vunpack.c.l.s8.bf16 %v2087_v38  ;;  %v2240_v38 = vld [vmem:[%s9892_s2 + $0xdc8] sm:$0xff] }
 0x204   : > { %2937 = vmatpush1.bf16.msra.mxu1 %v2447_v15  ;;  %2897 = vmatprep.subr.bf16.mxu0 %v2312_v9  ;;  %v2503_v15 = vunpack.c.l.s8.bf16 %v2151_v0  ;;  %v2624_v9 = vunpack.c.h.s8.bf16 %v2208_v7  ;;  %v2304_v0 = vld [vmem:[%s9892_s2 + $0xfc8] sm:$0xff] }
 0x205   : > { %2938 = vmatprep.subr.bf16.mxu1 %v2440_v16  ;;  %v2752_v16 = vunpack.c.h.s8.bf16 %v2272_v8 }
 0x207   : > { %2898 = vmatpush1.bf16.msra.mxu0 %v2311_v12  ;;  %v10087_v12 = vcombine.high %v10078_v10, %v10078_v10 }
 0x208   : > { %2939 = vmatpush1.bf16.msra.mxu1 %v2439_v21  ;;  %2899 = vmatprep.subr.bf16.mxu0 %v2432_v22  ;;  %v2751_v21 = vunpack.c.h.s8.bf16 %v2271_v18  ;;  %v2616_v22 = vunpack.c.l.s8.bf16 %v2208_v7  ;;  %v2239_v7 = vld [vmem:[%s9892_s2 + $0xdc0] sm:$0xff] }
 0x209   : > { %2940 = vmatprep.subr.bf16.mxu1 %v2560_v23  ;;  %v2744_v23 = vunpack.c.l.s8.bf16 %v2272_v8  ;;  %v2303_v8 = vld [vmem:[%s9892_s2 + $0xfc0] sm:$0xff]  ;;  %v2687_v6 = vunpack.c.h.s8.bf16 %v2239_v7 }
 0x20b   : > { %2900 = vmatpush2.bf16.msra.mxu0 %v2431_v26  ;;  %v10093_v26 = vcombine.high %v10083_v19, %v10083_v19 }
 0x20c   : > { %2941 = vmatpush2.bf16.msra.mxu1 %v2559_v27  ;;  %2901 = vmatprep.subr.bf16.mxu0 %v2424_v28  ;;  %v2615_v27 = vunpack.c.l.s8.bf16 %v2207_v17  ;;  %v2743_v28 = vunpack.c.l.s8.bf16 %v2271_v18  ;;  %v2296_v17 = vld [vmem:[%s9892_s2 + $0xf88] sm:$0xff]  ;;  %v2679_v18 = vunpack.c.l.s8.bf16 %v2239_v7  ;;  %v2074_v7 = vld [vmem:[%s9892_s2 + $0x898] sm:$0xff] }
 0x20d   : > { %2942 = vmatprep.subr.bf16.mxu1 %v2552_v29  ;;  %v2608_v29 = vunpack.c.h.s8.bf16 %v2200_v43 }
 0x20f   : > { %2902 = vmatpush2.bf16.msra.mxu0 %v2423_v33  ;;  %v2263_v33 = vld [vmem:[%s9892_s2 + $0xe80] sm:$0xff] }
 0x210   : > { %2943 = vmatpush2.bf16.msra.mxu1 %v2551_v34  ;;  %2903 = vmatprep.subr.bf16.mxu0 %v2416_v35  ;;  %v2607_v34 = vunpack.c.h.s8.bf16 %v2199_v32  ;;  %v2735_v35 = vunpack.c.h.s8.bf16 %v2263_v33 }
 0x211   : > { %2944 = vmatprep.subr.bf16.mxu1 %v2544_v36  ;;  %v2600_v36 = vunpack.c.l.s8.bf16 %v2200_v43  ;;  %v2295_v43 = vld [vmem:[%s9892_s2 + $0xf80] sm:$0xff] }
 0x213   : > { %2904 = vmatpush2.bf16.msra.mxu0 %v2415_v40  ;;  %v2256_v40 = vld [vmem:[%s9892_s2 + $0xe48] sm:$0xff] }
 0x214   : > { %2945 = vmatpush2.bf16.msra.mxu1 %v2543_v41  ;;  %2905 = vmatprep.subr.bf16.mxu0 %v2408_v42  ;;  %v2599_v41 = vunpack.c.l.s8.bf16 %v2199_v32  ;;  %v2727_v42 = vunpack.c.l.s8.bf16 %v2263_v33  ;;  %v2720_v45 = vunpack.c.h.s8.bf16 %v2256_v40  ;;  %v2712_v50 = vunpack.c.l.s8.bf16 %v2256_v40  ;;  %v2288_v32 = vld [vmem:[%s9892_s2 + $0xf48] sm:$0xff] }
 0x215   : > { %2946 = vmatprep.subr.bf16.mxu1 %v2536_v44  ;;  %v2592_v44 = vunpack.c.h.s8.bf16 %v2192_v39 }
 0x217   : > { %2906 = vmatpush2.bf16.msra.mxu0 %v2407_v47  ;;  %v2255_v47 = vld [vmem:[%s9892_s2 + $0xe40] sm:$0xff] }
 0x218   : > { %2947 = vmatpush2.bf16.msra.mxu1 %v2535_v48  ;;  %2907 = vmatprep.subr.bf16.mxu0 %v2400_v49  ;;  %v2591_v48 = vunpack.c.h.s8.bf16 %v2191_v46  ;;  %v2719_v49 = vunpack.c.h.s8.bf16 %v2255_v47 }
 0x219   : > { %2948 = vmatprep.subr.bf16.mxu1 %v2528_v30  ;;  %v2584_v30 = vunpack.c.l.s8.bf16 %v2192_v39  ;;  %v2287_v39 = vld [vmem:[%s9892_s2 + $0xf40] sm:$0xff] }
 0x21b   : > { %2908 = vmatpush2.bf16.msra.mxu0 %v2399_v52  ;;  %v2248_v52 = vld [vmem:[%s9892_s2 + $0xe08] sm:$0xff] }
 0x21c   : > { %2949 = vmatpush2.bf16.msra.mxu1 %v2527_v53  ;;  %2909 = vmatprep.subr.bf16.mxu0 %v2392_v54  ;;  %v2583_v53 = vunpack.c.l.s8.bf16 %v2191_v46  ;;  %v2711_v54 = vunpack.c.l.s8.bf16 %v2255_v47  ;;  %v2704_v56 = vunpack.c.h.s8.bf16 %v2248_v52  ;;  %v2280_v46 = vld [vmem:[%s9892_s2 + $0xf08] sm:$0xff] }
 0x21d   : > { %2950 = vmatprep.subr.bf16.mxu1 %v2520_v55  ;;  %v2576_v55 = vunpack.c.h.s8.bf16 %v2184_v51 }
 0x21f   : > { %2910 = vmatpush2.bf16.msra.mxu0 %v2391_v59  ;;  %v2575_v59 = vunpack.c.h.s8.bf16 %v2183_v57 }
 0x220   : > { %2951 = vmatpush2.bf16.msra.mxu1 %v2519_v60  ;;  %2911 = vmatprep.subr.bf16.mxu0 %v2384_v61  ;;  %v2703_v60 = vunpack.c.h.s8.bf16 %v2247_v58  ;;  %v2568_v61 = vunpack.c.l.s8.bf16 %v2184_v51  ;;  %v2279_v51 = vld [vmem:[%s9892_s2 + $0xf00] sm:$0xff] }
 0x221   : > { %2952 = vmatprep.subr.bf16.mxu1 %v2512_v62  ;;  %v2696_v62 = vunpack.c.l.s8.bf16 %v2248_v52 }
 0x223   : > { %2912 = vmatpush2.bf16.msra.mxu0 %v2383_v2  ;;  %v2567_v2 = vunpack.c.l.s8.bf16 %v2183_v57  ;;  %v2146_v57 = vld [vmem:[%s9892_s2 + $0xad8] sm:$0xff] }
 0x224   : > { %2953 = vmatpush2.bf16.msra.mxu1 %v2511_v3  ;;  %2913 = vmatprep.subr.bf16.mxu0 %v2376_v4  ;;  %v2695_v3 = vunpack.c.l.s8.bf16 %v2247_v58  ;;  %v2688_v4 = vunpack.c.h.s8.bf16 %v2240_v38  ;;  %v10129_v58 = vrot.slane %v10070_v1, %v10034_v11 }
 0x225   : > { %2954 = vmatprep.subr.bf16.mxu1 %v2504_v5  ;;  %v2816_v5 = vunpack.c.h.s8.bf16 %v2304_v0 }
 0x227   : > { %2914 = vmatpush2.bf16.msra.mxu0 %v2375_v14  ;;  %v2815_v14 = vunpack.c.h.s8.bf16 %v2303_v8 }
 0x228   : > { %2955 = vmatpush2.bf16.msra.mxu1 %v2503_v15  ;;  %2965 = vmatprep.subr.bf16.mxu0 %v2624_v9  ;;  %v2680_v15 = vunpack.c.l.s8.bf16 %v2240_v38  ;;  %v2808_v9 = vunpack.c.l.s8.bf16 %v2304_v0  ;;  %v2081_v38 = vld [vmem:[%s9892_s2 + $0x8d0] sm:$0xff] }
 0x229   : > { %3006 = vmatprep.subr.bf16.mxu1 %v2752_v16  ;;  %v2232_v16 = vld [vmem:[%s9892_s2 + $0xd88] sm:$0xff]  ;;  %v2145_v0 = vld [vmem:[%s9892_s2 + $0xad0] sm:$0xff]  ;;  %v2369_v1 = vunpack.c.h.s8.bf16 %v2081_v38 }
 0x22a   : > { %2916 = vmatmul.mubr.bf16.vlgmr.msra.gmra.mxu0 %v10078_v10 }
 0x22b   : > { %2957 = vmatmul.mubr.bf16.vlgmr.msra.gmra.mxu1 %v10087_v12  ;;  %2966 = vmatpush1.bf16.msra.mxu0 %v2623_v13  ;;  %v2807_v13 = vunpack.c.l.s8.bf16 %v2303_v8  ;;  %v2138_v8 = vld [vmem:[%s9892_s2 + $0xa98] sm:$0xff] }
 0x22c   : > { %3007 = vmatpush1.bf16.msra.mxu1 %v2751_v21  ;;  %2967 = vmatprep.subr.bf16.mxu0 %v2616_v22  ;;  %v2672_v21 = vunpack.c.h.s8.bf16 %v2232_v16  ;;  %v2800_v22 = vunpack.c.h.s8.bf16 %v2296_v17 }
 0x22d   : > { %3008 = vmatprep.subr.bf16.mxu1 %v2744_v23  ;;  %2997 = vmatprep.mubr.bf16.mxu0 %v10083_v19  ;;  %v2231_v23 = vld [vmem:[%s9892_s2 + $0xd80] sm:$0xff] }
 0x22e   : > { %3038 = vmatprep.mubr.bf16.mxu1 %v10093_v26  ;;  %v2671_v24 = vunpack.c.h.s8.bf16 %v2231_v23  ;;  %v2663_v33 = vunpack.c.l.s8.bf16 %v2231_v23  ;;  %v2066_v23 = vld [vmem:[%s9892_s2 + $0x858] sm:$0xff] }
 0x22f   : > { %2968 = vmatpush1.bf16.msra.mxu0 %v2615_v27  ;;  %v2799_v27 = vunpack.c.h.s8.bf16 %v2295_v43 }
 0x230   : > { %3009 = vmatpush1.bf16.msra.mxu1 %v2743_v28  ;;  %2969 = vmatprep.subr.bf16.mxu0 %v2608_v29  ;;  %v2664_v28 = vunpack.c.l.s8.bf16 %v2232_v16  ;;  %v2792_v29 = vunpack.c.l.s8.bf16 %v2296_v17  ;;  %v2073_v16 = vld [vmem:[%s9892_s2 + $0x890] sm:$0xff] }
 0x231   : > { %3010 = vmatprep.subr.bf16.mxu1 %v2736_v31  ;;  %v2224_v31 = vld [vmem:[%s9892_s2 + $0xd48] sm:$0xff]  ;;  %v2137_v17 = vld [vmem:[%s9892_s2 + $0xa90] sm:$0xff] }
 0x233   : > { %2970 = vmatpush1.bf16.msra.mxu0 %v2607_v34  ;;  %v2791_v34 = vunpack.c.l.s8.bf16 %v2295_v43  ;;  %v2130_v43 = vld [vmem:[%s9892_s2 + $0xa58] sm:$0xff] }
 0x234   : > { %3011 = vmatpush1.bf16.msra.mxu1 %v2735_v35  ;;  %2971 = vmatprep.subr.bf16.mxu0 %v2600_v36  ;;  %v2656_v35 = vunpack.c.h.s8.bf16 %v2224_v31  ;;  %v2784_v36 = vunpack.c.h.s8.bf16 %v2288_v32 }
 0x235   : > { %3012 = vmatprep.subr.bf16.mxu1 %v2728_v37  ;;  %v2223_v37 = vld [vmem:[%s9892_s2 + $0xd40] sm:$0xff] }
 0x236   : > { %v2655_v40 = vunpack.c.h.s8.bf16 %v2223_v37  ;;  %v2647_v47 = vunpack.c.l.s8.bf16 %v2223_v37  ;;  %v2058_v37 = vld [vmem:[%s9892_s2 + $0x818] sm:$0xff] }
 0x237   : > { %2972 = vmatpush1.bf16.msra.mxu0 %v2599_v41  ;;  %v2783_v41 = vunpack.c.h.s8.bf16 %v2287_v39 }
 0x238   : > { %3013 = vmatpush1.bf16.msra.mxu1 %v2727_v42  ;;  %2973 = vmatprep.subr.bf16.mxu0 %v2592_v44  ;;  %v2648_v42 = vunpack.c.l.s8.bf16 %v2224_v31  ;;  %v2776_v44 = vunpack.c.l.s8.bf16 %v2288_v32  ;;  %v2065_v31 = vld [vmem:[%s9892_s2 + $0x850] sm:$0xff] }
 0x239   : > { %3014 = vmatprep.subr.bf16.mxu1 %v2720_v45  ;;  %v2216_v45 = vld [vmem:[%s9892_s2 + $0xd08] sm:$0xff]  ;;  %v2129_v32 = vld [vmem:[%s9892_s2 + $0xa50] sm:$0xff] }
 0x23b   : > { %2974 = vmatpush1.bf16.msra.mxu0 %v2591_v48  ;;  %v2775_v48 = vunpack.c.l.s8.bf16 %v2287_v39  ;;  %v2122_v39 = vld [vmem:[%s9892_s2 + $0xa18] sm:$0xff] }
 0x23c   : > { %3015 = vmatpush1.bf16.msra.mxu1 %v2719_v49  ;;  %2975 = vmatprep.subr.bf16.mxu0 %v2584_v30  ;;  %v2640_v49 = vunpack.c.h.s8.bf16 %v2216_v45  ;;  %v2768_v30 = vunpack.c.h.s8.bf16 %v2280_v46 }
 0x23d   : > { %3016 = vmatprep.subr.bf16.mxu1 %v2712_v50  ;;  %v2215_v50 = vld [vmem:[%s9892_s2 + $0xd00] sm:$0xff] }
 0x23e   : > { %v2639_v52 = vunpack.c.h.s8.bf16 %v2215_v50 }
 0x23f   : > { %2976 = vmatpush1.bf16.msra.mxu0 %v2583_v53  ;;  %v2767_v53 = vunpack.c.h.s8.bf16 %v2279_v51 }
 0x240   : > { %3017 = vmatpush1.bf16.msra.mxu1 %v2711_v54  ;;  %2977 = vmatprep.subr.bf16.mxu0 %v2576_v55  ;;  %v2632_v54 = vunpack.c.l.s8.bf16 %v2216_v45  ;;  %v2760_v55 = vunpack.c.l.s8.bf16 %v2280_v46  ;;  %v2057_v45 = vld [vmem:[%s9892_s2 + $0x810] sm:$0xff] }
 0x241   : > { %3018 = vmatprep.subr.bf16.mxu1 %v2704_v56  ;;  %v2082_v56 = vld [vmem:[%s9892_s2 + $0x8d8] sm:$0xff]  ;;  %v2121_v46 = vld [vmem:[%s9892_s2 + $0xa10] sm:$0xff] }
 0x243   : > { %2978 = vmatpush1.bf16.msra.mxu0 %v2575_v59  ;;  %v2631_v59 = vunpack.c.l.s8.bf16 %v2215_v50  ;;  %v2114_v50 = vld [vmem:[%s9892_s2 + $0x9d8] sm:$0xff] }
 0x244   : > { %3019 = vmatpush1.bf16.msra.mxu1 %v2703_v60  ;;  %2979 = vmatprep.subr.bf16.mxu0 %v2568_v61  ;;  %v2759_v60 = vunpack.c.l.s8.bf16 %v2279_v51  ;;  %v2370_v61 = vunpack.c.h.s8.bf16 %v2082_v56  ;;  %v2178_v51 = vld [vmem:[%s9892_s2 + $0xbd8] sm:$0xff] }
 0x245   : > { %3020 = vmatprep.subr.bf16.mxu1 %v2696_v62  ;;  %v2498_v62 = vunpack.c.h.s8.bf16 %v2146_v57 }
 0x247   : > { %2980 = vmatpush1.bf16.msra.mxu0 %v2567_v2  ;;  %v10135_v2 = vcombine.high %v10129_v58, %v10129_v58 }
 0x248   : > { %3021 = vmatpush1.bf16.msra.mxu1 %v2695_v3  ;;  %2981 = vmatprep.subr.bf16.mxu0 %v2688_v4  ;;  %v2497_v3 = vunpack.c.h.s8.bf16 %v2145_v0  ;;  %v2362_v4 = vunpack.c.l.s8.bf16 %v2082_v56  ;;  %v2113_v56 = vld [vmem:[%s9892_s2 + $0x9d0] sm:$0xff] }
 0x249   : > { %3022 = vmatprep.subr.bf16.mxu1 %v2816_v5  ;;  %v2490_v5 = vunpack.c.l.s8.bf16 %v2146_v57  ;;  %v2177_v57 = vld [vmem:[%s9892_s2 + $0xbd0] sm:$0xff] }
 0x24b   : > { %2982 = vmatpush2.bf16.msra.mxu0 %v2687_v6  ;;  %v2361_v6 = vunpack.c.l.s8.bf16 %v2081_v38  ;;  %v2106_v38 = vld [vmem:[%s9892_s2 + $0x998] sm:$0xff] }
 0x24c   : > { %3023 = vmatpush2.bf16.msra.mxu1 %v2815_v14  ;;  %2983 = vmatprep.subr.bf16.mxu0 %v2680_v15  ;;  %v2489_v14 = vunpack.c.l.s8.bf16 %v2145_v0  ;;  %v2354_v15 = vunpack.c.h.s8.bf16 %v2074_v7  ;;  %v2170_v0 = vld [vmem:[%s9892_s2 + $0xb98] sm:$0xff] }
 0x24d   : > { %3024 = vmatprep.subr.bf16.mxu1 %v2808_v9  ;;  %v2482_v9 = vunpack.c.h.s8.bf16 %v2138_v8 }
 0x24f   : > { %2984 = vmatpush2.bf16.msra.mxu0 %v2679_v18  ;;  %v2353_v18 = vunpack.c.h.s8.bf16 %v2073_v16 }
 0x250   : > { %3025 = vmatpush2.bf16.msra.mxu1 %v2807_v13  ;;  %2985 = vmatprep.subr.bf16.mxu0 %v2672_v21  ;;  %v2481_v13 = vunpack.c.h.s8.bf16 %v2137_v17  ;;  %v2346_v21 = vunpack.c.l.s8.bf16 %v2074_v7  ;;  %v2105_v7 = vld [vmem:[%s9892_s2 + $0x990] sm:$0xff] }
 0x251   : > { %3026 = vmatprep.subr.bf16.mxu1 %v2800_v22  ;;  %v2474_v22 = vunpack.c.l.s8.bf16 %v2138_v8  ;;  %v2169_v8 = vld [vmem:[%s9892_s2 + $0xb90] sm:$0xff] }
 0x253   : > { %2986 = vmatpush2.bf16.msra.mxu0 %v2671_v24  ;;  %v2345_v24 = vunpack.c.l.s8.bf16 %v2073_v16  ;;  %v2098_v16 = vld [vmem:[%s9892_s2 + $0x958] sm:$0xff] }
 0x254   : > { %3027 = vmatpush2.bf16.msra.mxu1 %v2799_v27  ;;  %2987 = vmatprep.subr.bf16.mxu0 %v2664_v28  ;;  %v2473_v27 = vunpack.c.l.s8.bf16 %v2137_v17  ;;  %v2338_v28 = vunpack.c.h.s8.bf16 %v2066_v23  ;;  %v2162_v17 = vld [vmem:[%s9892_s2 + $0xb58] sm:$0xff] }
 0x255   : > { %3028 = vmatprep.subr.bf16.mxu1 %v2792_v29  ;;  %v2466_v29 = vunpack.c.h.s8.bf16 %v2130_v43 }
 0x257   : > { %2988 = vmatpush2.bf16.msra.mxu0 %v2663_v33  ;;  %v2337_v33 = vunpack.c.h.s8.bf16 %v2065_v31 }
 0x258   : > { %3029 = vmatpush2.bf16.msra.mxu1 %v2791_v34  ;;  %2989 = vmatprep.subr.bf16.mxu0 %v2656_v35  ;;  %v2465_v34 = vunpack.c.h.s8.bf16 %v2129_v32  ;;  %v2330_v35 = vunpack.c.l.s8.bf16 %v2066_v23  ;;  %v2097_v23 = vld [vmem:[%s9892_s2 + $0x950] sm:$0xff] }
 0x259   : > { %3030 = vmatprep.subr.bf16.mxu1 %v2784_v36  ;;  %v2458_v36 = vunpack.c.l.s8.bf16 %v2130_v43  ;;  %v2161_v43 = vld [vmem:[%s9892_s2 + $0xb50] sm:$0xff] }
 0x25b   : > { %2990 = vmatpush2.bf16.msra.mxu0 %v2655_v40  ;;  %v2329_v40 = vunpack.c.l.s8.bf16 %v2065_v31  ;;  %v2090_v31 = vld [vmem:[%s9892_s2 + $0x918] sm:$0xff] }
 0x25c   : > { %3031 = vmatpush2.bf16.msra.mxu1 %v2783_v41  ;;  %2991 = vmatprep.subr.bf16.mxu0 %v2648_v42  ;;  %v2457_v41 = vunpack.c.l.s8.bf16 %v2129_v32  ;;  %v2322_v42 = vunpack.c.h.s8.bf16 %v2058_v37  ;;  %v2154_v32 = vld [vmem:[%s9892_s2 + $0xb18] sm:$0xff] }
 0x25d   : > { %3032 = vmatprep.subr.bf16.mxu1 %v2776_v44  ;;  %v2450_v44 = vunpack.c.h.s8.bf16 %v2122_v39 }
 0x25f   : > { %2992 = vmatpush2.bf16.msra.mxu0 %v2647_v47  ;;  %v2321_v47 = vunpack.c.h.s8.bf16 %v2057_v45 }
 0x260   : > { %3033 = vmatpush2.bf16.msra.mxu1 %v2775_v48  ;;  %2993 = vmatprep.subr.bf16.mxu0 %v2640_v49  ;;  %v2449_v48 = vunpack.c.h.s8.bf16 %v2121_v46  ;;  %v2314_v49 = vunpack.c.l.s8.bf16 %v2058_v37  ;;  %v2089_v37 = vld [vmem:[%s9892_s2 + $0x910] sm:$0xff] }
 0x261   : > { %3034 = vmatprep.subr.bf16.mxu1 %v2768_v30  ;;  %v2442_v30 = vunpack.c.l.s8.bf16 %v2122_v39  ;;  %v2153_v39 = vld [vmem:[%s9892_s2 + $0xb10] sm:$0xff] }
 0x263   : > { %2994 = vmatpush2.bf16.msra.mxu0 %v2639_v52  ;;  %v2313_v52 = vunpack.c.l.s8.bf16 %v2057_v45  ;;  %v2210_v45 = vld [vmem:[%s9892_s2 + $0xcd8] sm:$0xff] }
 0x264   : > { %3035 = vmatpush2.bf16.msra.mxu1 %v2767_v53  ;;  %2995 = vmatprep.subr.bf16.mxu0 %v2632_v54  ;;  %v2441_v53 = vunpack.c.l.s8.bf16 %v2121_v46  ;;  %v2434_v54 = vunpack.c.h.s8.bf16 %v2114_v50  ;;  %v2274_v46 = vld [vmem:[%s9892_s2 + $0xed8] sm:$0xff] }
 0x265   : > { %3036 = vmatprep.subr.bf16.mxu1 %v2760_v55  ;;  %v2562_v55 = vunpack.c.h.s8.bf16 %v2178_v51 }
 0x267   : > { %2996 = vmatpush2.bf16.msra.mxu0 %v2631_v59  ;;  %v2433_v59 = vunpack.c.h.s8.bf16 %v2113_v56 }
 0x268   : > { %3037 = vmatpush2.bf16.msra.mxu1 %v2759_v60  ;;  %3047 = vmatprep.subr.bf16.mxu0 %v2370_v61  ;;  %v2561_v60 = vunpack.c.h.s8.bf16 %v2177_v57  ;;  %v2426_v61 = vunpack.c.l.s8.bf16 %v2114_v50  ;;  %v2209_v50 = vld [vmem:[%s9892_s2 + $0xcd0] sm:$0xff] }
 0x269   : > { %3088 = vmatprep.subr.bf16.mxu1 %v2498_v62  ;;  %v2554_v62 = vunpack.c.l.s8.bf16 %v2178_v51  ;;  %v2273_v51 = vld [vmem:[%s9892_s2 + $0xed0] sm:$0xff] }
 0x26a   : > { %2998 = vmatmul.mubr.bf16.vlgmr.msra.gmra.mxu0 %v10129_v58 }
 0x26b   : > { %3039 = vmatmul.mubr.bf16.vlgmr.msra.gmra.mxu1 %v10135_v2  ;;  %3048 = vmatpush1.bf16.msra.mxu0 %v2369_v1  ;;  %v2425_v1 = vunpack.c.l.s8.bf16 %v2113_v56  ;;  %v2202_v56 = vld [vmem:[%s9892_s2 + $0xc98] sm:$0xff] }
 0x26c   : > { %3089 = vmatpush1.bf16.msra.mxu1 %v2497_v3  ;;  %3049 = vmatprep.subr.bf16.mxu0 %v2362_v4  ;;  %v2553_v3 = vunpack.c.l.s8.bf16 %v2177_v57  ;;  %v2418_v4 = vunpack.c.h.s8.bf16 %v2106_v38  ;;  %v2266_v57 = vld [vmem:[%s9892_s2 + $0xe98] sm:$0xff] }
 0x26d   : > { %3090 = vmatprep.subr.bf16.mxu1 %v2490_v5  ;;  %3079 = vmatprep.mubr.bf16.mxu0 %v10045_v20  ;;  %v2546_v5 = vunpack.c.h.s8.bf16 %v2170_v0 }
 0x26e   : > { %3120 = vmatprep.mubr.bf16.mxu1 %v10051_v25 }
 0x26f   : > { %3050 = vmatpush1.bf16.msra.mxu0 %v2361_v6  ;;  %v2417_v6 = vunpack.c.h.s8.bf16 %v2105_v7 }
 0x270   : > { %3091 = vmatpush1.bf16.msra.mxu1 %v2489_v14  ;;  %3051 = vmatprep.subr.bf16.mxu0 %v2354_v15  ;;  %v2545_v14 = vunpack.c.h.s8.bf16 %v2169_v8  ;;  %v2410_v15 = vunpack.c.l.s8.bf16 %v2106_v38  ;;  %v2201_v38 = vld [vmem:[%s9892_s2 + $0xc90] sm:$0xff] }
 0x271   : > { %3092 = vmatprep.subr.bf16.mxu1 %v2482_v9  ;;  %v2538_v9 = vunpack.c.l.s8.bf16 %v2170_v0  ;;  %v2265_v0 = vld [vmem:[%s9892_s2 + $0xe90] sm:$0xff] }
 0x273   : > { %3052 = vmatpush1.bf16.msra.mxu0 %v2353_v18  ;;  %v2409_v18 = vunpack.c.l.s8.bf16 %v2105_v7  ;;  %v2194_v7 = vld [vmem:[%s9892_s2 + $0xc58] sm:$0xff] }
 0x274   : > { %3093 = vmatpush1.bf16.msra.mxu1 %v2481_v13  ;;  %3053 = vmatprep.subr.bf16.mxu0 %v2346_v21  ;;  %v2537_v13 = vunpack.c.l.s8.bf16 %v2169_v8  ;;  %v2402_v21 = vunpack.c.h.s8.bf16 %v2098_v16  ;;  %v2258_v8 = vld [vmem:[%s9892_s2 + $0xe58] sm:$0xff] }
 0x275   : > { %3094 = vmatprep.subr.bf16.mxu1 %v2474_v22  ;;  %v2530_v22 = vunpack.c.h.s8.bf16 %v2162_v17 }
 0x277   : > { %3054 = vmatpush1.bf16.msra.mxu0 %v2345_v24  ;;  %v2401_v24 = vunpack.c.h.s8.bf16 %v2097_v23 }
 0x278   : > { %3095 = vmatpush1.bf16.msra.mxu1 %v2473_v27  ;;  %3055 = vmatprep.subr.bf16.mxu0 %v2338_v28  ;;  %v2529_v27 = vunpack.c.h.s8.bf16 %v2161_v43  ;;  %v2394_v28 = vunpack.c.l.s8.bf16 %v2098_v16  ;;  %v2193_v16 = vld [vmem:[%s9892_s2 + $0xc50] sm:$0xff] }
 0x279   : > { %3096 = vmatprep.subr.bf16.mxu1 %v2466_v29  ;;  %v2522_v29 = vunpack.c.l.s8.bf16 %v2162_v17  ;;  %v2257_v17 = vld [vmem:[%s9892_s2 + $0xe50] sm:$0xff] }
 0x27b   : > { %3056 = vmatpush1.bf16.msra.mxu0 %v2337_v33  ;;  %v2393_v33 = vunpack.c.l.s8.bf16 %v2097_v23  ;;  %v2186_v23 = vld [vmem:[%s9892_s2 + $0xc18] sm:$0xff] }
 0x27c   : > { %3097 = vmatpush1.bf16.msra.mxu1 %v2465_v34  ;;  %3057 = vmatprep.subr.bf16.mxu0 %v2330_v35  ;;  %v2521_v34 = vunpack.c.l.s8.bf16 %v2161_v43  ;;  %v2386_v35 = vunpack.c.h.s8.bf16 %v2090_v31  ;;  %v2250_v43 = vld [vmem:[%s9892_s2 + $0xe18] sm:$0xff] }
 0x27d   : > { %3098 = vmatprep.subr.bf16.mxu1 %v2458_v36  ;;  %v2514_v36 = vunpack.c.h.s8.bf16 %v2154_v32 }
 0x27f   : > { %3058 = vmatpush1.bf16.msra.mxu0 %v2329_v40  ;;  %v2385_v40 = vunpack.c.h.s8.bf16 %v2089_v37 }
 0x280   : > { %3099 = vmatpush1.bf16.msra.mxu1 %v2457_v41  ;;  %3059 = vmatprep.subr.bf16.mxu0 %v2322_v42  ;;  %v2513_v41 = vunpack.c.h.s8.bf16 %v2153_v39  ;;  %v2378_v42 = vunpack.c.l.s8.bf16 %v2090_v31  ;;  %v2185_v31 = vld [vmem:[%s9892_s2 + $0xc10] sm:$0xff] }
 0x281   : > { %3100 = vmatprep.subr.bf16.mxu1 %v2450_v44  ;;  %v2506_v44 = vunpack.c.l.s8.bf16 %v2154_v32  ;;  %v2249_v32 = vld [vmem:[%s9892_s2 + $0xe10] sm:$0xff] }
 0x283   : > { %3060 = vmatpush1.bf16.msra.mxu0 %v2321_v47  ;;  %v2377_v47 = vunpack.c.l.s8.bf16 %v2089_v37  ;;  %v2242_v37 = vld [vmem:[%s9892_s2 + $0xdd8] sm:$0xff] }
 0x284   : > { %3101 = vmatpush1.bf16.msra.mxu1 %v2449_v48  ;;  %3061 = vmatprep.subr.bf16.mxu0 %v2314_v49  ;;  %v2505_v48 = vunpack.c.l.s8.bf16 %v2153_v39  ;;  %v2626_v49 = vunpack.c.h.s8.bf16 %v2210_v45  ;;  %v2306_v39 = vld [vmem:[%s9892_s2 + $0xfd8] sm:$0xff] }
 0x285   : > { %3102 = vmatprep.subr.bf16.mxu1 %v2442_v30  ;;  %v2754_v30 = vunpack.c.h.s8.bf16 %v2274_v46 }
 0x287   : > { %3062 = vmatpush1.bf16.msra.mxu0 %v2313_v52  ;;  %v2625_v52 = vunpack.c.h.s8.bf16 %v2209_v50 }
 0x288   : > { %3103 = vmatpush1.bf16.msra.mxu1 %v2441_v53  ;;  %3063 = vmatprep.subr.bf16.mxu0 %v2434_v54  ;;  %v2753_v53 = vunpack.c.h.s8.bf16 %v2273_v51  ;;  %v2618_v54 = vunpack.c.l.s8.bf16 %v2210_v45  ;;  %v2241_v45 = vld [vmem:[%s9892_s2 + $0xdd0] sm:$0xff] }
 0x289   : > { %3104 = vmatprep.subr.bf16.mxu1 %v2562_v55  ;;  %v2746_v55 = vunpack.c.l.s8.bf16 %v2274_v46  ;;  %v2305_v46 = vld [vmem:[%s9892_s2 + $0xfd0] sm:$0xff] }
 0x28b   : > { %3064 = vmatpush2.bf16.msra.mxu0 %v2433_v59  ;;  %v2617_v59 = vunpack.c.l.s8.bf16 %v2209_v50  ;;  %v2234_v50 = vld [vmem:[%s9892_s2 + $0xd98] sm:$0xff] }
 0x28c   : > { %3105 = vmatpush2.bf16.msra.mxu1 %v2561_v60  ;;  %3065 = vmatprep.subr.bf16.mxu0 %v2426_v61  ;;  %v2745_v60 = vunpack.c.l.s8.bf16 %v2273_v51  ;;  %v2610_v61 = vunpack.c.h.s8.bf16 %v2202_v56  ;;  %v2298_v51 = vld [vmem:[%s9892_s2 + $0xf98] sm:$0xff] }
 0x28d   : > { %3106 = vmatprep.subr.bf16.mxu1 %v2554_v62  ;;  %v2738_v62 = vunpack.c.h.s8.bf16 %v2266_v57 }
 0x28f   : > { %3066 = vmatpush2.bf16.msra.mxu0 %v2425_v1  ;;  %v2609_v1 = vunpack.c.h.s8.bf16 %v2201_v38 }
 0x290   : > { %3107 = vmatpush2.bf16.msra.mxu1 %v2553_v3  ;;  %3067 = vmatprep.subr.bf16.mxu0 %v2418_v4  ;;  %v2737_v3 = vunpack.c.h.s8.bf16 %v2265_v0  ;;  %v2602_v4 = vunpack.c.l.s8.bf16 %v2202_v56  ;;  %v2233_v56 = vld [vmem:[%s9892_s2 + $0xd90] sm:$0xff] }
 0x291   : > { %3108 = vmatprep.subr.bf16.mxu1 %v2546_v5  ;;  %v2730_v5 = vunpack.c.l.s8.bf16 %v2266_v57  ;;  %v2297_v57 = vld [vmem:[%s9892_s2 + $0xf90] sm:$0xff] }
 0x293   : > { %3068 = vmatpush2.bf16.msra.mxu0 %v2417_v6  ;;  %v2601_v6 = vunpack.c.l.s8.bf16 %v2201_v38  ;;  %v2226_v38 = vld [vmem:[%s9892_s2 + $0xd58] sm:$0xff] }
 0x294   : > { %3109 = vmatpush2.bf16.msra.mxu1 %v2545_v14  ;;  %3069 = vmatprep.subr.bf16.mxu0 %v2410_v15  ;;  %v2729_v14 = vunpack.c.l.s8.bf16 %v2265_v0  ;;  %v2594_v15 = vunpack.c.h.s8.bf16 %v2194_v7  ;;  %v2290_v0 = vld [vmem:[%s9892_s2 + $0xf58] sm:$0xff] }
 0x295   : > { %3110 = vmatprep.subr.bf16.mxu1 %v2538_v9  ;;  %v2722_v9 = vunpack.c.h.s8.bf16 %v2258_v8 }
 0x297   : > { %3070 = vmatpush2.bf16.msra.mxu0 %v2409_v18  ;;  %v2593_v18 = vunpack.c.h.s8.bf16 %v2193_v16 }
 0x298   : > { %3111 = vmatpush2.bf16.msra.mxu1 %v2537_v13  ;;  %3071 = vmatprep.subr.bf16.mxu0 %v2402_v21  ;;  %v2721_v13 = vunpack.c.h.s8.bf16 %v2257_v17  ;;  %v2586_v21 = vunpack.c.l.s8.bf16 %v2194_v7  ;;  %v2225_v7 = vld [vmem:[%s9892_s2 + $0xd50] sm:$0xff] }
 0x299   : > { %3112 = vmatprep.subr.bf16.mxu1 %v2530_v22  ;;  %v2714_v22 = vunpack.c.l.s8.bf16 %v2258_v8  ;;  %v2289_v8 = vld [vmem:[%s9892_s2 + $0xf50] sm:$0xff] }
 0x29b   : > { %3072 = vmatpush2.bf16.msra.mxu0 %v2401_v24  ;;  %v2585_v24 = vunpack.c.l.s8.bf16 %v2193_v16  ;;  %v2218_v16 = vld [vmem:[%s9892_s2 + $0xd18] sm:$0xff] }
 0x29c   : > { %3113 = vmatpush2.bf16.msra.mxu1 %v2529_v27  ;;  %3073 = vmatprep.subr.bf16.mxu0 %v2394_v28  ;;  %v2713_v27 = vunpack.c.l.s8.bf16 %v2257_v17  ;;  %v2578_v28 = vunpack.c.h.s8.bf16 %v2186_v23  ;;  %v2282_v17 = vld [vmem:[%s9892_s2 + $0xf18] sm:$0xff] }
 0x29d   : > { %3114 = vmatprep.subr.bf16.mxu1 %v2522_v29  ;;  %v2706_v29 = vunpack.c.h.s8.bf16 %v2250_v43 }
 0x29f   : > { %3074 = vmatpush2.bf16.msra.mxu0 %v2393_v33  ;;  %v2577_v33 = vunpack.c.h.s8.bf16 %v2185_v31 }
 0x2a0   : > { %3115 = vmatpush2.bf16.msra.mxu1 %v2521_v34  ;;  %3075 = vmatprep.subr.bf16.mxu0 %v2386_v35  ;;  %v2705_v34 = vunpack.c.h.s8.bf16 %v2249_v32  ;;  %v2570_v35 = vunpack.c.l.s8.bf16 %v2186_v23  ;;  %v2217_v23 = vld [vmem:[%s9892_s2 + $0xd10] sm:$0xff] }
 0x2a1   : > { %3116 = vmatprep.subr.bf16.mxu1 %v2514_v36  ;;  %v2698_v36 = vunpack.c.l.s8.bf16 %v2250_v43  ;;  %v2281_v43 = vld [vmem:[%s9892_s2 + $0xf10] sm:$0xff] }
 0x2a3   : > { %3076 = vmatpush2.bf16.msra.mxu0 %v2385_v40  ;;  %v2569_v40 = vunpack.c.l.s8.bf16 %v2185_v31  ;;  %v2084_v31 = vld [vmem:[%s9892_s2 + $0x8e8] sm:$0xff] }
 0x2a4   : > { %3117 = vmatpush2.bf16.msra.mxu1 %v2513_v41  ;;  %3077 = vmatprep.subr.bf16.mxu0 %v2378_v42  ;;  %v2697_v41 = vunpack.c.l.s8.bf16 %v2249_v32  ;;  %v2690_v42 = vunpack.c.h.s8.bf16 %v2242_v37  ;;  %v2148_v32 = vld [vmem:[%s9892_s2 + $0xae8] sm:$0xff] }
 0x2a5   : > { %3118 = vmatprep.subr.bf16.mxu1 %v2506_v44  ;;  %v2818_v44 = vunpack.c.h.s8.bf16 %v2306_v39 }
 0x2a7   : > { %3078 = vmatpush2.bf16.msra.mxu0 %v2377_v47  ;;  %v2689_v47 = vunpack.c.h.s8.bf16 %v2241_v45 }
 0x2a8   : > { %3119 = vmatpush2.bf16.msra.mxu1 %v2505_v48  ;;  %3129 = vmatprep.subr.bf16.mxu0 %v2626_v49  ;;  %v2817_v48 = vunpack.c.h.s8.bf16 %v2305_v46  ;;  %v2682_v49 = vunpack.c.l.s8.bf16 %v2242_v37  ;;  %v2083_v37 = vld [vmem:[%s9892_s2 + $0x8e0] sm:$0xff] }
 0x2a9   : > { %3170 = vmatprep.subr.bf16.mxu1 %v2754_v30  ;;  %v2810_v30 = vunpack.c.l.s8.bf16 %v2306_v39  ;;  %v2147_v39 = vld [vmem:[%s9892_s2 + $0xae0] sm:$0xff] }
 0x2aa   : > { %3080 = vmatmul.mubr.bf16.vlgmr.msra.gmra.mxu0 %v10078_v10 }
 0x2ab   : > { %3121 = vmatmul.mubr.bf16.vlgmr.msra.gmra.mxu1 %v10087_v12  ;;  %3130 = vmatpush1.bf16.msra.mxu0 %v2625_v52  ;;  %v2681_v52 = vunpack.c.l.s8.bf16 %v2241_v45  ;;  %v2076_v45 = vld [vmem:[%s9892_s2 + $0x8a8] sm:$0xff] }
 0x2ac   : > { %3171 = vmatpush1.bf16.msra.mxu1 %v2753_v53  ;;  %3131 = vmatprep.subr.bf16.mxu0 %v2618_v54  ;;  %v2809_v53 = vunpack.c.l.s8.bf16 %v2305_v46  ;;  %v2674_v54 = vunpack.c.h.s8.bf16 %v2234_v50  ;;  %v2140_v46 = vld [vmem:[%s9892_s2 + $0xaa8] sm:$0xff] }
 0x2ad   : > { %3172 = vmatprep.subr.bf16.mxu1 %v2746_v55  ;;  %3161 = vmatprep.mubr.bf16.mxu0 %v10083_v19  ;;  %v2802_v55 = vunpack.c.h.s8.bf16 %v2298_v51 }
 0x2ae   : > { %3202 = vmatprep.mubr.bf16.mxu1 %v10093_v26 }
 0x2af   : > { %3132 = vmatpush1.bf16.msra.mxu0 %v2617_v59  ;;  %v2673_v59 = vunpack.c.h.s8.bf16 %v2233_v56 }
 0x2b0   : > { %3173 = vmatpush1.bf16.msra.mxu1 %v2745_v60  ;;  %3133 = vmatprep.subr.bf16.mxu0 %v2610_v61  ;;  %v2801_v60 = vunpack.c.h.s8.bf16 %v2297_v57  ;;  %v2666_v61 = vunpack.c.l.s8.bf16 %v2234_v50  ;;  %v2491_v50 = vunpack.c.l.s8.bf16 %v2147_v39 }
 0x2b1   : > { %3174 = vmatprep.subr.bf16.mxu1 %v2738_v62  ;;  %v2794_v62 = vunpack.c.l.s8.bf16 %v2298_v51 }
 0x2b3   : > { %3134 = vmatpush1.bf16.msra.mxu0 %v2609_v1  ;;  %v2665_v1 = vunpack.c.l.s8.bf16 %v2233_v56  ;;  %v2139_v56 = vld [vmem:[%s9892_s2 + $0xaa0] sm:$0xff] }
 0x2b4   : > { %3175 = vmatpush1.bf16.msra.mxu1 %v2737_v3  ;;  %3135 = vmatprep.subr.bf16.mxu0 %v2602_v4  ;;  %v2793_v3 = vunpack.c.l.s8.bf16 %v2297_v57  ;;  %v2658_v4 = vunpack.c.h.s8.bf16 %v2226_v38 }
 0x2b5   : > { %3176 = vmatprep.subr.bf16.mxu1 %v2730_v5  ;;  %v2786_v5 = vunpack.c.h.s8.bf16 %v2290_v0 }
 0x2b7   : > { %3136 = vmatpush1.bf16.msra.mxu0 %v2601_v6  ;;  %v2657_v6 = vunpack.c.h.s8.bf16 %v2225_v7 }
 0x2b8   : > { %3177 = vmatpush1.bf16.msra.mxu1 %v2729_v14  ;;  %3137 = vmatprep.subr.bf16.mxu0 %v2594_v15  ;;  %v2785_v14 = vunpack.c.h.s8.bf16 %v2289_v8  ;;  %v2650_v15 = vunpack.c.l.s8.bf16 %v2226_v38 }
 0x2b9   : > { %3178 = vmatprep.subr.bf16.mxu1 %v2722_v9  ;;  %v2778_v9 = vunpack.c.l.s8.bf16 %v2290_v0 }
 0x2bb   : > { %3138 = vmatpush1.bf16.msra.mxu0 %v2593_v18  ;;  %v2649_v18 = vunpack.c.l.s8.bf16 %v2225_v7 }
 0x2bc   : > { %3179 = vmatpush1.bf16.msra.mxu1 %v2721_v13  ;;  %3139 = vmatprep.subr.bf16.mxu0 %v2586_v21  ;;  %v2777_v13 = vunpack.c.l.s8.bf16 %v2289_v8  ;;  %v2642_v21 = vunpack.c.h.s8.bf16 %v2218_v16  ;;  %v2475_v8 = vunpack.c.l.s8.bf16 %v2139_v56 }
 0x2bd   : > { %3180 = vmatprep.subr.bf16.mxu1 %v2714_v22  ;;  %v2770_v22 = vunpack.c.h.s8.bf16 %v2282_v17 }
 0x2bf   : > { %3140 = vmatpush1.bf16.msra.mxu0 %v2585_v24  ;;  %v2641_v24 = vunpack.c.h.s8.bf16 %v2217_v23 }
 0x2c0   : > { %3181 = vmatpush1.bf16.msra.mxu1 %v2713_v27  ;;  %3141 = vmatprep.subr.bf16.mxu0 %v2578_v28  ;;  %v2769_v27 = vunpack.c.h.s8.bf16 %v2281_v43  ;;  %v2634_v28 = vunpack.c.l.s8.bf16 %v2218_v16 }
 0x2c1   : > { %3182 = vmatprep.subr.bf16.mxu1 %v2706_v29  ;;  %v2762_v29 = vunpack.c.l.s8.bf16 %v2282_v17 }
 0x2c3   : > { %3142 = vmatpush1.bf16.msra.mxu0 %v2577_v33  ;;  %v2633_v33 = vunpack.c.l.s8.bf16 %v2217_v23 }
 0x2c4   : > { %3183 = vmatpush1.bf16.msra.mxu1 %v2705_v34  ;;  %3143 = vmatprep.subr.bf16.mxu0 %v2570_v35  ;;  %v2761_v34 = vunpack.c.l.s8.bf16 %v2281_v43  ;;  %v2372_v35 = vunpack.c.h.s8.bf16 %v2084_v31 }
 0x2c5   : > { %3184 = vmatprep.subr.bf16.mxu1 %v2698_v36  ;;  %v2500_v36 = vunpack.c.h.s8.bf16 %v2148_v32 }
 0x2c7   : > { %3144 = vmatpush1.bf16.msra.mxu0 %v2569_v40  ;;  %v2371_v40 = vunpack.c.h.s8.bf16 %v2083_v37 }
 0x2c8   : > { %3185 = vmatpush1.bf16.msra.mxu1 %v2697_v41  ;;  %3145 = vmatprep.subr.bf16.mxu0 %v2690_v42  ;;  %v2499_v41 = vunpack.c.h.s8.bf16 %v2147_v39  ;;  %v2364_v42 = vunpack.c.l.s8.bf16 %v2084_v31 }
 0x2c9   : > { %3186 = vmatprep.subr.bf16.mxu1 %v2818_v44  ;;  %v2492_v44 = vunpack.c.l.s8.bf16 %v2148_v32 }
 0x2cb   : > { %3146 = vmatpush2.bf16.msra.mxu0 %v2689_v47 }
 0x2cc   : > { %3187 = vmatpush2.bf16.msra.mxu1 %v2817_v48  ;;  %3147 = vmatprep.subr.bf16.mxu0 %v2682_v49 }
 0x2cd   : > { %3188 = vmatprep.subr.bf16.mxu1 %v2810_v30  ;;  %v2363_v30 = vunpack.c.l.s8.bf16 %v2083_v37 }
 0x2cf   : > { %3148 = vmatpush2.bf16.msra.mxu0 %v2681_v52 }
 0x2d0   : > { %3189 = vmatpush2.bf16.msra.mxu1 %v2809_v53  ;;  %3149 = vmatprep.subr.bf16.mxu0 %v2674_v54  ;;  %v2356_v53 = vunpack.c.h.s8.bf16 %v2076_v45  ;;  %v2484_v54 = vunpack.c.h.s8.bf16 %v2140_v46 }
 0x2d1   : > { %3190 = vmatprep.subr.bf16.mxu1 %v2802_v55  ;;  %v2075_v55 = vld [vmem:[%s9892_s2 + $0x8a0] sm:$0xff] }
 0x2d2   : > { %v2347_v7 = vunpack.c.l.s8.bf16 %v2075_v55 }
 0x2d3   : > { %3150 = vmatpush2.bf16.msra.mxu0 %v2673_v59 }
 0x2d4   : > { %3191 = vmatpush2.bf16.msra.mxu1 %v2801_v60  ;;  %3151 = vmatprep.subr.bf16.mxu0 %v2666_v61  ;;  %v2355_v61 = vunpack.c.h.s8.bf16 %v2075_v55  ;;  %v2107_v55 = vld [vmem:[%s9892_s2 + $0x9a0] sm:$0xff] }
 0x2d5   : > { %3192 = vmatprep.subr.bf16.mxu1 %v2794_v62  ;;  %v2483_v62 = vunpack.c.h.s8.bf16 %v2139_v56  ;;  %v2171_v56 = vld [vmem:[%s9892_s2 + $0xba0] sm:$0xff] }
 0x2d7   : > { %3152 = vmatpush2.bf16.msra.mxu0 %v2665_v1  ;;  %v2348_v1 = vunpack.c.l.s8.bf16 %v2076_v45 }
 0x2d8   : > { %3193 = vmatpush2.bf16.msra.mxu1 %v2793_v3  ;;  %3153 = vmatprep.subr.bf16.mxu0 %v2658_v4  ;;  %v2476_v3 = vunpack.c.l.s8.bf16 %v2140_v46  ;;  %v2068_v4 = vld [vmem:[%s9892_s2 + $0x868] sm:$0xff] }
 0x2d9   : > { %3194 = vmatprep.subr.bf16.mxu1 %v2786_v5  ;;  %v2132_v5 = vld [vmem:[%s9892_s2 + $0xa68] sm:$0xff] }
 0x2db   : > { %3154 = vmatpush2.bf16.msra.mxu0 %v2657_v6  ;;  %v2340_v6 = vunpack.c.h.s8.bf16 %v2068_v4 }
 0x2dc   : > { %3195 = vmatpush2.bf16.msra.mxu1 %v2785_v14  ;;  %3155 = vmatprep.subr.bf16.mxu0 %v2650_v15  ;;  %v2468_v14 = vunpack.c.h.s8.bf16 %v2132_v5  ;;  %v2067_v15 = vld [vmem:[%s9892_s2 + $0x860] sm:$0xff] }
 0x2dd   : > { %3196 = vmatprep.subr.bf16.mxu1 %v2778_v9  ;;  %v2131_v9 = vld [vmem:[%s9892_s2 + $0xa60] sm:$0xff]  ;;  %v2339_v16 = vunpack.c.h.s8.bf16 %v2067_v15  ;;  %v2331_v23 = vunpack.c.l.s8.bf16 %v2067_v15 }
 0x2de   : > { %v2467_v17 = vunpack.c.h.s8.bf16 %v2131_v9  ;;  %v2459_v43 = vunpack.c.l.s8.bf16 %v2131_v9 }
 0x2df   : > { %3156 = vmatpush2.bf16.msra.mxu0 %v2649_v18  ;;  %v2332_v18 = vunpack.c.l.s8.bf16 %v2068_v4 }
 0x2e0   : > { %3197 = vmatpush2.bf16.msra.mxu1 %v2777_v13  ;;  %3157 = vmatprep.subr.bf16.mxu0 %v2642_v21  ;;  %v2460_v13 = vunpack.c.l.s8.bf16 %v2132_v5  ;;  %v2060_v21 = vld [vmem:[%s9892_s2 + $0x828] sm:$0xff] }
 0x2e1   : > { %3198 = vmatprep.subr.bf16.mxu1 %v2770_v22  ;;  %v2124_v22 = vld [vmem:[%s9892_s2 + $0xa28] sm:$0xff] }
 0x2e3   : > { %3158 = vmatpush2.bf16.msra.mxu0 %v2641_v24  ;;  %v2324_v24 = vunpack.c.h.s8.bf16 %v2060_v21 }
 0x2e4   : > { %3199 = vmatpush2.bf16.msra.mxu1 %v2769_v27  ;;  %3159 = vmatprep.subr.bf16.mxu0 %v2634_v28  ;;  %v2452_v27 = vunpack.c.h.s8.bf16 %v2124_v22  ;;  %v2059_v28 = vld [vmem:[%s9892_s2 + $0x820] sm:$0xff] }
 0x2e5   : > { %3200 = vmatprep.subr.bf16.mxu1 %v2762_v29  ;;  %v2123_v29 = vld [vmem:[%s9892_s2 + $0xa20] sm:$0xff]  ;;  %v2323_v31 = vunpack.c.h.s8.bf16 %v2059_v28  ;;  %v2315_v37 = vunpack.c.l.s8.bf16 %v2059_v28 }
 0x2e6   : > { %v2451_v32 = vunpack.c.h.s8.bf16 %v2123_v29  ;;  %v2443_v39 = vunpack.c.l.s8.bf16 %v2123_v29 }
 0x2e7   : > { %3160 = vmatpush2.bf16.msra.mxu0 %v2633_v33  ;;  %v2316_v33 = vunpack.c.l.s8.bf16 %v2060_v21 }
 0x2e8   : > { %3201 = vmatpush2.bf16.msra.mxu1 %v2761_v34  ;;  %3211 = vmatprep.subr.bf16.mxu0 %v2372_v35  ;;  %v2444_v34 = vunpack.c.l.s8.bf16 %v2124_v22  ;;  %v2116_v35 = vld [vmem:[%s9892_s2 + $0x9e8] sm:$0xff] }
 0x2e9   : > { %3252 = vmatprep.subr.bf16.mxu1 %v2500_v36  ;;  %v2180_v36 = vld [vmem:[%s9892_s2 + $0xbe8] sm:$0xff] }
 0x2ea   : > { %v2917_v47 = vpop.f32.mrf.mxu0  ;;  %3162 = vmatmul.mubr.bf16.vlgmr.msra.gmra.mxu0 %v10129_v58 }
 0x2eb   : > { %v2958_v48 = vpop.f32.mrf.mxu1  ;;  %3203 = vmatmul.mubr.bf16.vlgmr.msra.gmra.mxu1 %v10135_v2  ;;  %3212 = vmatpush1.bf16.msra.mxu0 %v2371_v40  ;;  %v2436_v40 = vunpack.c.h.s8.bf16 %v2116_v35 }
 0x2ec   : > { %v10213_v49 = vadd.f32 %v2958_v48, %v2917_v47  ;;  %3253 = vmatpush1.bf16.msra.mxu1 %v2499_v41  ;;  %v2919_v51 = vpop.f32.mrf.mxu0  ;;  %3213 = vmatprep.subr.bf16.mxu0 %v2364_v42  ;;  %v2564_v41 = vunpack.c.h.s8.bf16 %v2180_v36  ;;  %v2115_v42 = vld [vmem:[%s9892_s2 + $0x9e0] sm:$0xff]  ;;  %v2428_v47 = vunpack.c.l.s8.bf16 %v2116_v35  ;;  %v2556_v48 = vunpack.c.l.s8.bf16 %v2180_v36 }
 0x2ed   : > { %v2960_v52 = vpop.f32.mrf.mxu1  ;;  %3254 = vmatprep.subr.bf16.mxu1 %v2492_v44  ;;  %3243 = vmatprep.mubr.bf16.mxu0 %v10045_v20  ;;  %v2179_v44 = vld [vmem:[%s9892_s2 + $0xbe0] sm:$0xff]  ;;  %v2435_v45 = vunpack.c.h.s8.bf16 %v2115_v42 }
 0x2ee   : > { %v10217_v57 = vadd.f32 %v2960_v52, %v2919_v51  ;;  %3284 = vmatprep.mubr.bf16.mxu1 %v10051_v25  ;;  %v2921_v59 = vpop.f32.mrf.mxu0  ;;  %v2563_v46 = vunpack.c.h.s8.bf16 %v2179_v44  ;;  %v2427_v51 = vunpack.c.l.s8.bf16 %v2115_v42  ;;  %v2555_v52 = vunpack.c.l.s8.bf16 %v2179_v44 }
 0x2ef   : > { %v2962_v60 = vpop.f32.mrf.mxu1  ;;  %3214 = vmatpush1.bf16.msra.mxu0 %v2363_v30  ;;  %v2108_v30 = vld [vmem:[%s9892_s2 + $0x9a8] sm:$0xff]  ;;  %v2419_v59 = vunpack.c.h.s8.bf16 %v2107_v55 }
 0x2f0   : > { %3255 = vmatpush1.bf16.msra.mxu1 %v2491_v50  ;;  %v2922_v38 = vpop.f32.mrf.mxu0  ;;  %3215 = vmatprep.subr.bf16.mxu0 %v2356_v53  ;;  %v2172_v50 = vld [vmem:[%s9892_s2 + $0xba8] sm:$0xff]  ;;  %v2420_v53 = vunpack.c.h.s8.bf16 %v2108_v30  ;;  %v2547_v60 = vunpack.c.h.s8.bf16 %v2171_v56 }
 0x2f1   : > { %v2963_v0 = vpop.f32.mrf.mxu1  ;;  %3256 = vmatprep.subr.bf16.mxu1 %v2484_v54  ;;  %v2548_v54 = vunpack.c.h.s8.bf16 %v2172_v50  ;;  %v2100_v38 = vld [vmem:[%s9892_s2 + $0x968] sm:$0xff] }
 0x2f2   : > { %v2164_v0 = vld [vmem:[%s9892_s2 + $0xb68] sm:$0xff]  ;;  %v2404_v4 = vunpack.c.h.s8.bf16 %v2100_v38  ;;  %v2396_v15 = vunpack.c.l.s8.bf16 %v2100_v38 }
 0x2f3   : > { %3216 = vmatpush1.bf16.msra.mxu0 %v2355_v61  ;;  %v2412_v61 = vunpack.c.l.s8.bf16 %v2108_v30  ;;  %v2532_v5 = vunpack.c.h.s8.bf16 %v2164_v0  ;;  %v2524_v9 = vunpack.c.l.s8.bf16 %v2164_v0 }
 0x2f4   : > { %3257 = vmatpush1.bf16.msra.mxu1 %v2483_v62  ;;  %3217 = vmatprep.subr.bf16.mxu0 %v2348_v1  ;;  %v2540_v62 = vunpack.c.l.s8.bf16 %v2172_v50  ;;  %v2411_v1 = vunpack.c.l.s8.bf16 %v2107_v55 }
 0x2f5   : > { %3258 = vmatprep.subr.bf16.mxu1 %v2476_v3  ;;  %v2539_v3 = vunpack.c.l.s8.bf16 %v2171_v56  ;;  %v2203_v56 = vld [vmem:[%s9892_s2 + $0xca0] sm:$0xff] }
 0x2f6   : > { %v2611_v0 = vunpack.c.h.s8.bf16 %v2203_v56 }
 0x2f7   : > { %3218 = vmatpush1.bf16.msra.mxu0 %v2347_v7  ;;  %v2099_v7 = vld [vmem:[%s9892_s2 + $0x960] sm:$0xff] }
 0x2f8   : > { %3259 = vmatpush1.bf16.msra.mxu1 %v2475_v8  ;;  %3219 = vmatprep.subr.bf16.mxu0 %v2340_v6  ;;  %v2163_v8 = vld [vmem:[%s9892_s2 + $0xb60] sm:$0xff]  ;;  %v2403_v6 = vunpack.c.h.s8.bf16 %v2099_v7 }
 0x2f9   : > { %3260 = vmatprep.subr.bf16.mxu1 %v2468_v14  ;;  %v2531_v14 = vunpack.c.h.s8.bf16 %v2163_v8 }
 0x2fb   : > { %3220 = vmatpush1.bf16.msra.mxu0 %v2339_v16  ;;  %v2092_v16 = vld [vmem:[%s9892_s2 + $0x928] sm:$0xff] }
 0x2fc   : > { %3261 = vmatpush1.bf16.msra.mxu1 %v2467_v17  ;;  %3221 = vmatprep.subr.bf16.mxu0 %v2332_v18  ;;  %v2156_v17 = vld [vmem:[%s9892_s2 + $0xb28] sm:$0xff]  ;;  %v2395_v18 = vunpack.c.l.s8.bf16 %v2099_v7  ;;  %v2388_v21 = vunpack.c.h.s8.bf16 %v2092_v16  ;;  %v2380_v28 = vunpack.c.l.s8.bf16 %v2092_v16  ;;  %v2195_v16 = vld [vmem:[%s9892_s2 + $0xc60] sm:$0xff] }
 0x2fd   : > { %3262 = vmatprep.subr.bf16.mxu1 %v2460_v13  ;;  %v2523_v13 = vunpack.c.l.s8.bf16 %v2163_v8  ;;  %v2516_v22 = vunpack.c.h.s8.bf16 %v2156_v17  ;;  %v2508_v29 = vunpack.c.l.s8.bf16 %v2156_v17  ;;  %v2196_v7 = vld [vmem:[%s9892_s2 + $0xc68] sm:$0xff]  ;;  %v2259_v17 = vld [vmem:[%s9892_s2 + $0xe60] sm:$0xff] }
 0x2fe   : > { %v2260_v8 = vld [vmem:[%s9892_s2 + $0xe68] sm:$0xff] }
 0x2ff   : > { %3222 = vmatpush1.bf16.msra.mxu0 %v2331_v23  ;;  %v2091_v23 = vld [vmem:[%s9892_s2 + $0x920] sm:$0xff] }
 0x300   : > { %3263 = vmatpush1.bf16.msra.mxu1 %v2459_v43  ;;  %3223 = vmatprep.subr.bf16.mxu0 %v2324_v24  ;;  %v2155_v43 = vld [vmem:[%s9892_s2 + $0xb20] sm:$0xff]  ;;  %v2387_v24 = vunpack.c.h.s8.bf16 %v2091_v23 }
 0x301   : > { %3264 = vmatprep.subr.bf16.mxu1 %v2452_v27  ;;  %v2515_v27 = vunpack.c.h.s8.bf16 %v2155_v43 }
 0x303   : > { %3224 = vmatpush1.bf16.msra.mxu0 %v2323_v31  ;;  %v2212_v31 = vld [vmem:[%s9892_s2 + $0xce8] sm:$0xff] }
 0x304   : > { %3265 = vmatpush1.bf16.msra.mxu1 %v2451_v32  ;;  %3225 = vmatprep.subr.bf16.mxu0 %v2316_v33  ;;  %v2276_v32 = vld [vmem:[%s9892_s2 + $0xee8] sm:$0xff]  ;;  %v2379_v33 = vunpack.c.l.s8.bf16 %v2091_v23  ;;  %v2628_v35 = vunpack.c.h.s8.bf16 %v2212_v31  ;;  %v2620_v42 = vunpack.c.l.s8.bf16 %v2212_v31  ;;  %v2187_v31 = vld [vmem:[%s9892_s2 + $0xc20] sm:$0xff] }
 0x305   : > { %3266 = vmatprep.subr.bf16.mxu1 %v2444_v34  ;;  %v2507_v34 = vunpack.c.l.s8.bf16 %v2155_v43  ;;  %v2756_v36 = vunpack.c.h.s8.bf16 %v2276_v32  ;;  %v2748_v44 = vunpack.c.l.s8.bf16 %v2276_v32  ;;  %v2188_v23 = vld [vmem:[%s9892_s2 + $0xc28] sm:$0xff]  ;;  %v2251_v32 = vld [vmem:[%s9892_s2 + $0xe20] sm:$0xff] }
 0x306   : > { %v2252_v43 = vld [vmem:[%s9892_s2 + $0xe28] sm:$0xff] }
 0x307   : > { %3226 = vmatpush1.bf16.msra.mxu0 %v2315_v37  ;;  %v2211_v37 = vld [vmem:[%s9892_s2 + $0xce0] sm:$0xff] }
 0x308   : > { %3267 = vmatpush1.bf16.msra.mxu1 %v2443_v39  ;;  %3227 = vmatprep.subr.bf16.mxu0 %v2436_v40  ;;  %v2275_v39 = vld [vmem:[%s9892_s2 + $0xee0] sm:$0xff]  ;;  %v2627_v40 = vunpack.c.h.s8.bf16 %v2211_v37  ;;  %v2619_v50 = vunpack.c.l.s8.bf16 %v2211_v37  ;;  %v2244_v37 = vld [vmem:[%s9892_s2 + $0xde8] sm:$0xff] }
 0x309   : > { %3268 = vmatprep.subr.bf16.mxu1 %v2564_v41  ;;  %v2755_v41 = vunpack.c.h.s8.bf16 %v2275_v39 }
 0x30b   : > { %3228 = vmatpush2.bf16.msra.mxu0 %v2435_v45  ;;  %v2204_v45 = vld [vmem:[%s9892_s2 + $0xca8] sm:$0xff] }
 0x30c   : > { %3269 = vmatpush2.bf16.msra.mxu1 %v2563_v46  ;;  %3229 = vmatprep.subr.bf16.mxu0 %v2428_v47  ;;  %v2268_v46 = vld [vmem:[%s9892_s2 + $0xea8] sm:$0xff] }
 0x30d   : > { %3270 = vmatprep.subr.bf16.mxu1 %v2556_v48  ;;  %v2740_v55 = vunpack.c.h.s8.bf16 %v2268_v46 }
 0x30f   : > { %3230 = vmatpush2.bf16.msra.mxu0 %v2427_v51  ;;  %v2747_v51 = vunpack.c.l.s8.bf16 %v2275_v39  ;;  %v2308_v39 = vld [vmem:[%s9892_s2 + $0xfe8] sm:$0xff] }
 0x310   : > { %3271 = vmatpush2.bf16.msra.mxu1 %v2555_v52  ;;  %3231 = vmatprep.subr.bf16.mxu0 %v2420_v53 }
 0x311   : > { %3272 = vmatprep.subr.bf16.mxu1 %v2548_v54  ;;  %v2612_v54 = vunpack.c.h.s8.bf16 %v2204_v45 }
 0x313   : > { %3232 = vmatpush2.bf16.msra.mxu0 %v2419_v59  ;;  %v2267_v59 = vld [vmem:[%s9892_s2 + $0xea0] sm:$0xff] }
 0x314   : > { %3273 = vmatpush2.bf16.msra.mxu1 %v2547_v60  ;;  %3233 = vmatprep.subr.bf16.mxu0 %v2412_v61 }
 0x315   : > { %3274 = vmatprep.subr.bf16.mxu1 %v2540_v62 }
 0x317   : > { %3234 = vmatpush2.bf16.msra.mxu0 %v2411_v1  ;;  %v2739_v1 = vunpack.c.h.s8.bf16 %v2267_v59 }
 0x318   : > { %3275 = vmatpush2.bf16.msra.mxu1 %v2539_v3  ;;  %3235 = vmatprep.subr.bf16.mxu0 %v2404_v4 }
 0x319   : > { %3276 = vmatprep.subr.bf16.mxu1 %v2532_v5  ;;  %v2732_v5 = vunpack.c.l.s8.bf16 %v2268_v46  ;;  %v2307_v46 = vld [vmem:[%s9892_s2 + $0xfe0] sm:$0xff] }
 0x31b   : > { %3236 = vmatpush2.bf16.msra.mxu0 %v2403_v6  ;;  %v2603_v6 = vunpack.c.l.s8.bf16 %v2203_v56 }
 0x31c   : > { %3277 = vmatpush2.bf16.msra.mxu1 %v2531_v14  ;;  %3237 = vmatprep.subr.bf16.mxu0 %v2396_v15  ;;  %v2731_v14 = vunpack.c.l.s8.bf16 %v2267_v59  ;;  %v2596_v15 = vunpack.c.h.s8.bf16 %v2196_v7  ;;  %v2235_v59 = vld [vmem:[%s9892_s2 + $0xda0] sm:$0xff] }
 0x31d   : > { %3278 = vmatprep.subr.bf16.mxu1 %v2524_v9  ;;  %v2724_v9 = vunpack.c.h.s8.bf16 %v2260_v8 }
 0x31f   : > { %3238 = vmatpush2.bf16.msra.mxu0 %v2395_v18  ;;  %v2595_v18 = vunpack.c.h.s8.bf16 %v2195_v16 }
 0x320   : > { %3279 = vmatpush2.bf16.msra.mxu1 %v2523_v13  ;;  %3239 = vmatprep.subr.bf16.mxu0 %v2388_v21  ;;  %v2723_v13 = vunpack.c.h.s8.bf16 %v2259_v17  ;;  %v2588_v21 = vunpack.c.l.s8.bf16 %v2196_v7 }
 0x321   : > { %3280 = vmatprep.subr.bf16.mxu1 %v2516_v22  ;;  %v2716_v22 = vunpack.c.l.s8.bf16 %v2260_v8 }
 0x323   : > { %3240 = vmatpush2.bf16.msra.mxu0 %v2387_v24  ;;  %v2587_v24 = vunpack.c.l.s8.bf16 %v2195_v16 }
 0x324   : > { %3281 = vmatpush2.bf16.msra.mxu1 %v2515_v27  ;;  %3241 = vmatprep.subr.bf16.mxu0 %v2380_v28  ;;  %v2715_v27 = vunpack.c.l.s8.bf16 %v2259_v17  ;;  %v2580_v28 = vunpack.c.h.s8.bf16 %v2188_v23 }
 0x325   : > { %3282 = vmatprep.subr.bf16.mxu1 %v2508_v29  ;;  %v2708_v29 = vunpack.c.h.s8.bf16 %v2252_v43 }
 0x327   : > { %3242 = vmatpush2.bf16.msra.mxu0 %v2379_v33  ;;  %v2579_v33 = vunpack.c.h.s8.bf16 %v2187_v31 }
 0x328   : > { %3283 = vmatpush2.bf16.msra.mxu1 %v2507_v34  ;;  %3293 = vmatprep.subr.bf16.mxu0 %v2628_v35  ;;  %v2707_v34 = vunpack.c.h.s8.bf16 %v2251_v32  ;;  %v2572_v35 = vunpack.c.l.s8.bf16 %v2188_v23 }
 0x329   : > { %3334 = vmatprep.subr.bf16.mxu1 %v2756_v36  ;;  %v2700_v36 = vunpack.c.l.s8.bf16 %v2252_v43 }
 0x32a   : > { %v2999_v47 = vpop.f32.mrf.mxu0  ;;  %3244 = vmatmul.mubr.bf16.vlgmr.msra.gmra.mxu0 %v10078_v10 }
 0x32b   : > { %v3040_v48 = vpop.f32.mrf.mxu1  ;;  %3285 = vmatmul.mubr.bf16.vlgmr.msra.gmra.mxu1 %v10087_v12  ;;  %v3000_v30 = vadd.f32 %v2999_v47, %v10213_v49  ;;  %3294 = vmatpush1.bf16.msra.mxu0 %v2627_v40  ;;  %v2571_v40 = vunpack.c.l.s8.bf16 %v2187_v31 }
 0x32c   : > { %3335 = vmatpush1.bf16.msra.mxu1 %v2755_v41  ;;  %v3001_v52 = vpop.f32.mrf.mxu0  ;;  %3295 = vmatprep.subr.bf16.mxu0 %v2620_v42  ;;  %v2699_v41 = vunpack.c.l.s8.bf16 %v2251_v32  ;;  %v2692_v42 = vunpack.c.h.s8.bf16 %v2244_v37 }
 0x32d   : > { %v3042_v53 = vpop.f32.mrf.mxu1  ;;  %3336 = vmatprep.subr.bf16.mxu1 %v2748_v44  ;;  %v10256_v60 = vadd.f32 %v3040_v48, %v3000_v30  ;;  %v3002_v61 = vadd.f32 %v3001_v52, %v10217_v57  ;;  %3325 = vmatprep.mubr.bf16.mxu0 %v10083_v19  ;;  %v2604_v57 = vunpack.c.l.s8.bf16 %v2204_v45  ;;  %v2820_v44 = vunpack.c.h.s8.bf16 %v2308_v39  ;;  %v2243_v45 = vld [vmem:[%s9892_s2 + $0xde0] sm:$0xff]  ;;  %v2300_v52 = vld [vmem:[%s9892_s2 + $0xfa8] sm:$0xff] }
 0x32e   : > { %3366 = vmatprep.mubr.bf16.mxu1 %v10093_v26  ;;  %v3003_v49 = vpop.f32.mrf.mxu0  ;;  %v2691_v47 = vunpack.c.h.s8.bf16 %v2243_v45  ;;  %v2819_v48 = vunpack.c.h.s8.bf16 %v2307_v46  ;;  %v2684_v30 = vunpack.c.l.s8.bf16 %v2244_v37  ;;  %v2804_v56 = vunpack.c.h.s8.bf16 %v2300_v52 }
 0x32f   : > { %v3044_v62 = vpop.f32.mrf.mxu1  ;;  %v10261_v38 = vadd.f32 %v3042_v53, %v3002_v61  ;;  %3296 = vmatpush1.bf16.msra.mxu0 %v2619_v50  ;;  %v2812_v50 = vunpack.c.l.s8.bf16 %v2308_v39  ;;  %v2683_v53 = vunpack.c.l.s8.bf16 %v2243_v45  ;;  %v2299_v61 = vld [vmem:[%s9892_s2 + $0xfa0] sm:$0xff]  ;;  %v2675_v49 = vunpack.c.h.s8.bf16 %v2235_v59 }
 0x330   : > { %3337 = vmatpush1.bf16.msra.mxu1 %v2747_v51  ;;  %v3004_v3 = vpop.f32.mrf.mxu0  ;;  %3297 = vmatprep.subr.bf16.mxu0 %v2612_v54  ;;  %v2236_v51 = vld [vmem:[%s9892_s2 + $0xda8] sm:$0xff]  ;;  %v2811_v54 = vunpack.c.l.s8.bf16 %v2307_v46  ;;  %v2803_v62 = vunpack.c.h.s8.bf16 %v2299_v61 }
 0x331   : > { %v3045_v4 = vpop.f32.mrf.mxu1  ;;  %3338 = vmatprep.subr.bf16.mxu1 %v2740_v55  ;;  %v2676_v55 = vunpack.c.h.s8.bf16 %v2236_v51  ;;  %v2228_v3 = vld [vmem:[%s9892_s2 + $0xd68] sm:$0xff] }
 0x332   : > { %v2292_v4 = vld [vmem:[%s9892_s2 + $0xf68] sm:$0xff]  ;;  %v2660_v7 = vunpack.c.h.s8.bf16 %v2228_v3  ;;  %v2652_v16 = vunpack.c.l.s8.bf16 %v2228_v3 }
 0x333   : > { %3298 = vmatpush1.bf16.msra.mxu0 %v2611_v0  ;;  %v2668_v0 = vunpack.c.l.s8.bf16 %v2236_v51  ;;  %v2788_v8 = vunpack.c.h.s8.bf16 %v2292_v4  ;;  %v2780_v17 = vunpack.c.l.s8.bf16 %v2292_v4 }
 0x334   : > { %3339 = vmatpush1.bf16.msra.mxu1 %v2739_v1  ;;  %3299 = vmatprep.subr.bf16.mxu0 %v2604_v57  ;;  %v2796_v1 = vunpack.c.l.s8.bf16 %v2300_v52  ;;  %v2667_v57 = vunpack.c.l.s8.bf16 %v2235_v59 }
 0x335   : > { %3340 = vmatprep.subr.bf16.mxu1 %v2732_v5  ;;  %v2795_v5 = vunpack.c.l.s8.bf16 %v2299_v61  ;;  %v2077_v61 = vld [vmem:[%s9892_s2 + $0x8b0] sm:$0xff] }
 0x336   : > { %v2357_v3 = vunpack.c.h.s8.bf16 %v2077_v61 }
 0x337   : > { %3300 = vmatpush1.bf16.msra.mxu0 %v2603_v6  ;;  %v2227_v6 = vld [vmem:[%s9892_s2 + $0xd60] sm:$0xff] }
 0x338   : > { %3341 = vmatpush1.bf16.msra.mxu1 %v2731_v14  ;;  %3301 = vmatprep.subr.bf16.mxu0 %v2596_v15  ;;  %v2291_v14 = vld [vmem:[%s9892_s2 + $0xf60] sm:$0xff]  ;;  %v2659_v15 = vunpack.c.h.s8.bf16 %v2227_v6 }
 0x339   : > { %3342 = vmatprep.subr.bf16.mxu1 %v2724_v9  ;;  %v2787_v9 = vunpack.c.h.s8.bf16 %v2291_v14 }
 0x33b   : > { %3302 = vmatpush1.bf16.msra.mxu0 %v2595_v18  ;;  %v2220_v18 = vld [vmem:[%s9892_s2 + $0xd28] sm:$0xff] }
 0x33c   : > { %3343 = vmatpush1.bf16.msra.mxu1 %v2723_v13  ;;  %3303 = vmatprep.subr.bf16.mxu0 %v2588_v21  ;;  %v2284_v13 = vld [vmem:[%s9892_s2 + $0xf28] sm:$0xff]  ;;  %v2651_v21 = vunpack.c.l.s8.bf16 %v2227_v6  ;;  %v2644_v23 = vunpack.c.h.s8.bf16 %v2220_v18  ;;  %v2636_v31 = vunpack.c.l.s8.bf16 %v2220_v18  ;;  %v2070_v6 = vld [vmem:[%s9892_s2 + $0x878] sm:$0xff] }
 0x33d   : > { %3344 = vmatprep.subr.bf16.mxu1 %v2716_v22  ;;  %v2779_v22 = vunpack.c.l.s8.bf16 %v2291_v14  ;;  %v2772_v43 = vunpack.c.h.s8.bf16 %v2284_v13  ;;  %v2764_v32 = vunpack.c.l.s8.bf16 %v2284_v13  ;;  %v2134_v14 = vld [vmem:[%s9892_s2 + $0xa78] sm:$0xff] }
 0x33f   : > { %3304 = vmatpush1.bf16.msra.mxu0 %v2587_v24  ;;  %v2219_v24 = vld [vmem:[%s9892_s2 + $0xd20] sm:$0xff] }
 0x340   : > { %3345 = vmatpush1.bf16.msra.mxu1 %v2715_v27  ;;  %3305 = vmatprep.subr.bf16.mxu0 %v2580_v28  ;;  %v2283_v27 = vld [vmem:[%s9892_s2 + $0xf20] sm:$0xff]  ;;  %v2643_v28 = vunpack.c.h.s8.bf16 %v2219_v24 }
 0x341   : > { %3346 = vmatprep.subr.bf16.mxu1 %v2708_v29  ;;  %v2771_v29 = vunpack.c.h.s8.bf16 %v2283_v27 }
 0x343   : > { %3306 = vmatpush1.bf16.msra.mxu0 %v2579_v33  ;;  %v2086_v33 = vld [vmem:[%s9892_s2 + $0x8f8] sm:$0xff] }
 0x344   : > { %3347 = vmatpush1.bf16.msra.mxu1 %v2707_v34  ;;  %3307 = vmatprep.subr.bf16.mxu0 %v2572_v35  ;;  %v2150_v34 = vld [vmem:[%s9892_s2 + $0xaf8] sm:$0xff]  ;;  %v2635_v35 = vunpack.c.l.s8.bf16 %v2219_v24  ;;  %v2374_v37 = vunpack.c.h.s8.bf16 %v2086_v33  ;;  %v2366_v45 = vunpack.c.l.s8.bf16 %v2086_v33 }
 0x345   : > { %3348 = vmatprep.subr.bf16.mxu1 %v2700_v36  ;;  %v2763_v36 = vunpack.c.l.s8.bf16 %v2283_v27  ;;  %v2502_v39 = vunpack.c.h.s8.bf16 %v2150_v34  ;;  %v2494_v46 = vunpack.c.l.s8.bf16 %v2150_v34 }
 0x347   : > { %3308 = vmatpush1.bf16.msra.mxu0 %v2571_v40  ;;  %v2085_v40 = vld [vmem:[%s9892_s2 + $0x8f0] sm:$0xff] }
 0x348   : > { %3349 = vmatpush1.bf16.msra.mxu1 %v2699_v41  ;;  %3309 = vmatprep.subr.bf16.mxu0 %v2692_v42  ;;  %v2149_v41 = vld [vmem:[%s9892_s2 + $0xaf0] sm:$0xff]  ;;  %v2373_v42 = vunpack.c.h.s8.bf16 %v2085_v40  ;;  %v2365_v52 = vunpack.c.l.s8.bf16 %v2085_v40 }
 0x349   : > { %3350 = vmatprep.subr.bf16.mxu1 %v2820_v44  ;;  %v2501_v44 = vunpack.c.h.s8.bf16 %v2149_v41 }
 0x34b   : > { %3310 = vmatpush2.bf16.msra.mxu0 %v2691_v47  ;;  %v2078_v47 = vld [vmem:[%s9892_s2 + $0x8b8] sm:$0xff] }
 0x34c   : > { %3351 = vmatpush2.bf16.msra.mxu1 %v2819_v48  ;;  %3311 = vmatprep.subr.bf16.mxu0 %v2684_v30  ;;  %v2142_v48 = vld [vmem:[%s9892_s2 + $0xab8] sm:$0xff] }
 0x34d   : > { %3352 = vmatprep.subr.bf16.mxu1 %v2812_v50  ;;  %v2486_v59 = vunpack.c.h.s8.bf16 %v2142_v48 }
 0x34f   : > { %3312 = vmatpush2.bf16.msra.mxu0 %v2683_v53  ;;  %v2493_v53 = vunpack.c.l.s8.bf16 %v2149_v41 }
 0x350   : > { %3353 = vmatpush2.bf16.msra.mxu1 %v2811_v54  ;;  %3313 = vmatprep.subr.bf16.mxu0 %v2676_v55 }
 0x351   : > { %3354 = vmatprep.subr.bf16.mxu1 %v2804_v56  ;;  %v2358_v56 = vunpack.c.h.s8.bf16 %v2078_v47 }
 0x353   : > { %3314 = vmatpush2.bf16.msra.mxu0 %v2675_v49  ;;  %v2141_v49 = vld [vmem:[%s9892_s2 + $0xab0] sm:$0xff] }
 0x354   : > { %3355 = vmatpush2.bf16.msra.mxu1 %v2803_v62  ;;  %3315 = vmatprep.subr.bf16.mxu0 %v2668_v0  ;;  %v2485_v4 = vunpack.c.h.s8.bf16 %v2141_v49 }
 0x355   : > { %3356 = vmatprep.subr.bf16.mxu1 %v2796_v1 }
 0x357   : > { %3316 = vmatpush2.bf16.msra.mxu0 %v2667_v57 }
 0x358   : > { %3357 = vmatpush2.bf16.msra.mxu1 %v2795_v5  ;;  %3317 = vmatprep.subr.bf16.mxu0 %v2660_v7  ;;  %v2350_v7 = vunpack.c.l.s8.bf16 %v2078_v47 }
 0x359   : > { %3358 = vmatprep.subr.bf16.mxu1 %v2788_v8  ;;  %v2478_v8 = vunpack.c.l.s8.bf16 %v2142_v48 }
 0x35b   : > { %3318 = vmatpush2.bf16.msra.mxu0 %v2659_v15  ;;  %v2342_v15 = vunpack.c.h.s8.bf16 %v2070_v6 }
 0x35c   : > { %3359 = vmatpush2.bf16.msra.mxu1 %v2787_v9  ;;  %3319 = vmatprep.subr.bf16.mxu0 %v2652_v16  ;;  %v2470_v9 = vunpack.c.h.s8.bf16 %v2134_v14  ;;  %v2069_v16 = vld [vmem:[%s9892_s2 + $0x870] sm:$0xff] }
 0x35d   : > { %3360 = vmatprep.subr.bf16.mxu1 %v2780_v17  ;;  %v2133_v17 = vld [vmem:[%s9892_s2 + $0xa70] sm:$0xff]  ;;  %v2341_v18 = vunpack.c.h.s8.bf16 %v2069_v16  ;;  %v2333_v24 = vunpack.c.l.s8.bf16 %v2069_v16 }
 0x35e   : > { %v2469_v13 = vunpack.c.h.s8.bf16 %v2133_v17  ;;  %v2461_v27 = vunpack.c.l.s8.bf16 %v2133_v17 }
 0x35f   : > { %3320 = vmatpush2.bf16.msra.mxu0 %v2651_v21  ;;  %v2334_v21 = vunpack.c.l.s8.bf16 %v2070_v6 }
 0x360   : > { %3361 = vmatpush2.bf16.msra.mxu1 %v2779_v22  ;;  %3321 = vmatprep.subr.bf16.mxu0 %v2644_v23  ;;  %v2462_v22 = vunpack.c.l.s8.bf16 %v2134_v14  ;;  %v2062_v23 = vld [vmem:[%s9892_s2 + $0x838] sm:$0xff] }
 0x361   : > { %3362 = vmatprep.subr.bf16.mxu1 %v2772_v43  ;;  %v2126_v43 = vld [vmem:[%s9892_s2 + $0xa38] sm:$0xff] }
 0x363   : > { %3322 = vmatpush2.bf16.msra.mxu0 %v2643_v28  ;;  %v2326_v28 = vunpack.c.h.s8.bf16 %v2062_v23 }
 0x364   : > { %3363 = vmatpush2.bf16.msra.mxu1 %v2771_v29  ;;  %3323 = vmatprep.subr.bf16.mxu0 %v2636_v31  ;;  %v2454_v29 = vunpack.c.h.s8.bf16 %v2126_v43  ;;  %v2061_v31 = vld [vmem:[%s9892_s2 + $0x830] sm:$0xff] }
 0x365   : > { %3364 = vmatprep.subr.bf16.mxu1 %v2764_v32  ;;  %v2125_v32 = vld [vmem:[%s9892_s2 + $0xa30] sm:$0xff]  ;;  %v2325_v33 = vunpack.c.h.s8.bf16 %v2061_v31  ;;  %v2317_v40 = vunpack.c.l.s8.bf16 %v2061_v31 }
 0x366   : > { %v2453_v34 = vunpack.c.h.s8.bf16 %v2125_v32  ;;  %v2445_v41 = vunpack.c.l.s8.bf16 %v2125_v32 }
 0x367   : > { %3324 = vmatpush2.bf16.msra.mxu0 %v2635_v35  ;;  %v2318_v35 = vunpack.c.l.s8.bf16 %v2062_v23 }
 0x368   : > { %3365 = vmatpush2.bf16.msra.mxu1 %v2763_v36  ;;  %3375 = vmatprep.subr.bf16.mxu0 %v2374_v37  ;;  %v2446_v36 = vunpack.c.l.s8.bf16 %v2126_v43  ;;  %v2118_v37 = vld [vmem:[%s9892_s2 + $0x9f8] sm:$0xff] }
 0x369   : > { %3416 = vmatprep.subr.bf16.mxu1 %v2502_v39  ;;  %v2182_v39 = vld [vmem:[%s9892_s2 + $0xbf8] sm:$0xff] }
 0x36a   : > { %v3081_v30 = vpop.f32.mrf.mxu0  ;;  %3326 = vmatmul.mubr.bf16.vlgmr.msra.gmra.mxu0 %v10129_v58 }
 0x36b   : > { %v3122_v50 = vpop.f32.mrf.mxu1  ;;  %3367 = vmatmul.mubr.bf16.vlgmr.msra.gmra.mxu1 %v10135_v2  ;;  %3376 = vmatpush1.bf16.msra.mxu0 %v2373_v42  ;;  %v2438_v42 = vunpack.c.h.s8.bf16 %v2118_v37 }
 0x36c   : > { %v10295_v51 = vadd.f32 %v3122_v50, %v3081_v30  ;;  %3417 = vmatpush1.bf16.msra.mxu1 %v2501_v44  ;;  %v3083_v54 = vpop.f32.mrf.mxu0  ;;  %3377 = vmatprep.subr.bf16.mxu0 %v2366_v45  ;;  %v2566_v44 = vunpack.c.h.s8.bf16 %v2182_v39  ;;  %v2117_v45 = vld [vmem:[%s9892_s2 + $0x9f0] sm:$0xff]  ;;  %v2430_v30 = vunpack.c.l.s8.bf16 %v2118_v37  ;;  %v2558_v50 = vunpack.c.l.s8.bf16 %v2182_v39 }
 0x36d   : > { %v3124_v55 = vpop.f32.mrf.mxu1  ;;  %3418 = vmatprep.subr.bf16.mxu1 %v2494_v46  ;;  %3407 = vmatprep.mubr.bf16.mxu0 %v10045_v20  ;;  %v2349_v20 = vunpack.c.l.s8.bf16 %v2077_v61  ;;  %v2181_v46 = vld [vmem:[%s9892_s2 + $0xbf0] sm:$0xff]  ;;  %v2437_v47 = vunpack.c.h.s8.bf16 %v2117_v45 }
 0x36e   : > { %v10299_v62 = vadd.f32 %v3124_v55, %v3083_v54  ;;  %3448 = vmatprep.mubr.bf16.mxu1 %v10051_v25  ;;  %v3085_v0 = vpop.f32.mrf.mxu0  ;;  %v2477_v25 = vunpack.c.l.s8.bf16 %v2141_v49  ;;  %v2565_v48 = vunpack.c.h.s8.bf16 %v2181_v46  ;;  %v2429_v54 = vunpack.c.l.s8.bf16 %v2117_v45  ;;  %v2109_v61 = vld [vmem:[%s9892_s2 + $0x9b0] sm:$0xff] }
 0x36f   : > { %v3126_v1 = vpop.f32.mrf.mxu1  ;;  %3378 = vmatpush1.bf16.msra.mxu0 %v2365_v52  ;;  %v2110_v52 = vld [vmem:[%s9892_s2 + $0x9b8] sm:$0xff]  ;;  %v2557_v55 = vunpack.c.l.s8.bf16 %v2181_v46  ;;  %v2173_v49 = vld [vmem:[%s9892_s2 + $0xbb0] sm:$0xff]  ;;  %v2421_v0 = vunpack.c.h.s8.bf16 %v2109_v61 }
 0x370   : > { %3419 = vmatpush1.bf16.msra.mxu1 %v2493_v53  ;;  %v3086_v57 = vpop.f32.mrf.mxu0  ;;  %3379 = vmatprep.subr.bf16.mxu0 %v2358_v56  ;;  %v2174_v53 = vld [vmem:[%s9892_s2 + $0xbb8] sm:$0xff]  ;;  %v2422_v56 = vunpack.c.h.s8.bf16 %v2110_v52  ;;  %v2549_v1 = vunpack.c.h.s8.bf16 %v2173_v49 }
 0x371   : > { %v3127_v5 = vpop.f32.mrf.mxu1  ;;  %3420 = vmatprep.subr.bf16.mxu1 %v2486_v59  ;;  %v2550_v59 = vunpack.c.h.s8.bf16 %v2174_v53  ;;  %v2102_v57 = vld [vmem:[%s9892_s2 + $0x978] sm:$0xff] }
 0x372   : > { %v2166_v5 = vld [vmem:[%s9892_s2 + $0xb78] sm:$0xff]  ;;  %v2406_v6 = vunpack.c.h.s8.bf16 %v2102_v57  ;;  %v2398_v16 = vunpack.c.l.s8.bf16 %v2102_v57 }
 0x373   : > { %3380 = vmatpush1.bf16.msra.mxu0 %v2357_v3  ;;  %v2414_v3 = vunpack.c.l.s8.bf16 %v2110_v52  ;;  %v2534_v14 = vunpack.c.h.s8.bf16 %v2166_v5  ;;  %v2526_v17 = vunpack.c.l.s8.bf16 %v2166_v5 }
 0x374   : > { %3421 = vmatpush1.bf16.msra.mxu1 %v2485_v4  ;;  %3381 = vmatprep.subr.bf16.mxu0 %v2350_v7  ;;  %v2542_v4 = vunpack.c.l.s8.bf16 %v2174_v53  ;;  %v2413_v7 = vunpack.c.l.s8.bf16 %v2109_v61 }
 0x375   : > { %3422 = vmatprep.subr.bf16.mxu1 %v2478_v8  ;;  %v2541_v8 = vunpack.c.l.s8.bf16 %v2173_v49  ;;  %v2205_v49 = vld [vmem:[%s9892_s2 + $0xcb0] sm:$0xff] }
 0x377   : > { %3382 = vmatpush1.bf16.msra.mxu0 %v2349_v20  ;;  %v2101_v20 = vld [vmem:[%s9892_s2 + $0x970] sm:$0xff] }
 0x378   : > { %3423 = vmatpush1.bf16.msra.mxu1 %v2477_v25  ;;  %3383 = vmatprep.subr.bf16.mxu0 %v2342_v15  ;;  %v2165_v25 = vld [vmem:[%s9892_s2 + $0xb70] sm:$0xff]  ;;  %v2405_v15 = vunpack.c.h.s8.bf16 %v2101_v20 }
 0x379   : > { %3424 = vmatprep.subr.bf16.mxu1 %v2470_v9  ;;  %v2533_v9 = vunpack.c.h.s8.bf16 %v2165_v25 }
 0x37b   : > { %3384 = vmatpush1.bf16.msra.mxu0 %v2341_v18  ;;  %v2094_v18 = vld [vmem:[%s9892_s2 + $0x938] sm:$0xff] }
 0x37c   : > { %3425 = vmatpush1.bf16.msra.mxu1 %v2469_v13  ;;  %3385 = vmatprep.subr.bf16.mxu0 %v2334_v21  ;;  %v2158_v13 = vld [vmem:[%s9892_s2 + $0xb38] sm:$0xff]  ;;  %v2397_v21 = vunpack.c.l.s8.bf16 %v2101_v20  ;;  %v2390_v23 = vunpack.c.h.s8.bf16 %v2094_v18  ;;  %v2382_v31 = vunpack.c.l.s8.bf16 %v2094_v18 }
 0x37d   : > { %3426 = vmatprep.subr.bf16.mxu1 %v2462_v22  ;;  %v2525_v22 = vunpack.c.l.s8.bf16 %v2165_v25  ;;  %v2518_v43 = vunpack.c.h.s8.bf16 %v2158_v13  ;;  %v2510_v32 = vunpack.c.l.s8.bf16 %v2158_v13 }
 0x37f   : > { %3386 = vmatpush1.bf16.msra.mxu0 %v2333_v24  ;;  %v2093_v24 = vld [vmem:[%s9892_s2 + $0x930] sm:$0xff] }
 0x380   : > { %3427 = vmatpush1.bf16.msra.mxu1 %v2461_v27  ;;  %3387 = vmatprep.subr.bf16.mxu0 %v2326_v28  ;;  %v2157_v27 = vld [vmem:[%s9892_s2 + $0xb30] sm:$0xff]  ;;  %v2389_v28 = vunpack.c.h.s8.bf16 %v2093_v24 }
 0x381   : > { %3428 = vmatprep.subr.bf16.mxu1 %v2454_v29  ;;  %v2517_v29 = vunpack.c.h.s8.bf16 %v2157_v27 }
 0x383   : > { %3388 = vmatpush1.bf16.msra.mxu0 %v2325_v33  ;;  %v2214_v33 = vld [vmem:[%s9892_s2 + $0xcf8] sm:$0xff] }
 0x384   : > { %3429 = vmatpush1.bf16.msra.mxu1 %v2453_v34  ;;  %3389 = vmatprep.subr.bf16.mxu0 %v2318_v35  ;;  %v2278_v34 = vld [vmem:[%s9892_s2 + $0xef8] sm:$0xff]  ;;  %v2381_v35 = vunpack.c.l.s8.bf16 %v2093_v24  ;;  %v2630_v37 = vunpack.c.h.s8.bf16 %v2214_v33  ;;  %v2622_v45 = vunpack.c.l.s8.bf16 %v2214_v33 }
 0x385   : > { %3430 = vmatprep.subr.bf16.mxu1 %v2446_v36  ;;  %v2509_v36 = vunpack.c.l.s8.bf16 %v2157_v27  ;;  %v2758_v39 = vunpack.c.h.s8.bf16 %v2278_v34  ;;  %v2750_v46 = vunpack.c.l.s8.bf16 %v2278_v34 }
 0x387   : > { %3390 = vmatpush1.bf16.msra.mxu0 %v2317_v40  ;;  %v2213_v40 = vld [vmem:[%s9892_s2 + $0xcf0] sm:$0xff] }
 0x388   : > { %3431 = vmatpush1.bf16.msra.mxu1 %v2445_v41  ;;  %3391 = vmatprep.subr.bf16.mxu0 %v2438_v42  ;;  %v2277_v41 = vld [vmem:[%s9892_s2 + $0xef0] sm:$0xff]  ;;  %v2629_v42 = vunpack.c.h.s8.bf16 %v2213_v40  ;;  %v2621_v53 = vunpack.c.l.s8.bf16 %v2213_v40 }
 0x389   : > { %3432 = vmatprep.subr.bf16.mxu1 %v2566_v44  ;;  %v2757_v44 = vunpack.c.h.s8.bf16 %v2277_v41 }
 0x38b   : > { %3392 = vmatpush2.bf16.msra.mxu0 %v2437_v47  ;;  %v2206_v47 = vld [vmem:[%s9892_s2 + $0xcb8] sm:$0xff] }
 0x38c   : > { %3433 = vmatpush2.bf16.msra.mxu1 %v2565_v48  ;;  %3393 = vmatprep.subr.bf16.mxu0 %v2430_v30  ;;  %v2270_v48 = vld [vmem:[%s9892_s2 + $0xeb8] sm:$0xff] }
 0x38d   : > { %3434 = vmatprep.subr.bf16.mxu1 %v2558_v50  ;;  %v2742_v61 = vunpack.c.h.s8.bf16 %v2270_v48 }
 0x38f   : > { %3394 = vmatpush2.bf16.msra.mxu0 %v2429_v54  ;;  %v2749_v54 = vunpack.c.l.s8.bf16 %v2277_v41 }
 0x390   : > { %3435 = vmatpush2.bf16.msra.mxu1 %v2557_v55  ;;  %3395 = vmatprep.subr.bf16.mxu0 %v2422_v56 }
 0x391   : > { %3436 = vmatprep.subr.bf16.mxu1 %v2550_v59  ;;  %v2614_v59 = vunpack.c.h.s8.bf16 %v2206_v47 }
 0x393   : > { %3396 = vmatpush2.bf16.msra.mxu0 %v2421_v0  ;;  %v2269_v0 = vld [vmem:[%s9892_s2 + $0xeb0] sm:$0xff] }
 0x394   : > { %3437 = vmatpush2.bf16.msra.mxu1 %v2549_v1  ;;  %3397 = vmatprep.subr.bf16.mxu0 %v2414_v3  ;;  %v2741_v57 = vunpack.c.h.s8.bf16 %v2269_v0 }
 0x395   : > { %3438 = vmatprep.subr.bf16.mxu1 %v2542_v4  ;;  %v2613_v4 = vunpack.c.h.s8.bf16 %v2205_v49 }
 0x397   : > { %3398 = vmatpush2.bf16.msra.mxu0 %v2413_v7 }
 0x398   : > { %3439 = vmatpush2.bf16.msra.mxu1 %v2541_v8  ;;  %3399 = vmatprep.subr.bf16.mxu0 %v2406_v6  ;;  %v2734_v8 = vunpack.c.l.s8.bf16 %v2270_v48  ;;  %v2262_v6 = vld [vmem:[%s9892_s2 + $0xe78] sm:$0xff] }
 0x399   : > { %3440 = vmatprep.subr.bf16.mxu1 %v2534_v14  ;;  %v2733_v14 = vunpack.c.l.s8.bf16 %v2269_v0  ;;  %v2726_v25 = vunpack.c.h.s8.bf16 %v2262_v6  ;;  %v2718_v13 = vunpack.c.l.s8.bf16 %v2262_v6 }
 0x39b   : > { %3400 = vmatpush2.bf16.msra.mxu0 %v2405_v15  ;;  %v2197_v15 = vld [vmem:[%s9892_s2 + $0xc70] sm:$0xff] }
 0x39c   : > { %3441 = vmatpush2.bf16.msra.mxu1 %v2533_v9  ;;  %3401 = vmatprep.subr.bf16.mxu0 %v2398_v16  ;;  %v2261_v9 = vld [vmem:[%s9892_s2 + $0xe70] sm:$0xff]  ;;  %v2597_v16 = vunpack.c.h.s8.bf16 %v2197_v15 }
 0x39d   : > { %3442 = vmatprep.subr.bf16.mxu1 %v2526_v17  ;;  %v2725_v17 = vunpack.c.h.s8.bf16 %v2261_v9 }
 0x39f   : > { %3402 = vmatpush2.bf16.msra.mxu0 %v2397_v21  ;;  %v2190_v21 = vld [vmem:[%s9892_s2 + $0xc38] sm:$0xff] }
 0x3a0   : > { %3443 = vmatpush2.bf16.msra.mxu1 %v2525_v22  ;;  %3403 = vmatprep.subr.bf16.mxu0 %v2390_v23  ;;  %v2254_v22 = vld [vmem:[%s9892_s2 + $0xe38] sm:$0xff]  ;;  %v2589_v23 = vunpack.c.l.s8.bf16 %v2197_v15  ;;  %v2582_v24 = vunpack.c.h.s8.bf16 %v2190_v21  ;;  %v2574_v33 = vunpack.c.l.s8.bf16 %v2190_v21  ;;  %v10367_v15 = vld [vmem:[#allocation2] sm:$0xff]  ;;  %v2285_v21 = vld [vmem:[%s9892_s2 + $0xf30] sm:$0xff] }
 0x3a1   : > { %3444 = vmatprep.subr.bf16.mxu1 %v2518_v43  ;;  %v2717_v43 = vunpack.c.l.s8.bf16 %v2261_v9  ;;  %v2710_v27 = vunpack.c.h.s8.bf16 %v2254_v22  ;;  %v2702_v34 = vunpack.c.l.s8.bf16 %v2254_v22  ;;  %v10373_v22 = vrot.slane %v10367_v15, %v10034_v11 }
 0x3a3   : > { %3404 = vmatpush2.bf16.msra.mxu0 %v2389_v28  ;;  %v2189_v28 = vld [vmem:[%s9892_s2 + $0xc30] sm:$0xff] }
 0x3a4   : > { %3445 = vmatpush2.bf16.msra.mxu1 %v2517_v29  ;;  %3405 = vmatprep.subr.bf16.mxu0 %v2382_v31  ;;  %v2253_v29 = vld [vmem:[%s9892_s2 + $0xe30] sm:$0xff]  ;;  %v2581_v31 = vunpack.c.h.s8.bf16 %v2189_v28 }
 0x3a5   : > { %3446 = vmatprep.subr.bf16.mxu1 %v2510_v32  ;;  %v2709_v32 = vunpack.c.h.s8.bf16 %v2253_v29 }
 0x3a7   : > { %3406 = vmatpush2.bf16.msra.mxu0 %v2381_v35  ;;  %v2246_v35 = vld [vmem:[%s9892_s2 + $0xdf8] sm:$0xff] }
 0x3a8   : > { %3447 = vmatpush2.bf16.msra.mxu1 %v2509_v36  ;;  %3457 = vmatprep.subr.bf16.mxu0 %v2630_v37  ;;  %v2310_v36 = vld [vmem:[%s9892_s2 + $0xff8] sm:$0xff]  ;;  %v2573_v37 = vunpack.c.l.s8.bf16 %v2189_v28  ;;  %v2694_v40 = vunpack.c.h.s8.bf16 %v2246_v35  ;;  %v1311_v28 = vld [vmem:[%s9892_s2 + $0xc8] sm:$0xff] }
 0x3a9   : > { %3498 = vmatprep.subr.bf16.mxu1 %v2758_v39  ;;  %v2701_v39 = vunpack.c.l.s8.bf16 %v2253_v29  ;;  %v2822_v41 = vunpack.c.h.s8.bf16 %v2310_v36  ;;  %v2814_v48 = vunpack.c.l.s8.bf16 %v2310_v36  ;;  %v1375_v29 = vld [vmem:[%s9892_s2 + $0x2c8] sm:$0xff]  ;;  %v1310_v36 = vld [vmem:[%s9892_s2 + $0xc0] sm:$0xff] }
 0x3aa   : > { %v3163_v30 = vpop.f32.mrf.mxu0  ;;  %3408 = vmatmul.mubr.bf16.vlgmr.msra.gmra.mxu0 %v10078_v10 }
 0x3ab   : > { %v3204_v50 = vpop.f32.mrf.mxu1  ;;  %3449 = vmatmul.mubr.bf16.vlgmr.msra.gmra.mxu1 %v10087_v12  ;;  %v3164_v52 = vadd.f32 %v3163_v30, %v10295_v51  ;;  %3458 = vmatpush1.bf16.msra.mxu0 %v2629_v42  ;;  %v2245_v42 = vld [vmem:[%s9892_s2 + $0xdf0] sm:$0xff]  ;;  %v2238_v30 = vld [vmem:[%s9892_s2 + $0xdb8] sm:$0xff] }
 0x3ac   : > { %3499 = vmatpush1.bf16.msra.mxu1 %v2757_v44  ;;  %v3165_v55 = vpop.f32.mrf.mxu0  ;;  %3459 = vmatprep.subr.bf16.mxu0 %v2622_v45  ;;  %v2309_v44 = vld [vmem:[%s9892_s2 + $0xff0] sm:$0xff]  ;;  %v2693_v45 = vunpack.c.h.s8.bf16 %v2245_v42  ;;  %v2670_v0 = vunpack.c.l.s8.bf16 %v2238_v30 }
 0x3ad   : > { %v3206_v56 = vpop.f32.mrf.mxu1  ;;  %3500 = vmatprep.subr.bf16.mxu1 %v2750_v46  ;;  %v10338_v1 = vadd.f32 %v3204_v50, %v3164_v52  ;;  %v3166_v10 = vadd.f32 %v3165_v55, %v10299_v62  ;;  %3489 = vmatprep.mubr.bf16.mxu0 %v10083_v19  ;;  %v2606_v62 = vunpack.c.l.s8.bf16 %v2206_v47  ;;  %v2198_v19 = vld [vmem:[%s9892_s2 + $0xc78] sm:$0xff]  ;;  %v2821_v46 = vunpack.c.h.s8.bf16 %v2309_v44 }
 0x3ae   : > { %3530 = vmatprep.mubr.bf16.mxu1 %v10093_v26  ;;  %v3167_v12 = vpop.f32.mrf.mxu0  ;;  %v2605_v26 = vunpack.c.l.s8.bf16 %v2205_v49  ;;  %v2598_v20 = vunpack.c.h.s8.bf16 %v2198_v19  ;;  %v2590_v18 = vunpack.c.l.s8.bf16 %v2198_v19  ;;  %v2686_v47 = vunpack.c.l.s8.bf16 %v2246_v35  ;;  %v2302_v50 = vld [vmem:[%s9892_s2 + $0xfb8] sm:$0xff] }
 0x3af   : > { %v3208_v51 = vpop.f32.mrf.mxu1  ;;  %v10343_v3 = vadd.f32 %v3206_v56, %v3166_v10  ;;  %3460 = vmatpush1.bf16.msra.mxu0 %v2621_v53  ;;  %v2685_v52 = vunpack.c.l.s8.bf16 %v2245_v42  ;;  %v2813_v53 = vunpack.c.l.s8.bf16 %v2309_v44  ;;  %v2806_v55 = vunpack.c.h.s8.bf16 %v2302_v50  ;;  %v2237_v56 = vld [vmem:[%s9892_s2 + $0xdb0] sm:$0xff]  ;;  %v2230_v12 = vld [vmem:[%s9892_s2 + $0xd78] sm:$0xff] }
 0x3b0   : > { %3501 = vmatpush1.bf16.msra.mxu1 %v2749_v54  ;;  %v3168_v5 = vpop.f32.mrf.mxu0  ;;  %3461 = vmatprep.subr.bf16.mxu0 %v2614_v59  ;;  %v2678_v54 = vunpack.c.h.s8.bf16 %v2238_v30  ;;  %v2301_v59 = vld [vmem:[%s9892_s2 + $0xfb0] sm:$0xff]  ;;  %v2798_v10 = vunpack.c.l.s8.bf16 %v2302_v50  ;;  %v2294_v51 = vld [vmem:[%s9892_s2 + $0xf78] sm:$0xff]  ;;  %v1727_v35 = vunpack.c.h.s8.bf16 %v1375_v29  ;;  %v1591_v42 = vunpack.c.l.s8.bf16 %v1311_v28 }
 0x3b1   : > { %v3209_v7 = vpop.f32.mrf.mxu1  ;;  %3502 = vmatprep.subr.bf16.mxu1 %v2742_v61  ;;  %v2677_v61 = vunpack.c.h.s8.bf16 %v2237_v56  ;;  %v2805_v49 = vunpack.c.h.s8.bf16 %v2301_v59  ;;  %v2662_v5 = vunpack.c.h.s8.bf16 %v2230_v12  ;;  %v1719_v44 = vunpack.c.l.s8.bf16 %v1375_v29 }
 0x3b2   : > { %v2790_v7 = vunpack.c.h.s8.bf16 %v2294_v51 }
 0x3b3   : > { %3462 = vmatpush1.bf16.msra.mxu0 %v2613_v4  ;;  %v2669_v4 = vunpack.c.l.s8.bf16 %v2237_v56 }
 0x3b4   : > { %3503 = vmatpush1.bf16.msra.mxu1 %v2741_v57  ;;  %3463 = vmatprep.subr.bf16.mxu0 %v2606_v62  ;;  %v2797_v57 = vunpack.c.l.s8.bf16 %v2301_v59  ;;  %v2229_v62 = vld [vmem:[%s9892_s2 + $0xd70] sm:$0xff] }
 0x3b5   : > { %3504 = vmatprep.subr.bf16.mxu1 %v2734_v8  ;;  %v2293_v8 = vld [vmem:[%s9892_s2 + $0xf70] sm:$0xff]  ;;  %v2661_v19 = vunpack.c.h.s8.bf16 %v2229_v62  ;;  %v2653_v9 = vunpack.c.l.s8.bf16 %v2229_v62  ;;  %v1359_v62 = vld [vmem:[%s9892_s2 + $0x248] sm:$0xff] }
 0x3b6   : > { %v2789_v6 = vunpack.c.h.s8.bf16 %v2293_v8 }
 0x3b7   : > { %3464 = vmatpush1.bf16.msra.mxu0 %v2605_v26  ;;  %v2654_v26 = vunpack.c.l.s8.bf16 %v2230_v12 }
 0x3b8   : > { %3505 = vmatpush1.bf16.msra.mxu1 %v2733_v14  ;;  %3465 = vmatprep.subr.bf16.mxu0 %v2598_v20  ;;  %v2782_v14 = vunpack.c.l.s8.bf16 %v2294_v51  ;;  %v2222_v20 = vld [vmem:[%s9892_s2 + $0xd38] sm:$0xff] }
 0x3b9   : > { %3506 = vmatprep.subr.bf16.mxu1 %v2726_v25  ;;  %v2286_v25 = vld [vmem:[%s9892_s2 + $0xf38] sm:$0xff] }
 0x3bb   : > { %3466 = vmatpush1.bf16.msra.mxu0 %v2597_v16  ;;  %v2781_v16 = vunpack.c.l.s8.bf16 %v2293_v8 }
 0x3bc   : > { %3507 = vmatpush1.bf16.msra.mxu1 %v2725_v17  ;;  %3467 = vmatprep.subr.bf16.mxu0 %v2590_v18  ;;  %v2646_v17 = vunpack.c.h.s8.bf16 %v2222_v20  ;;  %v2774_v18 = vunpack.c.h.s8.bf16 %v2286_v25 }
 0x3bd   : > { %3508 = vmatprep.subr.bf16.mxu1 %v2718_v13  ;;  %v2221_v13 = vld [vmem:[%s9892_s2 + $0xd30] sm:$0xff] }
 0x3bf   : > { %3468 = vmatpush1.bf16.msra.mxu0 %v2589_v23  ;;  %v2645_v23 = vunpack.c.h.s8.bf16 %v2221_v13 }
 0x3c0   : > { %3509 = vmatpush1.bf16.msra.mxu1 %v2717_v43  ;;  %3469 = vmatprep.subr.bf16.mxu0 %v2582_v24  ;;  %v2773_v43 = vunpack.c.h.s8.bf16 %v2285_v21  ;;  %v2638_v24 = vunpack.c.l.s8.bf16 %v2222_v20  ;;  %v1358_v20 = vld [vmem:[%s9892_s2 + $0x240] sm:$0xff] }
 0x3c1   : > { %3510 = vmatprep.subr.bf16.mxu1 %v2710_v27  ;;  %v2766_v27 = vunpack.c.l.s8.bf16 %v2286_v25 }
 0x3c3   : > { %3470 = vmatpush1.bf16.msra.mxu0 %v2581_v31  ;;  %v3555_v31 = vcombine.high %v10373_v22, %v10373_v22 }
 0x3c4   : > { %3511 = vmatpush1.bf16.msra.mxu1 %v2709_v32  ;;  %3471 = vmatprep.subr.bf16.mxu0 %v2574_v33  ;;  %v2637_v32 = vunpack.c.l.s8.bf16 %v2221_v13  ;;  %v2765_v33 = vunpack.c.l.s8.bf16 %v2285_v21  ;;  %v1351_v13 = vld [vmem:[%s9892_s2 + $0x208] sm:$0xff] }
 0x3c5   : > { %3512 = vmatprep.subr.bf16.mxu1 %v2702_v34  ;;  %v1599_v34 = vunpack.c.h.s8.bf16 %v1311_v28  ;;  %v1350_v28 = vld [vmem:[%s9892_s2 + $0x200] sm:$0xff] }
 0x3c7   : > { %3472 = vmatpush1.bf16.msra.mxu0 %v2573_v37  ;;  %v1374_v37 = vld [vmem:[%s9892_s2 + $0x2c0] sm:$0xff] }
 0x3c8   : > { %3513 = vmatpush1.bf16.msra.mxu1 %v2701_v39  ;;  %3473 = vmatprep.subr.bf16.mxu0 %v2694_v40  ;;  %v10382_v39 = vrot.slane %v3555_v31, %v10034_v11  ;;  %v1598_v40 = vunpack.c.h.s8.bf16 %v1310_v36  ;;  %v1678_v31 = vunpack.c.h.s8.bf16 %v1350_v28 }
 0x3c9   : > { %3514 = vmatprep.subr.bf16.mxu1 %v2822_v41  ;;  %v1726_v41 = vunpack.c.h.s8.bf16 %v1374_v37 }
 0x3cb   : > { %3474 = vmatpush2.bf16.msra.mxu0 %v2693_v45  ;;  %v1303_v45 = vld [vmem:[%s9892_s2 + $0x88] sm:$0xff] }
 0x3cc   : > { %3515 = vmatpush2.bf16.msra.mxu1 %v2821_v46  ;;  %3475 = vmatprep.subr.bf16.mxu0 %v2686_v47  ;;  %v1367_v46 = vld [vmem:[%s9892_s2 + $0x288] sm:$0xff]  ;;  %v10388_v47 = vcombine.high %v10382_v39, %v10382_v39  ;;  %v1583_v56 = vunpack.c.h.s8.bf16 %v1303_v45 }
 0x3cd   : > { %3516 = vmatprep.subr.bf16.mxu1 %v2814_v48  ;;  %v1711_v59 = vunpack.c.h.s8.bf16 %v1367_v46 }
 0x3cf   : > { %3476 = vmatpush2.bf16.msra.mxu0 %v2685_v52  ;;  %v1590_v52 = vunpack.c.l.s8.bf16 %v1310_v36 }
 0x3d0   : > { %3517 = vmatpush2.bf16.msra.mxu1 %v2813_v53  ;;  %3477 = vmatprep.subr.bf16.mxu0 %v2678_v54  ;;  %v1718_v53 = vunpack.c.l.s8.bf16 %v1374_v37  ;;  %v1670_v37 = vunpack.c.l.s8.bf16 %v1350_v28 }
 0x3d1   : > { %3518 = vmatprep.subr.bf16.mxu1 %v2806_v55 }
 0x3d3   : > { %3478 = vmatpush2.bf16.msra.mxu0 %v2677_v61  ;;  %v1302_v61 = vld [vmem:[%s9892_s2 + $0x80] sm:$0xff] }
 0x3d4   : > { %3519 = vmatpush2.bf16.msra.mxu1 %v2805_v49  ;;  %3479 = vmatprep.subr.bf16.mxu0 %v2670_v0  ;;  %v1366_v49 = vld [vmem:[%s9892_s2 + $0x280] sm:$0xff]  ;;  %v1574_v8 = vunpack.c.l.s8.bf16 %v1302_v61 }
 0x3d5   : > { %3520 = vmatprep.subr.bf16.mxu1 %v2798_v10  ;;  %v1582_v10 = vunpack.c.h.s8.bf16 %v1302_v61  ;;  %v1710_v12 = vunpack.c.h.s8.bf16 %v1366_v49  ;;  %v1334_v61 = vld [vmem:[%s9892_s2 + $0x180] sm:$0xff] }
 0x3d7   : > { %3480 = vmatpush2.bf16.msra.mxu0 %v2669_v4 }
 0x3d8   : > { %3521 = vmatpush2.bf16.msra.mxu1 %v2797_v57  ;;  %3481 = vmatprep.subr.bf16.mxu0 %v2662_v5  ;;  %v1575_v57 = vunpack.c.l.s8.bf16 %v1303_v45  ;;  %v1703_v5 = vunpack.c.l.s8.bf16 %v1367_v46 }
 0x3d9   : > { %3522 = vmatprep.subr.bf16.mxu1 %v2790_v7  ;;  %v1295_v7 = vld [vmem:[%s9892_s2 + $0x48] sm:$0xff] }
 0x3db   : > { %3482 = vmatpush2.bf16.msra.mxu0 %v2661_v19  ;;  %v1702_v19 = vunpack.c.l.s8.bf16 %v1366_v49  ;;  %v1398_v49 = vld [vmem:[%s9892_s2 + $0x380] sm:$0xff] }
 0x3dc   : > { %3523 = vmatpush2.bf16.msra.mxu1 %v2789_v6  ;;  %3483 = vmatprep.subr.bf16.mxu0 %v2654_v26  ;;  %v1567_v6 = vunpack.c.h.s8.bf16 %v1295_v7  ;;  %v1695_v26 = vunpack.c.h.s8.bf16 %v1359_v62 }
 0x3dd   : > { %3524 = vmatprep.subr.bf16.mxu1 %v2782_v14  ;;  %v1294_v14 = vld [vmem:[%s9892_s2 + $0x40] sm:$0xff] }
 0x3de   : > { %v1566_v25 = vunpack.c.h.s8.bf16 %v1294_v14  ;;  %v1558_v21 = vunpack.c.l.s8.bf16 %v1294_v14 }
 0x3df   : > { %3484 = vmatpush2.bf16.msra.mxu0 %v2653_v9  ;;  %v1694_v9 = vunpack.c.h.s8.bf16 %v1358_v20 }
 0x3e0   : > { %3525 = vmatpush2.bf16.msra.mxu1 %v2781_v16  ;;  %3485 = vmatprep.subr.bf16.mxu0 %v2646_v17  ;;  %v1559_v16 = vunpack.c.l.s8.bf16 %v1295_v7  ;;  %v1687_v17 = vunpack.c.l.s8.bf16 %v1359_v62 }
 0x3e1   : > { %3526 = vmatprep.subr.bf16.mxu1 %v2774_v18  ;;  %v1287_v18 = vld [vmem:[%s9892_s2 + $0x8] sm:$0xff] }
 0x3e3   : > { %3486 = vmatpush2.bf16.msra.mxu0 %v2645_v23  ;;  %v1686_v23 = vunpack.c.l.s8.bf16 %v1358_v20 }
 0x3e4   : > { %3527 = vmatpush2.bf16.msra.mxu1 %v2773_v43  ;;  %3487 = vmatprep.subr.bf16.mxu0 %v2638_v24  ;;  %v1551_v43 = vunpack.c.h.s8.bf16 %v1287_v18  ;;  %v1679_v24 = vunpack.c.h.s8.bf16 %v1351_v13 }
 0x3e5   : > { %3528 = vmatprep.subr.bf16.mxu1 %v2766_v27  ;;  %v1286_v27 = vld [vmem:[%s9892_s2] sm:$0xff] }
 0x3e6   : > { %v1550_v29 = vunpack.c.h.s8.bf16 %v1286_v27  ;;  %v1542_v36 = vunpack.c.l.s8.bf16 %v1286_v27 }
 0x3e7   : > { %3488 = vmatpush2.bf16.msra.mxu0 %v2637_v32  ;;  %v1543_v32 = vunpack.c.l.s8.bf16 %v1287_v18 }
 0x3e8   : > { %3529 = vmatpush2.bf16.msra.mxu1 %v2765_v33  ;;  %3597 = vmatprep.subr.bf16.mxu0 %v1599_v34  ;;  %v1671_v33 = vunpack.c.l.s8.bf16 %v1351_v13  ;;  %v1343_v34 = vld [vmem:[%s9892_s2 + $0x1c8] sm:$0xff] }
 0x3e9   : > { %3638 = vmatprep.subr.bf16.mxu1 %v1727_v35  ;;  %v1407_v35 = vld [vmem:[%s9892_s2 + $0x3c8] sm:$0xff] }
 0x3ea   : > { %v3245_v48 = vpop.f32.mrf.mxu0  ;;  %3490 = vmatmul.mubr.bf16.vlgmr.msra.gmra.mxu0 %v10129_v58 }
 0x3eb   : > { %v3286_v30 = vpop.f32.mrf.mxu1  ;;  %3531 = vmatmul.mubr.bf16.vlgmr.msra.gmra.mxu1 %v10135_v2  ;;  %3598 = vmatpush1.bf16.msra.mxu0 %v1598_v40  ;;  %v1663_v40 = vunpack.c.h.s8.bf16 %v1343_v34 }
 0x3ec   : > { %v10392_v50 = vadd.f32 %v3286_v30, %v3245_v48  ;;  %3639 = vmatpush1.bf16.msra.mxu1 %v1726_v41  ;;  %v3247_v54 = vpop.f32.mrf.mxu0  ;;  %3599 = vmatprep.subr.bf16.mxu0 %v1591_v42  ;;  %v1791_v41 = vunpack.c.h.s8.bf16 %v1407_v35  ;;  %v1342_v42 = vld [vmem:[%s9892_s2 + $0x1c0] sm:$0xff]  ;;  %v1655_v48 = vunpack.c.l.s8.bf16 %v1343_v34  ;;  %v1783_v30 = vunpack.c.l.s8.bf16 %v1407_v35 }
 0x3ed   : > { %v3288_v55 = vpop.f32.mrf.mxu1  ;;  %3640 = vmatprep.subr.bf16.mxu1 %v1719_v44  ;;  %3629 = vmatprep.mubr.bf16.mxu0 %v10382_v39  ;;  %v1406_v44 = vld [vmem:[%s9892_s2 + $0x3c0] sm:$0xff]  ;;  %v1662_v45 = vunpack.c.h.s8.bf16 %v1342_v42  ;;  %v10435_v34 = vrot.slane %v10373_v22, %v10034_v11 }
 0x3ee   : > { %v10396_v0 = vadd.f32 %v3288_v55, %v3247_v54  ;;  %3670 = vmatprep.mubr.bf16.mxu1 %v10388_v47  ;;  %v3249_v58 = vpop.f32.mrf.mxu0  ;;  %v1790_v46 = vunpack.c.h.s8.bf16 %v1406_v44  ;;  %v1654_v54 = vunpack.c.l.s8.bf16 %v1342_v42  ;;  %v1782_v55 = vunpack.c.l.s8.bf16 %v1406_v44  ;;  %v1502_v42 = vld [vmem:[%s9892_s2 + $0x6c0] sm:$0xff] }
 0x3ef   : > { %v3290_v2 = vpop.f32.mrf.mxu1  ;;  %3600 = vmatpush1.bf16.msra.mxu0 %v1590_v52  ;;  %v1335_v52 = vld [vmem:[%s9892_s2 + $0x188] sm:$0xff]  ;;  %v1646_v58 = vunpack.c.h.s8.bf16 %v1334_v61 }
 0x3f0   : > { %3641 = vmatpush1.bf16.msra.mxu1 %v1718_v53  ;;  %v3250_v51 = vpop.f32.mrf.mxu0  ;;  %3601 = vmatprep.subr.bf16.mxu0 %v1583_v56  ;;  %v1399_v53 = vld [vmem:[%s9892_s2 + $0x388] sm:$0xff]  ;;  %v1647_v56 = vunpack.c.h.s8.bf16 %v1335_v52  ;;  %v1774_v2 = vunpack.c.h.s8.bf16 %v1398_v49 }
 0x3f1   : > { %v3291_v4 = vpop.f32.mrf.mxu1  ;;  %3642 = vmatprep.subr.bf16.mxu1 %v1711_v59  ;;  %v1775_v59 = vunpack.c.h.s8.bf16 %v1399_v53  ;;  %v1327_v51 = vld [vmem:[%s9892_s2 + $0x148] sm:$0xff] }
 0x3f2   : > { %v1391_v4 = vld [vmem:[%s9892_s2 + $0x348] sm:$0xff]  ;;  %v1631_v7 = vunpack.c.h.s8.bf16 %v1327_v51  ;;  %v1623_v14 = vunpack.c.l.s8.bf16 %v1327_v51  ;;  %v1430_v51 = vld [vmem:[%s9892_s2 + $0x480] sm:$0xff] }
 0x3f3   : > { %3602 = vmatpush1.bf16.msra.mxu0 %v1582_v10  ;;  %v1639_v10 = vunpack.c.l.s8.bf16 %v1335_v52  ;;  %v1759_v62 = vunpack.c.h.s8.bf16 %v1391_v4  ;;  %v1751_v20 = vunpack.c.l.s8.bf16 %v1391_v4  ;;  %v1431_v52 = vld [vmem:[%s9892_s2 + $0x488] sm:$0xff]  ;;  %v1494_v4 = vld [vmem:[%s9892_s2 + $0x680] sm:$0xff] }
 0x3f4   : > { %3643 = vmatpush1.bf16.msra.mxu1 %v1710_v12  ;;  %3603 = vmatprep.subr.bf16.mxu0 %v1575_v57  ;;  %v1767_v12 = vunpack.c.l.s8.bf16 %v1399_v53  ;;  %v1638_v57 = vunpack.c.l.s8.bf16 %v1334_v61  ;;  %v1495_v53 = vld [vmem:[%s9892_s2 + $0x688] sm:$0xff] }
 0x3f5   : > { %3644 = vmatprep.subr.bf16.mxu1 %v1703_v5  ;;  %v1766_v5 = vunpack.c.l.s8.bf16 %v1398_v49  ;;  %v1974_v49 = vunpack.c.l.s8.bf16 %v1502_v42 }
 0x3f7   : > { %3604 = vmatpush1.bf16.msra.mxu0 %v1574_v8  ;;  %v1326_v8 = vld [vmem:[%s9892_s2 + $0x140] sm:$0xff] }
 0x3f8   : > { %3645 = vmatpush1.bf16.msra.mxu1 %v1702_v19  ;;  %3605 = vmatprep.subr.bf16.mxu0 %v1567_v6  ;;  %v1390_v19 = vld [vmem:[%s9892_s2 + $0x340] sm:$0xff]  ;;  %v1630_v6 = vunpack.c.h.s8.bf16 %v1326_v8 }
 0x3f9   : > { %3646 = vmatprep.subr.bf16.mxu1 %v1695_v26  ;;  %v1758_v26 = vunpack.c.h.s8.bf16 %v1390_v19  ;;  %v1750_v18 = vunpack.c.l.s8.bf16 %v1390_v19  ;;  %v1966_v19 = vunpack.c.h.s8.bf16 %v1494_v4 }
 0x3fb   : > { %3606 = vmatpush1.bf16.msra.mxu0 %v1566_v25  ;;  %v1319_v25 = vld [vmem:[%s9892_s2 + $0x108] sm:$0xff] }
 0x3fc   : > { %3647 = vmatpush1.bf16.msra.mxu1 %v1694_v9  ;;  %3607 = vmatprep.subr.bf16.mxu0 %v1559_v16  ;;  %v1383_v9 = vld [vmem:[%s9892_s2 + $0x308] sm:$0xff]  ;;  %v3540_v16 = vcombine.high %v10367_v15, %v10367_v15  ;;  %v1615_v13 = vunpack.c.h.s8.bf16 %v1319_v25  ;;  %v1607_v15 = vunpack.c.l.s8.bf16 %v1319_v25 }
 0x3fd   : > { %3648 = vmatprep.subr.bf16.mxu1 %v1687_v17  ;;  %v1622_v17 = vunpack.c.l.s8.bf16 %v1326_v8  ;;  %v1838_v8 = vunpack.c.h.s8.bf16 %v1430_v51  ;;  %v1487_v25 = vld [vmem:[%s9892_s2 + $0x648] sm:$0xff] }
 0x3ff   : > { %3608 = vmatpush1.bf16.msra.mxu0 %v1558_v21  ;;  %v1743_v21 = vunpack.c.h.s8.bf16 %v1383_v9 }
 0x400   : > { %3649 = vmatpush1.bf16.msra.mxu1 %v1686_v23  ;;  %3609 = vmatprep.subr.bf16.mxu0 %v1551_v43  ;;  %v1318_v23 = vld [vmem:[%s9892_s2 + $0x100] sm:$0xff] }
 0x401   : > { %3650 = vmatprep.subr.bf16.mxu1 %v1679_v24  ;;  %v1382_v43 = vld [vmem:[%s9892_s2 + $0x300] sm:$0xff]  ;;  %v10427_v24 = vrot.slane %v3540_v16, %v10034_v11  ;;  %v1614_v27 = vunpack.c.h.s8.bf16 %v1318_v23  ;;  %v1606_v35 = vunpack.c.l.s8.bf16 %v1318_v23  ;;  %v1958_v16 = vunpack.c.l.s8.bf16 %v1494_v4 }
 0x402   : > { %v1742_v28 = vunpack.c.h.s8.bf16 %v1382_v43 }
 0x403   : > { %3610 = vmatpush1.bf16.msra.mxu0 %v1550_v29  ;;  %v1735_v29 = vunpack.c.l.s8.bf16 %v1383_v9  ;;  %v1830_v9 = vunpack.c.l.s8.bf16 %v1430_v51 }
 0x404   : > { %3651 = vmatpush1.bf16.msra.mxu1 %v1678_v31  ;;  %3611 = vmatprep.subr.bf16.mxu0 %v1543_v32  ;;  %v1439_v31 = vld [vmem:[%s9892_s2 + $0x4c8] sm:$0xff] }
 0x405   : > { %3652 = vmatprep.subr.bf16.mxu1 %v1671_v33  ;;  %v1503_v32 = vld [vmem:[%s9892_s2 + $0x6c8] sm:$0xff]  ;;  %v3556_v33 = vcombine.high %v10427_v24, %v10427_v24 }
 0x407   : > { %3612 = vmatpush1.bf16.msra.mxu0 %v1542_v36  ;;  %v1734_v36 = vunpack.c.l.s8.bf16 %v1382_v43  ;;  %v10440_v44 = vrot.slane %v3556_v33, %v10034_v11 }
 0x408   : > { %3653 = vmatpush1.bf16.msra.mxu1 %v1670_v37  ;;  %3613 = vmatprep.subr.bf16.mxu0 %v1663_v40  ;;  %v1855_v37 = vunpack.c.h.s8.bf16 %v1439_v31  ;;  %v1983_v40 = vunpack.c.h.s8.bf16 %v1503_v32 }
 0x409   : > { %3654 = vmatprep.subr.bf16.mxu1 %v1791_v41  ;;  %v1438_v41 = vld [vmem:[%s9892_s2 + $0x4c0] sm:$0xff] }
 0x40a   : > { %v1854_v22 = vunpack.c.h.s8.bf16 %v1438_v41  ;;  %v1846_v61 = vunpack.c.l.s8.bf16 %v1438_v41 }
 0x40b   : > { %3614 = vmatpush2.bf16.msra.mxu0 %v1662_v45  ;;  %v10444_v45 = vcombine.high %v10435_v34, %v10435_v34 }
 0x40c   : > { %3655 = vmatpush2.bf16.msra.mxu1 %v1790_v46  ;;  %3615 = vmatprep.subr.bf16.mxu0 %v1655_v48  ;;  %v1982_v46 = vunpack.c.h.s8.bf16 %v1502_v42  ;;  %v1847_v48 = vunpack.c.l.s8.bf16 %v1439_v31 }
 0x40d   : > { %3656 = vmatprep.subr.bf16.mxu1 %v1783_v30  ;;  %v1975_v30 = vunpack.c.l.s8.bf16 %v1503_v32 }
 0x40f   : > { %3616 = vmatpush2.bf16.msra.mxu0 %v1654_v54  ;;  %v10450_v54 = vcombine.high %v10440_v44, %v10440_v44 }
 0x410   : > { %3657 = vmatpush2.bf16.msra.mxu1 %v1782_v55  ;;  %3617 = vmatprep.subr.bf16.mxu0 %v1647_v56 }
 0x411   : > { %3658 = vmatprep.subr.bf16.mxu1 %v1775_v59 }
 0x413   : > { %3618 = vmatpush2.bf16.msra.mxu0 %v1646_v58 }
 0x414   : > { %3659 = vmatpush2.bf16.msra.mxu1 %v1774_v2  ;;  %3619 = vmatprep.subr.bf16.mxu0 %v1639_v10  ;;  %v1839_v10 = vunpack.c.h.s8.bf16 %v1431_v52 }
 0x415   : > { %3660 = vmatprep.subr.bf16.mxu1 %v1767_v12  ;;  %v1967_v12 = vunpack.c.h.s8.bf16 %v1495_v53 }
 0x417   : > { %3620 = vmatpush2.bf16.msra.mxu0 %v1638_v57 }
 0x418   : > { %3661 = vmatpush2.bf16.msra.mxu1 %v1766_v5  ;;  %3621 = vmatprep.subr.bf16.mxu0 %v1631_v7 }
 0x419   : > { %3662 = vmatprep.subr.bf16.mxu1 %v1759_v62 }
 0x41b   : > { %3622 = vmatpush2.bf16.msra.mxu0 %v1630_v6 }
 0x41c   : > { %3663 = vmatpush2.bf16.msra.mxu1 %v1758_v26  ;;  %3623 = vmatprep.subr.bf16.mxu0 %v1623_v14  ;;  %v1959_v14 = vunpack.c.l.s8.bf16 %v1495_v53 }
 0x41d   : > { %3664 = vmatprep.subr.bf16.mxu1 %v1751_v20  ;;  %v1423_v20 = vld [vmem:[%s9892_s2 + $0x448] sm:$0xff] }
 0x41f   : > { %3624 = vmatpush2.bf16.msra.mxu0 %v1622_v17  ;;  %v1823_v17 = vunpack.c.h.s8.bf16 %v1423_v20 }
 0x420   : > { %3665 = vmatpush2.bf16.msra.mxu1 %v1750_v18  ;;  %3625 = vmatprep.subr.bf16.mxu0 %v1615_v13  ;;  %v1951_v18 = vunpack.c.h.s8.bf16 %v1487_v25  ;;  %v1422_v13 = vld [vmem:[%s9892_s2 + $0x440] sm:$0xff] }
 0x421   : > { %3666 = vmatprep.subr.bf16.mxu1 %v1743_v21  ;;  %v1486_v21 = vld [vmem:[%s9892_s2 + $0x640] sm:$0xff]  ;;  %v1822_v23 = vunpack.c.h.s8.bf16 %v1422_v13  ;;  %v1814_v31 = vunpack.c.l.s8.bf16 %v1422_v13 }
 0x422   : > { %v1950_v43 = vunpack.c.h.s8.bf16 %v1486_v21  ;;  %v1942_v32 = vunpack.c.l.s8.bf16 %v1486_v21  ;;  %v1518_v13 = vld [vmem:[%s9892_s2 + $0x740] sm:$0xff] }
 0x423   : > { %3626 = vmatpush2.bf16.msra.mxu0 %v1614_v27  ;;  %v1815_v27 = vunpack.c.l.s8.bf16 %v1423_v20  ;;  %v1519_v20 = vld [vmem:[%s9892_s2 + $0x748] sm:$0xff] }
 0x424   : > { %3667 = vmatpush2.bf16.msra.mxu1 %v1742_v28  ;;  %3627 = vmatprep.subr.bf16.mxu0 %v1607_v15  ;;  %v1943_v28 = vunpack.c.l.s8.bf16 %v1487_v25  ;;  %v1415_v15 = vld [vmem:[%s9892_s2 + $0x408] sm:$0xff] }
 0x425   : > { %3668 = vmatprep.subr.bf16.mxu1 %v1735_v29  ;;  %v1479_v29 = vld [vmem:[%s9892_s2 + $0x608] sm:$0xff]  ;;  %v1807_v33 = vunpack.c.h.s8.bf16 %v1415_v15  ;;  %v1799_v42 = vunpack.c.l.s8.bf16 %v1415_v15 }
 0x426   : > { %v1511_v15 = vld [vmem:[%s9892_s2 + $0x708] sm:$0xff] }
 0x427   : > { %3628 = vmatpush2.bf16.msra.mxu0 %v1606_v35  ;;  %v1935_v35 = vunpack.c.h.s8.bf16 %v1479_v29 }
 0x428   : > { %3669 = vmatpush2.bf16.msra.mxu1 %v1734_v36  ;;  %3679 = vmatprep.subr.bf16.mxu0 %v1855_v37  ;;  %v1414_v36 = vld [vmem:[%s9892_s2 + $0x400] sm:$0xff] }
 0x429   : > { %3720 = vmatprep.subr.bf16.mxu1 %v1983_v40  ;;  %v1478_v37 = vld [vmem:[%s9892_s2 + $0x600] sm:$0xff]  ;;  %v1806_v40 = vunpack.c.h.s8.bf16 %v1414_v36 }
 0x42a   : > { %v3327_v55 = vpop.f32.mrf.mxu0  ;;  %3630 = vmatmul.mubr.bf16.vlgmr.msra.gmra.mxu0 %v10435_v34  ;;  %v1934_v41 = vunpack.c.h.s8.bf16 %v1478_v37 }
 0x42b   : > { %v3368_v56 = vpop.f32.mrf.mxu1  ;;  %3671 = vmatmul.mubr.bf16.vlgmr.msra.gmra.mxu1 %v10444_v45  ;;  %v3328_v59 = vadd.f32 %v3327_v55, %v10392_v50  ;;  %3680 = vmatpush1.bf16.msra.mxu0 %v1854_v22  ;;  %v1927_v22 = vunpack.c.l.s8.bf16 %v1479_v29 }
 0x42c   : > { %3721 = vmatpush1.bf16.msra.mxu1 %v1982_v46  ;;  %v3329_v58 = vpop.f32.mrf.mxu0  ;;  %3681 = vmatprep.subr.bf16.mxu0 %v1847_v48  ;;  %v1471_v46 = vld [vmem:[%s9892_s2 + $0x5c8] sm:$0xff] }
 0x42d   : > { %v3370_v2 = vpop.f32.mrf.mxu1  ;;  %3722 = vmatprep.subr.bf16.mxu1 %v1975_v30  ;;  %v10457_v57 = vadd.f32 %v3368_v56, %v3328_v59  ;;  %v3330_v5 = vadd.f32 %v3329_v58, %v10396_v0  ;;  %3711 = vmatprep.mubr.bf16.mxu0 %v10440_v44  ;;  %v1831_v0 = vunpack.c.l.s8.bf16 %v1431_v52  ;;  %v1535_v48 = vld [vmem:[%s9892_s2 + $0x7c8] sm:$0xff]  ;;  %v1798_v30 = vunpack.c.l.s8.bf16 %v1414_v36  ;;  %v1470_v56 = vld [vmem:[%s9892_s2 + $0x5c0] sm:$0xff] }
 0x42e   : > { %3752 = vmatprep.mubr.bf16.mxu1 %v10450_v54  ;;  %v3331_v50 = vpop.f32.mrf.mxu0  ;;  %v1926_v52 = vunpack.c.l.s8.bf16 %v1478_v37  ;;  %v1919_v53 = vunpack.c.h.s8.bf16 %v1471_v46  ;;  %v2047_v55 = vunpack.c.h.s8.bf16 %v1535_v48  ;;  %v1534_v59 = vld [vmem:[%s9892_s2 + $0x7c0] sm:$0xff]  ;;  %v1911_v58 = vunpack.c.l.s8.bf16 %v1471_v46  ;;  %v1377_v46 = vld [vmem:[%s9892_s2 + $0x2d8] sm:$0xff] }
 0x42f   : > { %v3372_v7 = vpop.f32.mrf.mxu1  ;;  %v10462_v62 = vadd.f32 %v3370_v2, %v3330_v5  ;;  %3682 = vmatpush1.bf16.msra.mxu0 %v1846_v61  ;;  %v1918_v61 = vunpack.c.h.s8.bf16 %v1470_v56  ;;  %v2039_v2 = vunpack.c.l.s8.bf16 %v1535_v48  ;;  %v1910_v51 = vunpack.c.l.s8.bf16 %v1470_v56  ;;  %v1510_v36 = vld [vmem:[%s9892_s2 + $0x700] sm:$0xff]  ;;  %v1312_v56 = vld [vmem:[%s9892_s2 + $0xd0] sm:$0xff] }
 0x430   : > { %3723 = vmatpush1.bf16.msra.mxu1 %v1974_v49  ;;  %v3332_v6 = vpop.f32.mrf.mxu0  ;;  %3683 = vmatprep.subr.bf16.mxu0 %v1839_v10  ;;  %v2046_v49 = vunpack.c.h.s8.bf16 %v1534_v59  ;;  %v1463_v10 = vld [vmem:[%s9892_s2 + $0x588] sm:$0xff]  ;;  %v2038_v4 = vunpack.c.l.s8.bf16 %v1534_v59  ;;  %v1462_v7 = vld [vmem:[%s9892_s2 + $0x580] sm:$0xff]  ;;  %v10492_v48 = vrot.slane %v10427_v24, %v10034_v11  ;;  %v1376_v59 = vld [vmem:[%s9892_s2 + $0x2d0] sm:$0xff]  ;;  %v1600_v24 = vunpack.c.h.s8.bf16 %v1312_v56 }
 0x431   : > { %v3373_v26 = vpop.f32.mrf.mxu1  ;;  %3724 = vmatprep.subr.bf16.mxu1 %v1967_v12  ;;  %v1527_v12 = vld [vmem:[%s9892_s2 + $0x788] sm:$0xff]  ;;  %v1903_v5 = vunpack.c.h.s8.bf16 %v1463_v10  ;;  %v1894_v25 = vunpack.c.l.s8.bf16 %v1462_v7 }
 0x432   : > { %v2031_v50 = vunpack.c.h.s8.bf16 %v1527_v12  ;;  %v1895_v26 = vunpack.c.l.s8.bf16 %v1463_v10  ;;  %v1305_v10 = vld [vmem:[%s9892_s2 + $0x98] sm:$0xff] }
 0x433   : > { %3684 = vmatpush1.bf16.msra.mxu0 %v1838_v8  ;;  %v1526_v8 = vld [vmem:[%s9892_s2 + $0x780] sm:$0xff] }
 0x434   : > { %3725 = vmatpush1.bf16.msra.mxu1 %v1966_v19  ;;  %3685 = vmatprep.subr.bf16.mxu0 %v1831_v0  ;;  %v1902_v19 = vunpack.c.h.s8.bf16 %v1462_v7  ;;  %v2030_v6 = vunpack.c.h.s8.bf16 %v1526_v8  ;;  %v2023_v0 = vunpack.c.l.s8.bf16 %v1527_v12  ;;  %v1369_v12 = vld [vmem:[%s9892_s2 + $0x298] sm:$0xff]  ;;  %v1720_v7 = vunpack.c.l.s8.bf16 %v1376_v59 }
 0x435   : > { %3726 = vmatprep.subr.bf16.mxu1 %v1959_v14  ;;  %v1455_v14 = vld [vmem:[%s9892_s2 + $0x548] sm:$0xff] }
 0x437   : > { %3686 = vmatpush1.bf16.msra.mxu0 %v1830_v9  ;;  %v2022_v9 = vunpack.c.l.s8.bf16 %v1526_v8 }
 0x438   : > { %3727 = vmatpush1.bf16.msra.mxu1 %v1958_v16  ;;  %3687 = vmatprep.subr.bf16.mxu0 %v1823_v17  ;;  %v1887_v16 = vunpack.c.h.s8.bf16 %v1455_v14  ;;  %v2015_v17 = vunpack.c.h.s8.bf16 %v1519_v20 }
 0x439   : > { %3728 = vmatprep.subr.bf16.mxu1 %v1951_v18  ;;  %v1454_v18 = vld [vmem:[%s9892_s2 + $0x540] sm:$0xff] }
 0x43a   : > { %v1886_v21 = vunpack.c.h.s8.bf16 %v1454_v18  ;;  %v1878_v29 = vunpack.c.l.s8.bf16 %v1454_v18 }
 0x43b   : > { %3688 = vmatpush1.bf16.msra.mxu0 %v1822_v23  ;;  %v2014_v23 = vunpack.c.h.s8.bf16 %v1518_v13 }
 0x43c   : > { %3729 = vmatpush1.bf16.msra.mxu1 %v1950_v43  ;;  %3689 = vmatprep.subr.bf16.mxu0 %v1815_v27  ;;  %v1879_v43 = vunpack.c.l.s8.bf16 %v1455_v14  ;;  %v2007_v27 = vunpack.c.l.s8.bf16 %v1519_v20  ;;  %v1368_v14 = vld [vmem:[%s9892_s2 + $0x290] sm:$0xff] }
 0x43d   : > { %3730 = vmatprep.subr.bf16.mxu1 %v1943_v28  ;;  %v1447_v28 = vld [vmem:[%s9892_s2 + $0x508] sm:$0xff] }
 0x43f   : > { %3690 = vmatpush1.bf16.msra.mxu0 %v1814_v31  ;;  %v2006_v31 = vunpack.c.l.s8.bf16 %v1518_v13 }
 0x440   : > { %3731 = vmatpush1.bf16.msra.mxu1 %v1942_v32  ;;  %3691 = vmatprep.subr.bf16.mxu0 %v1807_v33  ;;  %v1871_v32 = vunpack.c.h.s8.bf16 %v1447_v28  ;;  %v1999_v33 = vunpack.c.h.s8.bf16 %v1511_v15 }
 0x441   : > { %3732 = vmatprep.subr.bf16.mxu1 %v1935_v35  ;;  %v1446_v35 = vld [vmem:[%s9892_s2 + $0x500] sm:$0xff] }
 0x442   : > { %v1870_v37 = vunpack.c.h.s8.bf16 %v1446_v35 }
 0x443   : > { %3692 = vmatpush1.bf16.msra.mxu0 %v1806_v40  ;;  %v1998_v40 = vunpack.c.h.s8.bf16 %v1510_v36 }
 0x444   : > { %3733 = vmatpush1.bf16.msra.mxu1 %v1934_v41  ;;  %3693 = vmatprep.subr.bf16.mxu0 %v1799_v42  ;;  %v1863_v41 = vunpack.c.l.s8.bf16 %v1447_v28  ;;  %v1991_v42 = vunpack.c.l.s8.bf16 %v1511_v15  ;;  %v1704_v15 = vunpack.c.l.s8.bf16 %v1368_v14 }
 0x445   : > { %3734 = vmatprep.subr.bf16.mxu1 %v1927_v22  ;;  %v1313_v22 = vld [vmem:[%s9892_s2 + $0xd8] sm:$0xff] }
 0x447   : > { %3694 = vmatpush1.bf16.msra.mxu0 %v1798_v30  ;;  %v1862_v30 = vunpack.c.l.s8.bf16 %v1446_v35 }
 0x448   : > { %3735 = vmatpush1.bf16.msra.mxu1 %v1926_v52  ;;  %3695 = vmatprep.subr.bf16.mxu0 %v1919_v53  ;;  %v1990_v52 = vunpack.c.l.s8.bf16 %v1510_v36  ;;  %v1601_v53 = vunpack.c.h.s8.bf16 %v1313_v22 }
 0x449   : > { %3736 = vmatprep.subr.bf16.mxu1 %v2047_v55  ;;  %v1729_v55 = vunpack.c.h.s8.bf16 %v1377_v46 }
 0x44b   : > { %3696 = vmatpush2.bf16.msra.mxu0 %v1918_v61  ;;  %v10498_v61 = vcombine.high %v10492_v48, %v10492_v48 }
 0x44c   : > { %3737 = vmatpush2.bf16.msra.mxu1 %v2046_v49  ;;  %3697 = vmatprep.subr.bf16.mxu0 %v1911_v58  ;;  %v1728_v49 = vunpack.c.h.s8.bf16 %v1376_v59  ;;  %v1593_v58 = vunpack.c.l.s8.bf16 %v1313_v22 }
 0x44d   : > { %3738 = vmatprep.subr.bf16.mxu1 %v2039_v2  ;;  %v1721_v2 = vunpack.c.l.s8.bf16 %v1377_v46 }
 0x44f   : > { %3698 = vmatpush2.bf16.msra.mxu0 %v1910_v51 }
 0x450   : > { %3739 = vmatpush2.bf16.msra.mxu1 %v2038_v4  ;;  %3699 = vmatprep.subr.bf16.mxu0 %v1903_v5 }
 0x451   : > { %3740 = vmatprep.subr.bf16.mxu1 %v2031_v50  ;;  %v1592_v50 = vunpack.c.l.s8.bf16 %v1312_v56 }
 0x453   : > { %3700 = vmatpush2.bf16.msra.mxu0 %v1902_v19 }
 0x454   : > { %3741 = vmatpush2.bf16.msra.mxu1 %v2030_v6  ;;  %3701 = vmatprep.subr.bf16.mxu0 %v1895_v26  ;;  %v1585_v6 = vunpack.c.h.s8.bf16 %v1305_v10  ;;  %v1713_v26 = vunpack.c.h.s8.bf16 %v1369_v12 }
 0x455   : > { %3742 = vmatprep.subr.bf16.mxu1 %v2023_v0  ;;  %v1304_v0 = vld [vmem:[%s9892_s2 + $0x90] sm:$0xff] }
 0x456   : > { %v1576_v28 = vunpack.c.l.s8.bf16 %v1304_v0 }
 0x457   : > { %3702 = vmatpush2.bf16.msra.mxu0 %v1894_v25 }
 0x458   : > { %3743 = vmatpush2.bf16.msra.mxu1 %v2022_v9  ;;  %3703 = vmatprep.subr.bf16.mxu0 %v1887_v16  ;;  %v1584_v16 = vunpack.c.h.s8.bf16 %v1304_v0  ;;  %v1337_v0 = vld [vmem:[%s9892_s2 + $0x198] sm:$0xff] }
 0x459   : > { %3744 = vmatprep.subr.bf16.mxu1 %v2015_v17  ;;  %v1712_v17 = vunpack.c.h.s8.bf16 %v1368_v14  ;;  %v1401_v14 = vld [vmem:[%s9892_s2 + $0x398] sm:$0xff] }
 0x45b   : > { %3704 = vmatpush2.bf16.msra.mxu0 %v1886_v21  ;;  %v1577_v21 = vunpack.c.l.s8.bf16 %v1305_v10 }
 0x45c   : > { %3745 = vmatpush2.bf16.msra.mxu1 %v2014_v23  ;;  %3705 = vmatprep.subr.bf16.mxu0 %v1879_v43  ;;  %v1705_v23 = vunpack.c.l.s8.bf16 %v1369_v12  ;;  %v1297_v43 = vld [vmem:[%s9892_s2 + $0x58] sm:$0xff] }
 0x45d   : > { %3746 = vmatprep.subr.bf16.mxu1 %v2007_v27  ;;  %v1361_v27 = vld [vmem:[%s9892_s2 + $0x258] sm:$0xff] }
 0x45f   : > { %3706 = vmatpush2.bf16.msra.mxu0 %v1878_v29  ;;  %v1569_v29 = vunpack.c.h.s8.bf16 %v1297_v43 }
 0x460   : > { %3747 = vmatpush2.bf16.msra.mxu1 %v2006_v31  ;;  %3707 = vmatprep.subr.bf16.mxu0 %v1871_v32  ;;  %v1697_v31 = vunpack.c.h.s8.bf16 %v1361_v27  ;;  %v1296_v32 = vld [vmem:[%s9892_s2 + $0x50] sm:$0xff] }
 0x461   : > { %3748 = vmatprep.subr.bf16.mxu1 %v1999_v33  ;;  %v1360_v33 = vld [vmem:[%s9892_s2 + $0x250] sm:$0xff]  ;;  %v1568_v35 = vunpack.c.h.s8.bf16 %v1296_v32  ;;  %v1560_v22 = vunpack.c.l.s8.bf16 %v1296_v32 }
 0x462   : > { %v1696_v36 = vunpack.c.h.s8.bf16 %v1360_v33  ;;  %v1688_v46 = vunpack.c.l.s8.bf16 %v1360_v33 }
 0x463   : > { %3708 = vmatpush2.bf16.msra.mxu0 %v1870_v37  ;;  %v1561_v37 = vunpack.c.l.s8.bf16 %v1297_v43  ;;  %v1641_v43 = vunpack.c.l.s8.bf16 %v1337_v0 }
 0x464   : > { %3749 = vmatpush2.bf16.msra.mxu1 %v1998_v40  ;;  %3709 = vmatprep.subr.bf16.mxu0 %v1863_v41  ;;  %v1689_v40 = vunpack.c.l.s8.bf16 %v1361_v27  ;;  %v1289_v41 = vld [vmem:[%s9892_s2 + $0x18] sm:$0xff]  ;;  %v1769_v27 = vunpack.c.l.s8.bf16 %v1401_v14 }
 0x465   : > { %3750 = vmatprep.subr.bf16.mxu1 %v1991_v42  ;;  %v1353_v42 = vld [vmem:[%s9892_s2 + $0x218] sm:$0xff] }
 0x467   : > { %3710 = vmatpush2.bf16.msra.mxu0 %v1862_v30  ;;  %v1553_v30 = vunpack.c.h.s8.bf16 %v1289_v41 }
 0x468   : > { %3751 = vmatpush2.bf16.msra.mxu1 %v1990_v52  ;;  %3761 = vmatprep.subr.bf16.mxu0 %v1601_v53  ;;  %v1681_v52 = vunpack.c.h.s8.bf16 %v1353_v42  ;;  %v1288_v53 = vld [vmem:[%s9892_s2 + $0x10] sm:$0xff] }
 0x469   : > { %3802 = vmatprep.subr.bf16.mxu1 %v1729_v55  ;;  %v1352_v55 = vld [vmem:[%s9892_s2 + $0x210] sm:$0xff]  ;;  %v1552_v56 = vunpack.c.h.s8.bf16 %v1288_v53  ;;  %v1544_v10 = vunpack.c.l.s8.bf16 %v1288_v53 }
 0x46a   : > { %v3409_v51 = vpop.f32.mrf.mxu0  ;;  %3712 = vmatmul.mubr.bf16.vlgmr.msra.gmra.mxu0 %v10492_v48  ;;  %v1680_v59 = vunpack.c.h.s8.bf16 %v1352_v55  ;;  %v1672_v12 = vunpack.c.l.s8.bf16 %v1352_v55 }
 0x46b   : > { %v3450_v4 = vpop.f32.mrf.mxu1  ;;  %3753 = vmatmul.mubr.bf16.vlgmr.msra.gmra.mxu1 %v10498_v61  ;;  %3762 = vmatpush1.bf16.msra.mxu0 %v1600_v24  ;;  %v1545_v24 = vunpack.c.l.s8.bf16 %v1289_v41 }
 0x46c   : > { %v10504_v5 = vadd.f32 %v3450_v4, %v3409_v51  ;;  %3803 = vmatpush1.bf16.msra.mxu1 %v1728_v49  ;;  %v3411_v8 = vpop.f32.mrf.mxu0  ;;  %3763 = vmatprep.subr.bf16.mxu0 %v1593_v58  ;;  %v1673_v49 = vunpack.c.l.s8.bf16 %v1353_v42  ;;  %v1345_v58 = vld [vmem:[%s9892_s2 + $0x1d8] sm:$0xff] }
 0x46d   : > { %v3452_v19 = vpop.f32.mrf.mxu1  ;;  %3804 = vmatprep.subr.bf16.mxu1 %v1721_v2  ;;  %3793 = vmatprep.mubr.bf16.mxu0 %v10382_v39  ;;  %v1409_v2 = vld [vmem:[%s9892_s2 + $0x3d8] sm:$0xff]  ;;  %v1665_v51 = vunpack.c.h.s8.bf16 %v1345_v58 }
 0x46e   : > { %v10508_v20 = vadd.f32 %v3452_v19, %v3411_v8  ;;  %3834 = vmatprep.mubr.bf16.mxu1 %v10388_v47  ;;  %v3413_v25 = vpop.f32.mrf.mxu0  ;;  %v1793_v4 = vunpack.c.h.s8.bf16 %v1409_v2 }
 0x46f   : > { %v3454_v9 = vpop.f32.mrf.mxu1  ;;  %3764 = vmatpush1.bf16.msra.mxu0 %v1592_v50  ;;  %v1344_v50 = vld [vmem:[%s9892_s2 + $0x1d0] sm:$0xff] }
 0x470   : > { %3805 = vmatpush1.bf16.msra.mxu1 %v1720_v7  ;;  %v3414_v18 = vpop.f32.mrf.mxu0  ;;  %3765 = vmatprep.subr.bf16.mxu0 %v1585_v6  ;;  %v1408_v7 = vld [vmem:[%s9892_s2 + $0x3d0] sm:$0xff]  ;;  %v1664_v8 = vunpack.c.h.s8.bf16 %v1344_v50  ;;  %v1657_v6 = vunpack.c.l.s8.bf16 %v1345_v58  ;;  %v1656_v25 = vunpack.c.l.s8.bf16 %v1344_v50 }
 0x471   : > { %v3455_v13 = vpop.f32.mrf.mxu1  ;;  %3806 = vmatprep.subr.bf16.mxu1 %v1713_v26  ;;  %v1792_v19 = vunpack.c.h.s8.bf16 %v1408_v7  ;;  %v1785_v26 = vunpack.c.l.s8.bf16 %v1409_v2  ;;  %v1784_v9 = vunpack.c.l.s8.bf16 %v1408_v7  ;;  %v1336_v18 = vld [vmem:[%s9892_s2 + $0x190] sm:$0xff] }
 0x472   : > { %v1400_v13 = vld [vmem:[%s9892_s2 + $0x390] sm:$0xff] }
 0x473   : > { %3766 = vmatpush1.bf16.msra.mxu0 %v1584_v16  ;;  %v1649_v16 = vunpack.c.h.s8.bf16 %v1337_v0 }
 0x474   : > { %3807 = vmatpush1.bf16.msra.mxu1 %v1712_v17  ;;  %3767 = vmatprep.subr.bf16.mxu0 %v1577_v21  ;;  %v1777_v17 = vunpack.c.h.s8.bf16 %v1401_v14  ;;  %v1648_v21 = vunpack.c.h.s8.bf16 %v1336_v18 }
 0x475   : > { %3808 = vmatprep.subr.bf16.mxu1 %v1705_v23  ;;  %v1776_v23 = vunpack.c.h.s8.bf16 %v1400_v13 }
 0x477   : > { %3768 = vmatpush1.bf16.msra.mxu0 %v1576_v28  ;;  %v1329_v28 = vld [vmem:[%s9892_s2 + $0x158] sm:$0xff] }
 0x478   : > { %3809 = vmatpush1.bf16.msra.mxu1 %v1704_v15  ;;  %3769 = vmatprep.subr.bf16.mxu0 %v1569_v29  ;;  %v1393_v15 = vld [vmem:[%s9892_s2 + $0x358] sm:$0xff]  ;;  %v1640_v29 = vunpack.c.l.s8.bf16 %v1336_v18  ;;  %v1633_v32 = vunpack.c.h.s8.bf16 %v1329_v28  ;;  %v1625_v41 = vunpack.c.l.s8.bf16 %v1329_v28 }
 0x479   : > { %3810 = vmatprep.subr.bf16.mxu1 %v1697_v31  ;;  %v1768_v31 = vunpack.c.l.s8.bf16 %v1400_v13  ;;  %v1761_v33 = vunpack.c.h.s8.bf16 %v1393_v15  ;;  %v1753_v42 = vunpack.c.l.s8.bf16 %v1393_v15  ;;  %v1432_v15 = vld [vmem:[%s9892_s2 + $0x490] sm:$0xff] }
 0x47b   : > { %3770 = vmatpush1.bf16.msra.mxu0 %v1568_v35  ;;  %v1328_v35 = vld [vmem:[%s9892_s2 + $0x150] sm:$0xff] }
 0x47c   : > { %3811 = vmatpush1.bf16.msra.mxu1 %v1696_v36  ;;  %3771 = vmatprep.subr.bf16.mxu0 %v1561_v37  ;;  %v1392_v36 = vld [vmem:[%s9892_s2 + $0x350] sm:$0xff]  ;;  %v1632_v37 = vunpack.c.h.s8.bf16 %v1328_v35 }
 0x47d   : > { %3812 = vmatprep.subr.bf16.mxu1 %v1689_v40  ;;  %v1760_v40 = vunpack.c.h.s8.bf16 %v1392_v36 }
 0x47f   : > { %3772 = vmatpush1.bf16.msra.mxu0 %v1560_v22  ;;  %v1321_v22 = vld [vmem:[%s9892_s2 + $0x118] sm:$0xff] }
 0x480   : > { %3813 = vmatpush1.bf16.msra.mxu1 %v1688_v46  ;;  %3773 = vmatprep.subr.bf16.mxu0 %v1553_v30  ;;  %v1385_v46 = vld [vmem:[%s9892_s2 + $0x318] sm:$0xff]  ;;  %v1624_v30 = vunpack.c.l.s8.bf16 %v1328_v35  ;;  %v1617_v53 = vunpack.c.h.s8.bf16 %v1321_v22  ;;  %v1609_v58 = vunpack.c.l.s8.bf16 %v1321_v22 }
 0x481   : > { %3814 = vmatprep.subr.bf16.mxu1 %v1681_v52  ;;  %v1752_v52 = vunpack.c.l.s8.bf16 %v1392_v36  ;;  %v1745_v55 = vunpack.c.h.s8.bf16 %v1385_v46  ;;  %v1737_v2 = vunpack.c.l.s8.bf16 %v1385_v46  ;;  %v1840_v36 = vunpack.c.h.s8.bf16 %v1432_v15  ;;  %v1425_v22 = vld [vmem:[%s9892_s2 + $0x458] sm:$0xff] }
 0x482   : > { %v1489_v46 = vld [vmem:[%s9892_s2 + $0x658] sm:$0xff] }
 0x483   : > { %3774 = vmatpush1.bf16.msra.mxu0 %v1552_v56  ;;  %v1320_v56 = vld [vmem:[%s9892_s2 + $0x110] sm:$0xff] }
 0x484   : > { %3815 = vmatpush1.bf16.msra.mxu1 %v1680_v59  ;;  %3775 = vmatprep.subr.bf16.mxu0 %v1545_v24  ;;  %v1384_v59 = vld [vmem:[%s9892_s2 + $0x310] sm:$0xff]  ;;  %v1616_v24 = vunpack.c.h.s8.bf16 %v1320_v56 }
 0x485   : > { %3816 = vmatprep.subr.bf16.mxu1 %v1673_v49  ;;  %v1744_v49 = vunpack.c.h.s8.bf16 %v1384_v59 }
 0x487   : > { %3776 = vmatpush1.bf16.msra.mxu0 %v1544_v10  ;;  %v1441_v10 = vld [vmem:[%s9892_s2 + $0x4d8] sm:$0xff] }
 0x488   : > { %3817 = vmatpush1.bf16.msra.mxu1 %v1672_v12  ;;  %3777 = vmatprep.subr.bf16.mxu0 %v1665_v51  ;;  %v1505_v12 = vld [vmem:[%s9892_s2 + $0x6d8] sm:$0xff]  ;;  %v1608_v51 = vunpack.c.l.s8.bf16 %v1320_v56  ;;  %v1857_v50 = vunpack.c.h.s8.bf16 %v1441_v10  ;;  %v1849_v0 = vunpack.c.l.s8.bf16 %v1441_v10  ;;  %v1424_v56 = vld [vmem:[%s9892_s2 + $0x450] sm:$0xff] }
 0x489   : > { %3818 = vmatprep.subr.bf16.mxu1 %v1793_v4  ;;  %v1736_v4 = vunpack.c.l.s8.bf16 %v1384_v59  ;;  %v1985_v7 = vunpack.c.h.s8.bf16 %v1505_v12  ;;  %v1977_v14 = vunpack.c.l.s8.bf16 %v1505_v12  ;;  %v1488_v59 = vld [vmem:[%s9892_s2 + $0x650] sm:$0xff]  ;;  %v1417_v10 = vld [vmem:[%s9892_s2 + $0x418] sm:$0xff] }
 0x48a   : > { %v1481_v12 = vld [vmem:[%s9892_s2 + $0x618] sm:$0xff] }
 0x48b   : > { %3778 = vmatpush2.bf16.msra.mxu0 %v1664_v8  ;;  %v1440_v8 = vld [vmem:[%s9892_s2 + $0x4d0] sm:$0xff] }
 0x48c   : > { %3819 = vmatpush2.bf16.msra.mxu1 %v1792_v19  ;;  %3779 = vmatprep.subr.bf16.mxu0 %v1657_v6  ;;  %v1504_v19 = vld [vmem:[%s9892_s2 + $0x6d0] sm:$0xff]  ;;  %v1856_v6 = vunpack.c.h.s8.bf16 %v1440_v8  ;;  %v1848_v13 = vunpack.c.l.s8.bf16 %v1440_v8 }
 0x48d   : > { %3820 = vmatprep.subr.bf16.mxu1 %v1785_v26  ;;  %v1984_v26 = vunpack.c.h.s8.bf16 %v1504_v19  ;;  %v1416_v8 = vld [vmem:[%s9892_s2 + $0x410] sm:$0xff] }
 0x48f   : > { %3780 = vmatpush2.bf16.msra.mxu0 %v1656_v25  ;;  %v1433_v25 = vld [vmem:[%s9892_s2 + $0x498] sm:$0xff] }
 0x490   : > { %3821 = vmatpush2.bf16.msra.mxu1 %v1784_v9  ;;  %3781 = vmatprep.subr.bf16.mxu0 %v1649_v16  ;;  %v1497_v9 = vld [vmem:[%s9892_s2 + $0x698] sm:$0xff] }
 0x491   : > { %3822 = vmatprep.subr.bf16.mxu1 %v1777_v17  ;;  %v1969_v28 = vunpack.c.h.s8.bf16 %v1497_v9 }
 0x493   : > { %3782 = vmatpush2.bf16.msra.mxu0 %v1648_v21  ;;  %v1976_v21 = vunpack.c.l.s8.bf16 %v1504_v19  ;;  %v1480_v19 = vld [vmem:[%s9892_s2 + $0x610] sm:$0xff] }
 0x494   : > { %3823 = vmatpush2.bf16.msra.mxu1 %v1776_v23  ;;  %3783 = vmatprep.subr.bf16.mxu0 %v1641_v43 }
 0x495   : > { %3824 = vmatprep.subr.bf16.mxu1 %v1769_v27  ;;  %v1841_v27 = vunpack.c.h.s8.bf16 %v1433_v25 }
 0x497   : > { %3784 = vmatpush2.bf16.msra.mxu0 %v1640_v29  ;;  %v1496_v29 = vld [vmem:[%s9892_s2 + $0x690] sm:$0xff] }
 0x498   : > { %3825 = vmatpush2.bf16.msra.mxu1 %v1768_v31  ;;  %3785 = vmatprep.subr.bf16.mxu0 %v1633_v32 }
 0x499   : > { %3826 = vmatprep.subr.bf16.mxu1 %v1761_v33 }
 0x49b   : > { %3786 = vmatpush2.bf16.msra.mxu0 %v1632_v37  ;;  %v1968_v37 = vunpack.c.h.s8.bf16 %v1496_v29 }
 0x49c   : > { %3827 = vmatpush2.bf16.msra.mxu1 %v1760_v40  ;;  %3787 = vmatprep.subr.bf16.mxu0 %v1625_v41 }
 0x49d   : > { %3828 = vmatprep.subr.bf16.mxu1 %v1753_v42  ;;  %v1961_v42 = vunpack.c.l.s8.bf16 %v1497_v9  ;;  %v1537_v9 = vld [vmem:[%s9892_s2 + $0x7d8] sm:$0xff] }
 0x49f   : > { %3788 = vmatpush2.bf16.msra.mxu0 %v1624_v30  ;;  %v1832_v30 = vunpack.c.l.s8.bf16 %v1432_v15  ;;  %v2041_v15 = vunpack.c.l.s8.bf16 %v1537_v9 }
 0x4a0   : > { %3829 = vmatpush2.bf16.msra.mxu1 %v1752_v52  ;;  %3789 = vmatprep.subr.bf16.mxu0 %v1617_v53  ;;  %v1960_v52 = vunpack.c.l.s8.bf16 %v1496_v29  ;;  %v1825_v53 = vunpack.c.h.s8.bf16 %v1425_v22  ;;  %v1465_v29 = vld [vmem:[%s9892_s2 + $0x598] sm:$0xff] }
 0x4a1   : > { %3830 = vmatprep.subr.bf16.mxu1 %v1745_v55  ;;  %v1953_v55 = vunpack.c.h.s8.bf16 %v1489_v46 }
 0x4a3   : > { %3790 = vmatpush2.bf16.msra.mxu0 %v1616_v24  ;;  %v1824_v24 = vunpack.c.h.s8.bf16 %v1424_v56 }
 0x4a4   : > { %3831 = vmatpush2.bf16.msra.mxu1 %v1744_v49  ;;  %3791 = vmatprep.subr.bf16.mxu0 %v1609_v58  ;;  %v1952_v49 = vunpack.c.h.s8.bf16 %v1488_v59  ;;  %v1817_v58 = vunpack.c.l.s8.bf16 %v1425_v22  ;;  %v1897_v22 = vunpack.c.l.s8.bf16 %v1465_v29 }
 0x4a5   : > { %3832 = vmatprep.subr.bf16.mxu1 %v1737_v2  ;;  %v1945_v2 = vunpack.c.l.s8.bf16 %v1489_v46 }
 0x4a7   : > { %3792 = vmatpush2.bf16.msra.mxu0 %v1608_v51  ;;  %v1816_v51 = vunpack.c.l.s8.bf16 %v1424_v56 }
 0x4a8   : > { %3833 = vmatpush2.bf16.msra.mxu1 %v1736_v4  ;;  %3843 = vmatprep.subr.bf16.mxu0 %v1857_v50  ;;  %v1944_v4 = vunpack.c.l.s8.bf16 %v1488_v59  ;;  %v1809_v50 = vunpack.c.h.s8.bf16 %v1417_v10 }
 0x4a9   : > { %3884 = vmatprep.subr.bf16.mxu1 %v1985_v7  ;;  %v1937_v7 = vunpack.c.h.s8.bf16 %v1481_v12 }
 0x4aa   : > { %v3491_v16 = vpop.f32.mrf.mxu0  ;;  %3794 = vmatmul.mubr.bf16.vlgmr.msra.gmra.mxu0 %v10435_v34 }
 0x4ab   : > { %v3532_v17 = vpop.f32.mrf.mxu1  ;;  %3835 = vmatmul.mubr.bf16.vlgmr.msra.gmra.mxu1 %v10444_v45  ;;  %v3492_v18 = vadd.f32 %v3491_v16, %v10504_v5  ;;  %3844 = vmatpush1.bf16.msra.mxu0 %v1856_v6  ;;  %v1808_v6 = vunpack.c.h.s8.bf16 %v1416_v8  ;;  %v1800_v16 = vunpack.c.l.s8.bf16 %v1416_v8 }
 0x4ac   : > { %3885 = vmatpush1.bf16.msra.mxu1 %v1984_v26  ;;  %v3493_v23 = vpop.f32.mrf.mxu0  ;;  %3845 = vmatprep.subr.bf16.mxu0 %v1849_v0  ;;  %v1936_v26 = vunpack.c.h.s8.bf16 %v1480_v19  ;;  %v1801_v0 = vunpack.c.l.s8.bf16 %v1417_v10 }
 0x4ad   : > { %v3534_v43 = vpop.f32.mrf.mxu1  ;;  %3886 = vmatprep.subr.bf16.mxu1 %v1977_v14  ;;  %v10547_v31 = vadd.f32 %v3532_v17, %v3492_v18  ;;  %v3494_v32 = vadd.f32 %v3493_v23, %v10508_v20  ;;  %3875 = vmatprep.mubr.bf16.mxu0 %v10440_v44  ;;  %v1833_v20 = vunpack.c.l.s8.bf16 %v1433_v25  ;;  %v1929_v14 = vunpack.c.l.s8.bf16 %v1481_v12  ;;  %v1473_v25 = vld [vmem:[%s9892_s2 + $0x5d8] sm:$0xff]  ;;  %v1536_v23 = vld [vmem:[%s9892_s2 + $0x7d0] sm:$0xff] }
 0x4ae   : > { %3916 = vmatprep.mubr.bf16.mxu1 %v10450_v54  ;;  %v3495_v5 = vpop.f32.mrf.mxu0  ;;  %v1928_v17 = vunpack.c.l.s8.bf16 %v1480_v19  ;;  %v1921_v18 = vunpack.c.h.s8.bf16 %v1473_v25 }
 0x4af   : > { %v3536_v33 = vpop.f32.mrf.mxu1  ;;  %v10552_v35 = vadd.f32 %v3534_v43, %v3494_v32  ;;  %3846 = vmatpush1.bf16.msra.mxu0 %v1848_v13  ;;  %v2049_v13 = vunpack.c.h.s8.bf16 %v1537_v9  ;;  %v1529_v32 = vld [vmem:[%s9892_s2 + $0x798] sm:$0xff] }
 0x4b0   : > { %3887 = vmatpush1.bf16.msra.mxu1 %v1976_v21  ;;  %v3496_v40 = vpop.f32.mrf.mxu0  ;;  %3847 = vmatprep.subr.bf16.mxu0 %v1841_v27  ;;  %v1472_v21 = vld [vmem:[%s9892_s2 + $0x5d0] sm:$0xff]  ;;  %v2048_v27 = vunpack.c.h.s8.bf16 %v1536_v23  ;;  %v2040_v33 = vunpack.c.l.s8.bf16 %v1536_v23  ;;  %v2025_v46 = vunpack.c.l.s8.bf16 %v1529_v32 }
 0x4b1   : > { %v3537_v41 = vpop.f32.mrf.mxu1  ;;  %3888 = vmatprep.subr.bf16.mxu1 %v1969_v28  ;;  %v1920_v43 = vunpack.c.h.s8.bf16 %v1472_v21  ;;  %v1913_v28 = vunpack.c.l.s8.bf16 %v1473_v25  ;;  %v1912_v5 = vunpack.c.l.s8.bf16 %v1472_v21  ;;  %v1464_v40 = vld [vmem:[%s9892_s2 + $0x590] sm:$0xff] }
 0x4b2   : > { %v1528_v41 = vld [vmem:[%s9892_s2 + $0x790] sm:$0xff] }
 0x4b3   : > { %3848 = vmatpush1.bf16.msra.mxu0 %v1840_v36  ;;  %v1905_v36 = vunpack.c.h.s8.bf16 %v1465_v29 }
 0x4b4   : > { %3889 = vmatpush1.bf16.msra.mxu1 %v1968_v37  ;;  %3849 = vmatprep.subr.bf16.mxu0 %v1833_v20  ;;  %v2033_v37 = vunpack.c.h.s8.bf16 %v1529_v32  ;;  %v1904_v20 = vunpack.c.h.s8.bf16 %v1464_v40 }
 0x4b5   : > { %3890 = vmatprep.subr.bf16.mxu1 %v1961_v42  ;;  %v2032_v42 = vunpack.c.h.s8.bf16 %v1528_v41 }
 0x4b7   : > { %3850 = vmatpush1.bf16.msra.mxu0 %v1832_v30  ;;  %v1457_v30 = vld [vmem:[%s9892_s2 + $0x558] sm:$0xff] }
 0x4b8   : > { %3891 = vmatpush1.bf16.msra.mxu1 %v1960_v52  ;;  %3851 = vmatprep.subr.bf16.mxu0 %v1825_v53  ;;  %v1521_v52 = vld [vmem:[%s9892_s2 + $0x758] sm:$0xff]  ;;  %v1896_v53 = vunpack.c.l.s8.bf16 %v1464_v40  ;;  %v1889_v56 = vunpack.c.h.s8.bf16 %v1457_v30  ;;  %v1881_v10 = vunpack.c.l.s8.bf16 %v1457_v30 }
 0x4b9   : > { %3892 = vmatprep.subr.bf16.mxu1 %v1953_v55  ;;  %v2024_v55 = vunpack.c.l.s8.bf16 %v1528_v41  ;;  %v2017_v59 = vunpack.c.h.s8.bf16 %v1521_v52  ;;  %v2009_v12 = vunpack.c.l.s8.bf16 %v1521_v52  ;;  %v1306_v52 = vld [vmem:[%s9892_s2 + $0xa0] sm:$0xff] }
 0x4bb   : > { %3852 = vmatpush1.bf16.msra.mxu0 %v1824_v24  ;;  %v1456_v24 = vld [vmem:[%s9892_s2 + $0x550] sm:$0xff] }
 0x4bc   : > { %3893 = vmatpush1.bf16.msra.mxu1 %v1952_v49  ;;  %3853 = vmatprep.subr.bf16.mxu0 %v1817_v58  ;;  %v1520_v49 = vld [vmem:[%s9892_s2 + $0x750] sm:$0xff]  ;;  %v1888_v58 = vunpack.c.h.s8.bf16 %v1456_v24 }
 0x4bd   : > { %3894 = vmatprep.subr.bf16.mxu1 %v1945_v2  ;;  %v2016_v2 = vunpack.c.h.s8.bf16 %v1520_v49 }
 0x4bf   : > { %3854 = vmatpush1.bf16.msra.mxu0 %v1816_v51  ;;  %v1449_v51 = vld [vmem:[%s9892_s2 + $0x518] sm:$0xff] }
 0x4c0   : > { %3895 = vmatpush1.bf16.msra.mxu1 %v1944_v4  ;;  %3855 = vmatprep.subr.bf16.mxu0 %v1809_v50  ;;  %v1513_v4 = vld [vmem:[%s9892_s2 + $0x718] sm:$0xff]  ;;  %v1880_v50 = vunpack.c.l.s8.bf16 %v1456_v24  ;;  %v1873_v8 = vunpack.c.h.s8.bf16 %v1449_v51  ;;  %v1865_v25 = vunpack.c.l.s8.bf16 %v1449_v51  ;;  %v1299_v51 = vld [vmem:[%s9892_s2 + $0x68] sm:$0xff] }
 0x4c1   : > { %3896 = vmatprep.subr.bf16.mxu1 %v1937_v7  ;;  %v2008_v7 = vunpack.c.l.s8.bf16 %v1520_v49  ;;  %v2001_v19 = vunpack.c.h.s8.bf16 %v1513_v4  ;;  %v1993_v9 = vunpack.c.l.s8.bf16 %v1513_v4  ;;  %v1586_v49 = vunpack.c.h.s8.bf16 %v1306_v52  ;;  %v1363_v4 = vld [vmem:[%s9892_s2 + $0x268] sm:$0xff] }
 0x4c3   : > { %3856 = vmatpush1.bf16.msra.mxu0 %v1808_v6  ;;  %v1448_v6 = vld [vmem:[%s9892_s2 + $0x510] sm:$0xff] }
 0x4c4   : > { %3897 = vmatpush1.bf16.msra.mxu1 %v1936_v26  ;;  %3857 = vmatprep.subr.bf16.mxu0 %v1801_v0  ;;  %v1512_v26 = vld [vmem:[%s9892_s2 + $0x710] sm:$0xff]  ;;  %v1872_v0 = vunpack.c.h.s8.bf16 %v1448_v6 }
 0x4c5   : > { %3898 = vmatprep.subr.bf16.mxu1 %v1929_v14  ;;  %v2000_v14 = vunpack.c.h.s8.bf16 %v1512_v26 }
 0x4c7   : > { %3858 = vmatpush1.bf16.msra.mxu0 %v1800_v16  ;;  %v1315_v16 = vld [vmem:[%s9892_s2 + $0xe8] sm:$0xff] }
 0x4c8   : > { %3899 = vmatpush1.bf16.msra.mxu1 %v1928_v17  ;;  %3859 = vmatprep.subr.bf16.mxu0 %v1921_v18  ;;  %v1379_v17 = vld [vmem:[%s9892_s2 + $0x2e8] sm:$0xff]  ;;  %v1864_v18 = vunpack.c.l.s8.bf16 %v1448_v6  ;;  %v1603_v21 = vunpack.c.h.s8.bf16 %v1315_v16  ;;  %v1595_v29 = vunpack.c.l.s8.bf16 %v1315_v16  ;;  %v1298_v6 = vld [vmem:[%s9892_s2 + $0x60] sm:$0xff] }
 0x4c9   : > { %3900 = vmatprep.subr.bf16.mxu1 %v2049_v13  ;;  %v1992_v13 = vunpack.c.l.s8.bf16 %v1512_v26  ;;  %v1731_v23 = vunpack.c.h.s8.bf16 %v1379_v17  ;;  %v1723_v32 = vunpack.c.l.s8.bf16 %v1379_v17  ;;  %v1362_v26 = vld [vmem:[%s9892_s2 + $0x260] sm:$0xff]  ;;  %v1291_v16 = vld [vmem:[%s9892_s2 + $0x28] sm:$0xff] }
 0x4ca   : > { %v1355_v17 = vld [vmem:[%s9892_s2 + $0x228] sm:$0xff] }
 0x4cb   : > { %3860 = vmatpush2.bf16.msra.mxu0 %v1920_v43  ;;  %v1314_v43 = vld [vmem:[%s9892_s2 + $0xe0] sm:$0xff] }
 0x4cc   : > { %3901 = vmatpush2.bf16.msra.mxu1 %v2048_v27  ;;  %3861 = vmatprep.subr.bf16.mxu0 %v1913_v28  ;;  %v1378_v27 = vld [vmem:[%s9892_s2 + $0x2e0] sm:$0xff]  ;;  %v1602_v28 = vunpack.c.h.s8.bf16 %v1314_v43  ;;  %v1594_v41 = vunpack.c.l.s8.bf16 %v1314_v43 }
 0x4cd   : > { %3902 = vmatprep.subr.bf16.mxu1 %v2041_v15  ;;  %v1730_v15 = vunpack.c.h.s8.bf16 %v1378_v27  ;;  %v1290_v43 = vld [vmem:[%s9892_s2 + $0x20] sm:$0xff] }
 0x4cf   : > { %3862 = vmatpush2.bf16.msra.mxu0 %v1912_v5  ;;  %v1307_v5 = vld [vmem:[%s9892_s2 + $0xa8] sm:$0xff] }
 0x4d0   : > { %3903 = vmatpush2.bf16.msra.mxu1 %v2040_v33  ;;  %3863 = vmatprep.subr.bf16.mxu0 %v1905_v36  ;;  %v1371_v33 = vld [vmem:[%s9892_s2 + $0x2a8] sm:$0xff] }
 0x4d1   : > { %3904 = vmatprep.subr.bf16.mxu1 %v2033_v37  ;;  %v1715_v30 = vunpack.c.h.s8.bf16 %v1371_v33 }
 0x4d3   : > { %3864 = vmatpush2.bf16.msra.mxu0 %v1904_v20  ;;  %v1722_v20 = vunpack.c.l.s8.bf16 %v1378_v27  ;;  %v1354_v27 = vld [vmem:[%s9892_s2 + $0x220] sm:$0xff] }
 0x4d4   : > { %3905 = vmatpush2.bf16.msra.mxu1 %v2032_v42  ;;  %3865 = vmatprep.subr.bf16.mxu0 %v1897_v22 }
 0x4d5   : > { %3906 = vmatprep.subr.bf16.mxu1 %v2025_v46  ;;  %v1587_v46 = vunpack.c.h.s8.bf16 %v1307_v5 }
 0x4d7   : > { %3866 = vmatpush2.bf16.msra.mxu0 %v1896_v53  ;;  %v1370_v53 = vld [vmem:[%s9892_s2 + $0x2a0] sm:$0xff] }
 0x4d8   : > { %3907 = vmatpush2.bf16.msra.mxu1 %v2024_v55  ;;  %3867 = vmatprep.subr.bf16.mxu0 %v1889_v56 }
 0x4d9   : > { %3908 = vmatprep.subr.bf16.mxu1 %v2017_v59 }
 0x4db   : > { %3868 = vmatpush2.bf16.msra.mxu0 %v1888_v58  ;;  %v1714_v58 = vunpack.c.h.s8.bf16 %v1370_v53 }
 0x4dc   : > { %3909 = vmatpush2.bf16.msra.mxu1 %v2016_v2  ;;  %3869 = vmatprep.subr.bf16.mxu0 %v1881_v10 }
 0x4dd   : > { %3910 = vmatprep.subr.bf16.mxu1 %v2009_v12  ;;  %v1707_v12 = vunpack.c.l.s8.bf16 %v1371_v33  ;;  %v1411_v33 = vld [vmem:[%s9892_s2 + $0x3e8] sm:$0xff] }
 0x4df   : > { %3870 = vmatpush2.bf16.msra.mxu0 %v1880_v50  ;;  %v1578_v50 = vunpack.c.l.s8.bf16 %v1306_v52  ;;  %v1787_v52 = vunpack.c.l.s8.bf16 %v1411_v33 }
 0x4e0   : > { %3911 = vmatpush2.bf16.msra.mxu1 %v2008_v7  ;;  %3871 = vmatprep.subr.bf16.mxu0 %v1873_v8  ;;  %v1706_v7 = vunpack.c.l.s8.bf16 %v1370_v53  ;;  %v1571_v8 = vunpack.c.h.s8.bf16 %v1299_v51  ;;  %v1339_v53 = vld [vmem:[%s9892_s2 + $0x1a8] sm:$0xff] }
 0x4e1   : > { %3912 = vmatprep.subr.bf16.mxu1 %v2001_v19  ;;  %v1699_v19 = vunpack.c.h.s8.bf16 %v1363_v4 }
 0x4e3   : > { %3872 = vmatpush2.bf16.msra.mxu0 %v1872_v0  ;;  %v1570_v0 = vunpack.c.h.s8.bf16 %v1298_v6 }
 0x4e4   : > { %3913 = vmatpush2.bf16.msra.mxu1 %v2000_v14  ;;  %3873 = vmatprep.subr.bf16.mxu0 %v1865_v25  ;;  %v1698_v14 = vunpack.c.h.s8.bf16 %v1362_v26  ;;  %v1563_v25 = vunpack.c.l.s8.bf16 %v1299_v51  ;;  %v1643_v51 = vunpack.c.l.s8.bf16 %v1339_v53 }
 0x4e5   : > { %3914 = vmatprep.subr.bf16.mxu1 %v1993_v9  ;;  %v1691_v9 = vunpack.c.l.s8.bf16 %v1363_v4 }
 0x4e7   : > { %3874 = vmatpush2.bf16.msra.mxu0 %v1864_v18  ;;  %v1562_v18 = vunpack.c.l.s8.bf16 %v1298_v6 }
 0x4e8   : > { %3915 = vmatpush2.bf16.msra.mxu1 %v1992_v13  ;;  %3925 = vmatprep.subr.bf16.mxu0 %v1603_v21  ;;  %v1690_v13 = vunpack.c.l.s8.bf16 %v1362_v26  ;;  %v1555_v21 = vunpack.c.h.s8.bf16 %v1291_v16 }
 0x4e9   : > { %3966 = vmatprep.subr.bf16.mxu1 %v1731_v23  ;;  %v1683_v23 = vunpack.c.h.s8.bf16 %v1355_v17 }
 0x4ea   : > { %v3631_v36 = vpop.f32.mrf.mxu0  ;;  %3876 = vmatmul.mubr.bf16.vlgmr.msra.gmra.mxu0 %v10492_v48 }
 0x4eb   : > { %v3672_v37 = vpop.f32.mrf.mxu1  ;;  %3917 = vmatmul.mubr.bf16.vlgmr.msra.gmra.mxu1 %v10498_v61  ;;  %v3632_v40 = vadd.f32 %v3631_v36, %v10256_v60  ;;  %3926 = vmatpush1.bf16.msra.mxu0 %v1602_v28  ;;  %v1554_v28 = vunpack.c.h.s8.bf16 %v1290_v43  ;;  %v1546_v36 = vunpack.c.l.s8.bf16 %v1290_v43 }
 0x4ec   : > { %3967 = vmatpush1.bf16.msra.mxu1 %v1730_v15  ;;  %v3633_v42 = vpop.f32.mrf.mxu0  ;;  %3927 = vmatprep.subr.bf16.mxu0 %v1595_v29  ;;  %v1682_v15 = vunpack.c.h.s8.bf16 %v1354_v27  ;;  %v1547_v29 = vunpack.c.l.s8.bf16 %v1291_v16 }
 0x4ed   : > { %v3674_v22 = vpop.f32.mrf.mxu1  ;;  %3968 = vmatprep.subr.bf16.mxu1 %v1723_v32  ;;  %v10589_v55 = vadd.f32 %v3672_v37, %v3632_v40  ;;  %v3634_v56 = vadd.f32 %v3633_v42, %v10261_v38  ;;  %3957 = vmatprep.mubr.bf16.mxu0 %v10382_v39  ;;  %v1579_v38 = vunpack.c.l.s8.bf16 %v1307_v5  ;;  %v1675_v32 = vunpack.c.l.s8.bf16 %v1355_v17  ;;  %v1347_v5 = vld [vmem:[%s9892_s2 + $0x1e8] sm:$0xff]  ;;  %v1410_v42 = vld [vmem:[%s9892_s2 + $0x3e0] sm:$0xff] }
 0x4ee   : > { %3998 = vmatprep.mubr.bf16.mxu1 %v10388_v47  ;;  %v3635_v60 = vpop.f32.mrf.mxu0  ;;  %v1674_v37 = vunpack.c.l.s8.bf16 %v1354_v27  ;;  %v1667_v40 = vunpack.c.h.s8.bf16 %v1347_v5 }
 0x4ef   : > { %v3676_v59 = vpop.f32.mrf.mxu1  ;;  %v10594_v24 = vadd.f32 %v3674_v22, %v3634_v56  ;;  %3928 = vmatpush1.bf16.msra.mxu0 %v1594_v41  ;;  %v1795_v41 = vunpack.c.h.s8.bf16 %v1411_v33  ;;  %v1403_v56 = vld [vmem:[%s9892_s2 + $0x3a8] sm:$0xff] }
 0x4f0   : > { %3969 = vmatpush1.bf16.msra.mxu1 %v1722_v20  ;;  %v3636_v2 = vpop.f32.mrf.mxu0  ;;  %3929 = vmatprep.subr.bf16.mxu0 %v1587_v46  ;;  %v1346_v20 = vld [vmem:[%s9892_s2 + $0x1e0] sm:$0xff]  ;;  %v1794_v46 = vunpack.c.h.s8.bf16 %v1410_v42  ;;  %v1786_v59 = vunpack.c.l.s8.bf16 %v1410_v42  ;;  %v1771_v4 = vunpack.c.l.s8.bf16 %v1403_v56 }
 0x4f1   : > { %v3677_v10 = vpop.f32.mrf.mxu1  ;;  %3970 = vmatprep.subr.bf16.mxu1 %v1715_v30  ;;  %v1666_v22 = vunpack.c.h.s8.bf16 %v1346_v20  ;;  %v1659_v30 = vunpack.c.l.s8.bf16 %v1347_v5  ;;  %v1658_v60 = vunpack.c.l.s8.bf16 %v1346_v20  ;;  %v1338_v2 = vld [vmem:[%s9892_s2 + $0x1a0] sm:$0xff] }
 0x4f2   : > { %v1402_v10 = vld [vmem:[%s9892_s2 + $0x3a0] sm:$0xff] }
 0x4f3   : > { %3930 = vmatpush1.bf16.msra.mxu0 %v1586_v49  ;;  %v1651_v49 = vunpack.c.h.s8.bf16 %v1339_v53 }
 0x4f4   : > { %3971 = vmatpush1.bf16.msra.mxu1 %v1714_v58  ;;  %3931 = vmatprep.subr.bf16.mxu0 %v1579_v38  ;;  %v1779_v58 = vunpack.c.h.s8.bf16 %v1403_v56  ;;  %v1650_v38 = vunpack.c.h.s8.bf16 %v1338_v2 }
 0x4f5   : > { %3972 = vmatprep.subr.bf16.mxu1 %v1707_v12  ;;  %v1778_v12 = vunpack.c.h.s8.bf16 %v1402_v10 }
 0x4f7   : > { %3932 = vmatpush1.bf16.msra.mxu0 %v1578_v50  ;;  %v1331_v50 = vld [vmem:[%s9892_s2 + $0x168] sm:$0xff] }
 0x4f8   : > { %3973 = vmatpush1.bf16.msra.mxu1 %v1706_v7  ;;  %3933 = vmatprep.subr.bf16.mxu0 %v1571_v8  ;;  %v1395_v7 = vld [vmem:[%s9892_s2 + $0x368] sm:$0xff]  ;;  %v1642_v8 = vunpack.c.l.s8.bf16 %v1338_v2  ;;  %v1635_v6 = vunpack.c.h.s8.bf16 %v1331_v50  ;;  %v1627_v16 = vunpack.c.l.s8.bf16 %v1331_v50 }
 0x4f9   : > { %3974 = vmatprep.subr.bf16.mxu1 %v1699_v19  ;;  %v1770_v19 = vunpack.c.l.s8.bf16 %v1402_v10  ;;  %v1763_v26 = vunpack.c.h.s8.bf16 %v1395_v7  ;;  %v1755_v17 = vunpack.c.l.s8.bf16 %v1395_v7  ;;  %v1434_v7 = vld [vmem:[%s9892_s2 + $0x4a0] sm:$0xff] }
 0x4fb   : > { %3934 = vmatpush1.bf16.msra.mxu0 %v1570_v0  ;;  %v1330_v0 = vld [vmem:[%s9892_s2 + $0x160] sm:$0xff] }
 0x4fc   : > { %3975 = vmatpush1.bf16.msra.mxu1 %v1698_v14  ;;  %3935 = vmatprep.subr.bf16.mxu0 %v1563_v25  ;;  %v1394_v14 = vld [vmem:[%s9892_s2 + $0x360] sm:$0xff]  ;;  %v1634_v25 = vunpack.c.h.s8.bf16 %v1330_v0 }
 0x4fd   : > { %3976 = vmatprep.subr.bf16.mxu1 %v1691_v9  ;;  %v1762_v9 = vunpack.c.h.s8.bf16 %v1394_v14 }
 0x4ff   : > { %3936 = vmatpush1.bf16.msra.mxu0 %v1562_v18  ;;  %v1323_v18 = vld [vmem:[%s9892_s2 + $0x128] sm:$0xff] }
 0x500   : > { %3977 = vmatpush1.bf16.msra.mxu1 %v1690_v13  ;;  %3937 = vmatprep.subr.bf16.mxu0 %v1555_v21  ;;  %v1387_v13 = vld [vmem:[%s9892_s2 + $0x328] sm:$0xff]  ;;  %v1626_v21 = vunpack.c.l.s8.bf16 %v1330_v0  ;;  %v1619_v43 = vunpack.c.h.s8.bf16 %v1323_v18  ;;  %v1611_v5 = vunpack.c.l.s8.bf16 %v1323_v18 }
 0x501   : > { %3978 = vmatprep.subr.bf16.mxu1 %v1683_v23  ;;  %v1754_v23 = vunpack.c.l.s8.bf16 %v1394_v14  ;;  %v1747_v27 = vunpack.c.h.s8.bf16 %v1387_v13  ;;  %v1739_v33 = vunpack.c.l.s8.bf16 %v1387_v13  ;;  %v1842_v14 = vunpack.c.h.s8.bf16 %v1434_v7  ;;  %v1427_v18 = vld [vmem:[%s9892_s2 + $0x468] sm:$0xff] }
 0x502   : > { %v1491_v13 = vld [vmem:[%s9892_s2 + $0x668] sm:$0xff] }
 0x503   : > { %3938 = vmatpush1.bf16.msra.mxu0 %v1554_v28  ;;  %v1322_v28 = vld [vmem:[%s9892_s2 + $0x120] sm:$0xff] }
 0x504   : > { %3979 = vmatpush1.bf16.msra.mxu1 %v1682_v15  ;;  %3939 = vmatprep.subr.bf16.mxu0 %v1547_v29  ;;  %v1386_v15 = vld [vmem:[%s9892_s2 + $0x320] sm:$0xff]  ;;  %v1618_v29 = vunpack.c.h.s8.bf16 %v1322_v28 }
 0x505   : > { %3980 = vmatprep.subr.bf16.mxu1 %v1675_v32  ;;  %v1746_v32 = vunpack.c.h.s8.bf16 %v1386_v15 }
 0x507   : > { %3940 = vmatpush1.bf16.msra.mxu0 %v1546_v36  ;;  %v1443_v36 = vld [vmem:[%s9892_s2 + $0x4e8] sm:$0xff] }
 0x508   : > { %3981 = vmatpush1.bf16.msra.mxu1 %v1674_v37  ;;  %3941 = vmatprep.subr.bf16.mxu0 %v1667_v40  ;;  %v1507_v37 = vld [vmem:[%s9892_s2 + $0x6e8] sm:$0xff]  ;;  %v1610_v40 = vunpack.c.l.s8.bf16 %v1322_v28  ;;  %v1859_v20 = vunpack.c.h.s8.bf16 %v1443_v36  ;;  %v1851_v53 = vunpack.c.l.s8.bf16 %v1443_v36  ;;  %v1426_v28 = vld [vmem:[%s9892_s2 + $0x460] sm:$0xff] }
 0x509   : > { %3982 = vmatprep.subr.bf16.mxu1 %v1795_v41  ;;  %v1738_v41 = vunpack.c.l.s8.bf16 %v1386_v15  ;;  %v1987_v42 = vunpack.c.h.s8.bf16 %v1507_v37  ;;  %v1979_v56 = vunpack.c.l.s8.bf16 %v1507_v37  ;;  %v1490_v15 = vld [vmem:[%s9892_s2 + $0x660] sm:$0xff]  ;;  %v1419_v36 = vld [vmem:[%s9892_s2 + $0x428] sm:$0xff] }
 0x50a   : > { %v1483_v37 = vld [vmem:[%s9892_s2 + $0x628] sm:$0xff] }
 0x50b   : > { %3942 = vmatpush2.bf16.msra.mxu0 %v1666_v22  ;;  %v1442_v22 = vld [vmem:[%s9892_s2 + $0x4e0] sm:$0xff] }
 0x50c   : > { %3983 = vmatpush2.bf16.msra.mxu1 %v1794_v46  ;;  %3943 = vmatprep.subr.bf16.mxu0 %v1659_v30  ;;  %v1506_v46 = vld [vmem:[%s9892_s2 + $0x6e0] sm:$0xff]  ;;  %v1858_v30 = vunpack.c.h.s8.bf16 %v1442_v22  ;;  %v1850_v10 = vunpack.c.l.s8.bf16 %v1442_v22 }
 0x50d   : > { %3984 = vmatprep.subr.bf16.mxu1 %v1787_v52  ;;  %v1986_v52 = vunpack.c.h.s8.bf16 %v1506_v46  ;;  %v1418_v22 = vld [vmem:[%s9892_s2 + $0x420] sm:$0xff] }
 0x50f   : > { %3944 = vmatpush2.bf16.msra.mxu0 %v1658_v60  ;;  %v1435_v60 = vld [vmem:[%s9892_s2 + $0x4a8] sm:$0xff] }
 0x510   : > { %3985 = vmatpush2.bf16.msra.mxu1 %v1786_v59  ;;  %3945 = vmatprep.subr.bf16.mxu0 %v1651_v49  ;;  %v1499_v59 = vld [vmem:[%s9892_s2 + $0x6a8] sm:$0xff] }
 0x511   : > { %3986 = vmatprep.subr.bf16.mxu1 %v1779_v58  ;;  %v1971_v50 = vunpack.c.h.s8.bf16 %v1499_v59 }
 0x513   : > { %3946 = vmatpush2.bf16.msra.mxu0 %v1650_v38  ;;  %v1978_v38 = vunpack.c.l.s8.bf16 %v1506_v46  ;;  %v1482_v46 = vld [vmem:[%s9892_s2 + $0x620] sm:$0xff] }
 0x514   : > { %3987 = vmatpush2.bf16.msra.mxu1 %v1778_v12  ;;  %3947 = vmatprep.subr.bf16.mxu0 %v1643_v51 }
 0x515   : > { %3988 = vmatprep.subr.bf16.mxu1 %v1771_v4  ;;  %v1843_v4 = vunpack.c.h.s8.bf16 %v1435_v60 }
 0x517   : > { %3948 = vmatpush2.bf16.msra.mxu0 %v1642_v8  ;;  %v1498_v8 = vld [vmem:[%s9892_s2 + $0x6a0] sm:$0xff] }
 0x518   : > { %3989 = vmatpush2.bf16.msra.mxu1 %v1770_v19  ;;  %3949 = vmatprep.subr.bf16.mxu0 %v1635_v6 }
 0x519   : > { %3990 = vmatprep.subr.bf16.mxu1 %v1763_v26 }
 0x51b   : > { %3950 = vmatpush2.bf16.msra.mxu0 %v1634_v25  ;;  %v1970_v25 = vunpack.c.h.s8.bf16 %v1498_v8 }
 0x51c   : > { %3991 = vmatpush2.bf16.msra.mxu1 %v1762_v9  ;;  %3951 = vmatprep.subr.bf16.mxu0 %v1627_v16 }
 0x51d   : > { %3992 = vmatprep.subr.bf16.mxu1 %v1755_v17  ;;  %v1963_v17 = vunpack.c.l.s8.bf16 %v1499_v59  ;;  %v1539_v59 = vld [vmem:[%s9892_s2 + $0x7e8] sm:$0xff] }
 0x51f   : > { %3952 = vmatpush2.bf16.msra.mxu0 %v1626_v21  ;;  %v1834_v21 = vunpack.c.l.s8.bf16 %v1434_v7  ;;  %v2043_v7 = vunpack.c.l.s8.bf16 %v1539_v59 }
 0x520   : > { %3993 = vmatpush2.bf16.msra.mxu1 %v1754_v23  ;;  %3953 = vmatprep.subr.bf16.mxu0 %v1619_v43  ;;  %v1962_v23 = vunpack.c.l.s8.bf16 %v1498_v8  ;;  %v1827_v43 = vunpack.c.h.s8.bf16 %v1427_v18  ;;  %v1467_v8 = vld [vmem:[%s9892_s2 + $0x5a8] sm:$0xff] }
 0x521   : > { %3994 = vmatprep.subr.bf16.mxu1 %v1747_v27  ;;  %v1955_v27 = vunpack.c.h.s8.bf16 %v1491_v13 }
 0x523   : > { %3954 = vmatpush2.bf16.msra.mxu0 %v1618_v29  ;;  %v1826_v29 = vunpack.c.h.s8.bf16 %v1426_v28 }
 0x524   : > { %3995 = vmatpush2.bf16.msra.mxu1 %v1746_v32  ;;  %3955 = vmatprep.subr.bf16.mxu0 %v1611_v5  ;;  %v1954_v32 = vunpack.c.h.s8.bf16 %v1490_v15  ;;  %v1819_v5 = vunpack.c.l.s8.bf16 %v1427_v18  ;;  %v1899_v18 = vunpack.c.l.s8.bf16 %v1467_v8 }
 0x525   : > { %3996 = vmatprep.subr.bf16.mxu1 %v1739_v33  ;;  %v1947_v33 = vunpack.c.l.s8.bf16 %v1491_v13 }
 0x527   : > { %3956 = vmatpush2.bf16.msra.mxu0 %v1610_v40  ;;  %v1818_v40 = vunpack.c.l.s8.bf16 %v1426_v28 }
 0x528   : > { %3997 = vmatpush2.bf16.msra.mxu1 %v1738_v41  ;;  %4007 = vmatprep.subr.bf16.mxu0 %v1859_v20  ;;  %v1946_v41 = vunpack.c.l.s8.bf16 %v1490_v15  ;;  %v1811_v20 = vunpack.c.h.s8.bf16 %v1419_v36 }
 0x529   : > { %4048 = vmatprep.subr.bf16.mxu1 %v1987_v42  ;;  %v1939_v42 = vunpack.c.h.s8.bf16 %v1483_v37 }
 0x52a   : > { %v3713_v49 = vpop.f32.mrf.mxu0  ;;  %3958 = vmatmul.mubr.bf16.vlgmr.msra.gmra.mxu0 %v10435_v34 }
 0x52b   : > { %v3754_v58 = vpop.f32.mrf.mxu1  ;;  %3999 = vmatmul.mubr.bf16.vlgmr.msra.gmra.mxu1 %v10444_v45  ;;  %v3714_v2 = vadd.f32 %v3713_v49, %v10589_v55  ;;  %4008 = vmatpush1.bf16.msra.mxu0 %v1858_v30  ;;  %v1810_v30 = vunpack.c.h.s8.bf16 %v1418_v22  ;;  %v1802_v49 = vunpack.c.l.s8.bf16 %v1418_v22 }
 0x52c   : > { %4049 = vmatpush1.bf16.msra.mxu1 %v1986_v52  ;;  %v3715_v12 = vpop.f32.mrf.mxu0  ;;  %4009 = vmatprep.subr.bf16.mxu0 %v1851_v53  ;;  %v1938_v52 = vunpack.c.h.s8.bf16 %v1482_v46  ;;  %v1803_v53 = vunpack.c.l.s8.bf16 %v1419_v36 }
 0x52d   : > { %v3756_v51 = vpop.f32.mrf.mxu1  ;;  %4050 = vmatprep.subr.bf16.mxu1 %v1979_v56  ;;  %v10631_v19 = vadd.f32 %v3754_v58, %v3714_v2  ;;  %v3716_v6 = vadd.f32 %v3715_v12, %v10594_v24  ;;  %4039 = vmatprep.mubr.bf16.mxu0 %v10440_v44  ;;  %v1835_v24 = vunpack.c.l.s8.bf16 %v1435_v60  ;;  %v1931_v56 = vunpack.c.l.s8.bf16 %v1483_v37  ;;  %v1475_v60 = vld [vmem:[%s9892_s2 + $0x5e8] sm:$0xff]  ;;  %v1538_v12 = vld [vmem:[%s9892_s2 + $0x7e0] sm:$0xff] }
 0x52e   : > { %4080 = vmatprep.mubr.bf16.mxu1 %v10450_v54  ;;  %v3717_v55 = vpop.f32.mrf.mxu0  ;;  %v1930_v58 = vunpack.c.l.s8.bf16 %v1482_v46  ;;  %v1923_v2 = vunpack.c.h.s8.bf16 %v1475_v60 }
 0x52f   : > { %v3758_v26 = vpop.f32.mrf.mxu1  ;;  %v10636_v0 = vadd.f32 %v3756_v51, %v3716_v6  ;;  %4010 = vmatpush1.bf16.msra.mxu0 %v1850_v10  ;;  %v2051_v10 = vunpack.c.h.s8.bf16 %v1539_v59  ;;  %v1531_v6 = vld [vmem:[%s9892_s2 + $0x7a8] sm:$0xff] }
 0x530   : > { %4051 = vmatpush1.bf16.msra.mxu1 %v1978_v38  ;;  %v3718_v9 = vpop.f32.mrf.mxu0  ;;  %4011 = vmatprep.subr.bf16.mxu0 %v1843_v4  ;;  %v1474_v38 = vld [vmem:[%s9892_s2 + $0x5e0] sm:$0xff]  ;;  %v2050_v4 = vunpack.c.h.s8.bf16 %v1538_v12  ;;  %v2042_v26 = vunpack.c.l.s8.bf16 %v1538_v12  ;;  %v2027_v13 = vunpack.c.l.s8.bf16 %v1531_v6 }
 0x531   : > { %v3759_v16 = vpop.f32.mrf.mxu1  ;;  %4052 = vmatprep.subr.bf16.mxu1 %v1971_v50  ;;  %v1922_v51 = vunpack.c.h.s8.bf16 %v1474_v38  ;;  %v1915_v50 = vunpack.c.l.s8.bf16 %v1475_v60  ;;  %v1914_v55 = vunpack.c.l.s8.bf16 %v1474_v38  ;;  %v1466_v9 = vld [vmem:[%s9892_s2 + $0x5a0] sm:$0xff] }
 0x532   : > { %v1530_v16 = vld [vmem:[%s9892_s2 + $0x7a0] sm:$0xff] }
 0x533   : > { %4012 = vmatpush1.bf16.msra.mxu0 %v1842_v14  ;;  %v1907_v14 = vunpack.c.h.s8.bf16 %v1467_v8 }
 0x534   : > { %4053 = vmatpush1.bf16.msra.mxu1 %v1970_v25  ;;  %4013 = vmatprep.subr.bf16.mxu0 %v1835_v24  ;;  %v2035_v25 = vunpack.c.h.s8.bf16 %v1531_v6  ;;  %v1906_v24 = vunpack.c.h.s8.bf16 %v1466_v9 }
 0x535   : > { %4054 = vmatprep.subr.bf16.mxu1 %v1963_v17  ;;  %v2034_v17 = vunpack.c.h.s8.bf16 %v1530_v16 }
 0x537   : > { %4014 = vmatpush1.bf16.msra.mxu0 %v1834_v21  ;;  %v1459_v21 = vld [vmem:[%s9892_s2 + $0x568] sm:$0xff] }
 0x538   : > { %4055 = vmatpush1.bf16.msra.mxu1 %v1962_v23  ;;  %4015 = vmatprep.subr.bf16.mxu0 %v1827_v43  ;;  %v1523_v23 = vld [vmem:[%s9892_s2 + $0x768] sm:$0xff]  ;;  %v1898_v43 = vunpack.c.l.s8.bf16 %v1466_v9  ;;  %v1891_v28 = vunpack.c.h.s8.bf16 %v1459_v21  ;;  %v1883_v36 = vunpack.c.l.s8.bf16 %v1459_v21 }
 0x539   : > { %4056 = vmatprep.subr.bf16.mxu1 %v1955_v27  ;;  %v2026_v27 = vunpack.c.l.s8.bf16 %v1530_v16  ;;  %v2019_v15 = vunpack.c.h.s8.bf16 %v1523_v23  ;;  %v2011_v37 = vunpack.c.l.s8.bf16 %v1523_v23  ;;  %v1308_v23 = vld [vmem:[%s9892_s2 + $0xb0] sm:$0xff] }
 0x53b   : > { %4016 = vmatpush1.bf16.msra.mxu0 %v1826_v29  ;;  %v1458_v29 = vld [vmem:[%s9892_s2 + $0x560] sm:$0xff] }
 0x53c   : > { %4057 = vmatpush1.bf16.msra.mxu1 %v1954_v32  ;;  %4017 = vmatprep.subr.bf16.mxu0 %v1819_v5  ;;  %v1522_v32 = vld [vmem:[%s9892_s2 + $0x760] sm:$0xff]  ;;  %v1890_v5 = vunpack.c.h.s8.bf16 %v1458_v29 }
 0x53d   : > { %4058 = vmatprep.subr.bf16.mxu1 %v1947_v33  ;;  %v2018_v33 = vunpack.c.h.s8.bf16 %v1522_v32 }
 0x53f   : > { %4018 = vmatpush1.bf16.msra.mxu0 %v1818_v40  ;;  %v1451_v40 = vld [vmem:[%s9892_s2 + $0x528] sm:$0xff] }
 0x540   : > { %4059 = vmatpush1.bf16.msra.mxu1 %v1946_v41  ;;  %4019 = vmatprep.subr.bf16.mxu0 %v1811_v20  ;;  %v1515_v41 = vld [vmem:[%s9892_s2 + $0x728] sm:$0xff]  ;;  %v1882_v20 = vunpack.c.l.s8.bf16 %v1458_v29  ;;  %v1875_v22 = vunpack.c.h.s8.bf16 %v1451_v40  ;;  %v1867_v60 = vunpack.c.l.s8.bf16 %v1451_v40  ;;  %v1365_v40 = vld [vmem:[%s9892_s2 + $0x278] sm:$0xff] }
 0x541   : > { %4060 = vmatprep.subr.bf16.mxu1 %v1939_v42  ;;  %v2010_v42 = vunpack.c.l.s8.bf16 %v1522_v32  ;;  %v2003_v46 = vunpack.c.h.s8.bf16 %v1515_v41  ;;  %v1995_v59 = vunpack.c.l.s8.bf16 %v1515_v41  ;;  %v1588_v32 = vunpack.c.h.s8.bf16 %v1308_v23 }
 0x543   : > { %4020 = vmatpush1.bf16.msra.mxu0 %v1810_v30  ;;  %v1450_v30 = vld [vmem:[%s9892_s2 + $0x520] sm:$0xff] }
 0x544   : > { %4061 = vmatpush1.bf16.msra.mxu1 %v1938_v52  ;;  %4021 = vmatprep.subr.bf16.mxu0 %v1803_v53  ;;  %v1514_v52 = vld [vmem:[%s9892_s2 + $0x720] sm:$0xff]  ;;  %v1874_v53 = vunpack.c.h.s8.bf16 %v1450_v30 }
 0x545   : > { %4062 = vmatprep.subr.bf16.mxu1 %v1931_v56  ;;  %v2002_v56 = vunpack.c.h.s8.bf16 %v1514_v52 }
 0x547   : > { %4022 = vmatpush1.bf16.msra.mxu0 %v1802_v49  ;;  %v1317_v49 = vld [vmem:[%s9892_s2 + $0xf8] sm:$0xff] }
 0x548   : > { %4063 = vmatpush1.bf16.msra.mxu1 %v1930_v58  ;;  %4023 = vmatprep.subr.bf16.mxu0 %v1923_v2  ;;  %v1381_v58 = vld [vmem:[%s9892_s2 + $0x2f8] sm:$0xff]  ;;  %v1866_v2 = vunpack.c.l.s8.bf16 %v1450_v30  ;;  %v1605_v38 = vunpack.c.h.s8.bf16 %v1317_v49  ;;  %v1597_v8 = vunpack.c.l.s8.bf16 %v1317_v49 }
 0x549   : > { %4064 = vmatprep.subr.bf16.mxu1 %v2051_v10  ;;  %v1994_v10 = vunpack.c.l.s8.bf16 %v1514_v52  ;;  %v1733_v12 = vunpack.c.h.s8.bf16 %v1381_v58  ;;  %v1725_v6 = vunpack.c.l.s8.bf16 %v1381_v58 }
 0x54b   : > { %4024 = vmatpush2.bf16.msra.mxu0 %v1922_v51  ;;  %v1316_v51 = vld [vmem:[%s9892_s2 + $0xf0] sm:$0xff] }
 0x54c   : > { %4065 = vmatpush2.bf16.msra.mxu1 %v2050_v4  ;;  %4025 = vmatprep.subr.bf16.mxu0 %v1915_v50  ;;  %v1380_v4 = vld [vmem:[%s9892_s2 + $0x2f0] sm:$0xff]  ;;  %v1604_v50 = vunpack.c.h.s8.bf16 %v1316_v51  ;;  %v1596_v16 = vunpack.c.l.s8.bf16 %v1316_v51 }
 0x54d   : > { %4066 = vmatprep.subr.bf16.mxu1 %v2043_v7  ;;  %v1732_v7 = vunpack.c.h.s8.bf16 %v1380_v4 }
 0x54f   : > { %4026 = vmatpush2.bf16.msra.mxu0 %v1914_v55  ;;  %v1309_v55 = vld [vmem:[%s9892_s2 + $0xb8] sm:$0xff] }
 0x550   : > { %4067 = vmatpush2.bf16.msra.mxu1 %v2042_v26  ;;  %4027 = vmatprep.subr.bf16.mxu0 %v1907_v14  ;;  %v1373_v26 = vld [vmem:[%s9892_s2 + $0x2b8] sm:$0xff] }
 0x551   : > { %4068 = vmatprep.subr.bf16.mxu1 %v2035_v25  ;;  %v1717_v21 = vunpack.c.h.s8.bf16 %v1373_v26 }
 0x553   : > { %4028 = vmatpush2.bf16.msra.mxu0 %v1906_v24  ;;  %v1724_v24 = vunpack.c.l.s8.bf16 %v1380_v4 }
 0x554   : > { %4069 = vmatpush2.bf16.msra.mxu1 %v2034_v17  ;;  %4029 = vmatprep.subr.bf16.mxu0 %v1899_v18 }
 0x555   : > { %4070 = vmatprep.subr.bf16.mxu1 %v2027_v13  ;;  %v1589_v13 = vunpack.c.h.s8.bf16 %v1309_v55 }
 0x557   : > { %4030 = vmatpush2.bf16.msra.mxu0 %v1898_v43  ;;  %v1372_v43 = vld [vmem:[%s9892_s2 + $0x2b0] sm:$0xff] }
 0x558   : > { %4071 = vmatpush2.bf16.msra.mxu1 %v2026_v27  ;;  %4031 = vmatprep.subr.bf16.mxu0 %v1891_v28  ;;  %v1708_v41 = vunpack.c.l.s8.bf16 %v1372_v43 }
 0x559   : > { %4072 = vmatprep.subr.bf16.mxu1 %v2019_v15 }
 0x55b   : > { %4032 = vmatpush2.bf16.msra.mxu0 %v1890_v5  ;;  %v1716_v5 = vunpack.c.h.s8.bf16 %v1372_v43 }
 0x55c   : > { %4073 = vmatpush2.bf16.msra.mxu1 %v2018_v33  ;;  %4033 = vmatprep.subr.bf16.mxu0 %v1883_v36 }
 0x55d   : > { %4074 = vmatprep.subr.bf16.mxu1 %v2011_v37  ;;  %v1709_v37 = vunpack.c.l.s8.bf16 %v1373_v26 }
 0x55f   : > { %4034 = vmatpush2.bf16.msra.mxu0 %v1882_v20 }
 0x560   : > { %4075 = vmatpush2.bf16.msra.mxu1 %v2010_v42  ;;  %4035 = vmatprep.subr.bf16.mxu0 %v1875_v22  ;;  %v1701_v42 = vunpack.c.h.s8.bf16 %v1365_v40  ;;  %v1300_v22 = vld [vmem:[%s9892_s2 + $0x70] sm:$0xff] }
 0x561   : > { %4076 = vmatprep.subr.bf16.mxu1 %v2003_v46  ;;  %v1364_v46 = vld [vmem:[%s9892_s2 + $0x270] sm:$0xff]  ;;  %v1572_v30 = vunpack.c.h.s8.bf16 %v1300_v22  ;;  %v1564_v49 = vunpack.c.l.s8.bf16 %v1300_v22 }
 0x562   : > { %v1700_v52 = vunpack.c.h.s8.bf16 %v1364_v46  ;;  %v1692_v58 = vunpack.c.l.s8.bf16 %v1364_v46  ;;  %v1332_v22 = vld [vmem:[%s9892_s2 + $0x170] sm:$0xff] }
 0x563   : > { %4036 = vmatpush2.bf16.msra.mxu0 %v1874_v53  ;;  %v1396_v46 = vld [vmem:[%s9892_s2 + $0x370] sm:$0xff] }
 0x564   : > { %4077 = vmatpush2.bf16.msra.mxu1 %v2002_v56  ;;  %4037 = vmatprep.subr.bf16.mxu0 %v1867_v60  ;;  %v1693_v56 = vunpack.c.l.s8.bf16 %v1365_v40  ;;  %v1293_v60 = vld [vmem:[%s9892_s2 + $0x38] sm:$0xff] }
 0x565   : > { %4078 = vmatprep.subr.bf16.mxu1 %v1995_v59  ;;  %v1357_v59 = vld [vmem:[%s9892_s2 + $0x238] sm:$0xff] }
 0x566   : > { %v1397_v40 = vld [vmem:[%s9892_s2 + $0x378] sm:$0xff] }
 0x567   : > { %4038 = vmatpush2.bf16.msra.mxu0 %v1866_v2  ;;  %v1557_v2 = vunpack.c.h.s8.bf16 %v1293_v60 }
 0x568   : > { %4079 = vmatpush2.bf16.msra.mxu1 %v1994_v10  ;;  %4089 = vmatprep.subr.bf16.mxu0 %v1605_v38  ;;  %v1685_v10 = vunpack.c.h.s8.bf16 %v1357_v59  ;;  %v1292_v38 = vld [vmem:[%s9892_s2 + $0x30] sm:$0xff] }
 0x569   : > { %4130 = vmatprep.subr.bf16.mxu1 %v1733_v12  ;;  %v1356_v12 = vld [vmem:[%s9892_s2 + $0x230] sm:$0xff]  ;;  %v1556_v51 = vunpack.c.h.s8.bf16 %v1292_v38 }
 0x56a   : > { %v3795_v14 = vpop.f32.mrf.mxu0  ;;  %4040 = vmatmul.mubr.bf16.vlgmr.msra.gmra.mxu0 %v10492_v48  ;;  %v1684_v4 = vunpack.c.h.s8.bf16 %v1356_v12  ;;  %v1676_v26 = vunpack.c.l.s8.bf16 %v1356_v12  ;;  %v1388_v12 = vld [vmem:[%s9892_s2 + $0x330] sm:$0xff] }
 0x56b   : > { %v3836_v25 = vpop.f32.mrf.mxu1  ;;  %4081 = vmatmul.mubr.bf16.vlgmr.msra.gmra.mxu1 %v10498_v61  ;;  %v3796_v9 = vadd.f32 %v3795_v14, %v10338_v1  ;;  %4090 = vmatpush1.bf16.msra.mxu0 %v1604_v50  ;;  %v1549_v50 = vunpack.c.l.s8.bf16 %v1293_v60  ;;  %v1325_v60 = vld [vmem:[%s9892_s2 + $0x138] sm:$0xff] }
 0x56c   : > { %4131 = vmatpush1.bf16.msra.mxu1 %v1732_v7  ;;  %v3797_v17 = vpop.f32.mrf.mxu0  ;;  %4091 = vmatprep.subr.bf16.mxu0 %v1597_v8  ;;  %v1677_v7 = vunpack.c.l.s8.bf16 %v1357_v59  ;;  %v1349_v8 = vld [vmem:[%s9892_s2 + $0x1f8] sm:$0xff] }
 0x56d   : > { %v3838_v18 = vpop.f32.mrf.mxu1  ;;  %4132 = vmatprep.subr.bf16.mxu1 %v1725_v6  ;;  %v10673_v27 = vadd.f32 %v3836_v25, %v3796_v9  ;;  %v3798_v28 = vadd.f32 %v3797_v17, %v10343_v3  ;;  %4121 = vmatprep.mubr.bf16.mxu0 %v10382_v39  ;;  %v1581_v3 = vunpack.c.l.s8.bf16 %v1309_v55  ;;  %v1301_v39 = vld [vmem:[%s9892_s2 + $0x78] sm:$0xff]  ;;  %v1548_v55 = vunpack.c.l.s8.bf16 %v1292_v38  ;;  %v1348_v9 = vld [vmem:[%s9892_s2 + $0x1f0] sm:$0xff] }
 0x56e   : > { %4162 = vmatprep.mubr.bf16.mxu1 %v10388_v47  ;;  %v3799_v1 = vpop.f32.mrf.mxu0  ;;  %v1580_v47 = vunpack.c.l.s8.bf16 %v1308_v23  ;;  %v1573_v20 = vunpack.c.h.s8.bf16 %v1301_v39  ;;  %v1565_v53 = vunpack.c.l.s8.bf16 %v1301_v39  ;;  %v1413_v6 = vld [vmem:[%s9892_s2 + $0x3f8] sm:$0xff]  ;;  %v1669_v14 = vunpack.c.h.s8.bf16 %v1349_v8  ;;  %v1324_v38 = vld [vmem:[%s9892_s2 + $0x130] sm:$0xff] }
 0x56f   : > { %v3840_v15 = vpop.f32.mrf.mxu1  ;;  %v10678_v29 = vadd.f32 %v3838_v18, %v3798_v28  ;;  %4092 = vmatpush1.bf16.msra.mxu0 %v1596_v16  ;;  %v1797_v25 = vunpack.c.h.s8.bf16 %v1413_v6  ;;  %v1412_v16 = vld [vmem:[%s9892_s2 + $0x3f0] sm:$0xff]  ;;  %v1661_v18 = vunpack.c.l.s8.bf16 %v1349_v8  ;;  %v1405_v23 = vld [vmem:[%s9892_s2 + $0x3b8] sm:$0xff]  ;;  %v1660_v43 = vunpack.c.l.s8.bf16 %v1348_v9 }
 0x570   : > { %4133 = vmatpush1.bf16.msra.mxu1 %v1724_v24  ;;  %v3800_v33 = vpop.f32.mrf.mxu0  ;;  %4093 = vmatprep.subr.bf16.mxu0 %v1589_v13  ;;  %v1668_v24 = vunpack.c.h.s8.bf16 %v1348_v9  ;;  %v1796_v17 = vunpack.c.h.s8.bf16 %v1412_v16  ;;  %v1789_v13 = vunpack.c.l.s8.bf16 %v1413_v6  ;;  %v1788_v28 = vunpack.c.l.s8.bf16 %v1412_v16  ;;  %v1333_v39 = vld [vmem:[%s9892_s2 + $0x178] sm:$0xff]  ;;  %v1444_v9 = vld [vmem:[%s9892_s2 + $0x4f0] sm:$0xff] }
 0x571   : > { %v3841_v36 = vpop.f32.mrf.mxu1  ;;  %4134 = vmatprep.subr.bf16.mxu1 %v1717_v21  ;;  %v1341_v21 = vld [vmem:[%s9892_s2 + $0x1b8] sm:$0xff]  ;;  %v1781_v15 = vunpack.c.h.s8.bf16 %v1405_v23  ;;  %v1508_v16 = vld [vmem:[%s9892_s2 + $0x6f0] sm:$0xff] }
 0x572   : > { %v1653_v1 = vunpack.c.h.s8.bf16 %v1341_v21  ;;  %v1389_v59 = vld [vmem:[%s9892_s2 + $0x338] sm:$0xff] }
 0x573   : > { %4094 = vmatpush1.bf16.msra.mxu0 %v1588_v32  ;;  %v1340_v32 = vld [vmem:[%s9892_s2 + $0x1b0] sm:$0xff]  ;;  %v1445_v8 = vld [vmem:[%s9892_s2 + $0x4f8] sm:$0xff] }
 0x574   : > { %4135 = vmatpush1.bf16.msra.mxu1 %v1716_v5  ;;  %4095 = vmatprep.subr.bf16.mxu0 %v1581_v3  ;;  %v1404_v5 = vld [vmem:[%s9892_s2 + $0x3b0] sm:$0xff]  ;;  %v1652_v33 = vunpack.c.h.s8.bf16 %v1340_v32  ;;  %v1645_v3 = vunpack.c.l.s8.bf16 %v1341_v21  ;;  %v1509_v6 = vld [vmem:[%s9892_s2 + $0x6f8] sm:$0xff] }
 0x575   : > { %4136 = vmatprep.subr.bf16.mxu1 %v1709_v37  ;;  %v1780_v36 = vunpack.c.h.s8.bf16 %v1404_v5  ;;  %v1773_v37 = vunpack.c.l.s8.bf16 %v1405_v23  ;;  %v1437_v21 = vld [vmem:[%s9892_s2 + $0x4b8] sm:$0xff] }
 0x576   : > { %v1501_v23 = vld [vmem:[%s9892_s2 + $0x6b8] sm:$0xff] }
 0x577   : > { %4096 = vmatpush1.bf16.msra.mxu0 %v1580_v47  ;;  %v1644_v47 = vunpack.c.l.s8.bf16 %v1340_v32  ;;  %v1980_v32 = vunpack.c.l.s8.bf16 %v1508_v16 }
 0x578   : > { %4137 = vmatpush1.bf16.msra.mxu1 %v1708_v41  ;;  %4097 = vmatprep.subr.bf16.mxu0 %v1573_v20  ;;  %v1772_v41 = vunpack.c.l.s8.bf16 %v1404_v5  ;;  %v1637_v20 = vunpack.c.h.s8.bf16 %v1333_v39 }
 0x579   : > { %4138 = vmatprep.subr.bf16.mxu1 %v1701_v42  ;;  %v1765_v42 = vunpack.c.h.s8.bf16 %v1397_v40 }
 0x57b   : > { %4098 = vmatpush1.bf16.msra.mxu0 %v1572_v30  ;;  %v1636_v30 = vunpack.c.h.s8.bf16 %v1332_v22 }
 0x57c   : > { %4139 = vmatpush1.bf16.msra.mxu1 %v1700_v52  ;;  %4099 = vmatprep.subr.bf16.mxu0 %v1565_v53  ;;  %v1764_v52 = vunpack.c.h.s8.bf16 %v1396_v46  ;;  %v1629_v53 = vunpack.c.l.s8.bf16 %v1333_v39  ;;  %v1500_v39 = vld [vmem:[%s9892_s2 + $0x6b0] sm:$0xff] }
 0x57d   : > { %4140 = vmatprep.subr.bf16.mxu1 %v1693_v56  ;;  %v1757_v56 = vunpack.c.l.s8.bf16 %v1397_v40 }
 0x57f   : > { %4100 = vmatpush1.bf16.msra.mxu0 %v1564_v49  ;;  %v1628_v49 = vunpack.c.l.s8.bf16 %v1332_v22 }
 0x580   : > { %4141 = vmatpush1.bf16.msra.mxu1 %v1692_v58  ;;  %4101 = vmatprep.subr.bf16.mxu0 %v1557_v2  ;;  %v1756_v58 = vunpack.c.l.s8.bf16 %v1396_v46  ;;  %v1621_v2 = vunpack.c.h.s8.bf16 %v1325_v60  ;;  %v1965_v46 = vunpack.c.l.s8.bf16 %v1501_v23 }
 0x581   : > { %4142 = vmatprep.subr.bf16.mxu1 %v1685_v10  ;;  %v1749_v10 = vunpack.c.h.s8.bf16 %v1389_v59 }
 0x583   : > { %4102 = vmatpush1.bf16.msra.mxu0 %v1556_v51  ;;  %v1620_v51 = vunpack.c.h.s8.bf16 %v1324_v38 }
 0x584   : > { %4143 = vmatpush1.bf16.msra.mxu1 %v1684_v4  ;;  %4103 = vmatprep.subr.bf16.mxu0 %v1549_v50  ;;  %v1748_v4 = vunpack.c.h.s8.bf16 %v1388_v12  ;;  %v1613_v50 = vunpack.c.l.s8.bf16 %v1325_v60  ;;  %v1428_v60 = vld [vmem:[%s9892_s2 + $0x470] sm:$0xff] }
 0x585   : > { %4144 = vmatprep.subr.bf16.mxu1 %v1677_v7  ;;  %v1741_v7 = vunpack.c.l.s8.bf16 %v1389_v59  ;;  %v1492_v59 = vld [vmem:[%s9892_s2 + $0x670] sm:$0xff] }
 0x587   : > { %4104 = vmatpush1.bf16.msra.mxu0 %v1548_v55  ;;  %v1612_v55 = vunpack.c.l.s8.bf16 %v1324_v38  ;;  %v1421_v38 = vld [vmem:[%s9892_s2 + $0x438] sm:$0xff] }
 0x588   : > { %4145 = vmatpush1.bf16.msra.mxu1 %v1676_v26  ;;  %4105 = vmatprep.subr.bf16.mxu0 %v1669_v14  ;;  %v1740_v26 = vunpack.c.l.s8.bf16 %v1388_v12  ;;  %v1861_v14 = vunpack.c.h.s8.bf16 %v1445_v8  ;;  %v1485_v12 = vld [vmem:[%s9892_s2 + $0x638] sm:$0xff] }
 0x589   : > { %4146 = vmatprep.subr.bf16.mxu1 %v1797_v25  ;;  %v1989_v25 = vunpack.c.h.s8.bf16 %v1509_v6 }
 0x58b   : > { %4106 = vmatpush2.bf16.msra.mxu0 %v1668_v24  ;;  %v1860_v24 = vunpack.c.h.s8.bf16 %v1444_v9 }
 0x58c   : > { %4147 = vmatpush2.bf16.msra.mxu1 %v1796_v17  ;;  %4107 = vmatprep.subr.bf16.mxu0 %v1661_v18  ;;  %v1988_v17 = vunpack.c.h.s8.bf16 %v1508_v16  ;;  %v1853_v18 = vunpack.c.l.s8.bf16 %v1445_v8  ;;  %v1420_v8 = vld [vmem:[%s9892_s2 + $0x430] sm:$0xff]  ;;  %v1541_v16 = vld [vmem:[%s9892_s2 + $0x7f8] sm:$0xff] }
 0x58d   : > { %4148 = vmatprep.subr.bf16.mxu1 %v1789_v13  ;;  %v1981_v13 = vunpack.c.l.s8.bf16 %v1509_v6  ;;  %v1484_v6 = vld [vmem:[%s9892_s2 + $0x630] sm:$0xff] }
 0x58f   : > { %4108 = vmatpush2.bf16.msra.mxu0 %v1660_v43 }
 0x590   : > { %4149 = vmatpush2.bf16.msra.mxu1 %v1788_v28  ;;  %4109 = vmatprep.subr.bf16.mxu0 %v1653_v1 }
 0x591   : > { %4150 = vmatprep.subr.bf16.mxu1 %v1781_v15  ;;  %v1852_v15 = vunpack.c.l.s8.bf16 %v1444_v9  ;;  %v1477_v9 = vld [vmem:[%s9892_s2 + $0x5f8] sm:$0xff] }
 0x593   : > { %4110 = vmatpush2.bf16.msra.mxu0 %v1652_v33 }
 0x594   : > { %4151 = vmatpush2.bf16.msra.mxu1 %v1780_v36  ;;  %4111 = vmatprep.subr.bf16.mxu0 %v1645_v3  ;;  %v1845_v36 = vunpack.c.h.s8.bf16 %v1437_v21  ;;  %v1973_v3 = vunpack.c.h.s8.bf16 %v1501_v23  ;;  %v1540_v23 = vld [vmem:[%s9892_s2 + $0x7f0] sm:$0xff] }
 0x595   : > { %4152 = vmatprep.subr.bf16.mxu1 %v1773_v37  ;;  %v1436_v37 = vld [vmem:[%s9892_s2 + $0x4b0] sm:$0xff] }
 0x597   : > { %4112 = vmatpush2.bf16.msra.mxu0 %v1644_v47 }
 0x598   : > { %4153 = vmatpush2.bf16.msra.mxu1 %v1772_v41  ;;  %4113 = vmatprep.subr.bf16.mxu0 %v1637_v20  ;;  %v1844_v41 = vunpack.c.h.s8.bf16 %v1436_v37  ;;  %v1972_v20 = vunpack.c.h.s8.bf16 %v1500_v39 }
 0x599   : > { %4154 = vmatprep.subr.bf16.mxu1 %v1765_v42 }
 0x59b   : > { %4114 = vmatpush2.bf16.msra.mxu0 %v1636_v30  ;;  %v1493_v30 = vld [vmem:[%s9892_s2 + $0x678] sm:$0xff] }
 0x59c   : > { %4155 = vmatpush2.bf16.msra.mxu1 %v1764_v52  ;;  %4115 = vmatprep.subr.bf16.mxu0 %v1629_v53  ;;  %v1964_v52 = vunpack.c.l.s8.bf16 %v1500_v39  ;;  %v1468_v39 = vld [vmem:[%s9892_s2 + $0x5b0] sm:$0xff] }
 0x59d   : > { %4156 = vmatprep.subr.bf16.mxu1 %v1757_v56  ;;  %v1957_v56 = vunpack.c.h.s8.bf16 %v1493_v30 }
 0x59f   : > { %4116 = vmatpush2.bf16.msra.mxu0 %v1628_v49  ;;  %v1828_v49 = vunpack.c.h.s8.bf16 %v1428_v60 }
 0x5a0   : > { %4157 = vmatpush2.bf16.msra.mxu1 %v1756_v58  ;;  %4117 = vmatprep.subr.bf16.mxu0 %v1621_v2  ;;  %v1956_v58 = vunpack.c.h.s8.bf16 %v1492_v59 }
 0x5a1   : > { %4158 = vmatprep.subr.bf16.mxu1 %v1749_v10  ;;  %v1949_v10 = vunpack.c.l.s8.bf16 %v1493_v30 }
 0x5a3   : > { %4118 = vmatpush2.bf16.msra.mxu0 %v1620_v51  ;;  %v1820_v51 = vunpack.c.l.s8.bf16 %v1428_v60 }
 0x5a4   : > { %4159 = vmatpush2.bf16.msra.mxu1 %v1748_v4  ;;  %4119 = vmatprep.subr.bf16.mxu0 %v1613_v50  ;;  %v1948_v4 = vunpack.c.l.s8.bf16 %v1492_v59  ;;  %v1813_v50 = vunpack.c.h.s8.bf16 %v1421_v38 }
 0x5a5   : > { %4160 = vmatprep.subr.bf16.mxu1 %v1741_v7  ;;  %v1941_v7 = vunpack.c.h.s8.bf16 %v1485_v12 }
 0x5a7   : > { %4120 = vmatpush2.bf16.msra.mxu0 %v1612_v55  ;;  %v1812_v55 = vunpack.c.h.s8.bf16 %v1420_v8 }
 0x5a8   : > { %4161 = vmatpush2.bf16.msra.mxu1 %v1740_v26  ;;  %4171 = vmatprep.subr.bf16.mxu0 %v1861_v14  ;;  %v1940_v26 = vunpack.c.h.s8.bf16 %v1484_v6  ;;  %v1805_v14 = vunpack.c.l.s8.bf16 %v1421_v38 }
 0x5a9   : > { %4212 = vmatprep.subr.bf16.mxu1 %v1989_v25  ;;  %v1933_v25 = vunpack.c.l.s8.bf16 %v1485_v12 }
 0x5aa   : > { %v3877_v43 = vpop.f32.mrf.mxu0  ;;  %4122 = vmatmul.mubr.bf16.vlgmr.msra.gmra.mxu0 %v10435_v34 }
 0x5ab   : > { %v3918_v28 = vpop.f32.mrf.mxu1  ;;  %4163 = vmatmul.mubr.bf16.vlgmr.msra.gmra.mxu1 %v10444_v45  ;;  %v3878_v1 = vadd.f32 %v3877_v43, %v10673_v27  ;;  %4172 = vmatpush1.bf16.msra.mxu0 %v1860_v24  ;;  %v1804_v24 = vunpack.c.l.s8.bf16 %v1420_v8 }
 0x5ac   : > { %4213 = vmatpush1.bf16.msra.mxu1 %v1988_v17  ;;  %v3879_v5 = vpop.f32.mrf.mxu0  ;;  %4173 = vmatprep.subr.bf16.mxu0 %v1853_v18  ;;  %v1932_v17 = vunpack.c.l.s8.bf16 %v1484_v6  ;;  %v1925_v18 = vunpack.c.h.s8.bf16 %v1477_v9 }
 0x5ad   : > { %v3920_v33 = vpop.f32.mrf.mxu1  ;;  %4214 = vmatprep.subr.bf16.mxu1 %v1981_v13  ;;  %v10715_v40 = vadd.f32 %v3918_v28, %v3878_v1  ;;  %v3880_v34 = vadd.f32 %v3879_v5, %v10678_v29  ;;  %4203 = vmatprep.mubr.bf16.mxu0 %v10440_v44  ;;  %v1837_v29 = vunpack.c.l.s8.bf16 %v1437_v21  ;;  %v1429_v44 = vld [vmem:[%s9892_s2 + $0x478] sm:$0xff]  ;;  %v2053_v13 = vunpack.c.h.s8.bf16 %v1541_v16  ;;  %v1476_v21 = vld [vmem:[%s9892_s2 + $0x5f0] sm:$0xff] }
 0x5ae   : > { %4244 = vmatprep.mubr.bf16.mxu1 %v10450_v54  ;;  %v3881_v45 = vpop.f32.mrf.mxu0  ;;  %v1836_v54 = vunpack.c.l.s8.bf16 %v1436_v37  ;;  %v1829_v53 = vunpack.c.h.s8.bf16 %v1429_v44  ;;  %v1821_v2 = vunpack.c.l.s8.bf16 %v1429_v44  ;;  %v1924_v43 = vunpack.c.h.s8.bf16 %v1476_v21  ;;  %v1533_v5 = vld [vmem:[%s9892_s2 + $0x7b8] sm:$0xff] }
 0x5af   : > { %v3922_v27 = vpop.f32.mrf.mxu1  ;;  %v10720_v47 = vadd.f32 %v3920_v33, %v3880_v34  ;;  %4174 = vmatpush1.bf16.msra.mxu0 %v1852_v15  ;;  %v2052_v28 = vunpack.c.h.s8.bf16 %v1540_v23  ;;  %v1917_v1 = vunpack.c.l.s8.bf16 %v1477_v9  ;;  %v2045_v15 = vunpack.c.l.s8.bf16 %v1541_v16  ;;  %v1532_v34 = vld [vmem:[%s9892_s2 + $0x7b0] sm:$0xff] }
 0x5b0   : > { %4215 = vmatpush1.bf16.msra.mxu1 %v1980_v32  ;;  %v3882_v42 = vpop.f32.mrf.mxu0  ;;  %4175 = vmatprep.subr.bf16.mxu0 %v1845_v36  ;;  %v1469_v32 = vld [vmem:[%s9892_s2 + $0x5b8] sm:$0xff]  ;;  %v1916_v33 = vunpack.c.l.s8.bf16 %v1476_v21  ;;  %v2044_v36 = vunpack.c.l.s8.bf16 %v1540_v23  ;;  %v2037_v37 = vunpack.c.h.s8.bf16 %v1533_v5  ;;  %v1908_v45 = vunpack.c.h.s8.bf16 %v1468_v39  ;;  %v4341_v21 = vld [vmem:[%s9892_s2 + $0x12c0] sm:$0xff] }
 0x5b1   : > { %v3923_v22 = vpop.f32.mrf.mxu1  ;;  %4216 = vmatprep.subr.bf16.mxu1 %v1973_v3  ;;  %v1909_v3 = vunpack.c.h.s8.bf16 %v1469_v32  ;;  %v2036_v27 = vunpack.c.h.s8.bf16 %v1532_v34  ;;  %v1461_v42 = vld [vmem:[%s9892_s2 + $0x578] sm:$0xff] }
 0x5b2   : > { %v1525_v22 = vld [vmem:[%s9892_s2 + $0x778] sm:$0xff]  ;;  %v1893_v44 = vunpack.c.h.s8.bf16 %v1461_v42  ;;  %v1885_v60 = vunpack.c.l.s8.bf16 %v1461_v42  ;;  %v4269_v42 = vld [vmem:[%s9892_s2 + $0x1080] sm:$0xff] }
 0x5b3   : > { %4176 = vmatpush1.bf16.msra.mxu0 %v1844_v41  ;;  %v1901_v41 = vunpack.c.l.s8.bf16 %v1469_v32  ;;  %v2021_v30 = vunpack.c.h.s8.bf16 %v1525_v22  ;;  %v2013_v59 = vunpack.c.l.s8.bf16 %v1525_v22  ;;  %v4270_v32 = vld [vmem:[%s9892_s2 + $0x1088] sm:$0xff]  ;;  %v4333_v22 = vld [vmem:[%s9892_s2 + $0x1280] sm:$0xff] }
 0x5b4   : > { %4217 = vmatpush1.bf16.msra.mxu1 %v1972_v20  ;;  %4177 = vmatprep.subr.bf16.mxu0 %v1837_v29  ;;  %v2029_v20 = vunpack.c.l.s8.bf16 %v1533_v5  ;;  %v1900_v29 = vunpack.c.l.s8.bf16 %v1468_v39  ;;  %v4334_v5 = vld [vmem:[%s9892_s2 + $0x1288] sm:$0xff] }
 0x5b5   : > { %4218 = vmatprep.subr.bf16.mxu1 %v1965_v46  ;;  %v2028_v46 = vunpack.c.l.s8.bf16 %v1532_v34  ;;  %v4685_v34 = vunpack.c.l.s8.bf16 %v4341_v21 }
 0x5b7   : > { %4178 = vmatpush1.bf16.msra.mxu0 %v1836_v54  ;;  %v1460_v54 = vld [vmem:[%s9892_s2 + $0x570] sm:$0xff] }
 0x5b8   : > { %4219 = vmatpush1.bf16.msra.mxu1 %v1964_v52  ;;  %4179 = vmatprep.subr.bf16.mxu0 %v1829_v53  ;;  %v1524_v52 = vld [vmem:[%s9892_s2 + $0x770] sm:$0xff]  ;;  %v1892_v53 = vunpack.c.h.s8.bf16 %v1460_v54 }
 0x5b9   : > { %4220 = vmatprep.subr.bf16.mxu1 %v1957_v56  ;;  %v2020_v56 = vunpack.c.h.s8.bf16 %v1524_v52  ;;  %v2012_v38 = vunpack.c.l.s8.bf16 %v1524_v52 }
 0x5bb   : > { %4180 = vmatpush1.bf16.msra.mxu0 %v1828_v49  ;;  %v1453_v49 = vld [vmem:[%s9892_s2 + $0x538] sm:$0xff] }
 0x5bc   : > { %4221 = vmatpush1.bf16.msra.mxu1 %v1956_v58  ;;  %4181 = vmatprep.subr.bf16.mxu0 %v1821_v2  ;;  %v1517_v58 = vld [vmem:[%s9892_s2 + $0x738] sm:$0xff]  ;;  %v10744_v2 = vld [vmem:[#allocation2 + $0x10] sm:$0xff]  ;;  %v1877_v12 = vunpack.c.h.s8.bf16 %v1453_v49 }
 0x5bd   : > { %4222 = vmatprep.subr.bf16.mxu1 %v1949_v10  ;;  %v1884_v10 = vunpack.c.l.s8.bf16 %v1460_v54 }
 0x5bf   : > { %4182 = vmatpush1.bf16.msra.mxu0 %v1820_v51  ;;  %v2005_v51 = vunpack.c.h.s8.bf16 %v1517_v58 }
 0x5c0   : > { %4223 = vmatpush1.bf16.msra.mxu1 %v1948_v4  ;;  %4183 = vmatprep.subr.bf16.mxu0 %v1813_v50  ;;  %v1452_v4 = vld [vmem:[%s9892_s2 + $0x530] sm:$0xff] }
 0x5c1   : > { %4224 = vmatprep.subr.bf16.mxu1 %v1941_v7  ;;  %v1516_v50 = vld [vmem:[%s9892_s2 + $0x730] sm:$0xff]  ;;  %v10750_v7 = vrot.slane %v10744_v2, %v10034_v11  ;;  %v1876_v8 = vunpack.c.h.s8.bf16 %v1452_v4  ;;  %v1868_v16 = vunpack.c.l.s8.bf16 %v1452_v4 }
 0x5c2   : > { %v2004_v6 = vunpack.c.h.s8.bf16 %v1516_v50 }
 0x5c3   : > { %4184 = vmatpush1.bf16.msra.mxu0 %v1812_v55  ;;  %v1869_v55 = vunpack.c.l.s8.bf16 %v1453_v49  ;;  %v5039_v9 = vcombine.high %v10750_v7, %v10750_v7  ;;  %v4669_v49 = vunpack.c.l.s8.bf16 %v4333_v22 }
 0x5c4   : > { %4225 = vmatpush1.bf16.msra.mxu1 %v1940_v26  ;;  %4185 = vmatprep.subr.bf16.mxu0 %v1805_v14  ;;  %v1997_v26 = vunpack.c.l.s8.bf16 %v1517_v58  ;;  %v4278_v14 = vld [vmem:[%s9892_s2 + $0x10c8] sm:$0xff] }
 0x5c5   : > { %4226 = vmatprep.subr.bf16.mxu1 %v1933_v25  ;;  %v4342_v25 = vld [vmem:[%s9892_s2 + $0x12c8] sm:$0xff]  ;;  %v10759_v23 = vrot.slane %v5039_v9, %v10034_v11 }
 0x5c7   : > { %4186 = vmatpush1.bf16.msra.mxu0 %v1804_v24  ;;  %v1996_v24 = vunpack.c.l.s8.bf16 %v1516_v50 }
 0x5c8   : > { %4227 = vmatpush1.bf16.msra.mxu1 %v1932_v17  ;;  %4187 = vmatprep.subr.bf16.mxu0 %v1925_v18  ;;  %v4566_v17 = vunpack.c.h.s8.bf16 %v4278_v14  ;;  %v4694_v18 = vunpack.c.h.s8.bf16 %v4342_v25 }
 0x5c9   : > { %4228 = vmatprep.subr.bf16.mxu1 %v2053_v13  ;;  %v4277_v13 = vld [vmem:[%s9892_s2 + $0x10c0] sm:$0xff] }
 0x5ca   : > { %v4557_v39 = vunpack.c.l.s8.bf16 %v4277_v13 }
 0x5cb   : > { %4188 = vmatpush2.bf16.msra.mxu0 %v1924_v43  ;;  %v4565_v43 = vunpack.c.h.s8.bf16 %v4277_v13 }
 0x5cc   : > { %4229 = vmatpush2.bf16.msra.mxu1 %v2052_v28  ;;  %4189 = vmatprep.subr.bf16.mxu0 %v1917_v1  ;;  %v4693_v28 = vunpack.c.h.s8.bf16 %v4341_v21  ;;  %v4558_v1 = vunpack.c.l.s8.bf16 %v4278_v14 }
 0x5cd   : > { %4230 = vmatprep.subr.bf16.mxu1 %v2045_v15  ;;  %v4686_v15 = vunpack.c.l.s8.bf16 %v4342_v25 }
 0x5cf   : > { %4190 = vmatpush2.bf16.msra.mxu0 %v1916_v33  ;;  %v10765_v33 = vcombine.high %v10759_v23, %v10759_v23 }
 0x5d0   : > { %4231 = vmatpush2.bf16.msra.mxu1 %v2044_v36  ;;  %4191 = vmatprep.subr.bf16.mxu0 %v1909_v3 }
 0x5d1   : > { %4232 = vmatprep.subr.bf16.mxu1 %v2037_v37 }
 0x5d3   : > { %4192 = vmatpush2.bf16.msra.mxu0 %v1908_v45 }
 0x5d4   : > { %4233 = vmatpush2.bf16.msra.mxu1 %v2036_v27  ;;  %4193 = vmatprep.subr.bf16.mxu0 %v1901_v41  ;;  %v4550_v41 = vunpack.c.h.s8.bf16 %v4270_v32 }
 0x5d5   : > { %4234 = vmatprep.subr.bf16.mxu1 %v2029_v20  ;;  %v4678_v20 = vunpack.c.h.s8.bf16 %v4334_v5 }
 0x5d7   : > { %4194 = vmatpush2.bf16.msra.mxu0 %v1900_v29 }
 0x5d8   : > { %4235 = vmatpush2.bf16.msra.mxu1 %v2028_v46  ;;  %4195 = vmatprep.subr.bf16.mxu0 %v1893_v44  ;;  %v4549_v44 = vunpack.c.h.s8.bf16 %v4269_v42 }
 0x5d9   : > { %4236 = vmatprep.subr.bf16.mxu1 %v2021_v30  ;;  %v4677_v30 = vunpack.c.h.s8.bf16 %v4333_v22 }
 0x5db   : > { %4196 = vmatpush2.bf16.msra.mxu0 %v1892_v53  ;;  %v4670_v53 = vunpack.c.l.s8.bf16 %v4334_v5 }
 0x5dc   : > { %4237 = vmatpush2.bf16.msra.mxu1 %v2020_v56  ;;  %4197 = vmatprep.subr.bf16.mxu0 %v1885_v60  ;;  %v4262_v56 = vld [vmem:[%s9892_s2 + $0x1048] sm:$0xff] }
 0x5dd   : > { %4238 = vmatprep.subr.bf16.mxu1 %v2013_v59  ;;  %v4326_v60 = vld [vmem:[%s9892_s2 + $0x1248] sm:$0xff]  ;;  %v4541_v59 = vunpack.c.l.s8.bf16 %v4269_v42  ;;  %v4534_v58 = vunpack.c.h.s8.bf16 %v4262_v56  ;;  %v4526_v50 = vunpack.c.l.s8.bf16 %v4262_v56 }
 0x5df   : > { %4198 = vmatpush2.bf16.msra.mxu0 %v1884_v10  ;;  %v4662_v10 = vunpack.c.h.s8.bf16 %v4326_v60 }
 0x5e0   : > { %4239 = vmatpush2.bf16.msra.mxu1 %v2012_v38  ;;  %4199 = vmatprep.subr.bf16.mxu0 %v1877_v12  ;;  %v4261_v38 = vld [vmem:[%s9892_s2 + $0x1040] sm:$0xff] }
 0x5e1   : > { %4240 = vmatprep.subr.bf16.mxu1 %v2005_v51  ;;  %v4325_v12 = vld [vmem:[%s9892_s2 + $0x1240] sm:$0xff]  ;;  %v4533_v51 = vunpack.c.h.s8.bf16 %v4261_v38 }
 0x5e2   : > { %v4661_v4 = vunpack.c.h.s8.bf16 %v4325_v12  ;;  %v4653_v14 = vunpack.c.l.s8.bf16 %v4325_v12 }
 0x5e3   : > { %4200 = vmatpush2.bf16.msra.mxu0 %v1876_v8  ;;  %v4654_v8 = vunpack.c.l.s8.bf16 %v4326_v60 }
 0x5e4   : > { %4241 = vmatpush2.bf16.msra.mxu1 %v2004_v6  ;;  %4201 = vmatprep.subr.bf16.mxu0 %v1869_v55  ;;  %v4254_v6 = vld [vmem:[%s9892_s2 + $0x1008] sm:$0xff] }
 0x5e5   : > { %4242 = vmatprep.subr.bf16.mxu1 %v1997_v26  ;;  %v4318_v55 = vld [vmem:[%s9892_s2 + $0x1208] sm:$0xff]  ;;  %v4525_v26 = vunpack.c.l.s8.bf16 %v4261_v38  ;;  %v4518_v25 = vunpack.c.h.s8.bf16 %v4254_v6  ;;  %v4510_v13 = vunpack.c.l.s8.bf16 %v4254_v6  ;;  %v5024_v6 = vcombine.high %v10744_v2, %v10744_v2 }
 0x5e6   : > { %v4646_v9 = vunpack.c.h.s8.bf16 %v4318_v55  ;;  %v4638_v21 = vunpack.c.l.s8.bf16 %v4318_v55 }
 0x5e7   : > { %4202 = vmatpush2.bf16.msra.mxu0 %v1868_v16  ;;  %v4253_v16 = vld [vmem:[%s9892_s2 + $0x1000] sm:$0xff] }
 0x5e8   : > { %4243 = vmatpush2.bf16.msra.mxu1 %v1996_v24  ;;  %5081 = vmatprep.subr.bf16.mxu0 %v4566_v17  ;;  %v4317_v24 = vld [vmem:[%s9892_s2 + $0x1200] sm:$0xff]  ;;  %v4517_v17 = vunpack.c.h.s8.bf16 %v4253_v16 }
 0x5e9   : > { %5122 = vmatprep.subr.bf16.mxu1 %v4694_v18  ;;  %v4645_v18 = vunpack.c.h.s8.bf16 %v4317_v24 }
 0x5ea   : > { %v3959_v36 = vpop.f32.mrf.mxu0  ;;  %4204 = vmatmul.mubr.bf16.vlgmr.msra.gmra.mxu0 %v10492_v48 }
 0x5eb   : > { %v4000_v3 = vpop.f32.mrf.mxu1  ;;  %4245 = vmatmul.mubr.bf16.vlgmr.msra.gmra.mxu1 %v10498_v61  ;;  %v3960_v37 = vadd.f32 %v3959_v36, %v10457_v57  ;;  %5082 = vmatpush1.bf16.msra.mxu0 %v4565_v43  ;;  %v4310_v43 = vld [vmem:[%s9892_s2 + $0x11c8] sm:$0xff]  ;;  %v4309_v36 = vld [vmem:[%s9892_s2 + $0x11c0] sm:$0xff] }
 0x5ec   : > { %5123 = vmatpush1.bf16.msra.mxu1 %v4693_v28  ;;  %v3961_v45 = vpop.f32.mrf.mxu0  ;;  %5083 = vmatprep.subr.bf16.mxu0 %v4558_v1  ;;  %v4374_v28 = vld [vmem:[%s9892_s2 + $0x13c8] sm:$0xff]  ;;  %v4509_v1 = vunpack.c.l.s8.bf16 %v4253_v16  ;;  %v4349_v16 = vld [vmem:[%s9892_s2 + $0x1300] sm:$0xff] }
 0x5ed   : > { %v4002_v27 = vpop.f32.mrf.mxu1  ;;  %5124 = vmatprep.subr.bf16.mxu1 %v4686_v15  ;;  %v10772_v29 = vadd.f32 %v4000_v3, %v3960_v37  ;;  %v3962_v48 = vadd.f32 %v3961_v45, %v10462_v62  ;;  %5113 = vmatprep.mubr.bf16.mxu0 %v10759_v23  ;;  %v4542_v62 = vunpack.c.l.s8.bf16 %v4270_v32  ;;  %v4637_v15 = vunpack.c.l.s8.bf16 %v4317_v24  ;;  %v4373_v3 = vld [vmem:[%s9892_s2 + $0x13c0] sm:$0xff] }
 0x5ee   : > { %5154 = vmatprep.mubr.bf16.mxu1 %v10765_v33  ;;  %v3963_v57 = vpop.f32.mrf.mxu0  ;;  %v4630_v32 = vunpack.c.h.s8.bf16 %v4310_v43  ;;  %v4758_v5 = vunpack.c.h.s8.bf16 %v4374_v28  ;;  %v4629_v37 = vunpack.c.h.s8.bf16 %v4309_v36  ;;  %v4750_v45 = vunpack.c.l.s8.bf16 %v4374_v28 }
 0x5ef   : > { %v4004_v61 = vpop.f32.mrf.mxu1  ;;  %v10777_v46 = vadd.f32 %v4002_v27, %v3962_v48  ;;  %5084 = vmatpush1.bf16.msra.mxu0 %v4557_v39  ;;  %v4757_v39 = vunpack.c.h.s8.bf16 %v4373_v3  ;;  %v4302_v27 = vld [vmem:[%s9892_s2 + $0x1188] sm:$0xff]  ;;  %v4749_v42 = vunpack.c.l.s8.bf16 %v4373_v3  ;;  %v4301_v57 = vld [vmem:[%s9892_s2 + $0x1180] sm:$0xff]  ;;  %v10806_v24 = vrot.slane %v5024_v6, %v10034_v11 }
 0x5f0   : > { %5125 = vmatpush1.bf16.msra.mxu1 %v4685_v34  ;;  %v3964_v54 = vpop.f32.mrf.mxu0  ;;  %5085 = vmatprep.subr.bf16.mxu0 %v4550_v41  ;;  %v4622_v34 = vunpack.c.l.s8.bf16 %v4310_v43  ;;  %v4366_v41 = vld [vmem:[%s9892_s2 + $0x1388] sm:$0xff]  ;;  %v4614_v22 = vunpack.c.h.s8.bf16 %v4302_v27  ;;  %v4365_v61 = vld [vmem:[%s9892_s2 + $0x1380] sm:$0xff]  ;;  %v4605_v56 = vunpack.c.l.s8.bf16 %v4301_v57 }
 0x5f1   : > { %v4005_v52 = vpop.f32.mrf.mxu1  ;;  %5126 = vmatprep.subr.bf16.mxu1 %v4678_v20  ;;  %v4621_v20 = vunpack.c.l.s8.bf16 %v4309_v36  ;;  %v4742_v48 = vunpack.c.h.s8.bf16 %v4366_v41  ;;  %v4606_v54 = vunpack.c.l.s8.bf16 %v4302_v27  ;;  %v4733_v60 = vunpack.c.l.s8.bf16 %v4365_v61  ;;  %v4470_v43 = vld [vmem:[%s9892_s2 + $0x16c8] sm:$0xff]  ;;  %v4405_v3 = vld [vmem:[%s9892_s2 + $0x14c0] sm:$0xff] }
 0x5f2   : > { %v4734_v52 = vunpack.c.l.s8.bf16 %v4366_v41  ;;  %v5040_v28 = vcombine.high %v10806_v24, %v10806_v24  ;;  %v4950_v36 = vunpack.c.h.s8.bf16 %v4470_v43  ;;  %v4942_v41 = vunpack.c.l.s8.bf16 %v4470_v43  ;;  %v4454_v6 = vld [vmem:[%s9892_s2 + $0x1648] sm:$0xff] }
 0x5f3   : > { %5086 = vmatpush1.bf16.msra.mxu0 %v4549_v44  ;;  %v4613_v44 = vunpack.c.h.s8.bf16 %v4301_v57  ;;  %v4446_v43 = vld [vmem:[%s9892_s2 + $0x1608] sm:$0xff] }
 0x5f4   : > { %5127 = vmatpush1.bf16.msra.mxu1 %v4677_v30  ;;  %5087 = vmatprep.subr.bf16.mxu0 %v4542_v62  ;;  %v4741_v30 = vunpack.c.h.s8.bf16 %v4365_v61  ;;  %v4294_v62 = vld [vmem:[%s9892_s2 + $0x1148] sm:$0xff] }
 0x5f5   : > { %5128 = vmatprep.subr.bf16.mxu1 %v4670_v53  ;;  %v4358_v53 = vld [vmem:[%s9892_s2 + $0x1348] sm:$0xff] }
 0x5f7   : > { %5088 = vmatpush1.bf16.msra.mxu0 %v4541_v59  ;;  %v4598_v59 = vunpack.c.h.s8.bf16 %v4294_v62 }
 0x5f8   : > { %5129 = vmatpush1.bf16.msra.mxu1 %v4669_v49  ;;  %5089 = vmatprep.subr.bf16.mxu0 %v4534_v58  ;;  %v4726_v49 = vunpack.c.h.s8.bf16 %v4358_v53  ;;  %v4293_v58 = vld [vmem:[%s9892_s2 + $0x1140] sm:$0xff] }
 0x5f9   : > { %5130 = vmatprep.subr.bf16.mxu1 %v4662_v10  ;;  %v4357_v10 = vld [vmem:[%s9892_s2 + $0x1340] sm:$0xff]  ;;  %v4597_v38 = vunpack.c.h.s8.bf16 %v4293_v58  ;;  %v4589_v55 = vunpack.c.l.s8.bf16 %v4293_v58 }
 0x5fa   : > { %v4725_v12 = vunpack.c.h.s8.bf16 %v4357_v10 }
 0x5fb   : > { %5090 = vmatpush1.bf16.msra.mxu0 %v4533_v51  ;;  %v4590_v51 = vunpack.c.l.s8.bf16 %v4294_v62 }
 0x5fc   : > { %5131 = vmatpush1.bf16.msra.mxu1 %v4661_v4  ;;  %5091 = vmatprep.subr.bf16.mxu0 %v4526_v50  ;;  %v4718_v4 = vunpack.c.l.s8.bf16 %v4358_v53  ;;  %v4286_v50 = vld [vmem:[%s9892_s2 + $0x1108] sm:$0xff] }
 0x5fd   : > { %5132 = vmatprep.subr.bf16.mxu1 %v4654_v8  ;;  %v4350_v8 = vld [vmem:[%s9892_s2 + $0x1308] sm:$0xff]  ;;  %v4574_v2 = vunpack.c.l.s8.bf16 %v4286_v50 }
 0x5ff   : > { %5092 = vmatpush1.bf16.msra.mxu0 %v4525_v26  ;;  %v4717_v26 = vunpack.c.l.s8.bf16 %v4357_v10 }
 0x600   : > { %5133 = vmatpush1.bf16.msra.mxu1 %v4653_v14  ;;  %5093 = vmatprep.subr.bf16.mxu0 %v4518_v25  ;;  %v4582_v14 = vunpack.c.h.s8.bf16 %v4286_v50  ;;  %v4710_v25 = vunpack.c.h.s8.bf16 %v4350_v8 }
 0x601   : > { %5134 = vmatprep.subr.bf16.mxu1 %v4646_v9  ;;  %v4285_v9 = vld [vmem:[%s9892_s2 + $0x1100] sm:$0xff] }
 0x603   : > { %5094 = vmatpush1.bf16.msra.mxu0 %v4517_v17  ;;  %v4581_v17 = vunpack.c.h.s8.bf16 %v4285_v9 }
 0x604   : > { %5135 = vmatpush1.bf16.msra.mxu1 %v4645_v18  ;;  %5095 = vmatprep.subr.bf16.mxu0 %v4510_v13  ;;  %v4709_v18 = vunpack.c.h.s8.bf16 %v4349_v16  ;;  %v4702_v13 = vunpack.c.l.s8.bf16 %v4350_v8  ;;  %v4390_v8 = vld [vmem:[%s9892_s2 + $0x1448] sm:$0xff] }
 0x605   : > { %5136 = vmatprep.subr.bf16.mxu1 %v4638_v21  ;;  %v4406_v21 = vld [vmem:[%s9892_s2 + $0x14c8] sm:$0xff] }
 0x606   : > { %v4814_v27 = vunpack.c.l.s8.bf16 %v4406_v21 }
 0x607   : > { %5096 = vmatpush1.bf16.msra.mxu0 %v4509_v1  ;;  %v10814_v1 = vrot.slane %v10750_v7, %v10034_v11  ;;  %v4821_v7 = vunpack.c.h.s8.bf16 %v4405_v3 }
 0x608   : > { %5137 = vmatpush1.bf16.msra.mxu1 %v4637_v15  ;;  %5097 = vmatprep.subr.bf16.mxu0 %v4630_v32  ;;  %v4573_v15 = vunpack.c.l.s8.bf16 %v4285_v9  ;;  %v4701_v32 = vunpack.c.l.s8.bf16 %v4349_v16  ;;  %v4389_v9 = vld [vmem:[%s9892_s2 + $0x1440] sm:$0xff] }
 0x609   : > { %5138 = vmatprep.subr.bf16.mxu1 %v4758_v5  ;;  %v4822_v5 = vunpack.c.h.s8.bf16 %v4406_v21  ;;  %v4453_v16 = vld [vmem:[%s9892_s2 + $0x1640] sm:$0xff]  ;;  %v4382_v21 = vld [vmem:[%s9892_s2 + $0x1408] sm:$0xff] }
 0x60b   : > { %5098 = vmatpush2.bf16.msra.mxu0 %v4629_v37  ;;  %v4469_v37 = vld [vmem:[%s9892_s2 + $0x16c0] sm:$0xff] }
 0x60c   : > { %5139 = vmatpush2.bf16.msra.mxu1 %v4757_v39  ;;  %5099 = vmatprep.subr.bf16.mxu0 %v4622_v34  ;;  %v10819_v39 = vrot.slane %v5040_v28, %v10034_v11  ;;  %v10823_v34 = vcombine.high %v10814_v1, %v10814_v1  ;;  %v4781_v28 = vunpack.c.l.s8.bf16 %v4389_v9 }
 0x60d   : > { %5140 = vmatprep.subr.bf16.mxu1 %v4750_v45  ;;  %v4949_v45 = vunpack.c.h.s8.bf16 %v4469_v37 }
 0x60f   : > { %5100 = vmatpush2.bf16.msra.mxu0 %v4621_v20  ;;  %v4398_v20 = vld [vmem:[%s9892_s2 + $0x1488] sm:$0xff] }
 0x610   : > { %5141 = vmatpush2.bf16.msra.mxu1 %v4749_v42  ;;  %5101 = vmatprep.subr.bf16.mxu0 %v4614_v22  ;;  %v4462_v42 = vld [vmem:[%s9892_s2 + $0x1688] sm:$0xff]  ;;  %v10829_v22 = vcombine.high %v10819_v39, %v10819_v39  ;;  %v4806_v62 = vunpack.c.h.s8.bf16 %v4398_v20 }
 0x611   : > { %5142 = vmatprep.subr.bf16.mxu1 %v4742_v48  ;;  %v4934_v53 = vunpack.c.h.s8.bf16 %v4462_v42  ;;  %v4926_v50 = vunpack.c.l.s8.bf16 %v4462_v42 }
 0x613   : > { %5102 = vmatpush2.bf16.msra.mxu0 %v4613_v44  ;;  %v4813_v44 = vunpack.c.l.s8.bf16 %v4405_v3  ;;  %v4445_v3 = vld [vmem:[%s9892_s2 + $0x1600] sm:$0xff] }
 0x614   : > { %5143 = vmatpush2.bf16.msra.mxu1 %v4741_v30  ;;  %5103 = vmatprep.subr.bf16.mxu0 %v4606_v54  ;;  %v4941_v30 = vunpack.c.l.s8.bf16 %v4469_v37 }
 0x615   : > { %5144 = vmatprep.subr.bf16.mxu1 %v4734_v52 }
 0x617   : > { %5104 = vmatpush2.bf16.msra.mxu0 %v4605_v56  ;;  %v4397_v56 = vld [vmem:[%s9892_s2 + $0x1480] sm:$0xff] }
 0x618   : > { %5145 = vmatpush2.bf16.msra.mxu1 %v4733_v60  ;;  %5105 = vmatprep.subr.bf16.mxu0 %v4598_v59  ;;  %v4461_v60 = vld [vmem:[%s9892_s2 + $0x1680] sm:$0xff] }
 0x619   : > { %5146 = vmatprep.subr.bf16.mxu1 %v4726_v49 }
 0x61b   : > { %5106 = vmatpush2.bf16.msra.mxu0 %v4597_v38  ;;  %v4805_v38 = vunpack.c.h.s8.bf16 %v4397_v56 }
 0x61c   : > { %5147 = vmatpush2.bf16.msra.mxu1 %v4725_v12  ;;  %5107 = vmatprep.subr.bf16.mxu0 %v4590_v51  ;;  %v4933_v12 = vunpack.c.h.s8.bf16 %v4461_v60 }
 0x61d   : > { %5148 = vmatprep.subr.bf16.mxu1 %v4718_v4 }
 0x61f   : > { %5108 = vmatpush2.bf16.msra.mxu0 %v4589_v55  ;;  %v4797_v55 = vunpack.c.l.s8.bf16 %v4397_v56  ;;  %v4430_v56 = vld [vmem:[%s9892_s2 + $0x1588] sm:$0xff] }
 0x620   : > { %5149 = vmatpush2.bf16.msra.mxu1 %v4717_v26  ;;  %5109 = vmatprep.subr.bf16.mxu0 %v4582_v14  ;;  %v4925_v26 = vunpack.c.l.s8.bf16 %v4461_v60  ;;  %v4790_v14 = vunpack.c.h.s8.bf16 %v4390_v8  ;;  %v4494_v60 = vld [vmem:[%s9892_s2 + $0x1788] sm:$0xff] }
 0x621   : > { %5150 = vmatprep.subr.bf16.mxu1 %v4710_v25  ;;  %v4918_v25 = vunpack.c.h.s8.bf16 %v4454_v6 }
 0x623   : > { %5110 = vmatpush2.bf16.msra.mxu0 %v4581_v17  ;;  %v4789_v17 = vunpack.c.h.s8.bf16 %v4389_v9 }
 0x624   : > { %5151 = vmatpush2.bf16.msra.mxu1 %v4709_v18  ;;  %5111 = vmatprep.subr.bf16.mxu0 %v4574_v2  ;;  %v4917_v18 = vunpack.c.h.s8.bf16 %v4453_v16  ;;  %v4782_v2 = vunpack.c.l.s8.bf16 %v4390_v8  ;;  %v4990_v8 = vunpack.c.l.s8.bf16 %v4494_v60 }
 0x625   : > { %5152 = vmatprep.subr.bf16.mxu1 %v4702_v13  ;;  %v4910_v13 = vunpack.c.l.s8.bf16 %v4454_v6  ;;  %v4422_v6 = vld [vmem:[%s9892_s2 + $0x1548] sm:$0xff] }
 0x627   : > { %5112 = vmatpush2.bf16.msra.mxu0 %v4573_v15  ;;  %v4909_v15 = vunpack.c.l.s8.bf16 %v4453_v16  ;;  %v4421_v16 = vld [vmem:[%s9892_s2 + $0x1540] sm:$0xff] }
 0x628   : > { %5153 = vmatpush2.bf16.msra.mxu1 %v4701_v32  ;;  %5163 = vmatprep.subr.bf16.mxu0 %v4822_v5  ;;  %v4774_v32 = vunpack.c.h.s8.bf16 %v4382_v21  ;;  %v4902_v5 = vunpack.c.h.s8.bf16 %v4446_v43 }
 0x629   : > { %5204 = vmatprep.subr.bf16.mxu1 %v4950_v36  ;;  %v4381_v36 = vld [vmem:[%s9892_s2 + $0x1400] sm:$0xff] }
 0x62a   : > { %v4041_v48 = vpop.f32.mrf.mxu0  ;;  %5114 = vmatmul.mubr.bf16.vlgmr.msra.gmra.mxu0 %v10814_v1  ;;  %v4773_v37 = vunpack.c.h.s8.bf16 %v4381_v36  ;;  %v4765_v42 = vunpack.c.l.s8.bf16 %v4381_v36 }
 0x62b   : > { %v4082_v57 = vpop.f32.mrf.mxu1  ;;  %5155 = vmatmul.mubr.bf16.vlgmr.msra.gmra.mxu1 %v10823_v34  ;;  %v4042_v61 = vadd.f32 %v4041_v48, %v10772_v29  ;;  %5164 = vmatpush1.bf16.msra.mxu0 %v4821_v7  ;;  %v4901_v7 = vunpack.c.h.s8.bf16 %v4445_v3  ;;  %v4893_v48 = vunpack.c.l.s8.bf16 %v4445_v3  ;;  %v4413_v3 = vld [vmem:[%s9892_s2 + $0x1500] sm:$0xff] }
 0x62c   : > { %5205 = vmatpush1.bf16.msra.mxu1 %v4949_v45  ;;  %v4043_v54 = vpop.f32.mrf.mxu0  ;;  %5165 = vmatprep.subr.bf16.mxu0 %v4814_v27  ;;  %v4766_v45 = vunpack.c.l.s8.bf16 %v4382_v21  ;;  %v4894_v27 = vunpack.c.l.s8.bf16 %v4446_v43  ;;  %v4414_v43 = vld [vmem:[%s9892_s2 + $0x1508] sm:$0xff] }
 0x62d   : > { %v4084_v52 = vpop.f32.mrf.mxu1  ;;  %5206 = vmatprep.subr.bf16.mxu1 %v4942_v41  ;;  %v10836_v59 = vadd.f32 %v4082_v57, %v4042_v61  ;;  %v4044_v49 = vadd.f32 %v4043_v54, %v10777_v46  ;;  %5195 = vmatprep.mubr.bf16.mxu0 %v10819_v39  ;;  %v4798_v46 = vunpack.c.l.s8.bf16 %v4398_v20  ;;  %v4438_v41 = vld [vmem:[%s9892_s2 + $0x15c8] sm:$0xff] }
 0x62e   : > { %5236 = vmatprep.mubr.bf16.mxu1 %v10829_v22  ;;  %v4045_v29 = vpop.f32.mrf.mxu0  ;;  %v4502_v20 = vld [vmem:[%s9892_s2 + $0x17c8] sm:$0xff]  ;;  %v4886_v57 = vunpack.c.h.s8.bf16 %v4438_v41 }
 0x62f   : > { %v4086_v58 = vpop.f32.mrf.mxu1  ;;  %v10841_v10 = vadd.f32 %v4084_v52, %v4044_v49  ;;  %5166 = vmatpush1.bf16.msra.mxu0 %v4813_v44  ;;  %v5014_v61 = vunpack.c.h.s8.bf16 %v4502_v20  ;;  %v4437_v44 = vld [vmem:[%s9892_s2 + $0x15c0] sm:$0xff] }
 0x630   : > { %5207 = vmatpush1.bf16.msra.mxu1 %v4941_v30  ;;  %v4046_v51 = vpop.f32.mrf.mxu0  ;;  %5167 = vmatprep.subr.bf16.mxu0 %v4806_v62  ;;  %v4501_v30 = vld [vmem:[%s9892_s2 + $0x17c0] sm:$0xff]  ;;  %v4885_v54 = vunpack.c.h.s8.bf16 %v4437_v44  ;;  %v4878_v62 = vunpack.c.l.s8.bf16 %v4438_v41  ;;  %v4877_v49 = vunpack.c.l.s8.bf16 %v4437_v44  ;;  %v4870_v58 = vunpack.c.h.s8.bf16 %v4430_v56 }
 0x631   : > { %v4087_v4 = vpop.f32.mrf.mxu1  ;;  %5208 = vmatprep.subr.bf16.mxu1 %v4934_v53  ;;  %v5013_v52 = vunpack.c.h.s8.bf16 %v4501_v30  ;;  %v5006_v53 = vunpack.c.l.s8.bf16 %v4502_v20  ;;  %v5005_v29 = vunpack.c.l.s8.bf16 %v4501_v30  ;;  %v4493_v51 = vld [vmem:[%s9892_s2 + $0x1780] sm:$0xff]  ;;  %v4280_v20 = vld [vmem:[%s9892_s2 + $0x10d8] sm:$0xff] }
 0x632   : > { %v4568_v44 = vunpack.c.h.s8.bf16 %v4280_v20 }
 0x633   : > { %5168 = vmatpush1.bf16.msra.mxu0 %v4805_v38  ;;  %v4998_v38 = vunpack.c.h.s8.bf16 %v4494_v60 }
 0x634   : > { %5209 = vmatpush1.bf16.msra.mxu1 %v4933_v12  ;;  %5169 = vmatprep.subr.bf16.mxu0 %v4798_v46  ;;  %v4429_v12 = vld [vmem:[%s9892_s2 + $0x1580] sm:$0xff]  ;;  %v4997_v46 = vunpack.c.h.s8.bf16 %v4493_v51 }
 0x635   : > { %5210 = vmatprep.subr.bf16.mxu1 %v4926_v50  ;;  %v4869_v4 = vunpack.c.h.s8.bf16 %v4429_v12  ;;  %v4862_v50 = vunpack.c.l.s8.bf16 %v4430_v56  ;;  %v4560_v56 = vunpack.c.l.s8.bf16 %v4280_v20  ;;  %v4256_v20 = vld [vmem:[%s9892_s2 + $0x1018] sm:$0xff] }
 0x637   : > { %5170 = vmatpush1.bf16.msra.mxu0 %v4797_v55  ;;  %v4486_v55 = vld [vmem:[%s9892_s2 + $0x1748] sm:$0xff] }
 0x638   : > { %5211 = vmatpush1.bf16.msra.mxu1 %v4925_v26  ;;  %5171 = vmatprep.subr.bf16.mxu0 %v4790_v14  ;;  %v4861_v26 = vunpack.c.l.s8.bf16 %v4429_v12  ;;  %v4989_v14 = vunpack.c.l.s8.bf16 %v4493_v51  ;;  %v4982_v9 = vunpack.c.h.s8.bf16 %v4486_v55  ;;  %v4974_v21 = vunpack.c.l.s8.bf16 %v4486_v55  ;;  %v4271_v55 = vld [vmem:[%s9892_s2 + $0x1090] sm:$0xff] }
 0x639   : > { %5212 = vmatprep.subr.bf16.mxu1 %v4918_v25  ;;  %v4854_v25 = vunpack.c.h.s8.bf16 %v4422_v6 }
 0x63b   : > { %5172 = vmatpush1.bf16.msra.mxu0 %v4789_v17  ;;  %v4485_v17 = vld [vmem:[%s9892_s2 + $0x1740] sm:$0xff] }
 0x63c   : > { %5213 = vmatpush1.bf16.msra.mxu1 %v4917_v18  ;;  %5173 = vmatprep.subr.bf16.mxu0 %v4782_v2  ;;  %v4853_v18 = vunpack.c.h.s8.bf16 %v4421_v16  ;;  %v4981_v2 = vunpack.c.h.s8.bf16 %v4485_v17 }
 0x63d   : > { %5214 = vmatprep.subr.bf16.mxu1 %v4910_v13  ;;  %v4846_v13 = vunpack.c.l.s8.bf16 %v4422_v6 }
 0x63f   : > { %5174 = vmatpush1.bf16.msra.mxu0 %v4781_v28  ;;  %v4478_v28 = vld [vmem:[%s9892_s2 + $0x1708] sm:$0xff] }
 0x640   : > { %5215 = vmatpush1.bf16.msra.mxu1 %v4909_v15  ;;  %5175 = vmatprep.subr.bf16.mxu0 %v4774_v32  ;;  %v4845_v15 = vunpack.c.l.s8.bf16 %v4421_v16  ;;  %v4973_v32 = vunpack.c.l.s8.bf16 %v4485_v17  ;;  %v4966_v36 = vunpack.c.h.s8.bf16 %v4478_v28  ;;  %v4958_v41 = vunpack.c.l.s8.bf16 %v4478_v28  ;;  %v4328_v28 = vld [vmem:[%s9892_s2 + $0x1258] sm:$0xff] }
 0x641   : > { %5216 = vmatprep.subr.bf16.mxu1 %v4902_v5  ;;  %v4838_v5 = vunpack.c.h.s8.bf16 %v4414_v43  ;;  %v4551_v17 = vunpack.c.h.s8.bf16 %v4271_v55 }
 0x643   : > { %5176 = vmatpush1.bf16.msra.mxu0 %v4773_v37  ;;  %v4477_v37 = vld [vmem:[%s9892_s2 + $0x1700] sm:$0xff] }
 0x644   : > { %5217 = vmatpush1.bf16.msra.mxu1 %v4901_v7  ;;  %5177 = vmatprep.subr.bf16.mxu0 %v4766_v45  ;;  %v4837_v7 = vunpack.c.h.s8.bf16 %v4413_v3  ;;  %v4965_v45 = vunpack.c.h.s8.bf16 %v4477_v37 }
 0x645   : > { %5218 = vmatprep.subr.bf16.mxu1 %v4894_v27  ;;  %v4830_v27 = vunpack.c.l.s8.bf16 %v4414_v43  ;;  %v4264_v43 = vld [vmem:[%s9892_s2 + $0x1058] sm:$0xff] }
 0x647   : > { %5178 = vmatpush1.bf16.msra.mxu0 %v4765_v42  ;;  %v4344_v42 = vld [vmem:[%s9892_s2 + $0x12d8] sm:$0xff] }
 0x648   : > { %5219 = vmatpush1.bf16.msra.mxu1 %v4893_v48  ;;  %5179 = vmatprep.subr.bf16.mxu0 %v4886_v57  ;;  %v10871_v48 = vrot.slane %v10806_v24, %v10034_v11  ;;  %v4829_v57 = vunpack.c.l.s8.bf16 %v4413_v3  ;;  %v4696_v30 = vunpack.c.h.s8.bf16 %v4344_v42  ;;  %v4688_v60 = vunpack.c.l.s8.bf16 %v4344_v42  ;;  %v4263_v3 = vld [vmem:[%s9892_s2 + $0x1050] sm:$0xff]  ;;  %v4320_v42 = vld [vmem:[%s9892_s2 + $0x1218] sm:$0xff] }
 0x649   : > { %5220 = vmatprep.subr.bf16.mxu1 %v5014_v61  ;;  %v4957_v61 = vunpack.c.l.s8.bf16 %v4477_v37  ;;  %v4327_v37 = vld [vmem:[%s9892_s2 + $0x1250] sm:$0xff] }
 0x64b   : > { %5180 = vmatpush2.bf16.msra.mxu0 %v4885_v54  ;;  %v4279_v54 = vld [vmem:[%s9892_s2 + $0x10d0] sm:$0xff] }
 0x64c   : > { %5221 = vmatpush2.bf16.msra.mxu1 %v5013_v52  ;;  %5181 = vmatprep.subr.bf16.mxu0 %v4878_v62  ;;  %v4343_v52 = vld [vmem:[%s9892_s2 + $0x12d0] sm:$0xff]  ;;  %v10877_v62 = vcombine.high %v10871_v48, %v10871_v48  ;;  %v4567_v24 = vunpack.c.h.s8.bf16 %v4279_v54  ;;  %v4559_v51 = vunpack.c.l.s8.bf16 %v4279_v54 }
 0x64d   : > { %5222 = vmatprep.subr.bf16.mxu1 %v5006_v53  ;;  %v4695_v53 = vunpack.c.h.s8.bf16 %v4343_v52  ;;  %v4255_v54 = vld [vmem:[%s9892_s2 + $0x1010] sm:$0xff] }
 0x64f   : > { %5182 = vmatpush2.bf16.msra.mxu0 %v4877_v49  ;;  %v4272_v49 = vld [vmem:[%s9892_s2 + $0x1098] sm:$0xff] }
 0x650   : > { %5223 = vmatpush2.bf16.msra.mxu1 %v5005_v29  ;;  %5183 = vmatprep.subr.bf16.mxu0 %v4870_v58  ;;  %v4336_v29 = vld [vmem:[%s9892_s2 + $0x1298] sm:$0xff] }
 0x651   : > { %5224 = vmatprep.subr.bf16.mxu1 %v4998_v38  ;;  %v4680_v6 = vunpack.c.h.s8.bf16 %v4336_v29 }
 0x653   : > { %5184 = vmatpush2.bf16.msra.mxu0 %v4869_v4  ;;  %v4687_v4 = vunpack.c.l.s8.bf16 %v4343_v52  ;;  %v4319_v52 = vld [vmem:[%s9892_s2 + $0x1210] sm:$0xff] }
 0x654   : > { %5225 = vmatpush2.bf16.msra.mxu1 %v4997_v46  ;;  %5185 = vmatprep.subr.bf16.mxu0 %v4862_v50 }
 0x655   : > { %5226 = vmatprep.subr.bf16.mxu1 %v4990_v8  ;;  %v4552_v8 = vunpack.c.h.s8.bf16 %v4272_v49 }
 0x657   : > { %5186 = vmatpush2.bf16.msra.mxu0 %v4861_v26  ;;  %v4335_v26 = vld [vmem:[%s9892_s2 + $0x1290] sm:$0xff] }
 0x658   : > { %5227 = vmatpush2.bf16.msra.mxu1 %v4989_v14  ;;  %5187 = vmatprep.subr.bf16.mxu0 %v4854_v25 }
 0x659   : > { %5228 = vmatprep.subr.bf16.mxu1 %v4982_v9 }
 0x65b   : > { %5188 = vmatpush2.bf16.msra.mxu0 %v4853_v18  ;;  %v4679_v18 = vunpack.c.h.s8.bf16 %v4335_v26 }
 0x65c   : > { %5229 = vmatpush2.bf16.msra.mxu1 %v4981_v2  ;;  %5189 = vmatprep.subr.bf16.mxu0 %v4846_v13 }
 0x65d   : > { %5230 = vmatprep.subr.bf16.mxu1 %v4974_v21  ;;  %v4672_v21 = vunpack.c.l.s8.bf16 %v4336_v29  ;;  %v4376_v29 = vld [vmem:[%s9892_s2 + $0x13d8] sm:$0xff] }
 0x65f   : > { %5190 = vmatpush2.bf16.msra.mxu0 %v4845_v15  ;;  %v4543_v15 = vunpack.c.l.s8.bf16 %v4271_v55  ;;  %v4752_v55 = vunpack.c.l.s8.bf16 %v4376_v29 }
 0x660   : > { %5231 = vmatpush2.bf16.msra.mxu1 %v4973_v32  ;;  %5191 = vmatprep.subr.bf16.mxu0 %v4838_v5  ;;  %v4671_v32 = vunpack.c.l.s8.bf16 %v4335_v26  ;;  %v4536_v5 = vunpack.c.h.s8.bf16 %v4264_v43  ;;  %v4304_v26 = vld [vmem:[%s9892_s2 + $0x1198] sm:$0xff] }
 0x661   : > { %5232 = vmatprep.subr.bf16.mxu1 %v4966_v36  ;;  %v4664_v36 = vunpack.c.h.s8.bf16 %v4328_v28 }
 0x663   : > { %5192 = vmatpush2.bf16.msra.mxu0 %v4837_v7  ;;  %v4535_v7 = vunpack.c.h.s8.bf16 %v4263_v3 }
 0x664   : > { %5233 = vmatpush2.bf16.msra.mxu1 %v4965_v45  ;;  %5193 = vmatprep.subr.bf16.mxu0 %v4830_v27  ;;  %v4663_v45 = vunpack.c.h.s8.bf16 %v4327_v37  ;;  %v4528_v27 = vunpack.c.l.s8.bf16 %v4264_v43  ;;  %v4608_v43 = vunpack.c.l.s8.bf16 %v4304_v26 }
 0x665   : > { %5234 = vmatprep.subr.bf16.mxu1 %v4958_v41  ;;  %v4656_v41 = vunpack.c.l.s8.bf16 %v4328_v28 }
 0x667   : > { %5194 = vmatpush2.bf16.msra.mxu0 %v4829_v57  ;;  %v4527_v57 = vunpack.c.l.s8.bf16 %v4263_v3 }
 0x668   : > { %5235 = vmatpush2.bf16.msra.mxu1 %v4957_v61  ;;  %5245 = vmatprep.subr.bf16.mxu0 %v4568_v44  ;;  %v4655_v61 = vunpack.c.l.s8.bf16 %v4327_v37  ;;  %v4520_v44 = vunpack.c.h.s8.bf16 %v4256_v20 }
 0x669   : > { %5286 = vmatprep.subr.bf16.mxu1 %v4696_v30  ;;  %v4648_v30 = vunpack.c.h.s8.bf16 %v4320_v42 }
 0x66a   : > { %v4123_v58 = vpop.f32.mrf.mxu0  ;;  %5196 = vmatmul.mubr.bf16.vlgmr.msra.gmra.mxu0 %v10871_v48 }
 0x66b   : > { %v4164_v38 = vpop.f32.mrf.mxu1  ;;  %5237 = vmatmul.mubr.bf16.vlgmr.msra.gmra.mxu1 %v10877_v62  ;;  %v4124_v12 = vadd.f32 %v4123_v58, %v10547_v31  ;;  %5246 = vmatpush1.bf16.msra.mxu0 %v4567_v24  ;;  %v4519_v24 = vunpack.c.h.s8.bf16 %v4255_v54  ;;  %v4511_v58 = vunpack.c.l.s8.bf16 %v4255_v54 }
 0x66c   : > { %5287 = vmatpush1.bf16.msra.mxu1 %v4695_v53  ;;  %v4125_v46 = vpop.f32.mrf.mxu0  ;;  %5247 = vmatprep.subr.bf16.mxu0 %v4560_v56  ;;  %v4647_v53 = vunpack.c.h.s8.bf16 %v4319_v52  ;;  %v4512_v56 = vunpack.c.l.s8.bf16 %v4256_v20 }
 0x66d   : > { %v4166_v50 = vpop.f32.mrf.mxu1  ;;  %5288 = vmatprep.subr.bf16.mxu1 %v4688_v60  ;;  %v10886_v14 = vadd.f32 %v4164_v38, %v4124_v12  ;;  %v4126_v25 = vadd.f32 %v4125_v46, %v10552_v35  ;;  %5277 = vmatprep.mubr.bf16.mxu0 %v10759_v23  ;;  %v4544_v35 = vunpack.c.l.s8.bf16 %v4272_v49  ;;  %v4640_v60 = vunpack.c.l.s8.bf16 %v4320_v42  ;;  %v4312_v49 = vld [vmem:[%s9892_s2 + $0x11d8] sm:$0xff]  ;;  %v4375_v46 = vld [vmem:[%s9892_s2 + $0x13d0] sm:$0xff] }
 0x66e   : > { %5318 = vmatprep.mubr.bf16.mxu1 %v10765_v33  ;;  %v4127_v31 = vpop.f32.mrf.mxu0  ;;  %v4639_v38 = vunpack.c.l.s8.bf16 %v4319_v52  ;;  %v4632_v12 = vunpack.c.h.s8.bf16 %v4312_v49 }
 0x66f   : > { %v4168_v9 = vpop.f32.mrf.mxu1  ;;  %v10891_v16 = vadd.f32 %v4166_v50, %v4126_v25  ;;  %5248 = vmatpush1.bf16.msra.mxu0 %v4559_v51  ;;  %v4760_v51 = vunpack.c.h.s8.bf16 %v4376_v29  ;;  %v4368_v25 = vld [vmem:[%s9892_s2 + $0x1398] sm:$0xff] }
 0x670   : > { %5289 = vmatpush1.bf16.msra.mxu1 %v4687_v4  ;;  %v4128_v2 = vpop.f32.mrf.mxu0  ;;  %5249 = vmatprep.subr.bf16.mxu0 %v4552_v8  ;;  %v4311_v4 = vld [vmem:[%s9892_s2 + $0x11d0] sm:$0xff]  ;;  %v4759_v8 = vunpack.c.h.s8.bf16 %v4375_v46  ;;  %v4751_v9 = vunpack.c.l.s8.bf16 %v4375_v46  ;;  %v4736_v28 = vunpack.c.l.s8.bf16 %v4368_v25 }
 0x671   : > { %v4169_v13 = vpop.f32.mrf.mxu1  ;;  %5290 = vmatprep.subr.bf16.mxu1 %v4680_v6  ;;  %v4631_v50 = vunpack.c.h.s8.bf16 %v4311_v4  ;;  %v4624_v6 = vunpack.c.l.s8.bf16 %v4312_v49  ;;  %v4623_v31 = vunpack.c.l.s8.bf16 %v4311_v4  ;;  %v4303_v2 = vld [vmem:[%s9892_s2 + $0x1190] sm:$0xff] }
 0x672   : > { %v4367_v13 = vld [vmem:[%s9892_s2 + $0x1390] sm:$0xff] }
 0x673   : > { %5250 = vmatpush1.bf16.msra.mxu0 %v4551_v17  ;;  %v4616_v17 = vunpack.c.h.s8.bf16 %v4304_v26 }
 0x674   : > { %5291 = vmatpush1.bf16.msra.mxu1 %v4679_v18  ;;  %5251 = vmatprep.subr.bf16.mxu0 %v4544_v35  ;;  %v4744_v18 = vunpack.c.h.s8.bf16 %v4368_v25  ;;  %v4615_v35 = vunpack.c.h.s8.bf16 %v4303_v2 }
 0x675   : > { %5292 = vmatprep.subr.bf16.mxu1 %v4672_v21  ;;  %v4743_v21 = vunpack.c.h.s8.bf16 %v4367_v13 }
 0x677   : > { %5252 = vmatpush1.bf16.msra.mxu0 %v4543_v15  ;;  %v4296_v15 = vld [vmem:[%s9892_s2 + $0x1158] sm:$0xff] }
 0x678   : > { %5293 = vmatpush1.bf16.msra.mxu1 %v4671_v32  ;;  %5253 = vmatprep.subr.bf16.mxu0 %v4536_v5  ;;  %v4360_v32 = vld [vmem:[%s9892_s2 + $0x1358] sm:$0xff]  ;;  %v4607_v5 = vunpack.c.l.s8.bf16 %v4303_v2  ;;  %v4600_v3 = vunpack.c.h.s8.bf16 %v4296_v15  ;;  %v4592_v20 = vunpack.c.l.s8.bf16 %v4296_v15 }
 0x679   : > { %5294 = vmatprep.subr.bf16.mxu1 %v4664_v36  ;;  %v4735_v36 = vunpack.c.l.s8.bf16 %v4367_v13  ;;  %v4728_v37 = vunpack.c.h.s8.bf16 %v4360_v32  ;;  %v4720_v42 = vunpack.c.l.s8.bf16 %v4360_v32  ;;  %v4399_v32 = vld [vmem:[%s9892_s2 + $0x1490] sm:$0xff] }
 0x67b   : > { %5254 = vmatpush1.bf16.msra.mxu0 %v4535_v7  ;;  %v4295_v7 = vld [vmem:[%s9892_s2 + $0x1150] sm:$0xff] }
 0x67c   : > { %5295 = vmatpush1.bf16.msra.mxu1 %v4663_v45  ;;  %5255 = vmatprep.subr.bf16.mxu0 %v4528_v27  ;;  %v4359_v45 = vld [vmem:[%s9892_s2 + $0x1350] sm:$0xff]  ;;  %v4599_v27 = vunpack.c.h.s8.bf16 %v4295_v7 }
 0x67d   : > { %5296 = vmatprep.subr.bf16.mxu1 %v4656_v41  ;;  %v4727_v41 = vunpack.c.h.s8.bf16 %v4359_v45 }
 0x67f   : > { %5256 = vmatpush1.bf16.msra.mxu0 %v4527_v57  ;;  %v4288_v57 = vld [vmem:[%s9892_s2 + $0x1118] sm:$0xff] }
 0x680   : > { %5297 = vmatpush1.bf16.msra.mxu1 %v4655_v61  ;;  %5257 = vmatprep.subr.bf16.mxu0 %v4520_v44  ;;  %v4352_v61 = vld [vmem:[%s9892_s2 + $0x1318] sm:$0xff]  ;;  %v4591_v44 = vunpack.c.l.s8.bf16 %v4295_v7  ;;  %v4584_v54 = vunpack.c.h.s8.bf16 %v4288_v57  ;;  %v4576_v49 = vunpack.c.l.s8.bf16 %v4288_v57 }
 0x681   : > { %5298 = vmatprep.subr.bf16.mxu1 %v4648_v30  ;;  %v4719_v30 = vunpack.c.l.s8.bf16 %v4359_v45  ;;  %v4712_v52 = vunpack.c.h.s8.bf16 %v4352_v61  ;;  %v4704_v29 = vunpack.c.l.s8.bf16 %v4352_v61  ;;  %v4807_v45 = vunpack.c.h.s8.bf16 %v4399_v32  ;;  %v4392_v57 = vld [vmem:[%s9892_s2 + $0x1458] sm:$0xff] }
 0x682   : > { %v4456_v61 = vld [vmem:[%s9892_s2 + $0x1658] sm:$0xff] }
 0x683   : > { %5258 = vmatpush1.bf16.msra.mxu0 %v4519_v24  ;;  %v4287_v24 = vld [vmem:[%s9892_s2 + $0x1110] sm:$0xff] }
 0x684   : > { %5299 = vmatpush1.bf16.msra.mxu1 %v4647_v53  ;;  %5259 = vmatprep.subr.bf16.mxu0 %v4512_v56  ;;  %v4351_v53 = vld [vmem:[%s9892_s2 + $0x1310] sm:$0xff]  ;;  %v4583_v56 = vunpack.c.h.s8.bf16 %v4287_v24 }
 0x685   : > { %5300 = vmatprep.subr.bf16.mxu1 %v4640_v60  ;;  %v4711_v60 = vunpack.c.h.s8.bf16 %v4351_v53 }
 0x687   : > { %5260 = vmatpush1.bf16.msra.mxu0 %v4511_v58  ;;  %v4408_v58 = vld [vmem:[%s9892_s2 + $0x14d8] sm:$0xff] }
 0x688   : > { %5301 = vmatpush1.bf16.msra.mxu1 %v4639_v38  ;;  %5261 = vmatprep.subr.bf16.mxu0 %v4632_v12  ;;  %v4472_v38 = vld [vmem:[%s9892_s2 + $0x16d8] sm:$0xff]  ;;  %v4575_v12 = vunpack.c.l.s8.bf16 %v4287_v24  ;;  %v4824_v4 = vunpack.c.h.s8.bf16 %v4408_v58  ;;  %v4816_v26 = vunpack.c.l.s8.bf16 %v4408_v58  ;;  %v4391_v24 = vld [vmem:[%s9892_s2 + $0x1450] sm:$0xff] }
 0x689   : > { %5302 = vmatprep.subr.bf16.mxu1 %v4760_v51  ;;  %v4703_v51 = vunpack.c.l.s8.bf16 %v4351_v53  ;;  %v4952_v46 = vunpack.c.h.s8.bf16 %v4472_v38  ;;  %v4944_v25 = vunpack.c.l.s8.bf16 %v4472_v38  ;;  %v4455_v53 = vld [vmem:[%s9892_s2 + $0x1650] sm:$0xff]  ;;  %v4384_v58 = vld [vmem:[%s9892_s2 + $0x1418] sm:$0xff] }
 0x68a   : > { %v4448_v38 = vld [vmem:[%s9892_s2 + $0x1618] sm:$0xff] }
 0x68b   : > { %5262 = vmatpush2.bf16.msra.mxu0 %v4631_v50  ;;  %v4407_v50 = vld [vmem:[%s9892_s2 + $0x14d0] sm:$0xff] }
 0x68c   : > { %5303 = vmatpush2.bf16.msra.mxu1 %v4759_v8  ;;  %5263 = vmatprep.subr.bf16.mxu0 %v4624_v6  ;;  %v4471_v8 = vld [vmem:[%s9892_s2 + $0x16d0] sm:$0xff]  ;;  %v4823_v6 = vunpack.c.h.s8.bf16 %v4407_v50  ;;  %v4815_v13 = vunpack.c.l.s8.bf16 %v4407_v50 }
 0x68d   : > { %5304 = vmatprep.subr.bf16.mxu1 %v4752_v55  ;;  %v4951_v55 = vunpack.c.h.s8.bf16 %v4471_v8  ;;  %v4383_v50 = vld [vmem:[%s9892_s2 + $0x1410] sm:$0xff] }
 0x68f   : > { %5264 = vmatpush2.bf16.msra.mxu0 %v4623_v31  ;;  %v4400_v31 = vld [vmem:[%s9892_s2 + $0x1498] sm:$0xff] }
 0x690   : > { %5305 = vmatpush2.bf16.msra.mxu1 %v4751_v9  ;;  %5265 = vmatprep.subr.bf16.mxu0 %v4616_v17  ;;  %v4464_v9 = vld [vmem:[%s9892_s2 + $0x1698] sm:$0xff] }
 0x691   : > { %5306 = vmatprep.subr.bf16.mxu1 %v4744_v18  ;;  %v4936_v15 = vunpack.c.h.s8.bf16 %v4464_v9 }
 0x693   : > { %5266 = vmatpush2.bf16.msra.mxu0 %v4615_v35  ;;  %v4943_v35 = vunpack.c.l.s8.bf16 %v4471_v8  ;;  %v4447_v8 = vld [vmem:[%s9892_s2 + $0x1610] sm:$0xff] }
 0x694   : > { %5307 = vmatpush2.bf16.msra.mxu1 %v4743_v21  ;;  %5267 = vmatprep.subr.bf16.mxu0 %v4608_v43 }
 0x695   : > { %5308 = vmatprep.subr.bf16.mxu1 %v4736_v28  ;;  %v4808_v28 = vunpack.c.h.s8.bf16 %v4400_v31 }
 0x697   : > { %5268 = vmatpush2.bf16.msra.mxu0 %v4607_v5  ;;  %v4463_v5 = vld [vmem:[%s9892_s2 + $0x1690] sm:$0xff] }
 0x698   : > { %5309 = vmatpush2.bf16.msra.mxu1 %v4735_v36  ;;  %5269 = vmatprep.subr.bf16.mxu0 %v4600_v3 }
 0x699   : > { %5310 = vmatprep.subr.bf16.mxu1 %v4728_v37 }
 0x69b   : > { %5270 = vmatpush2.bf16.msra.mxu0 %v4599_v27  ;;  %v4935_v27 = vunpack.c.h.s8.bf16 %v4463_v5 }
 0x69c   : > { %5311 = vmatpush2.bf16.msra.mxu1 %v4727_v41  ;;  %5271 = vmatprep.subr.bf16.mxu0 %v4592_v20 }
 0x69d   : > { %5312 = vmatprep.subr.bf16.mxu1 %v4720_v42  ;;  %v4928_v42 = vunpack.c.l.s8.bf16 %v4464_v9  ;;  %v4504_v9 = vld [vmem:[%s9892_s2 + $0x17d8] sm:$0xff] }
 0x69f   : > { %5272 = vmatpush2.bf16.msra.mxu0 %v4591_v44  ;;  %v4799_v44 = vunpack.c.l.s8.bf16 %v4399_v32  ;;  %v5008_v32 = vunpack.c.l.s8.bf16 %v4504_v9 }
 0x6a0   : > { %5313 = vmatpush2.bf16.msra.mxu1 %v4719_v30  ;;  %5273 = vmatprep.subr.bf16.mxu0 %v4584_v54  ;;  %v4927_v30 = vunpack.c.l.s8.bf16 %v4463_v5  ;;  %v4792_v54 = vunpack.c.h.s8.bf16 %v4392_v57  ;;  %v4432_v5 = vld [vmem:[%s9892_s2 + $0x1598] sm:$0xff] }
 0x6a1   : > { %5314 = vmatprep.subr.bf16.mxu1 %v4712_v52  ;;  %v4920_v52 = vunpack.c.h.s8.bf16 %v4456_v61 }
 0x6a3   : > { %5274 = vmatpush2.bf16.msra.mxu0 %v4583_v56  ;;  %v4791_v56 = vunpack.c.h.s8.bf16 %v4391_v24 }
 0x6a4   : > { %5315 = vmatpush2.bf16.msra.mxu1 %v4711_v60  ;;  %5275 = vmatprep.subr.bf16.mxu0 %v4576_v49  ;;  %v4919_v60 = vunpack.c.h.s8.bf16 %v4455_v53  ;;  %v4784_v49 = vunpack.c.l.s8.bf16 %v4392_v57  ;;  %v4864_v57 = vunpack.c.l.s8.bf16 %v4432_v5 }
 0x6a5   : > { %5316 = vmatprep.subr.bf16.mxu1 %v4704_v29  ;;  %v4912_v29 = vunpack.c.l.s8.bf16 %v4456_v61 }
 0x6a7   : > { %5276 = vmatpush2.bf16.msra.mxu0 %v4575_v12  ;;  %v4783_v12 = vunpack.c.l.s8.bf16 %v4391_v24 }
 0x6a8   : > { %5317 = vmatpush2.bf16.msra.mxu1 %v4703_v51  ;;  %5327 = vmatprep.subr.bf16.mxu0 %v4824_v4  ;;  %v4911_v51 = vunpack.c.l.s8.bf16 %v4455_v53  ;;  %v4776_v4 = vunpack.c.h.s8.bf16 %v4384_v58 }
 0x6a9   : > { %5368 = vmatprep.subr.bf16.mxu1 %v4952_v46  ;;  %v4904_v46 = vunpack.c.h.s8.bf16 %v4448_v38 }
 0x6aa   : > { %v4205_v17 = vpop.f32.mrf.mxu0  ;;  %5278 = vmatmul.mubr.bf16.vlgmr.msra.gmra.mxu0 %v10814_v1 }
 0x6ab   : > { %v4246_v18 = vpop.f32.mrf.mxu1  ;;  %5319 = vmatmul.mubr.bf16.vlgmr.msra.gmra.mxu1 %v10823_v34  ;;  %v4206_v2 = vadd.f32 %v4205_v17, %v10886_v14  ;;  %5328 = vmatpush1.bf16.msra.mxu0 %v4823_v6  ;;  %v4775_v6 = vunpack.c.h.s8.bf16 %v4383_v50  ;;  %v4767_v17 = vunpack.c.l.s8.bf16 %v4383_v50 }
 0x6ac   : > { %5369 = vmatpush1.bf16.msra.mxu1 %v4951_v55  ;;  %v4207_v21 = vpop.f32.mrf.mxu0  ;;  %5329 = vmatprep.subr.bf16.mxu0 %v4816_v26  ;;  %v4903_v55 = vunpack.c.h.s8.bf16 %v4447_v8  ;;  %v4768_v26 = vunpack.c.l.s8.bf16 %v4384_v58 }
 0x6ad   : > { %v4248_v43 = vpop.f32.mrf.mxu1  ;;  %5370 = vmatprep.subr.bf16.mxu1 %v4944_v25  ;;  %v10928_v36 = vadd.f32 %v4246_v18, %v4206_v2  ;;  %v4208_v3 = vadd.f32 %v4207_v21, %v10891_v16  ;;  %5359 = vmatprep.mubr.bf16.mxu0 %v10819_v39  ;;  %v4800_v16 = vunpack.c.l.s8.bf16 %v4400_v31  ;;  %v4896_v25 = vunpack.c.l.s8.bf16 %v4448_v38  ;;  %v4440_v31 = vld [vmem:[%s9892_s2 + $0x15d8] sm:$0xff]  ;;  %v4503_v21 = vld [vmem:[%s9892_s2 + $0x17d0] sm:$0xff] }
 0x6ae   : > { %5400 = vmatprep.mubr.bf16.mxu1 %v10829_v22  ;;  %v4209_v14 = vpop.f32.mrf.mxu0  ;;  %v4895_v18 = vunpack.c.l.s8.bf16 %v4447_v8  ;;  %v4888_v2 = vunpack.c.h.s8.bf16 %v4440_v31 }
 0x6af   : > { %v4250_v37 = vpop.f32.mrf.mxu1  ;;  %v10933_v7 = vadd.f32 %v4248_v43, %v4208_v3  ;;  %5330 = vmatpush1.bf16.msra.mxu0 %v4815_v13  ;;  %v5016_v13 = vunpack.c.h.s8.bf16 %v4504_v9  ;;  %v4496_v3 = vld [vmem:[%s9892_s2 + $0x1798] sm:$0xff] }
 0x6b0   : > { %5371 = vmatpush1.bf16.msra.mxu1 %v4943_v35  ;;  %v4210_v41 = vpop.f32.mrf.mxu0  ;;  %5331 = vmatprep.subr.bf16.mxu0 %v4808_v28  ;;  %v4439_v35 = vld [vmem:[%s9892_s2 + $0x15d0] sm:$0xff]  ;;  %v5015_v28 = vunpack.c.h.s8.bf16 %v4503_v21  ;;  %v5007_v37 = vunpack.c.l.s8.bf16 %v4503_v21  ;;  %v4992_v61 = vunpack.c.l.s8.bf16 %v4496_v3 }
 0x6b1   : > { %v4251_v20 = vpop.f32.mrf.mxu1  ;;  %5372 = vmatprep.subr.bf16.mxu1 %v4936_v15  ;;  %v4887_v43 = vunpack.c.h.s8.bf16 %v4439_v35  ;;  %v4880_v15 = vunpack.c.l.s8.bf16 %v4440_v31  ;;  %v4879_v14 = vunpack.c.l.s8.bf16 %v4439_v35  ;;  %v4431_v41 = vld [vmem:[%s9892_s2 + $0x1590] sm:$0xff] }
 0x6b2   : > { %v4495_v20 = vld [vmem:[%s9892_s2 + $0x1790] sm:$0xff] }
 0x6b3   : > { %5332 = vmatpush1.bf16.msra.mxu0 %v4807_v45  ;;  %v4872_v45 = vunpack.c.h.s8.bf16 %v4432_v5 }
 0x6b4   : > { %5373 = vmatpush1.bf16.msra.mxu1 %v4935_v27  ;;  %5333 = vmatprep.subr.bf16.mxu0 %v4800_v16  ;;  %v5000_v27 = vunpack.c.h.s8.bf16 %v4496_v3  ;;  %v4871_v16 = vunpack.c.h.s8.bf16 %v4431_v41 }
 0x6b5   : > { %5374 = vmatprep.subr.bf16.mxu1 %v4928_v42  ;;  %v4999_v42 = vunpack.c.h.s8.bf16 %v4495_v20 }
 0x6b7   : > { %5334 = vmatpush1.bf16.msra.mxu0 %v4799_v44  ;;  %v4424_v44 = vld [vmem:[%s9892_s2 + $0x1558] sm:$0xff] }
 0x6b8   : > { %5375 = vmatpush1.bf16.msra.mxu1 %v4927_v30  ;;  %5335 = vmatprep.subr.bf16.mxu0 %v4792_v54  ;;  %v4488_v30 = vld [vmem:[%s9892_s2 + $0x1758] sm:$0xff]  ;;  %v4863_v54 = vunpack.c.l.s8.bf16 %v4431_v41  ;;  %v4856_v24 = vunpack.c.h.s8.bf16 %v4424_v44  ;;  %v4848_v58 = vunpack.c.l.s8.bf16 %v4424_v44 }
 0x6b9   : > { %5376 = vmatprep.subr.bf16.mxu1 %v4920_v52  ;;  %v4991_v52 = vunpack.c.l.s8.bf16 %v4495_v20  ;;  %v4984_v53 = vunpack.c.h.s8.bf16 %v4488_v30  ;;  %v4976_v38 = vunpack.c.l.s8.bf16 %v4488_v30  ;;  %v4273_v30 = vld [vmem:[%s9892_s2 + $0x10a0] sm:$0xff] }
 0x6bb   : > { %5336 = vmatpush1.bf16.msra.mxu0 %v4791_v56  ;;  %v4423_v56 = vld [vmem:[%s9892_s2 + $0x1550] sm:$0xff] }
 0x6bc   : > { %5377 = vmatpush1.bf16.msra.mxu1 %v4919_v60  ;;  %5337 = vmatprep.subr.bf16.mxu0 %v4784_v49  ;;  %v4487_v60 = vld [vmem:[%s9892_s2 + $0x1750] sm:$0xff]  ;;  %v4855_v49 = vunpack.c.h.s8.bf16 %v4423_v56 }
 0x6bd   : > { %5378 = vmatprep.subr.bf16.mxu1 %v4912_v29  ;;  %v4983_v29 = vunpack.c.h.s8.bf16 %v4487_v60 }
 0x6bf   : > { %5338 = vmatpush1.bf16.msra.mxu0 %v4783_v12  ;;  %v4416_v12 = vld [vmem:[%s9892_s2 + $0x1518] sm:$0xff] }
 0x6c0   : > { %5379 = vmatpush1.bf16.msra.mxu1 %v4911_v51  ;;  %5339 = vmatprep.subr.bf16.mxu0 %v4776_v4  ;;  %v4480_v51 = vld [vmem:[%s9892_s2 + $0x1718] sm:$0xff]  ;;  %v4847_v4 = vunpack.c.l.s8.bf16 %v4423_v56  ;;  %v4840_v50 = vunpack.c.h.s8.bf16 %v4416_v12  ;;  %v4832_v31 = vunpack.c.l.s8.bf16 %v4416_v12  ;;  %v4553_v56 = vunpack.c.h.s8.bf16 %v4273_v30  ;;  %v4266_v12 = vld [vmem:[%s9892_s2 + $0x1068] sm:$0xff] }
 0x6c1   : > { %5380 = vmatprep.subr.bf16.mxu1 %v4904_v46  ;;  %v4975_v46 = vunpack.c.l.s8.bf16 %v4487_v60  ;;  %v4968_v8 = vunpack.c.h.s8.bf16 %v4480_v51  ;;  %v4960_v9 = vunpack.c.l.s8.bf16 %v4480_v51  ;;  %v4330_v51 = vld [vmem:[%s9892_s2 + $0x1268] sm:$0xff] }
 0x6c3   : > { %5340 = vmatpush1.bf16.msra.mxu0 %v4775_v6  ;;  %v4415_v6 = vld [vmem:[%s9892_s2 + $0x1510] sm:$0xff] }
 0x6c4   : > { %5381 = vmatpush1.bf16.msra.mxu1 %v4903_v55  ;;  %5341 = vmatprep.subr.bf16.mxu0 %v4768_v26  ;;  %v4479_v55 = vld [vmem:[%s9892_s2 + $0x1710] sm:$0xff]  ;;  %v4839_v26 = vunpack.c.h.s8.bf16 %v4415_v6 }
 0x6c5   : > { %5382 = vmatprep.subr.bf16.mxu1 %v4896_v25  ;;  %v4967_v25 = vunpack.c.h.s8.bf16 %v4479_v55 }
 0x6c7   : > { %5342 = vmatpush1.bf16.msra.mxu0 %v4767_v17  ;;  %v4282_v17 = vld [vmem:[%s9892_s2 + $0x10e8] sm:$0xff] }
 0x6c8   : > { %5383 = vmatpush1.bf16.msra.mxu1 %v4895_v18  ;;  %5343 = vmatprep.subr.bf16.mxu0 %v4888_v2  ;;  %v4346_v18 = vld [vmem:[%s9892_s2 + $0x12e8] sm:$0xff]  ;;  %v4831_v2 = vunpack.c.l.s8.bf16 %v4415_v6  ;;  %v4570_v35 = vunpack.c.h.s8.bf16 %v4282_v17  ;;  %v4562_v5 = vunpack.c.l.s8.bf16 %v4282_v17  ;;  %v4265_v6 = vld [vmem:[%s9892_s2 + $0x1060] sm:$0xff] }
 0x6c9   : > { %5384 = vmatprep.subr.bf16.mxu1 %v5016_v13  ;;  %v4959_v13 = vunpack.c.l.s8.bf16 %v4479_v55  ;;  %v4698_v21 = vunpack.c.h.s8.bf16 %v4346_v18  ;;  %v4690_v3 = vunpack.c.l.s8.bf16 %v4346_v18  ;;  %v4329_v55 = vld [vmem:[%s9892_s2 + $0x1260] sm:$0xff]  ;;  %v4258_v17 = vld [vmem:[%s9892_s2 + $0x1028] sm:$0xff] }
 0x6ca   : > { %v4322_v18 = vld [vmem:[%s9892_s2 + $0x1228] sm:$0xff] }
 0x6cb   : > { %5344 = vmatpush2.bf16.msra.mxu0 %v4887_v43  ;;  %v4281_v43 = vld [vmem:[%s9892_s2 + $0x10e0] sm:$0xff] }
 0x6cc   : > { %5385 = vmatpush2.bf16.msra.mxu1 %v5015_v28  ;;  %5345 = vmatprep.subr.bf16.mxu0 %v4880_v15  ;;  %v4345_v28 = vld [vmem:[%s9892_s2 + $0x12e0] sm:$0xff]  ;;  %v4569_v15 = vunpack.c.h.s8.bf16 %v4281_v43  ;;  %v4561_v20 = vunpack.c.l.s8.bf16 %v4281_v43 }
 0x6cd   : > { %5386 = vmatprep.subr.bf16.mxu1 %v5008_v32  ;;  %v4697_v32 = vunpack.c.h.s8.bf16 %v4345_v28  ;;  %v4257_v43 = vld [vmem:[%s9892_s2 + $0x1020] sm:$0xff] }
 0x6cf   : > { %5346 = vmatpush2.bf16.msra.mxu0 %v4879_v14  ;;  %v4274_v14 = vld [vmem:[%s9892_s2 + $0x10a8] sm:$0xff] }
 0x6d0   : > { %5387 = vmatpush2.bf16.msra.mxu1 %v5007_v37  ;;  %5347 = vmatprep.subr.bf16.mxu0 %v4872_v45  ;;  %v4338_v37 = vld [vmem:[%s9892_s2 + $0x12a8] sm:$0xff] }
 0x6d1   : > { %5388 = vmatprep.subr.bf16.mxu1 %v5000_v27  ;;  %v4682_v44 = vunpack.c.h.s8.bf16 %v4338_v37 }
 0x6d3   : > { %5348 = vmatpush2.bf16.msra.mxu0 %v4871_v16  ;;  %v4689_v16 = vunpack.c.l.s8.bf16 %v4345_v28  ;;  %v4321_v28 = vld [vmem:[%s9892_s2 + $0x1220] sm:$0xff] }
 0x6d4   : > { %5389 = vmatpush2.bf16.msra.mxu1 %v4999_v42  ;;  %5349 = vmatprep.subr.bf16.mxu0 %v4864_v57 }
 0x6d5   : > { %5390 = vmatprep.subr.bf16.mxu1 %v4992_v61  ;;  %v4554_v61 = vunpack.c.h.s8.bf16 %v4274_v14 }
 0x6d7   : > { %5350 = vmatpush2.bf16.msra.mxu0 %v4863_v54  ;;  %v4337_v54 = vld [vmem:[%s9892_s2 + $0x12a0] sm:$0xff] }
 0x6d8   : > { %5391 = vmatpush2.bf16.msra.mxu1 %v4991_v52  ;;  %5351 = vmatprep.subr.bf16.mxu0 %v4856_v24  ;;  %v4681_v60 = vunpack.c.h.s8.bf16 %v4337_v54 }
 0x6d9   : > { %5392 = vmatprep.subr.bf16.mxu1 %v4984_v53 }
 0x6db   : > { %5352 = vmatpush2.bf16.msra.mxu0 %v4855_v49 }
 0x6dc   : > { %5393 = vmatpush2.bf16.msra.mxu1 %v4983_v29  ;;  %5353 = vmatprep.subr.bf16.mxu0 %v4848_v58  ;;  %v4546_v58 = vunpack.c.l.s8.bf16 %v4274_v14  ;;  %v4314_v14 = vld [vmem:[%s9892_s2 + $0x11e8] sm:$0xff] }
 0x6dd   : > { %5394 = vmatprep.subr.bf16.mxu1 %v4976_v38  ;;  %v4674_v38 = vunpack.c.l.s8.bf16 %v4338_v37  ;;  %v4378_v37 = vld [vmem:[%s9892_s2 + $0x13e8] sm:$0xff] }
 0x6df   : > { %5354 = vmatpush2.bf16.msra.mxu0 %v4847_v4  ;;  %v4545_v4 = vunpack.c.l.s8.bf16 %v4273_v30  ;;  %v4626_v30 = vunpack.c.l.s8.bf16 %v4314_v14 }
 0x6e0   : > { %5395 = vmatpush2.bf16.msra.mxu1 %v4975_v46  ;;  %5355 = vmatprep.subr.bf16.mxu0 %v4840_v50  ;;  %v4673_v46 = vunpack.c.l.s8.bf16 %v4337_v54  ;;  %v4538_v50 = vunpack.c.h.s8.bf16 %v4266_v12  ;;  %v4754_v54 = vunpack.c.l.s8.bf16 %v4378_v37 }
 0x6e1   : > { %5396 = vmatprep.subr.bf16.mxu1 %v4968_v8  ;;  %v4666_v8 = vunpack.c.h.s8.bf16 %v4330_v51 }
 0x6e3   : > { %5356 = vmatpush2.bf16.msra.mxu0 %v4839_v26  ;;  %v4537_v26 = vunpack.c.h.s8.bf16 %v4265_v6 }
 0x6e4   : > { %5397 = vmatpush2.bf16.msra.mxu1 %v4967_v25  ;;  %5357 = vmatprep.subr.bf16.mxu0 %v4832_v31  ;;  %v4665_v25 = vunpack.c.h.s8.bf16 %v4329_v55  ;;  %v4530_v31 = vunpack.c.l.s8.bf16 %v4266_v12 }
 0x6e5   : > { %5398 = vmatprep.subr.bf16.mxu1 %v4960_v9  ;;  %v4658_v9 = vunpack.c.l.s8.bf16 %v4330_v51 }
 0x6e7   : > { %5358 = vmatpush2.bf16.msra.mxu0 %v4831_v2  ;;  %v4529_v2 = vunpack.c.l.s8.bf16 %v4265_v6 }
 0x6e8   : > { %5399 = vmatpush2.bf16.msra.mxu1 %v4959_v13  ;;  %5409 = vmatprep.subr.bf16.mxu0 %v4570_v35  ;;  %v4657_v13 = vunpack.c.l.s8.bf16 %v4329_v55  ;;  %v4522_v35 = vunpack.c.h.s8.bf16 %v4258_v17 }
 0x6e9   : > { %5450 = vmatprep.subr.bf16.mxu1 %v4698_v21  ;;  %v4650_v21 = vunpack.c.h.s8.bf16 %v4322_v18 }
 0x6ea   : > { %v5115_v45 = vpop.f32.mrf.mxu0  ;;  %5360 = vmatmul.mubr.bf16.vlgmr.msra.gmra.mxu0 %v10871_v48 }
 0x6eb   : > { %v5156_v27 = vpop.f32.mrf.mxu1  ;;  %5401 = vmatmul.mubr.bf16.vlgmr.msra.gmra.mxu1 %v10877_v62  ;;  %5410 = vmatpush1.bf16.msra.mxu0 %v4569_v15  ;;  %v4521_v15 = vunpack.c.h.s8.bf16 %v4257_v43 }
 0x6ec   : > { %v10967_v41 = vadd.f32 %v5156_v27, %v5115_v45  ;;  %5451 = vmatpush1.bf16.msra.mxu1 %v4697_v32  ;;  %v5117_v42 = vpop.f32.mrf.mxu0  ;;  %5411 = vmatprep.subr.bf16.mxu0 %v4562_v5  ;;  %v4649_v32 = vunpack.c.h.s8.bf16 %v4321_v28  ;;  %v4514_v5 = vunpack.c.l.s8.bf16 %v4258_v17  ;;  %v4513_v45 = vunpack.c.l.s8.bf16 %v4257_v43 }
 0x6ed   : > { %v5158_v57 = vpop.f32.mrf.mxu1  ;;  %5452 = vmatprep.subr.bf16.mxu1 %v4690_v3  ;;  %5441 = vmatprep.mubr.bf16.mxu0 %v10759_v23  ;;  %v4642_v3 = vunpack.c.l.s8.bf16 %v4322_v18  ;;  %v4641_v27 = vunpack.c.l.s8.bf16 %v4321_v28 }
 0x6ee   : > { %v10971_v52 = vadd.f32 %v5158_v57, %v5117_v42  ;;  %5482 = vmatprep.mubr.bf16.mxu1 %v10765_v33  ;;  %v5119_v24 = vpop.f32.mrf.mxu0  ;;  %v4313_v42 = vld [vmem:[%s9892_s2 + $0x11e0] sm:$0xff] }
 0x6ef   : > { %v5160_v53 = vpop.f32.mrf.mxu1  ;;  %5412 = vmatpush1.bf16.msra.mxu0 %v4561_v20  ;;  %v4634_v20 = vunpack.c.h.s8.bf16 %v4314_v14  ;;  %v4377_v57 = vld [vmem:[%s9892_s2 + $0x13e0] sm:$0xff]  ;;  %v4306_v24 = vld [vmem:[%s9892_s2 + $0x11a8] sm:$0xff] }
 0x6f0   : > { %5453 = vmatpush1.bf16.msra.mxu1 %v4689_v16  ;;  %v5120_v49 = vpop.f32.mrf.mxu0  ;;  %5413 = vmatprep.subr.bf16.mxu0 %v4554_v61  ;;  %v4762_v16 = vunpack.c.h.s8.bf16 %v4378_v37  ;;  %v4633_v61 = vunpack.c.h.s8.bf16 %v4313_v42  ;;  %v4370_v53 = vld [vmem:[%s9892_s2 + $0x13a8] sm:$0xff] }
 0x6f1   : > { %v5161_v29 = vpop.f32.mrf.mxu1  ;;  %5454 = vmatprep.subr.bf16.mxu1 %v4682_v44  ;;  %v4761_v44 = vunpack.c.h.s8.bf16 %v4377_v57  ;;  %v4618_v49 = vunpack.c.h.s8.bf16 %v4306_v24 }
 0x6f2   : > { %v4746_v29 = vunpack.c.h.s8.bf16 %v4370_v53 }
 0x6f3   : > { %5414 = vmatpush1.bf16.msra.mxu0 %v4553_v56  ;;  %v4625_v56 = vunpack.c.l.s8.bf16 %v4313_v42 }
 0x6f4   : > { %5455 = vmatpush1.bf16.msra.mxu1 %v4681_v60  ;;  %5415 = vmatprep.subr.bf16.mxu0 %v4546_v58  ;;  %v4753_v60 = vunpack.c.l.s8.bf16 %v4377_v57  ;;  %v4305_v58 = vld [vmem:[%s9892_s2 + $0x11a0] sm:$0xff] }
 0x6f5   : > { %5456 = vmatprep.subr.bf16.mxu1 %v4674_v38  ;;  %v4369_v38 = vld [vmem:[%s9892_s2 + $0x13a0] sm:$0xff]  ;;  %v4617_v12 = vunpack.c.h.s8.bf16 %v4305_v58  ;;  %v4609_v6 = vunpack.c.l.s8.bf16 %v4305_v58 }
 0x6f6   : > { %v4745_v51 = vunpack.c.h.s8.bf16 %v4369_v38  ;;  %v4737_v55 = vunpack.c.l.s8.bf16 %v4369_v38 }
 0x6f7   : > { %5416 = vmatpush1.bf16.msra.mxu0 %v4545_v4  ;;  %v4610_v4 = vunpack.c.l.s8.bf16 %v4306_v24 }
 0x6f8   : > { %5457 = vmatpush1.bf16.msra.mxu1 %v4673_v46  ;;  %5417 = vmatprep.subr.bf16.mxu0 %v4538_v50  ;;  %v4738_v46 = vunpack.c.l.s8.bf16 %v4370_v53  ;;  %v4298_v50 = vld [vmem:[%s9892_s2 + $0x1168] sm:$0xff] }
 0x6f9   : > { %5458 = vmatprep.subr.bf16.mxu1 %v4666_v8  ;;  %v4362_v8 = vld [vmem:[%s9892_s2 + $0x1368] sm:$0xff] }
 0x6fb   : > { %5418 = vmatpush1.bf16.msra.mxu0 %v4537_v26  ;;  %v4602_v26 = vunpack.c.h.s8.bf16 %v4298_v50 }
 0x6fc   : > { %5459 = vmatpush1.bf16.msra.mxu1 %v4665_v25  ;;  %5419 = vmatprep.subr.bf16.mxu0 %v4530_v31  ;;  %v4730_v25 = vunpack.c.h.s8.bf16 %v4362_v8  ;;  %v4297_v31 = vld [vmem:[%s9892_s2 + $0x1160] sm:$0xff] }
 0x6fd   : > { %5460 = vmatprep.subr.bf16.mxu1 %v4658_v9  ;;  %v4361_v9 = vld [vmem:[%s9892_s2 + $0x1360] sm:$0xff]  ;;  %v4601_v17 = vunpack.c.h.s8.bf16 %v4297_v31  ;;  %v4593_v43 = vunpack.c.l.s8.bf16 %v4297_v31 }
 0x6fe   : > { %v4729_v18 = vunpack.c.h.s8.bf16 %v4361_v9  ;;  %v4721_v28 = vunpack.c.l.s8.bf16 %v4361_v9 }
 0x6ff   : > { %5420 = vmatpush1.bf16.msra.mxu0 %v4529_v2  ;;  %v4594_v2 = vunpack.c.l.s8.bf16 %v4298_v50 }
 0x700   : > { %5461 = vmatpush1.bf16.msra.mxu1 %v4657_v13  ;;  %5421 = vmatprep.subr.bf16.mxu0 %v4522_v35  ;;  %v4722_v13 = vunpack.c.l.s8.bf16 %v4362_v8  ;;  %v4290_v35 = vld [vmem:[%s9892_s2 + $0x1128] sm:$0xff] }
 0x701   : > { %5462 = vmatprep.subr.bf16.mxu1 %v4650_v21  ;;  %v4354_v21 = vld [vmem:[%s9892_s2 + $0x1328] sm:$0xff] }
 0x703   : > { %5422 = vmatpush1.bf16.msra.mxu0 %v4521_v15  ;;  %v4586_v15 = vunpack.c.h.s8.bf16 %v4290_v35 }
 0x704   : > { %5463 = vmatpush1.bf16.msra.mxu1 %v4649_v32  ;;  %5423 = vmatprep.subr.bf16.mxu0 %v4514_v5  ;;  %v4714_v32 = vunpack.c.h.s8.bf16 %v4354_v21  ;;  %v4289_v5 = vld [vmem:[%s9892_s2 + $0x1120] sm:$0xff] }
 0x705   : > { %5464 = vmatprep.subr.bf16.mxu1 %v4642_v3  ;;  %v4353_v3 = vld [vmem:[%s9892_s2 + $0x1320] sm:$0xff]  ;;  %v4585_v14 = vunpack.c.h.s8.bf16 %v4289_v5  ;;  %v4577_v42 = vunpack.c.l.s8.bf16 %v4289_v5 }
 0x706   : > { %v4713_v37 = vunpack.c.h.s8.bf16 %v4353_v3  ;;  %v4705_v57 = vunpack.c.l.s8.bf16 %v4353_v3 }
 0x707   : > { %5424 = vmatpush1.bf16.msra.mxu0 %v4513_v45  ;;  %v4578_v45 = vunpack.c.l.s8.bf16 %v4290_v35 }
 0x708   : > { %5465 = vmatpush1.bf16.msra.mxu1 %v4641_v27  ;;  %5425 = vmatprep.subr.bf16.mxu0 %v4634_v20  ;;  %v4706_v27 = vunpack.c.l.s8.bf16 %v4354_v21  ;;  %v4410_v20 = vld [vmem:[%s9892_s2 + $0x14e8] sm:$0xff] }
 0x709   : > { %5466 = vmatprep.subr.bf16.mxu1 %v4762_v16  ;;  %v4474_v16 = vld [vmem:[%s9892_s2 + $0x16e8] sm:$0xff] }
 0x70b   : > { %5426 = vmatpush2.bf16.msra.mxu0 %v4633_v61  ;;  %v4826_v61 = vunpack.c.h.s8.bf16 %v4410_v20 }
 0x70c   : > { %5467 = vmatpush2.bf16.msra.mxu1 %v4761_v44  ;;  %5427 = vmatprep.subr.bf16.mxu0 %v4626_v30  ;;  %v4954_v44 = vunpack.c.h.s8.bf16 %v4474_v16  ;;  %v4409_v30 = vld [vmem:[%s9892_s2 + $0x14e0] sm:$0xff] }
 0x70d   : > { %5468 = vmatprep.subr.bf16.mxu1 %v4754_v54  ;;  %v4473_v54 = vld [vmem:[%s9892_s2 + $0x16e0] sm:$0xff]  ;;  %v4825_v24 = vunpack.c.h.s8.bf16 %v4409_v30 }
 0x70e   : > { %v4953_v53 = vunpack.c.h.s8.bf16 %v4473_v54 }
 0x70f   : > { %5428 = vmatpush2.bf16.msra.mxu0 %v4625_v56  ;;  %v4818_v56 = vunpack.c.l.s8.bf16 %v4410_v20 }
 0x710   : > { %5469 = vmatpush2.bf16.msra.mxu1 %v4753_v60  ;;  %5429 = vmatprep.subr.bf16.mxu0 %v4618_v49  ;;  %v4946_v60 = vunpack.c.l.s8.bf16 %v4474_v16  ;;  %v4402_v49 = vld [vmem:[%s9892_s2 + $0x14a8] sm:$0xff] }
 0x711   : > { %5470 = vmatprep.subr.bf16.mxu1 %v4746_v29  ;;  %v4466_v29 = vld [vmem:[%s9892_s2 + $0x16a8] sm:$0xff]  ;;  %v4810_v8 = vunpack.c.h.s8.bf16 %v4402_v49 }
 0x713   : > { %5430 = vmatpush2.bf16.msra.mxu0 %v4617_v12 }
 0x714   : > { %5471 = vmatpush2.bf16.msra.mxu1 %v4745_v51  ;;  %5431 = vmatprep.subr.bf16.mxu0 %v4610_v4  ;;  %v4817_v51 = vunpack.c.l.s8.bf16 %v4409_v30  ;;  %v4945_v4 = vunpack.c.l.s8.bf16 %v4473_v54 }
 0x715   : > { %5472 = vmatprep.subr.bf16.mxu1 %v4738_v46 }
 0x717   : > { %5432 = vmatpush2.bf16.msra.mxu0 %v4609_v6  ;;  %v4938_v6 = vunpack.c.h.s8.bf16 %v4466_v29 }
 0x718   : > { %5473 = vmatpush2.bf16.msra.mxu1 %v4737_v55  ;;  %5433 = vmatprep.subr.bf16.mxu0 %v4602_v26  ;;  %v4401_v55 = vld [vmem:[%s9892_s2 + $0x14a0] sm:$0xff] }
 0x719   : > { %5474 = vmatprep.subr.bf16.mxu1 %v4730_v25  ;;  %v4465_v26 = vld [vmem:[%s9892_s2 + $0x16a0] sm:$0xff] }
 0x71a   : > { %v4929_v5 = vunpack.c.l.s8.bf16 %v4465_v26 }
 0x71b   : > { %5434 = vmatpush2.bf16.msra.mxu0 %v4601_v17 }
 0x71c   : > { %5475 = vmatpush2.bf16.msra.mxu1 %v4729_v18  ;;  %5435 = vmatprep.subr.bf16.mxu0 %v4594_v2  ;;  %v4809_v2 = vunpack.c.h.s8.bf16 %v4401_v55 }
 0x71d   : > { %5476 = vmatprep.subr.bf16.mxu1 %v4722_v13  ;;  %v4937_v13 = vunpack.c.h.s8.bf16 %v4465_v26 }
 0x71f   : > { %5436 = vmatpush2.bf16.msra.mxu0 %v4593_v43  ;;  %v4930_v43 = vunpack.c.l.s8.bf16 %v4466_v29 }
 0x720   : > { %5477 = vmatpush2.bf16.msra.mxu1 %v4721_v28  ;;  %5437 = vmatprep.subr.bf16.mxu0 %v4586_v15  ;;  %v4394_v15 = vld [vmem:[%s9892_s2 + $0x1468] sm:$0xff] }
 0x721   : > { %5478 = vmatprep.subr.bf16.mxu1 %v4714_v32  ;;  %v4458_v32 = vld [vmem:[%s9892_s2 + $0x1668] sm:$0xff]  ;;  %v4794_v3 = vunpack.c.h.s8.bf16 %v4394_v15  ;;  %v4786_v20 = vunpack.c.l.s8.bf16 %v4394_v15 }
 0x722   : > { %v4914_v16 = vunpack.c.l.s8.bf16 %v4458_v32 }
 0x723   : > { %5438 = vmatpush2.bf16.msra.mxu0 %v4585_v14  ;;  %v4922_v14 = vunpack.c.h.s8.bf16 %v4458_v32 }
 0x724   : > { %5479 = vmatpush2.bf16.msra.mxu1 %v4713_v37  ;;  %5439 = vmatprep.subr.bf16.mxu0 %v4578_v45  ;;  %v4393_v37 = vld [vmem:[%s9892_s2 + $0x1460] sm:$0xff] }
 0x725   : > { %5480 = vmatprep.subr.bf16.mxu1 %v4706_v27  ;;  %v4457_v45 = vld [vmem:[%s9892_s2 + $0x1660] sm:$0xff]  ;;  %v4793_v27 = vunpack.c.h.s8.bf16 %v4393_v37 }
 0x727   : > { %5440 = vmatpush2.bf16.msra.mxu0 %v4577_v42  ;;  %v4386_v42 = vld [vmem:[%s9892_s2 + $0x1428] sm:$0xff] }
 0x728   : > { %5481 = vmatpush2.bf16.msra.mxu1 %v4705_v57  ;;  %5491 = vmatprep.subr.bf16.mxu0 %v4826_v61  ;;  %v4450_v57 = vld [vmem:[%s9892_s2 + $0x1628] sm:$0xff]  ;;  %v4785_v61 = vunpack.c.l.s8.bf16 %v4393_v37  ;;  %v4778_v30 = vunpack.c.h.s8.bf16 %v4386_v42 }
 0x729   : > { %5532 = vmatprep.subr.bf16.mxu1 %v4954_v44  ;;  %v4913_v44 = vunpack.c.l.s8.bf16 %v4457_v45  ;;  %v4906_v54 = vunpack.c.h.s8.bf16 %v4450_v57  ;;  %v4898_v29 = vunpack.c.l.s8.bf16 %v4450_v57 }
 0x72a   : > { %v5197_v58 = vpop.f32.mrf.mxu0  ;;  %5442 = vmatmul.mubr.bf16.vlgmr.msra.gmra.mxu0 %v10814_v1 }
 0x72b   : > { %v5238_v38 = vpop.f32.mrf.mxu1  ;;  %5483 = vmatmul.mubr.bf16.vlgmr.msra.gmra.mxu1 %v10823_v34  ;;  %v5198_v12 = vadd.f32 %v5197_v58, %v10967_v41  ;;  %5492 = vmatpush1.bf16.msra.mxu0 %v4825_v24  ;;  %v4385_v24 = vld [vmem:[%s9892_s2 + $0x1420] sm:$0xff]  ;;  %v4442_v58 = vld [vmem:[%s9892_s2 + $0x15e8] sm:$0xff] }
 0x72c   : > { %5533 = vmatpush1.bf16.msra.mxu1 %v4953_v53  ;;  %v5199_v46 = vpop.f32.mrf.mxu0  ;;  %5493 = vmatprep.subr.bf16.mxu0 %v4818_v56  ;;  %v4449_v53 = vld [vmem:[%s9892_s2 + $0x1620] sm:$0xff]  ;;  %v4777_v56 = vunpack.c.h.s8.bf16 %v4385_v24  ;;  %v4882_v26 = vunpack.c.l.s8.bf16 %v4442_v58 }
 0x72d   : > { %v5240_v50 = vpop.f32.mrf.mxu1  ;;  %5534 = vmatprep.subr.bf16.mxu1 %v4946_v60  ;;  %v5239_v25 = vadd.f32 %v5238_v38, %v5198_v12  ;;  %v5200_v31 = vadd.f32 %v5199_v46, %v10971_v52  ;;  %5523 = vmatprep.mubr.bf16.mxu0 %v10819_v39  ;;  %v4802_v52 = vunpack.c.l.s8.bf16 %v4402_v49  ;;  %v4905_v60 = vunpack.c.h.s8.bf16 %v4449_v53  ;;  %v4506_v38 = vld [vmem:[%s9892_s2 + $0x17e8] sm:$0xff] }
 0x72e   : > { %5564 = vmatprep.mubr.bf16.mxu1 %v10829_v22  ;;  %v5201_v41 = vpop.f32.mrf.mxu0  ;;  %v4770_v49 = vunpack.c.l.s8.bf16 %v4386_v42  ;;  %v4769_v12 = vunpack.c.l.s8.bf16 %v4385_v24  ;;  %v5018_v46 = vunpack.c.h.s8.bf16 %v4506_v38 }
 0x72f   : > { %v5242_v9 = vpop.f32.mrf.mxu1  ;;  %v11014_v17 = vadd.f32 %v5239_v25, %v10631_v19  ;;  %v5241_v18 = vadd.f32 %v5240_v50, %v5200_v31  ;;  %5494 = vmatpush1.bf16.msra.mxu0 %v4817_v51  ;;  %v4801_v19 = vunpack.c.l.s8.bf16 %v4401_v55  ;;  %v4897_v51 = vunpack.c.l.s8.bf16 %v4449_v53  ;;  %v4441_v50 = vld [vmem:[%s9892_s2 + $0x15e0] sm:$0xff]  ;;  %v4434_v31 = vld [vmem:[%s9892_s2 + $0x15a8] sm:$0xff] }
 0x730   : > { %5535 = vmatpush1.bf16.msra.mxu1 %v4945_v4  ;;  %v5202_v35 = vpop.f32.mrf.mxu0  ;;  %5495 = vmatprep.subr.bf16.mxu0 %v4810_v8  ;;  %v4890_v4 = vunpack.c.h.s8.bf16 %v4442_v58  ;;  %v4505_v8 = vld [vmem:[%s9892_s2 + $0x17e0] sm:$0xff]  ;;  %v5010_v25 = vunpack.c.l.s8.bf16 %v4506_v38  ;;  %v4498_v41 = vld [vmem:[%s9892_s2 + $0x17a8] sm:$0xff]  ;;  %v4881_v9 = vunpack.c.l.s8.bf16 %v4441_v50  ;;  %v4866_v15 = vunpack.c.l.s8.bf16 %v4434_v31 }
 0x731   : > { %v5243_v21 = vpop.f32.mrf.mxu1  ;;  %5536 = vmatprep.subr.bf16.mxu1 %v4938_v6  ;;  %v11017_v28 = vadd.f32 %v5241_v18, %v10636_v0  ;;  %v4921_v0 = vunpack.c.h.s8.bf16 %v4457_v45  ;;  %v4889_v6 = vunpack.c.h.s8.bf16 %v4441_v50  ;;  %v5017_v55 = vunpack.c.h.s8.bf16 %v4505_v8  ;;  %v4433_v35 = vld [vmem:[%s9892_s2 + $0x15a0] sm:$0xff] }
 0x732   : > { %v5009_v18 = vunpack.c.l.s8.bf16 %v4505_v8  ;;  %v4497_v21 = vld [vmem:[%s9892_s2 + $0x17a0] sm:$0xff]  ;;  %v4994_v32 = vunpack.c.l.s8.bf16 %v4498_v41 }
 0x733   : > { %5496 = vmatpush1.bf16.msra.mxu0 %v4809_v2  ;;  %v4874_v2 = vunpack.c.h.s8.bf16 %v4434_v31 }
 0x734   : > { %5537 = vmatpush1.bf16.msra.mxu1 %v4937_v13  ;;  %5497 = vmatprep.subr.bf16.mxu0 %v4802_v52  ;;  %v5002_v13 = vunpack.c.h.s8.bf16 %v4498_v41  ;;  %v4873_v52 = vunpack.c.h.s8.bf16 %v4433_v35 }
 0x735   : > { %5538 = vmatprep.subr.bf16.mxu1 %v4930_v43  ;;  %v5001_v43 = vunpack.c.h.s8.bf16 %v4497_v21 }
 0x737   : > { %5498 = vmatpush1.bf16.msra.mxu0 %v4801_v19  ;;  %v4426_v19 = vld [vmem:[%s9892_s2 + $0x1568] sm:$0xff] }
 0x738   : > { %5539 = vmatpush1.bf16.msra.mxu1 %v4929_v5  ;;  %5499 = vmatprep.subr.bf16.mxu0 %v4794_v3  ;;  %v4490_v5 = vld [vmem:[%s9892_s2 + $0x1768] sm:$0xff]  ;;  %v4865_v3 = vunpack.c.l.s8.bf16 %v4433_v35  ;;  %v4858_v37 = vunpack.c.h.s8.bf16 %v4426_v19  ;;  %v4850_v42 = vunpack.c.l.s8.bf16 %v4426_v19 }
 0x739   : > { %5540 = vmatprep.subr.bf16.mxu1 %v4922_v14  ;;  %v4993_v14 = vunpack.c.l.s8.bf16 %v4497_v21  ;;  %v4986_v45 = vunpack.c.h.s8.bf16 %v4490_v5  ;;  %v4978_v57 = vunpack.c.l.s8.bf16 %v4490_v5  ;;  %v4275_v5 = vld [vmem:[%s9892_s2 + $0x10b0] sm:$0xff] }
 0x73b   : > { %5500 = vmatpush1.bf16.msra.mxu0 %v4793_v27  ;;  %v4425_v27 = vld [vmem:[%s9892_s2 + $0x1560] sm:$0xff] }
 0x73c   : > { %5541 = vmatpush1.bf16.msra.mxu1 %v4921_v0  ;;  %5501 = vmatprep.subr.bf16.mxu0 %v4786_v20  ;;  %v4489_v0 = vld [vmem:[%s9892_s2 + $0x1760] sm:$0xff]  ;;  %v4857_v20 = vunpack.c.h.s8.bf16 %v4425_v27 }
 0x73d   : > { %5542 = vmatprep.subr.bf16.mxu1 %v4914_v16  ;;  %v4985_v16 = vunpack.c.h.s8.bf16 %v4489_v0 }
 0x73f   : > { %5502 = vmatpush1.bf16.msra.mxu0 %v4785_v61  ;;  %v4418_v61 = vld [vmem:[%s9892_s2 + $0x1528] sm:$0xff] }
 0x740   : > { %5543 = vmatpush1.bf16.msra.mxu1 %v4913_v44  ;;  %5503 = vmatprep.subr.bf16.mxu0 %v4778_v30  ;;  %v4482_v44 = vld [vmem:[%s9892_s2 + $0x1728] sm:$0xff]  ;;  %v4849_v30 = vunpack.c.l.s8.bf16 %v4425_v27  ;;  %v4842_v24 = vunpack.c.h.s8.bf16 %v4418_v61  ;;  %v4834_v58 = vunpack.c.l.s8.bf16 %v4418_v61  ;;  %v4555_v27 = vunpack.c.h.s8.bf16 %v4275_v5  ;;  %v4268_v61 = vld [vmem:[%s9892_s2 + $0x1078] sm:$0xff] }
 0x741   : > { %5544 = vmatprep.subr.bf16.mxu1 %v4906_v54  ;;  %v4977_v54 = vunpack.c.l.s8.bf16 %v4489_v0  ;;  %v4970_v53 = vunpack.c.h.s8.bf16 %v4482_v44  ;;  %v4962_v38 = vunpack.c.l.s8.bf16 %v4482_v44  ;;  %v4332_v44 = vld [vmem:[%s9892_s2 + $0x1278] sm:$0xff] }
 0x743   : > { %5504 = vmatpush1.bf16.msra.mxu0 %v4777_v56  ;;  %v4417_v56 = vld [vmem:[%s9892_s2 + $0x1520] sm:$0xff] }
 0x744   : > { %5545 = vmatpush1.bf16.msra.mxu1 %v4905_v60  ;;  %5505 = vmatprep.subr.bf16.mxu0 %v4770_v49  ;;  %v4481_v60 = vld [vmem:[%s9892_s2 + $0x1720] sm:$0xff]  ;;  %v4841_v49 = vunpack.c.h.s8.bf16 %v4417_v56 }
 0x745   : > { %5546 = vmatprep.subr.bf16.mxu1 %v4898_v29  ;;  %v4969_v29 = vunpack.c.h.s8.bf16 %v4481_v60 }
 0x747   : > { %5506 = vmatpush1.bf16.msra.mxu0 %v4769_v12  ;;  %v4284_v12 = vld [vmem:[%s9892_s2 + $0x10f8] sm:$0xff] }
 0x748   : > { %5547 = vmatpush1.bf16.msra.mxu1 %v4897_v51  ;;  %5507 = vmatprep.subr.bf16.mxu0 %v4890_v4  ;;  %v4348_v51 = vld [vmem:[%s9892_s2 + $0x12f8] sm:$0xff]  ;;  %v4833_v4 = vunpack.c.l.s8.bf16 %v4417_v56  ;;  %v4572_v50 = vunpack.c.h.s8.bf16 %v4284_v12  ;;  %v4564_v31 = vunpack.c.l.s8.bf16 %v4284_v12 }
 0x749   : > { %5548 = vmatprep.subr.bf16.mxu1 %v5018_v46  ;;  %v4961_v46 = vunpack.c.l.s8.bf16 %v4481_v60  ;;  %v4700_v8 = vunpack.c.h.s8.bf16 %v4348_v51  ;;  %v4692_v41 = vunpack.c.l.s8.bf16 %v4348_v51 }
 0x74b   : > { %5508 = vmatpush2.bf16.msra.mxu0 %v4889_v6  ;;  %v4283_v6 = vld [vmem:[%s9892_s2 + $0x10f0] sm:$0xff] }
 0x74c   : > { %5549 = vmatpush2.bf16.msra.mxu1 %v5017_v55  ;;  %5509 = vmatprep.subr.bf16.mxu0 %v4882_v26  ;;  %v4347_v55 = vld [vmem:[%s9892_s2 + $0x12f0] sm:$0xff]  ;;  %v4571_v26 = vunpack.c.h.s8.bf16 %v4283_v6  ;;  %v4563_v21 = vunpack.c.l.s8.bf16 %v4283_v6 }
 0x74d   : > { %5550 = vmatprep.subr.bf16.mxu1 %v5010_v25  ;;  %v4699_v25 = vunpack.c.h.s8.bf16 %v4347_v55 }
 0x74f   : > { %5510 = vmatpush2.bf16.msra.mxu0 %v4881_v9  ;;  %v4276_v9 = vld [vmem:[%s9892_s2 + $0x10b8] sm:$0xff] }
 0x750   : > { %5551 = vmatpush2.bf16.msra.mxu1 %v5009_v18  ;;  %5511 = vmatprep.subr.bf16.mxu0 %v4874_v2  ;;  %v4340_v18 = vld [vmem:[%s9892_s2 + $0x12b8] sm:$0xff] }
 0x751   : > { %5552 = vmatprep.subr.bf16.mxu1 %v5002_v13  ;;  %v4684_v19 = vunpack.c.h.s8.bf16 %v4340_v18 }
 0x753   : > { %5512 = vmatpush2.bf16.msra.mxu0 %v4873_v52  ;;  %v4691_v52 = vunpack.c.l.s8.bf16 %v4347_v55 }
 0x754   : > { %5553 = vmatpush2.bf16.msra.mxu1 %v5001_v43  ;;  %5513 = vmatprep.subr.bf16.mxu0 %v4866_v15 }
 0x755   : > { %5554 = vmatprep.subr.bf16.mxu1 %v4994_v32  ;;  %v4556_v32 = vunpack.c.h.s8.bf16 %v4276_v9 }
 0x757   : > { %5514 = vmatpush2.bf16.msra.mxu0 %v4865_v3  ;;  %v4339_v3 = vld [vmem:[%s9892_s2 + $0x12b0] sm:$0xff] }
 0x758   : > { %5555 = vmatpush2.bf16.msra.mxu1 %v4993_v14  ;;  %5515 = vmatprep.subr.bf16.mxu0 %v4858_v37  ;;  %v4683_v0 = vunpack.c.h.s8.bf16 %v4339_v3 }
 0x759   : > { %5556 = vmatprep.subr.bf16.mxu1 %v4986_v45 }
 0x75b   : > { %5516 = vmatpush2.bf16.msra.mxu0 %v4857_v20 }
 0x75c   : > { %5557 = vmatpush2.bf16.msra.mxu1 %v4985_v16  ;;  %5517 = vmatprep.subr.bf16.mxu0 %v4850_v42  ;;  %v4548_v42 = vunpack.c.l.s8.bf16 %v4276_v9 }
 0x75d   : > { %5558 = vmatprep.subr.bf16.mxu1 %v4978_v57  ;;  %v4676_v57 = vunpack.c.l.s8.bf16 %v4340_v18 }
 0x75f   : > { %5518 = vmatpush2.bf16.msra.mxu0 %v4849_v30  ;;  %v4540_v30 = vunpack.c.h.s8.bf16 %v4268_v61 }
 0x760   : > { %5559 = vmatpush2.bf16.msra.mxu1 %v4977_v54  ;;  %5519 = vmatprep.subr.bf16.mxu0 %v4842_v24  ;;  %v4668_v54 = vunpack.c.h.s8.bf16 %v4332_v44  ;;  %v4267_v24 = vld [vmem:[%s9892_s2 + $0x1070] sm:$0xff] }
 0x761   : > { %5560 = vmatprep.subr.bf16.mxu1 %v4970_v53  ;;  %v4331_v53 = vld [vmem:[%s9892_s2 + $0x1270] sm:$0xff]  ;;  %v4539_v56 = vunpack.c.h.s8.bf16 %v4267_v24  ;;  %v4531_v12 = vunpack.c.l.s8.bf16 %v4267_v24 }
 0x762   : > { %v4667_v60 = vunpack.c.h.s8.bf16 %v4331_v53  ;;  %v4659_v51 = vunpack.c.l.s8.bf16 %v4331_v53 }
 0x763   : > { %5520 = vmatpush2.bf16.msra.mxu0 %v4841_v49  ;;  %v4532_v49 = vunpack.c.l.s8.bf16 %v4268_v61 }
 0x764   : > { %5561 = vmatpush2.bf16.msra.mxu1 %v4969_v29  ;;  %5521 = vmatprep.subr.bf16.mxu0 %v4834_v58  ;;  %v4660_v29 = vunpack.c.l.s8.bf16 %v4332_v44  ;;  %v4260_v58 = vld [vmem:[%s9892_s2 + $0x1038] sm:$0xff] }
 0x765   : > { %5562 = vmatprep.subr.bf16.mxu1 %v4962_v38  ;;  %v4324_v38 = vld [vmem:[%s9892_s2 + $0x1238] sm:$0xff] }
 0x767   : > { %5522 = vmatpush2.bf16.msra.mxu0 %v4833_v4  ;;  %v4524_v4 = vunpack.c.h.s8.bf16 %v4260_v58 }
 0x768   : > { %5563 = vmatpush2.bf16.msra.mxu1 %v4961_v46  ;;  %5573 = vmatprep.subr.bf16.mxu0 %v4572_v50  ;;  %v4652_v46 = vunpack.c.h.s8.bf16 %v4324_v38  ;;  %v4259_v50 = vld [vmem:[%s9892_s2 + $0x1030] sm:$0xff] }
 0x769   : > { %5614 = vmatprep.subr.bf16.mxu1 %v4700_v8  ;;  %v4323_v8 = vld [vmem:[%s9892_s2 + $0x1230] sm:$0xff]  ;;  %v4523_v6 = vunpack.c.h.s8.bf16 %v4259_v50  ;;  %v4515_v9 = vunpack.c.l.s8.bf16 %v4259_v50 }
 0x76a   : > { %v5279_v2 = vpop.f32.mrf.mxu0  ;;  %5524 = vmatmul.mubr.bf16.vlgmr.msra.gmra.mxu0 %v10871_v48  ;;  %v4651_v55 = vunpack.c.h.s8.bf16 %v4323_v8  ;;  %v4643_v18 = vunpack.c.l.s8.bf16 %v4323_v8 }
 0x76b   : > { %v5320_v13 = vpop.f32.mrf.mxu1  ;;  %5565 = vmatmul.mubr.bf16.vlgmr.msra.gmra.mxu1 %v10877_v62  ;;  %5574 = vmatpush1.bf16.msra.mxu0 %v4571_v26  ;;  %v4516_v26 = vunpack.c.l.s8.bf16 %v4260_v58 }
 0x76c   : > { %v11051_v35 = vadd.f32 %v5320_v13, %v5279_v2  ;;  %5615 = vmatpush1.bf16.msra.mxu1 %v4699_v25  ;;  %v5281_v43 = vpop.f32.mrf.mxu0  ;;  %5575 = vmatprep.subr.bf16.mxu0 %v4564_v31  ;;  %v4644_v25 = vunpack.c.l.s8.bf16 %v4324_v38  ;;  %v4316_v31 = vld [vmem:[%s9892_s2 + $0x11f8] sm:$0xff] }
 0x76d   : > { %v5322_v15 = vpop.f32.mrf.mxu1  ;;  %5616 = vmatprep.subr.bf16.mxu1 %v4692_v41  ;;  %5605 = vmatprep.mubr.bf16.mxu0 %v10759_v23  ;;  %v4547_v23 = vunpack.c.l.s8.bf16 %v4275_v5  ;;  %v4380_v41 = vld [vmem:[%s9892_s2 + $0x13f8] sm:$0xff]  ;;  %v4636_v2 = vunpack.c.h.s8.bf16 %v4316_v31 }
 0x76e   : > { %v11055_v14 = vadd.f32 %v5322_v15, %v5281_v43  ;;  %5646 = vmatprep.mubr.bf16.mxu1 %v10765_v33  ;;  %v5283_v37 = vpop.f32.mrf.mxu0  ;;  %v4675_v33 = vunpack.c.l.s8.bf16 %v4339_v3  ;;  %v4764_v13 = vunpack.c.h.s8.bf16 %v4380_v41  ;;  %v4308_v5 = vld [vmem:[%s9892_s2 + $0x11b8] sm:$0xff] }
 0x76f   : > { %v5324_v45 = vpop.f32.mrf.mxu1  ;;  %5576 = vmatpush1.bf16.msra.mxu0 %v4563_v21  ;;  %v4315_v21 = vld [vmem:[%s9892_s2 + $0x11f0] sm:$0xff]  ;;  %v4372_v3 = vld [vmem:[%s9892_s2 + $0x13b8] sm:$0xff]  ;;  %v4612_v61 = vunpack.c.l.s8.bf16 %v4308_v5 }
 0x770   : > { %5617 = vmatpush1.bf16.msra.mxu1 %v4691_v52  ;;  %v5284_v20 = vpop.f32.mrf.mxu0  ;;  %5577 = vmatprep.subr.bf16.mxu0 %v4556_v32  ;;  %v4379_v52 = vld [vmem:[%s9892_s2 + $0x13f0] sm:$0xff]  ;;  %v4635_v43 = vunpack.c.h.s8.bf16 %v4315_v21  ;;  %v4628_v32 = vunpack.c.l.s8.bf16 %v4316_v31  ;;  %v4627_v37 = vunpack.c.l.s8.bf16 %v4315_v21  ;;  %v4740_v44 = vunpack.c.l.s8.bf16 %v4372_v3 }
 0x771   : > { %v5325_v16 = vpop.f32.mrf.mxu1  ;;  %5618 = vmatprep.subr.bf16.mxu1 %v4684_v19  ;;  %v4763_v15 = vunpack.c.h.s8.bf16 %v4379_v52  ;;  %v4756_v19 = vunpack.c.l.s8.bf16 %v4380_v41  ;;  %v4755_v45 = vunpack.c.l.s8.bf16 %v4379_v52  ;;  %v4307_v20 = vld [vmem:[%s9892_s2 + $0x11b0] sm:$0xff] }
 0x772   : > { %v4371_v16 = vld [vmem:[%s9892_s2 + $0x13b0] sm:$0xff] }
 0x773   : > { %5578 = vmatpush1.bf16.msra.mxu0 %v4555_v27  ;;  %v4620_v27 = vunpack.c.h.s8.bf16 %v4308_v5 }
 0x774   : > { %5619 = vmatpush1.bf16.msra.mxu1 %v4683_v0  ;;  %5579 = vmatprep.subr.bf16.mxu0 %v4548_v42  ;;  %v4748_v0 = vunpack.c.h.s8.bf16 %v4372_v3  ;;  %v4619_v42 = vunpack.c.h.s8.bf16 %v4307_v20 }
 0x775   : > { %5620 = vmatprep.subr.bf16.mxu1 %v4676_v57  ;;  %v4747_v57 = vunpack.c.h.s8.bf16 %v4371_v16 }
 0x777   : > { %5580 = vmatpush1.bf16.msra.mxu0 %v4547_v23  ;;  %v4300_v23 = vld [vmem:[%s9892_s2 + $0x1178] sm:$0xff] }
 0x778   : > { %5621 = vmatpush1.bf16.msra.mxu1 %v4675_v33  ;;  %5581 = vmatprep.subr.bf16.mxu0 %v4540_v30  ;;  %v4364_v33 = vld [vmem:[%s9892_s2 + $0x1378] sm:$0xff]  ;;  %v4611_v30 = vunpack.c.l.s8.bf16 %v4307_v20  ;;  %v4604_v24 = vunpack.c.h.s8.bf16 %v4300_v23  ;;  %v4596_v58 = vunpack.c.l.s8.bf16 %v4300_v23 }
 0x779   : > { %5622 = vmatprep.subr.bf16.mxu1 %v4668_v54  ;;  %v4739_v54 = vunpack.c.l.s8.bf16 %v4371_v16  ;;  %v4732_v53 = vunpack.c.h.s8.bf16 %v4364_v33  ;;  %v4724_v38 = vunpack.c.l.s8.bf16 %v4364_v33  ;;  %v4403_v33 = vld [vmem:[%s9892_s2 + $0x14b0] sm:$0xff] }
 0x77b   : > { %5582 = vmatpush1.bf16.msra.mxu0 %v4539_v56  ;;  %v4299_v56 = vld [vmem:[%s9892_s2 + $0x1170] sm:$0xff] }
 0x77c   : > { %5623 = vmatpush1.bf16.msra.mxu1 %v4667_v60  ;;  %5583 = vmatprep.subr.bf16.mxu0 %v4532_v49  ;;  %v4363_v60 = vld [vmem:[%s9892_s2 + $0x1370] sm:$0xff]  ;;  %v4603_v49 = vunpack.c.h.s8.bf16 %v4299_v56 }
 0x77d   : > { %5624 = vmatprep.subr.bf16.mxu1 %v4660_v29  ;;  %v4731_v29 = vunpack.c.h.s8.bf16 %v4363_v60 }
 0x77f   : > { %5584 = vmatpush1.bf16.msra.mxu0 %v4531_v12  ;;  %v4292_v12 = vld [vmem:[%s9892_s2 + $0x1138] sm:$0xff] }
 0x780   : > { %5625 = vmatpush1.bf16.msra.mxu1 %v4659_v51  ;;  %5585 = vmatprep.subr.bf16.mxu0 %v4524_v4  ;;  %v4356_v51 = vld [vmem:[%s9892_s2 + $0x1338] sm:$0xff]  ;;  %v4595_v4 = vunpack.c.l.s8.bf16 %v4299_v56  ;;  %v4588_v50 = vunpack.c.h.s8.bf16 %v4292_v12  ;;  %v4580_v31 = vunpack.c.l.s8.bf16 %v4292_v12  ;;  %v4811_v56 = vunpack.c.h.s8.bf16 %v4403_v33 }
 0x781   : > { %5626 = vmatprep.subr.bf16.mxu1 %v4652_v46  ;;  %v4723_v46 = vunpack.c.l.s8.bf16 %v4363_v60  ;;  %v4716_v8 = vunpack.c.h.s8.bf16 %v4356_v51  ;;  %v4708_v41 = vunpack.c.l.s8.bf16 %v4356_v51 }
 0x783   : > { %5586 = vmatpush1.bf16.msra.mxu0 %v4523_v6  ;;  %v4291_v6 = vld [vmem:[%s9892_s2 + $0x1130] sm:$0xff] }
 0x784   : > { %5627 = vmatpush1.bf16.msra.mxu1 %v4651_v55  ;;  %5587 = vmatprep.subr.bf16.mxu0 %v4516_v26  ;;  %v4355_v55 = vld [vmem:[%s9892_s2 + $0x1330] sm:$0xff]  ;;  %v4587_v26 = vunpack.c.h.s8.bf16 %v4291_v6 }
 0x785   : > { %5628 = vmatprep.subr.bf16.mxu1 %v4644_v25  ;;  %v4715_v25 = vunpack.c.h.s8.bf16 %v4355_v55 }
 0x787   : > { %5588 = vmatpush1.bf16.msra.mxu0 %v4515_v9  ;;  %v4412_v9 = vld [vmem:[%s9892_s2 + $0x14f8] sm:$0xff] }
 0x788   : > { %5629 = vmatpush1.bf16.msra.mxu1 %v4643_v18  ;;  %5589 = vmatprep.subr.bf16.mxu0 %v4636_v2  ;;  %v4476_v18 = vld [vmem:[%s9892_s2 + $0x16f8] sm:$0xff]  ;;  %v4579_v2 = vunpack.c.l.s8.bf16 %v4291_v6  ;;  %v4828_v21 = vunpack.c.h.s8.bf16 %v4412_v9  ;;  %v4820_v5 = vunpack.c.l.s8.bf16 %v4412_v9 }
 0x789   : > { %5630 = vmatprep.subr.bf16.mxu1 %v4764_v13  ;;  %v4707_v13 = vunpack.c.l.s8.bf16 %v4355_v55  ;;  %v4956_v52 = vunpack.c.h.s8.bf16 %v4476_v18  ;;  %v4948_v3 = vunpack.c.l.s8.bf16 %v4476_v18 }
 0x78b   : > { %5590 = vmatpush2.bf16.msra.mxu0 %v4635_v43  ;;  %v4411_v43 = vld [vmem:[%s9892_s2 + $0x14f0] sm:$0xff] }
 0x78c   : > { %5631 = vmatpush2.bf16.msra.mxu1 %v4763_v15  ;;  %5591 = vmatprep.subr.bf16.mxu0 %v4628_v32  ;;  %v4475_v15 = vld [vmem:[%s9892_s2 + $0x16f0] sm:$0xff]  ;;  %v4827_v32 = vunpack.c.h.s8.bf16 %v4411_v43  ;;  %v4819_v16 = vunpack.c.l.s8.bf16 %v4411_v43 }
 0x78d   : > { %5632 = vmatprep.subr.bf16.mxu1 %v4756_v19  ;;  %v4955_v19 = vunpack.c.h.s8.bf16 %v4475_v15 }
 0x78f   : > { %5592 = vmatpush2.bf16.msra.mxu0 %v4627_v37  ;;  %v4404_v37 = vld [vmem:[%s9892_s2 + $0x14b8] sm:$0xff] }
 0x790   : > { %5633 = vmatpush2.bf16.msra.mxu1 %v4755_v45  ;;  %5593 = vmatprep.subr.bf16.mxu0 %v4620_v27  ;;  %v4468_v45 = vld [vmem:[%s9892_s2 + $0x16b8] sm:$0xff] }
 0x791   : > { %5634 = vmatprep.subr.bf16.mxu1 %v4748_v0  ;;  %v4940_v23 = vunpack.c.h.s8.bf16 %v4468_v45 }
 0x793   : > { %5594 = vmatpush2.bf16.msra.mxu0 %v4619_v42  ;;  %v4947_v42 = vunpack.c.l.s8.bf16 %v4475_v15 }
 0x794   : > { %5635 = vmatpush2.bf16.msra.mxu1 %v4747_v57  ;;  %5595 = vmatprep.subr.bf16.mxu0 %v4612_v61 }
 0x795   : > { %5636 = vmatprep.subr.bf16.mxu1 %v4740_v44  ;;  %v4812_v44 = vunpack.c.h.s8.bf16 %v4404_v37 }
 0x797   : > { %5596 = vmatpush2.bf16.msra.mxu0 %v4611_v30  ;;  %v4467_v30 = vld [vmem:[%s9892_s2 + $0x16b0] sm:$0xff] }
 0x798   : > { %5637 = vmatpush2.bf16.msra.mxu1 %v4739_v54  ;;  %5597 = vmatprep.subr.bf16.mxu0 %v4604_v24  ;;  %v4939_v60 = vunpack.c.h.s8.bf16 %v4467_v30  ;;  %v4931_v12 = vunpack.c.l.s8.bf16 %v4467_v30 }
 0x799   : > { %5638 = vmatprep.subr.bf16.mxu1 %v4732_v53 }
 0x79b   : > { %5598 = vmatpush2.bf16.msra.mxu0 %v4603_v49 }
 0x79c   : > { %5639 = vmatpush2.bf16.msra.mxu1 %v4731_v29  ;;  %5599 = vmatprep.subr.bf16.mxu0 %v4596_v58  ;;  %v4396_v58 = vld [vmem:[%s9892_s2 + $0x1478] sm:$0xff] }
 0x79d   : > { %5640 = vmatprep.subr.bf16.mxu1 %v4724_v38  ;;  %v4460_v38 = vld [vmem:[%s9892_s2 + $0x1678] sm:$0xff]  ;;  %v4796_v51 = vunpack.c.h.s8.bf16 %v4396_v58  ;;  %v4788_v6 = vunpack.c.l.s8.bf16 %v4396_v58 }
 0x79e   : > { %v4916_v55 = vunpack.c.l.s8.bf16 %v4460_v38 }
 0x79f   : > { %5600 = vmatpush2.bf16.msra.mxu0 %v4595_v4  ;;  %v4924_v4 = vunpack.c.h.s8.bf16 %v4460_v38 }
 0x7a0   : > { %5641 = vmatpush2.bf16.msra.mxu1 %v4723_v46  ;;  %5601 = vmatprep.subr.bf16.mxu0 %v4588_v50  ;;  %v4395_v46 = vld [vmem:[%s9892_s2 + $0x1470] sm:$0xff] }
 0x7a1   : > { %5642 = vmatprep.subr.bf16.mxu1 %v4716_v8  ;;  %v4459_v50 = vld [vmem:[%s9892_s2 + $0x1670] sm:$0xff]  ;;  %v4795_v8 = vunpack.c.h.s8.bf16 %v4395_v46 }
 0x7a3   : > { %5602 = vmatpush2.bf16.msra.mxu0 %v4587_v26  ;;  %v4388_v26 = vld [vmem:[%s9892_s2 + $0x1438] sm:$0xff] }
 0x7a4   : > { %5643 = vmatpush2.bf16.msra.mxu1 %v4715_v25  ;;  %5603 = vmatprep.subr.bf16.mxu0 %v4580_v31  ;;  %v4452_v25 = vld [vmem:[%s9892_s2 + $0x1638] sm:$0xff]  ;;  %v4787_v31 = vunpack.c.l.s8.bf16 %v4395_v46  ;;  %v4780_v9 = vunpack.c.h.s8.bf16 %v4388_v26  ;;  %v4772_v43 = vunpack.c.l.s8.bf16 %v4388_v26 }
 0x7a5   : > { %5644 = vmatprep.subr.bf16.mxu1 %v4708_v41  ;;  %v4915_v41 = vunpack.c.l.s8.bf16 %v4459_v50  ;;  %v4908_v18 = vunpack.c.h.s8.bf16 %v4452_v25  ;;  %v4900_v15 = vunpack.c.l.s8.bf16 %v4452_v25 }
 0x7a7   : > { %5604 = vmatpush2.bf16.msra.mxu0 %v4579_v2  ;;  %v4387_v2 = vld [vmem:[%s9892_s2 + $0x1430] sm:$0xff] }
 0x7a8   : > { %5645 = vmatpush2.bf16.msra.mxu1 %v4707_v13  ;;  %5655 = vmatprep.subr.bf16.mxu0 %v4828_v21  ;;  %v4451_v13 = vld [vmem:[%s9892_s2 + $0x1630] sm:$0xff]  ;;  %v4779_v21 = vunpack.c.h.s8.bf16 %v4387_v2 }
 0x7a9   : > { %5696 = vmatprep.subr.bf16.mxu1 %v4956_v52  ;;  %v4907_v52 = vunpack.c.h.s8.bf16 %v4451_v13 }
 0x7aa   : > { %v5361_v27 = vpop.f32.mrf.mxu0  ;;  %5606 = vmatmul.mubr.bf16.vlgmr.msra.gmra.mxu0 %v10814_v1 }
 0x7ab   : > { %v5402_v0 = vpop.f32.mrf.mxu1  ;;  %5647 = vmatmul.mubr.bf16.vlgmr.msra.gmra.mxu1 %v10823_v34  ;;  %v5362_v20 = vadd.f32 %v5361_v27, %v11051_v35  ;;  %5656 = vmatpush1.bf16.msra.mxu0 %v4827_v32  ;;  %v4444_v32 = vld [vmem:[%s9892_s2 + $0x15f8] sm:$0xff]  ;;  %v4443_v27 = vld [vmem:[%s9892_s2 + $0x15f0] sm:$0xff] }
 0x7ac   : > { %5697 = vmatpush1.bf16.msra.mxu1 %v4955_v19  ;;  %v5363_v57 = vpop.f32.mrf.mxu0  ;;  %5657 = vmatprep.subr.bf16.mxu0 %v4820_v5  ;;  %v4508_v19 = vld [vmem:[%s9892_s2 + $0x17f8] sm:$0xff]  ;;  %v4771_v5 = vunpack.c.l.s8.bf16 %v4387_v2 }
 0x7ad   : > { %v5404_v61 = vpop.f32.mrf.mxu1  ;;  %5698 = vmatprep.subr.bf16.mxu1 %v4948_v3  ;;  %v5403_v54 = vadd.f32 %v5402_v0, %v5362_v20  ;;  %v5364_v24 = vadd.f32 %v5363_v57, %v11055_v14  ;;  %5687 = vmatprep.mubr.bf16.mxu0 %v10819_v39  ;;  %v4804_v39 = vunpack.c.l.s8.bf16 %v4404_v37  ;;  %v4899_v3 = vunpack.c.l.s8.bf16 %v4451_v13  ;;  %v4507_v0 = vld [vmem:[%s9892_s2 + $0x17f0] sm:$0xff] }
 0x7ae   : > { %5728 = vmatprep.mubr.bf16.mxu1 %v10829_v22  ;;  %v5365_v1 = vpop.f32.mrf.mxu0  ;;  %v4932_v22 = vunpack.c.l.s8.bf16 %v4468_v45  ;;  %v4892_v37 = vunpack.c.h.s8.bf16 %v4444_v32  ;;  %v5020_v45 = vunpack.c.h.s8.bf16 %v4508_v19  ;;  %v4891_v20 = vunpack.c.h.s8.bf16 %v4443_v27 }
 0x7af   : > { %v5406_v34 = vpop.f32.mrf.mxu1  ;;  %v11098_v35 = vadd.f32 %v5403_v54, %v10715_v40  ;;  %v5405_v53 = vadd.f32 %v5404_v61, %v5364_v24  ;;  %5658 = vmatpush1.bf16.msra.mxu0 %v4819_v16  ;;  %v4803_v40 = vunpack.c.l.s8.bf16 %v4403_v33  ;;  %v5019_v16 = vunpack.c.h.s8.bf16 %v4507_v0  ;;  %v4436_v61 = vld [vmem:[%s9892_s2 + $0x15b8] sm:$0xff]  ;;  %v4435_v24 = vld [vmem:[%s9892_s2 + $0x15b0] sm:$0xff] }
 0x7b0   : > { %5699 = vmatpush1.bf16.msra.mxu1 %v4947_v42  ;;  %v5366_v49 = vpop.f32.mrf.mxu0  ;;  %5659 = vmatprep.subr.bf16.mxu0 %v4812_v44  ;;  %v4884_v42 = vunpack.c.l.s8.bf16 %v4444_v32  ;;  %v5012_v57 = vunpack.c.l.s8.bf16 %v4508_v19  ;;  %v4500_v44 = vld [vmem:[%s9892_s2 + $0x17b8] sm:$0xff]  ;;  %v5011_v33 = vunpack.c.l.s8.bf16 %v4507_v0  ;;  %v4876_v30 = vunpack.c.h.s8.bf16 %v4436_v61  ;;  %v4499_v1 = vld [vmem:[%s9892_s2 + $0x17b0] sm:$0xff] }
 0x7b1   : > { %v5407_v29 = vpop.f32.mrf.mxu1  ;;  %5700 = vmatprep.subr.bf16.mxu1 %v4940_v23  ;;  %v11101_v14 = vadd.f32 %v5405_v53, %v10720_v47  ;;  %v4923_v47 = vunpack.c.h.s8.bf16 %v4459_v50  ;;  %v4883_v23 = vunpack.c.l.s8.bf16 %v4443_v27  ;;  %v5004_v54 = vunpack.c.h.s8.bf16 %v4500_v44  ;;  %v4428_v49 = vld [vmem:[%s9892_s2 + $0x1578] sm:$0xff]  ;;  %v5833_v27 = vld [vmem:[%s9892_s2 + $0x1ac0] sm:$0xff] }
 0x7b2   : > { %v4875_v34 = vunpack.c.h.s8.bf16 %v4435_v24  ;;  %v5003_v53 = vunpack.c.h.s8.bf16 %v4499_v1  ;;  %v4492_v29 = vld [vmem:[%s9892_s2 + $0x1778] sm:$0xff]  ;;  %v4860_v58 = vunpack.c.h.s8.bf16 %v4428_v49  ;;  %v4852_v46 = vunpack.c.l.s8.bf16 %v4428_v49  ;;  %v5761_v49 = vld [vmem:[%s9892_s2 + $0x1880] sm:$0xff] }
 0x7b3   : > { %5660 = vmatpush1.bf16.msra.mxu0 %v4811_v56  ;;  %v4868_v56 = vunpack.c.l.s8.bf16 %v4436_v61  ;;  %v4988_v38 = vunpack.c.h.s8.bf16 %v4492_v29  ;;  %v4980_v50 = vunpack.c.l.s8.bf16 %v4492_v29  ;;  %v5762_v61 = vld [vmem:[%s9892_s2 + $0x1888] sm:$0xff]  ;;  %v5825_v29 = vld [vmem:[%s9892_s2 + $0x1a80] sm:$0xff] }
 0x7b4   : > { %5701 = vmatpush1.bf16.msra.mxu1 %v4939_v60  ;;  %5661 = vmatprep.subr.bf16.mxu0 %v4804_v39  ;;  %v4996_v60 = vunpack.c.l.s8.bf16 %v4500_v44  ;;  %v4867_v39 = vunpack.c.l.s8.bf16 %v4435_v24  ;;  %v5826_v44 = vld [vmem:[%s9892_s2 + $0x1a88] sm:$0xff] }
 0x7b5   : > { %5702 = vmatprep.subr.bf16.mxu1 %v4932_v22  ;;  %v4995_v22 = vunpack.c.l.s8.bf16 %v4499_v1  ;;  %v6177_v1 = vunpack.c.l.s8.bf16 %v5833_v27 }
 0x7b7   : > { %5662 = vmatpush1.bf16.msra.mxu0 %v4803_v40  ;;  %v4427_v40 = vld [vmem:[%s9892_s2 + $0x1570] sm:$0xff] }
 0x7b8   : > { %5703 = vmatpush1.bf16.msra.mxu1 %v4931_v12  ;;  %5663 = vmatprep.subr.bf16.mxu0 %v4796_v51  ;;  %v4491_v12 = vld [vmem:[%s9892_s2 + $0x1770] sm:$0xff]  ;;  %v4859_v51 = vunpack.c.h.s8.bf16 %v4427_v40 }
 0x7b9   : > { %5704 = vmatprep.subr.bf16.mxu1 %v4924_v4  ;;  %v4987_v4 = vunpack.c.h.s8.bf16 %v4491_v12  ;;  %v4979_v26 = vunpack.c.l.s8.bf16 %v4491_v12  ;;  %v6034_v12 = vunpack.c.l.s8.bf16 %v5762_v61 }
 0x7bb   : > { %5664 = vmatpush1.bf16.msra.mxu0 %v4795_v8  ;;  %v4420_v8 = vld [vmem:[%s9892_s2 + $0x1538] sm:$0xff] }
 0x7bc   : > { %5705 = vmatpush1.bf16.msra.mxu1 %v4923_v47  ;;  %5665 = vmatprep.subr.bf16.mxu0 %v4788_v6  ;;  %v4484_v47 = vld [vmem:[%s9892_s2 + $0x1738] sm:$0xff]  ;;  %v4844_v25 = vunpack.c.h.s8.bf16 %v4420_v8 }
 0x7bd   : > { %5706 = vmatprep.subr.bf16.mxu1 %v4916_v55  ;;  %v11125_v6 = vld [vmem:[#allocation2 + $0x18] sm:$0xff]  ;;  %v4851_v55 = vunpack.c.l.s8.bf16 %v4427_v40 }
 0x7bf   : > { %5666 = vmatpush1.bf16.msra.mxu0 %v4787_v31  ;;  %v4972_v31 = vunpack.c.h.s8.bf16 %v4484_v47 }
 0x7c0   : > { %5707 = vmatpush1.bf16.msra.mxu1 %v4915_v41  ;;  %5667 = vmatprep.subr.bf16.mxu0 %v4780_v9  ;;  %v4419_v41 = vld [vmem:[%s9892_s2 + $0x1530] sm:$0xff] }
 0x7c1   : > { %5708 = vmatprep.subr.bf16.mxu1 %v4908_v18  ;;  %v4483_v9 = vld [vmem:[%s9892_s2 + $0x1730] sm:$0xff]  ;;  %v11131_v18 = vrot.slane %v11125_v6, %v10034_v11  ;;  %v4843_v2 = vunpack.c.h.s8.bf16 %v4419_v41  ;;  %v4835_v19 = vunpack.c.l.s8.bf16 %v4419_v41 }
 0x7c2   : > { %v4971_v13 = vunpack.c.h.s8.bf16 %v4483_v9 }
 0x7c3   : > { %5668 = vmatpush1.bf16.msra.mxu0 %v4779_v21  ;;  %v4836_v21 = vunpack.c.l.s8.bf16 %v4420_v8  ;;  %v6531_v32 = vcombine.high %v11131_v18, %v11131_v18  ;;  %v6161_v8 = vunpack.c.l.s8.bf16 %v5825_v29 }
 0x7c4   : > { %5709 = vmatpush1.bf16.msra.mxu1 %v4907_v52  ;;  %5669 = vmatprep.subr.bf16.mxu0 %v4772_v43  ;;  %v4964_v52 = vunpack.c.l.s8.bf16 %v4484_v47  ;;  %v5770_v43 = vld [vmem:[%s9892_s2 + $0x18c8] sm:$0xff] }
 0x7c5   : > { %5710 = vmatprep.subr.bf16.mxu1 %v4900_v15  ;;  %v5834_v15 = vld [vmem:[%s9892_s2 + $0x1ac8] sm:$0xff]  ;;  %v11140_v0 = vrot.slane %v6531_v32, %v10034_v11 }
 0x7c7   : > { %5670 = vmatpush1.bf16.msra.mxu0 %v4771_v5  ;;  %v4963_v5 = vunpack.c.l.s8.bf16 %v4483_v9 }
 0x7c8   : > { %5711 = vmatpush1.bf16.msra.mxu1 %v4899_v3  ;;  %5671 = vmatprep.subr.bf16.mxu0 %v4892_v37  ;;  %v6058_v3 = vunpack.c.h.s8.bf16 %v5770_v43  ;;  %v6186_v37 = vunpack.c.h.s8.bf16 %v5834_v15 }
 0x7c9   : > { %5712 = vmatprep.subr.bf16.mxu1 %v5020_v45  ;;  %v5769_v45 = vld [vmem:[%s9892_s2 + $0x18c0] sm:$0xff] }
 0x7ca   : > { %v6049_v24 = vunpack.c.l.s8.bf16 %v5769_v45 }
 0x7cb   : > { %5672 = vmatpush2.bf16.msra.mxu0 %v4891_v20  ;;  %v6057_v20 = vunpack.c.h.s8.bf16 %v5769_v45 }
 0x7cc   : > { %5713 = vmatpush2.bf16.msra.mxu1 %v5019_v16  ;;  %5673 = vmatprep.subr.bf16.mxu0 %v4884_v42  ;;  %v6185_v16 = vunpack.c.h.s8.bf16 %v5833_v27  ;;  %v6050_v42 = vunpack.c.l.s8.bf16 %v5770_v43 }
 0x7cd   : > { %5714 = vmatprep.subr.bf16.mxu1 %v5012_v57  ;;  %v6178_v57 = vunpack.c.l.s8.bf16 %v5834_v15 }
 0x7cf   : > { %5674 = vmatpush2.bf16.msra.mxu0 %v4883_v23  ;;  %v11146_v23 = vcombine.high %v11140_v0, %v11140_v0 }
 0x7d0   : > { %5715 = vmatpush2.bf16.msra.mxu1 %v5011_v33  ;;  %5675 = vmatprep.subr.bf16.mxu0 %v4876_v30 }
 0x7d1   : > { %5716 = vmatprep.subr.bf16.mxu1 %v5004_v54 }
 0x7d3   : > { %5676 = vmatpush2.bf16.msra.mxu0 %v4875_v34 }
 0x7d4   : > { %5717 = vmatpush2.bf16.msra.mxu1 %v5003_v53  ;;  %5677 = vmatprep.subr.bf16.mxu0 %v4868_v56  ;;  %v6042_v56 = vunpack.c.h.s8.bf16 %v5762_v61 }
 0x7d5   : > { %5718 = vmatprep.subr.bf16.mxu1 %v4996_v60  ;;  %v6170_v60 = vunpack.c.h.s8.bf16 %v5826_v44 }
 0x7d7   : > { %5678 = vmatpush2.bf16.msra.mxu0 %v4867_v39 }
 0x7d8   : > { %5719 = vmatpush2.bf16.msra.mxu1 %v4995_v22  ;;  %5679 = vmatprep.subr.bf16.mxu0 %v4860_v58  ;;  %v6041_v22 = vunpack.c.h.s8.bf16 %v5761_v49  ;;  %v6169_v58 = vunpack.c.h.s8.bf16 %v5825_v29 }
 0x7d9   : > { %5720 = vmatprep.subr.bf16.mxu1 %v4988_v38 }
 0x7db   : > { %5680 = vmatpush2.bf16.msra.mxu0 %v4859_v51  ;;  %v6162_v51 = vunpack.c.l.s8.bf16 %v5826_v44 }
 0x7dc   : > { %5721 = vmatpush2.bf16.msra.mxu1 %v4987_v4  ;;  %5681 = vmatprep.subr.bf16.mxu0 %v4852_v46  ;;  %v5754_v4 = vld [vmem:[%s9892_s2 + $0x1848] sm:$0xff] }
 0x7dd   : > { %5722 = vmatprep.subr.bf16.mxu1 %v4980_v50  ;;  %v5818_v46 = vld [vmem:[%s9892_s2 + $0x1a48] sm:$0xff]  ;;  %v6033_v50 = vunpack.c.l.s8.bf16 %v5761_v49  ;;  %v6026_v47 = vunpack.c.h.s8.bf16 %v5754_v4  ;;  %v6018_v9 = vunpack.c.l.s8.bf16 %v5754_v4 }
 0x7de   : > { %v5786_v4 = vld [vmem:[%s9892_s2 + $0x1948] sm:$0xff] }
 0x7df   : > { %5682 = vmatpush2.bf16.msra.mxu0 %v4851_v55  ;;  %v6154_v55 = vunpack.c.h.s8.bf16 %v5818_v46 }
 0x7e0   : > { %5723 = vmatpush2.bf16.msra.mxu1 %v4979_v26  ;;  %5683 = vmatprep.subr.bf16.mxu0 %v4844_v25  ;;  %v5753_v26 = vld [vmem:[%s9892_s2 + $0x1840] sm:$0xff] }
 0x7e1   : > { %5724 = vmatprep.subr.bf16.mxu1 %v4972_v31  ;;  %v5817_v25 = vld [vmem:[%s9892_s2 + $0x1a40] sm:$0xff]  ;;  %v6025_v31 = vunpack.c.h.s8.bf16 %v5753_v26 }
 0x7e2   : > { %v6153_v41 = vunpack.c.h.s8.bf16 %v5817_v25  ;;  %v6145_v43 = vunpack.c.l.s8.bf16 %v5817_v25  ;;  %v5849_v25 = vld [vmem:[%s9892_s2 + $0x1b40] sm:$0xff] }
 0x7e3   : > { %5684 = vmatpush2.bf16.msra.mxu0 %v4843_v2  ;;  %v6146_v2 = vunpack.c.l.s8.bf16 %v5818_v46  ;;  %v5850_v46 = vld [vmem:[%s9892_s2 + $0x1b48] sm:$0xff] }
 0x7e4   : > { %5725 = vmatpush2.bf16.msra.mxu1 %v4971_v13  ;;  %5685 = vmatprep.subr.bf16.mxu0 %v4836_v21  ;;  %v5746_v13 = vld [vmem:[%s9892_s2 + $0x1808] sm:$0xff] }
 0x7e5   : > { %5726 = vmatprep.subr.bf16.mxu1 %v4964_v52  ;;  %v5810_v21 = vld [vmem:[%s9892_s2 + $0x1a08] sm:$0xff]  ;;  %v6017_v52 = vunpack.c.l.s8.bf16 %v5753_v26  ;;  %v6010_v15 = vunpack.c.h.s8.bf16 %v5746_v13  ;;  %v6002_v45 = vunpack.c.l.s8.bf16 %v5746_v13  ;;  %v5785_v26 = vld [vmem:[%s9892_s2 + $0x1940] sm:$0xff] }
 0x7e6   : > { %v6138_v32 = vunpack.c.h.s8.bf16 %v5810_v21  ;;  %v6130_v27 = vunpack.c.l.s8.bf16 %v5810_v21  ;;  %v5778_v13 = vld [vmem:[%s9892_s2 + $0x1908] sm:$0xff] }
 0x7e7   : > { %5686 = vmatpush2.bf16.msra.mxu0 %v4835_v19  ;;  %v5745_v19 = vld [vmem:[%s9892_s2 + $0x1800] sm:$0xff]  ;;  %v5842_v21 = vld [vmem:[%s9892_s2 + $0x1b08] sm:$0xff] }
 0x7e8   : > { %5727 = vmatpush2.bf16.msra.mxu1 %v4963_v5  ;;  %6573 = vmatprep.subr.bf16.mxu0 %v6058_v3  ;;  %v5809_v5 = vld [vmem:[%s9892_s2 + $0x1a00] sm:$0xff]  ;;  %v6009_v3 = vunpack.c.h.s8.bf16 %v5745_v19 }
 0x7e9   : > { %6614 = vmatprep.subr.bf16.mxu1 %v6186_v37  ;;  %v6137_v37 = vunpack.c.h.s8.bf16 %v5809_v5 }
 0x7ea   : > { %v5443_v33 = vpop.f32.mrf.mxu0  ;;  %5688 = vmatmul.mubr.bf16.vlgmr.msra.gmra.mxu0 %v10871_v48 }
 0x7eb   : > { %v5484_v30 = vpop.f32.mrf.mxu1  ;;  %5729 = vmatmul.mubr.bf16.vlgmr.msra.gmra.mxu1 %v10877_v62  ;;  %6574 = vmatpush1.bf16.msra.mxu0 %v6057_v20  ;;  %v5802_v20 = vld [vmem:[%s9892_s2 + $0x19c8] sm:$0xff] }
 0x7ec   : > { %v11150_v54 = vadd.f32 %v5484_v30, %v5443_v33  ;;  %6615 = vmatpush1.bf16.msra.mxu1 %v6185_v16  ;;  %v5445_v34 = vpop.f32.mrf.mxu0  ;;  %6575 = vmatprep.subr.bf16.mxu0 %v6050_v42  ;;  %v5866_v16 = vld [vmem:[%s9892_s2 + $0x1bc8] sm:$0xff]  ;;  %v6001_v42 = vunpack.c.l.s8.bf16 %v5745_v19  ;;  %v6122_v61 = vunpack.c.h.s8.bf16 %v5802_v20  ;;  %v5801_v33 = vld [vmem:[%s9892_s2 + $0x19c0] sm:$0xff]  ;;  %v6202_v19 = vunpack.c.h.s8.bf16 %v5842_v21 }
 0x7ed   : > { %v5486_v53 = vpop.f32.mrf.mxu1  ;;  %6616 = vmatprep.subr.bf16.mxu1 %v6178_v57  ;;  %6605 = vmatprep.mubr.bf16.mxu0 %v11140_v0  ;;  %v6129_v57 = vunpack.c.l.s8.bf16 %v5809_v5  ;;  %v6250_v44 = vunpack.c.h.s8.bf16 %v5866_v16  ;;  %v5865_v30 = vld [vmem:[%s9892_s2 + $0x1bc0] sm:$0xff]  ;;  %v6113_v49 = vunpack.c.l.s8.bf16 %v5801_v33 }
 0x7ee   : > { %v11154_v39 = vadd.f32 %v5486_v53, %v5445_v34  ;;  %6646 = vmatprep.mubr.bf16.mxu1 %v11146_v23  ;;  %v5447_v48 = vpop.f32.mrf.mxu0  ;;  %v6114_v34 = vunpack.c.l.s8.bf16 %v5802_v20  ;;  %v6242_v53 = vunpack.c.l.s8.bf16 %v5866_v16  ;;  %v6241_v29 = vunpack.c.l.s8.bf16 %v5865_v30  ;;  %v5777_v5 = vld [vmem:[%s9892_s2 + $0x1900] sm:$0xff]  ;;  %v5898_v16 = vld [vmem:[%s9892_s2 + $0x1cc8] sm:$0xff] }
 0x7ef   : > { %v5488_v62 = vpop.f32.mrf.mxu1  ;;  %6576 = vmatpush1.bf16.msra.mxu0 %v6049_v24  ;;  %v6121_v24 = vunpack.c.h.s8.bf16 %v5801_v33  ;;  %v6194_v20 = vunpack.c.l.s8.bf16 %v5842_v21 }
 0x7f0   : > { %6617 = vmatpush1.bf16.msra.mxu1 %v6177_v1  ;;  %v5448_v38 = vpop.f32.mrf.mxu0  ;;  %6577 = vmatprep.subr.bf16.mxu0 %v6042_v56  ;;  %v6249_v1 = vunpack.c.h.s8.bf16 %v5865_v30  ;;  %v5794_v56 = vld [vmem:[%s9892_s2 + $0x1988] sm:$0xff]  ;;  %v6314_v30 = vunpack.c.h.s8.bf16 %v5898_v16 }
 0x7f1   : > { %v5489_v40 = vpop.f32.mrf.mxu1  ;;  %6618 = vmatprep.subr.bf16.mxu1 %v6170_v60  ;;  %v5858_v60 = vld [vmem:[%s9892_s2 + $0x1b88] sm:$0xff]  ;;  %v6106_v48 = vunpack.c.h.s8.bf16 %v5794_v56 }
 0x7f2   : > { %v6234_v62 = vunpack.c.h.s8.bf16 %v5858_v60 }
 0x7f3   : > { %6578 = vmatpush1.bf16.msra.mxu0 %v6041_v22  ;;  %v5793_v22 = vld [vmem:[%s9892_s2 + $0x1980] sm:$0xff] }
 0x7f4   : > { %6619 = vmatpush1.bf16.msra.mxu1 %v6169_v58  ;;  %6579 = vmatprep.subr.bf16.mxu0 %v6034_v12  ;;  %v5857_v58 = vld [vmem:[%s9892_s2 + $0x1b80] sm:$0xff]  ;;  %v6105_v38 = vunpack.c.h.s8.bf16 %v5793_v22  ;;  %v6098_v12 = vunpack.c.l.s8.bf16 %v5794_v56 }
 0x7f5   : > { %6620 = vmatprep.subr.bf16.mxu1 %v6162_v51  ;;  %v6233_v40 = vunpack.c.h.s8.bf16 %v5857_v58  ;;  %v6226_v51 = vunpack.c.l.s8.bf16 %v5858_v60 }
 0x7f7   : > { %6580 = vmatpush1.bf16.msra.mxu0 %v6033_v50  ;;  %v6097_v50 = vunpack.c.l.s8.bf16 %v5793_v22 }
 0x7f8   : > { %6621 = vmatpush1.bf16.msra.mxu1 %v6161_v8  ;;  %6581 = vmatprep.subr.bf16.mxu0 %v6026_v47  ;;  %v6225_v8 = vunpack.c.l.s8.bf16 %v5857_v58  ;;  %v6090_v47 = vunpack.c.h.s8.bf16 %v5786_v4 }
 0x7f9   : > { %6622 = vmatprep.subr.bf16.mxu1 %v6154_v55  ;;  %v6218_v55 = vunpack.c.h.s8.bf16 %v5850_v46 }
 0x7fb   : > { %6582 = vmatpush1.bf16.msra.mxu0 %v6025_v31  ;;  %v6089_v31 = vunpack.c.h.s8.bf16 %v5785_v26 }
 0x7fc   : > { %6623 = vmatpush1.bf16.msra.mxu1 %v6153_v41  ;;  %6583 = vmatprep.subr.bf16.mxu0 %v6018_v9  ;;  %v6217_v41 = vunpack.c.h.s8.bf16 %v5849_v25  ;;  %v6082_v9 = vunpack.c.l.s8.bf16 %v5786_v4 }
 0x7fd   : > { %6624 = vmatprep.subr.bf16.mxu1 %v6146_v2  ;;  %v6210_v2 = vunpack.c.l.s8.bf16 %v5850_v46 }
 0x7ff   : > { %6584 = vmatpush1.bf16.msra.mxu0 %v6017_v52  ;;  %v6516_v52 = vcombine.high %v11125_v6, %v11125_v6  ;;  %v6066_v6 = vunpack.c.l.s8.bf16 %v5778_v13 }
 0x800   : > { %6625 = vmatpush1.bf16.msra.mxu1 %v6145_v43  ;;  %6585 = vmatprep.subr.bf16.mxu0 %v6010_v15  ;;  %v6081_v43 = vunpack.c.l.s8.bf16 %v5785_v26  ;;  %v6209_v15 = vunpack.c.l.s8.bf16 %v5849_v25 }
 0x801   : > { %6626 = vmatprep.subr.bf16.mxu1 %v6138_v32  ;;  %v6074_v32 = vunpack.c.h.s8.bf16 %v5778_v13 }
 0x803   : > { %6586 = vmatpush1.bf16.msra.mxu0 %v6009_v3  ;;  %v5841_v3 = vld [vmem:[%s9892_s2 + $0x1b00] sm:$0xff] }
 0x804   : > { %6627 = vmatpush1.bf16.msra.mxu1 %v6137_v37  ;;  %6587 = vmatprep.subr.bf16.mxu0 %v6002_v45  ;;  %v11185_v37 = vrot.slane %v6516_v52, %v10034_v11  ;;  %v6073_v45 = vunpack.c.h.s8.bf16 %v5777_v5  ;;  %v6193_v33 = vunpack.c.l.s8.bf16 %v5841_v3 }
 0x805   : > { %6628 = vmatprep.subr.bf16.mxu1 %v6130_v27  ;;  %v6201_v27 = vunpack.c.h.s8.bf16 %v5841_v3 }
 0x807   : > { %6588 = vmatpush1.bf16.msra.mxu0 %v6001_v42  ;;  %v5962_v42 = vld [vmem:[%s9892_s2 + $0x1ec8] sm:$0xff] }
 0x808   : > { %6629 = vmatpush1.bf16.msra.mxu1 %v6129_v57  ;;  %6589 = vmatprep.subr.bf16.mxu0 %v6122_v61  ;;  %v6532_v57 = vcombine.high %v11185_v37, %v11185_v37  ;;  %v11193_v61 = vrot.slane %v11131_v18, %v10034_v11 }
 0x809   : > { %6630 = vmatprep.subr.bf16.mxu1 %v6250_v44  ;;  %v6065_v44 = vunpack.c.l.s8.bf16 %v5777_v5 }
 0x80a   : > { %v11202_v56 = vcombine.high %v11193_v61, %v11193_v61 }
 0x80b   : > { %6590 = vmatpush2.bf16.msra.mxu0 %v6121_v24  ;;  %v6442_v24 = vunpack.c.h.s8.bf16 %v5962_v42 }
 0x80c   : > { %6631 = vmatpush2.bf16.msra.mxu1 %v6249_v1  ;;  %6591 = vmatprep.subr.bf16.mxu0 %v6114_v34  ;;  %v5897_v1 = vld [vmem:[%s9892_s2 + $0x1cc0] sm:$0xff] }
 0x80d   : > { %6632 = vmatprep.subr.bf16.mxu1 %v6242_v53  ;;  %v5961_v34 = vld [vmem:[%s9892_s2 + $0x1ec0] sm:$0xff]  ;;  %v11198_v53 = vrot.slane %v6532_v57, %v10034_v11  ;;  %v6313_v18 = vunpack.c.h.s8.bf16 %v5897_v1  ;;  %v5874_v57 = vld [vmem:[%s9892_s2 + $0x1c08] sm:$0xff] }
 0x80e   : > { %v6441_v60 = vunpack.c.h.s8.bf16 %v5961_v34 }
 0x80f   : > { %6592 = vmatpush2.bf16.msra.mxu0 %v6113_v49  ;;  %v6306_v49 = vunpack.c.l.s8.bf16 %v5898_v16  ;;  %v11208_v22 = vcombine.high %v11198_v53, %v11198_v53 }
 0x810   : > { %6633 = vmatpush2.bf16.msra.mxu1 %v6241_v29  ;;  %6593 = vmatprep.subr.bf16.mxu0 %v6106_v48  ;;  %v6434_v29 = vunpack.c.l.s8.bf16 %v5962_v42  ;;  %v5890_v48 = vld [vmem:[%s9892_s2 + $0x1c88] sm:$0xff] }
 0x811   : > { %6634 = vmatprep.subr.bf16.mxu1 %v6234_v62  ;;  %v5954_v62 = vld [vmem:[%s9892_s2 + $0x1e88] sm:$0xff] }
 0x813   : > { %6594 = vmatpush2.bf16.msra.mxu0 %v6105_v38 }
 0x814   : > { %6635 = vmatpush2.bf16.msra.mxu1 %v6233_v40  ;;  %6595 = vmatprep.subr.bf16.mxu0 %v6098_v12  ;;  %v6305_v12 = vunpack.c.l.s8.bf16 %v5897_v1 }
 0x815   : > { %6636 = vmatprep.subr.bf16.mxu1 %v6226_v51  ;;  %v6433_v51 = vunpack.c.l.s8.bf16 %v5961_v34  ;;  %v5873_v34 = vld [vmem:[%s9892_s2 + $0x1c00] sm:$0xff] }
 0x817   : > { %6596 = vmatpush2.bf16.msra.mxu0 %v6097_v50  ;;  %v6298_v50 = vunpack.c.h.s8.bf16 %v5890_v48 }
 0x818   : > { %6637 = vmatpush2.bf16.msra.mxu1 %v6225_v8  ;;  %6597 = vmatprep.subr.bf16.mxu0 %v6090_v47  ;;  %v6426_v8 = vunpack.c.h.s8.bf16 %v5954_v62  ;;  %v5889_v47 = vld [vmem:[%s9892_s2 + $0x1c80] sm:$0xff] }
 0x819   : > { %6638 = vmatprep.subr.bf16.mxu1 %v6218_v55  ;;  %v5953_v55 = vld [vmem:[%s9892_s2 + $0x1e80] sm:$0xff] }
 0x81a   : > { %v6425_v13 = vunpack.c.h.s8.bf16 %v5953_v55  ;;  %v6417_v5 = vunpack.c.l.s8.bf16 %v5953_v55 }
 0x81b   : > { %6598 = vmatpush2.bf16.msra.mxu0 %v6089_v31 }
 0x81c   : > { %6639 = vmatpush2.bf16.msra.mxu1 %v6217_v41  ;;  %6599 = vmatprep.subr.bf16.mxu0 %v6082_v9 }
 0x81d   : > { %6640 = vmatprep.subr.bf16.mxu1 %v6210_v2  ;;  %v6297_v2 = vunpack.c.h.s8.bf16 %v5889_v47 }
 0x81f   : > { %6600 = vmatpush2.bf16.msra.mxu0 %v6081_v43  ;;  %v6418_v43 = vunpack.c.l.s8.bf16 %v5954_v62  ;;  %v5930_v62 = vld [vmem:[%s9892_s2 + $0x1dc8] sm:$0xff] }
 0x820   : > { %6641 = vmatpush2.bf16.msra.mxu1 %v6209_v15  ;;  %6601 = vmatprep.subr.bf16.mxu0 %v6074_v32  ;;  %v5882_v32 = vld [vmem:[%s9892_s2 + $0x1c48] sm:$0xff] }
 0x821   : > { %6642 = vmatprep.subr.bf16.mxu1 %v6202_v19  ;;  %v5946_v19 = vld [vmem:[%s9892_s2 + $0x1e48] sm:$0xff]  ;;  %v6282_v3 = vunpack.c.h.s8.bf16 %v5882_v32  ;;  %v6274_v16 = vunpack.c.l.s8.bf16 %v5882_v32 }
 0x822   : > { %v6402_v42 = vunpack.c.l.s8.bf16 %v5946_v19 }
 0x823   : > { %6602 = vmatpush2.bf16.msra.mxu0 %v6073_v45  ;;  %v6410_v45 = vunpack.c.h.s8.bf16 %v5946_v19  ;;  %v5914_v19 = vld [vmem:[%s9892_s2 + $0x1d48] sm:$0xff] }
 0x824   : > { %6643 = vmatpush2.bf16.msra.mxu1 %v6201_v27  ;;  %6603 = vmatprep.subr.bf16.mxu0 %v6066_v6  ;;  %v5881_v27 = vld [vmem:[%s9892_s2 + $0x1c40] sm:$0xff] }
 0x825   : > { %6644 = vmatprep.subr.bf16.mxu1 %v6194_v20  ;;  %v5945_v6 = vld [vmem:[%s9892_s2 + $0x1e40] sm:$0xff]  ;;  %v6281_v20 = vunpack.c.h.s8.bf16 %v5881_v27 }
 0x827   : > { %6604 = vmatpush2.bf16.msra.mxu0 %v6065_v44  ;;  %v5938_v44 = vld [vmem:[%s9892_s2 + $0x1e08] sm:$0xff] }
 0x828   : > { %6645 = vmatpush2.bf16.msra.mxu1 %v6193_v33  ;;  %6655 = vmatprep.subr.bf16.mxu0 %v6314_v30  ;;  %v6273_v33 = vunpack.c.l.s8.bf16 %v5881_v27  ;;  %v6401_v30 = vunpack.c.l.s8.bf16 %v5945_v6  ;;  %v6394_v1 = vunpack.c.h.s8.bf16 %v5938_v44 }
 0x829   : > { %6696 = vmatprep.subr.bf16.mxu1 %v6442_v24  ;;  %v6266_v24 = vunpack.c.h.s8.bf16 %v5874_v57 }
 0x82a   : > { %v5525_v58 = vpop.f32.mrf.mxu0  ;;  %6606 = vmatmul.mubr.bf16.vlgmr.msra.gmra.mxu0 %v11193_v61 }
 0x82b   : > { %v5566_v38 = vpop.f32.mrf.mxu1  ;;  %6647 = vmatmul.mubr.bf16.vlgmr.msra.gmra.mxu1 %v11202_v56  ;;  %v5526_v40 = vadd.f32 %v5525_v58, %v11150_v54  ;;  %6656 = vmatpush1.bf16.msra.mxu0 %v6313_v18  ;;  %v5937_v18 = vld [vmem:[%s9892_s2 + $0x1e00] sm:$0xff]  ;;  %v5994_v58 = vld [vmem:[%s9892_s2 + $0x1fc8] sm:$0xff] }
 0x82c   : > { %6697 = vmatpush1.bf16.msra.mxu1 %v6441_v60  ;;  %v5527_v4 = vpop.f32.mrf.mxu0  ;;  %6657 = vmatprep.subr.bf16.mxu0 %v6306_v49  ;;  %v6265_v60 = vunpack.c.h.s8.bf16 %v5873_v34  ;;  %v6393_v49 = vunpack.c.h.s8.bf16 %v5937_v18  ;;  %v6498_v55 = vunpack.c.l.s8.bf16 %v5994_v58 }
 0x82d   : > { %v5568_v46 = vpop.f32.mrf.mxu1  ;;  %6698 = vmatprep.subr.bf16.mxu1 %v6434_v29  ;;  %v5567_v26 = vadd.f32 %v5566_v38, %v5526_v40  ;;  %v5528_v25 = vadd.f32 %v5527_v4, %v11154_v39  ;;  %6687 = vmatprep.mubr.bf16.mxu0 %v11198_v53  ;;  %v6290_v39 = vunpack.c.l.s8.bf16 %v5890_v48  ;;  %v6258_v29 = vunpack.c.l.s8.bf16 %v5874_v57  ;;  %v5929_v4 = vld [vmem:[%s9892_s2 + $0x1dc0] sm:$0xff] }
 0x82e   : > { %6728 = vmatprep.mubr.bf16.mxu1 %v11208_v22  ;;  %v5529_v54 = vpop.f32.mrf.mxu0  ;;  %v6386_v48 = vunpack.c.l.s8.bf16 %v5938_v44  ;;  %v6257_v38 = vunpack.c.l.s8.bf16 %v5873_v34  ;;  %v6385_v40 = vunpack.c.l.s8.bf16 %v5937_v18  ;;  %v5906_v44 = vld [vmem:[%s9892_s2 + $0x1d08] sm:$0xff]  ;;  %v5905_v18 = vld [vmem:[%s9892_s2 + $0x1d00] sm:$0xff] }
 0x82f   : > { %v5570_v31 = vpop.f32.mrf.mxu1  ;;  %v11219_v41 = vadd.f32 %v5567_v26, %v10836_v59  ;;  %v5569_v9 = vadd.f32 %v5568_v46, %v5528_v25  ;;  %6658 = vmatpush1.bf16.msra.mxu0 %v6305_v12  ;;  %v6289_v59 = vunpack.c.l.s8.bf16 %v5889_v47  ;;  %v6378_v12 = vunpack.c.h.s8.bf16 %v5930_v62  ;;  %v5993_v46 = vld [vmem:[%s9892_s2 + $0x1fc0] sm:$0xff]  ;;  %v5922_v26 = vld [vmem:[%s9892_s2 + $0x1d88] sm:$0xff] }
 0x830   : > { %6699 = vmatpush1.bf16.msra.mxu1 %v6433_v51  ;;  %v5530_v21 = vpop.f32.mrf.mxu0  ;;  %6659 = vmatprep.subr.bf16.mxu0 %v6298_v50  ;;  %v6506_v51 = vunpack.c.h.s8.bf16 %v5994_v58  ;;  %v6377_v50 = vunpack.c.h.s8.bf16 %v5929_v4  ;;  %v6370_v47 = vunpack.c.l.s8.bf16 %v5930_v62  ;;  %v5986_v25 = vld [vmem:[%s9892_s2 + $0x1f88] sm:$0xff]  ;;  %v6369_v54 = vunpack.c.l.s8.bf16 %v5929_v4  ;;  %v5772_v58 = vld [vmem:[%s9892_s2 + $0x18d8] sm:$0xff] }
 0x831   : > { %v5571_v52 = vpop.f32.mrf.mxu1  ;;  %6700 = vmatprep.subr.bf16.mxu1 %v6426_v8  ;;  %v11222_v15 = vadd.f32 %v5569_v9, %v10841_v10  ;;  %v6409_v10 = vunpack.c.h.s8.bf16 %v5945_v6  ;;  %v6505_v8 = vunpack.c.h.s8.bf16 %v5993_v46  ;;  %v6497_v31 = vunpack.c.l.s8.bf16 %v5993_v46  ;;  %v5985_v21 = vld [vmem:[%s9892_s2 + $0x1f80] sm:$0xff] }
 0x832   : > { %v6362_v9 = vunpack.c.h.s8.bf16 %v5922_v26  ;;  %v6482_v32 = vunpack.c.l.s8.bf16 %v5986_v25  ;;  %v5913_v6 = vld [vmem:[%s9892_s2 + $0x1d40] sm:$0xff]  ;;  %v6060_v4 = vunpack.c.h.s8.bf16 %v5772_v58 }
 0x833   : > { %6660 = vmatpush1.bf16.msra.mxu0 %v6297_v2  ;;  %v6490_v2 = vunpack.c.h.s8.bf16 %v5986_v25 }
 0x834   : > { %6701 = vmatpush1.bf16.msra.mxu1 %v6425_v13  ;;  %6661 = vmatprep.subr.bf16.mxu0 %v6290_v39  ;;  %v5921_v13 = vld [vmem:[%s9892_s2 + $0x1d80] sm:$0xff]  ;;  %v6489_v39 = vunpack.c.h.s8.bf16 %v5985_v21 }
 0x835   : > { %6702 = vmatprep.subr.bf16.mxu1 %v6418_v43  ;;  %v6361_v52 = vunpack.c.h.s8.bf16 %v5921_v13  ;;  %v6354_v43 = vunpack.c.l.s8.bf16 %v5922_v26  ;;  %v6052_v26 = vunpack.c.l.s8.bf16 %v5772_v58  ;;  %v5748_v58 = vld [vmem:[%s9892_s2 + $0x1818] sm:$0xff] }
 0x837   : > { %6662 = vmatpush1.bf16.msra.mxu0 %v6289_v59  ;;  %v5978_v59 = vld [vmem:[%s9892_s2 + $0x1f48] sm:$0xff] }
 0x838   : > { %6703 = vmatpush1.bf16.msra.mxu1 %v6417_v5  ;;  %6663 = vmatprep.subr.bf16.mxu0 %v6282_v3  ;;  %v6353_v5 = vunpack.c.l.s8.bf16 %v5921_v13  ;;  %v6481_v3 = vunpack.c.l.s8.bf16 %v5985_v21  ;;  %v6474_v27 = vunpack.c.h.s8.bf16 %v5978_v59  ;;  %v6466_v57 = vunpack.c.l.s8.bf16 %v5978_v59  ;;  %v5763_v59 = vld [vmem:[%s9892_s2 + $0x1890] sm:$0xff] }
 0x839   : > { %6704 = vmatprep.subr.bf16.mxu1 %v6410_v45  ;;  %v6346_v45 = vunpack.c.h.s8.bf16 %v5914_v19 }
 0x83b   : > { %6664 = vmatpush1.bf16.msra.mxu0 %v6281_v20  ;;  %v5977_v20 = vld [vmem:[%s9892_s2 + $0x1f40] sm:$0xff] }
 0x83c   : > { %6705 = vmatpush1.bf16.msra.mxu1 %v6409_v10  ;;  %6665 = vmatprep.subr.bf16.mxu0 %v6274_v16  ;;  %v6345_v10 = vunpack.c.h.s8.bf16 %v5913_v6  ;;  %v6473_v16 = vunpack.c.h.s8.bf16 %v5977_v20 }
 0x83d   : > { %6706 = vmatprep.subr.bf16.mxu1 %v6402_v42  ;;  %v6338_v42 = vunpack.c.l.s8.bf16 %v5914_v19 }
 0x83f   : > { %6666 = vmatpush1.bf16.msra.mxu0 %v6273_v33  ;;  %v5970_v33 = vld [vmem:[%s9892_s2 + $0x1f08] sm:$0xff] }
 0x840   : > { %6707 = vmatpush1.bf16.msra.mxu1 %v6401_v30  ;;  %6667 = vmatprep.subr.bf16.mxu0 %v6266_v24  ;;  %v6337_v30 = vunpack.c.l.s8.bf16 %v5913_v6  ;;  %v6465_v24 = vunpack.c.l.s8.bf16 %v5977_v20  ;;  %v6458_v34 = vunpack.c.h.s8.bf16 %v5970_v33  ;;  %v6450_v62 = vunpack.c.l.s8.bf16 %v5970_v33  ;;  %v5820_v33 = vld [vmem:[%s9892_s2 + $0x1a58] sm:$0xff] }
 0x841   : > { %6708 = vmatprep.subr.bf16.mxu1 %v6394_v1  ;;  %v6330_v1 = vunpack.c.h.s8.bf16 %v5906_v44  ;;  %v6043_v6 = vunpack.c.h.s8.bf16 %v5763_v59 }
 0x843   : > { %6668 = vmatpush1.bf16.msra.mxu0 %v6265_v60  ;;  %v5969_v60 = vld [vmem:[%s9892_s2 + $0x1f00] sm:$0xff] }
 0x844   : > { %6709 = vmatpush1.bf16.msra.mxu1 %v6393_v49  ;;  %6669 = vmatprep.subr.bf16.mxu0 %v6258_v29  ;;  %v6329_v49 = vunpack.c.h.s8.bf16 %v5905_v18  ;;  %v6457_v29 = vunpack.c.h.s8.bf16 %v5969_v60 }
 0x845   : > { %6710 = vmatprep.subr.bf16.mxu1 %v6386_v48  ;;  %v6322_v48 = vunpack.c.l.s8.bf16 %v5906_v44  ;;  %v5756_v44 = vld [vmem:[%s9892_s2 + $0x1858] sm:$0xff] }
 0x847   : > { %6670 = vmatpush1.bf16.msra.mxu0 %v6257_v38  ;;  %v5836_v38 = vld [vmem:[%s9892_s2 + $0x1ad8] sm:$0xff] }
 0x848   : > { %6711 = vmatpush1.bf16.msra.mxu1 %v6385_v40  ;;  %6671 = vmatprep.subr.bf16.mxu0 %v6378_v12  ;;  %v11252_v40 = vrot.slane %v11185_v37, %v10034_v11  ;;  %v6321_v12 = vunpack.c.l.s8.bf16 %v5905_v18  ;;  %v6188_v46 = vunpack.c.h.s8.bf16 %v5836_v38  ;;  %v6180_v25 = vunpack.c.l.s8.bf16 %v5836_v38  ;;  %v5755_v18 = vld [vmem:[%s9892_s2 + $0x1850] sm:$0xff]  ;;  %v5812_v38 = vld [vmem:[%s9892_s2 + $0x1a18] sm:$0xff] }
 0x849   : > { %6712 = vmatprep.subr.bf16.mxu1 %v6506_v51  ;;  %v6449_v51 = vunpack.c.l.s8.bf16 %v5969_v60  ;;  %v5819_v60 = vld [vmem:[%s9892_s2 + $0x1a50] sm:$0xff] }
 0x84b   : > { %6672 = vmatpush2.bf16.msra.mxu0 %v6377_v50  ;;  %v5771_v50 = vld [vmem:[%s9892_s2 + $0x18d0] sm:$0xff] }
 0x84c   : > { %6713 = vmatpush2.bf16.msra.mxu1 %v6505_v8  ;;  %6673 = vmatprep.subr.bf16.mxu0 %v6370_v47  ;;  %v5835_v8 = vld [vmem:[%s9892_s2 + $0x1ad0] sm:$0xff]  ;;  %v11258_v47 = vcombine.high %v11252_v40, %v11252_v40  ;;  %v6059_v37 = vunpack.c.h.s8.bf16 %v5771_v50  ;;  %v6051_v21 = vunpack.c.l.s8.bf16 %v5771_v50 }
 0x84d   : > { %6714 = vmatprep.subr.bf16.mxu1 %v6498_v55  ;;  %v6187_v55 = vunpack.c.h.s8.bf16 %v5835_v8  ;;  %v5747_v50 = vld [vmem:[%s9892_s2 + $0x1810] sm:$0xff] }
 0x84f   : > { %6674 = vmatpush2.bf16.msra.mxu0 %v6369_v54  ;;  %v5764_v54 = vld [vmem:[%s9892_s2 + $0x1898] sm:$0xff] }
 0x850   : > { %6715 = vmatpush2.bf16.msra.mxu1 %v6497_v31  ;;  %6675 = vmatprep.subr.bf16.mxu0 %v6362_v9  ;;  %v5828_v31 = vld [vmem:[%s9892_s2 + $0x1a98] sm:$0xff] }
 0x851   : > { %6716 = vmatprep.subr.bf16.mxu1 %v6490_v2  ;;  %v6172_v19 = vunpack.c.h.s8.bf16 %v5828_v31 }
 0x853   : > { %6676 = vmatpush2.bf16.msra.mxu0 %v6361_v52  ;;  %v6179_v52 = vunpack.c.l.s8.bf16 %v5835_v8  ;;  %v5811_v8 = vld [vmem:[%s9892_s2 + $0x1a10] sm:$0xff] }
 0x854   : > { %6717 = vmatpush2.bf16.msra.mxu1 %v6489_v39  ;;  %6677 = vmatprep.subr.bf16.mxu0 %v6354_v43 }
 0x855   : > { %6718 = vmatprep.subr.bf16.mxu1 %v6482_v32  ;;  %v6044_v32 = vunpack.c.h.s8.bf16 %v5764_v54 }
 0x857   : > { %6678 = vmatpush2.bf16.msra.mxu0 %v6353_v5  ;;  %v5827_v5 = vld [vmem:[%s9892_s2 + $0x1a90] sm:$0xff] }
 0x858   : > { %6719 = vmatpush2.bf16.msra.mxu1 %v6481_v3  ;;  %6679 = vmatprep.subr.bf16.mxu0 %v6346_v45  ;;  %v6171_v20 = vunpack.c.h.s8.bf16 %v5827_v5 }
 0x859   : > { %6720 = vmatprep.subr.bf16.mxu1 %v6474_v27 }
 0x85b   : > { %6680 = vmatpush2.bf16.msra.mxu0 %v6345_v10 }
 0x85c   : > { %6721 = vmatpush2.bf16.msra.mxu1 %v6473_v16  ;;  %6681 = vmatprep.subr.bf16.mxu0 %v6338_v42  ;;  %v6036_v42 = vunpack.c.l.s8.bf16 %v5764_v54  ;;  %v5804_v54 = vld [vmem:[%s9892_s2 + $0x19d8] sm:$0xff] }
 0x85d   : > { %6722 = vmatprep.subr.bf16.mxu1 %v6466_v57  ;;  %v6164_v57 = vunpack.c.l.s8.bf16 %v5828_v31  ;;  %v5868_v31 = vld [vmem:[%s9892_s2 + $0x1bd8] sm:$0xff] }
 0x85f   : > { %6682 = vmatpush2.bf16.msra.mxu0 %v6337_v30  ;;  %v6035_v30 = vunpack.c.l.s8.bf16 %v5763_v59  ;;  %v6116_v59 = vunpack.c.l.s8.bf16 %v5804_v54 }
 0x860   : > { %6723 = vmatpush2.bf16.msra.mxu1 %v6465_v24  ;;  %6683 = vmatprep.subr.bf16.mxu0 %v6330_v1  ;;  %v6163_v24 = vunpack.c.l.s8.bf16 %v5827_v5  ;;  %v6028_v1 = vunpack.c.h.s8.bf16 %v5756_v44  ;;  %v6244_v5 = vunpack.c.l.s8.bf16 %v5868_v31 }
 0x861   : > { %6724 = vmatprep.subr.bf16.mxu1 %v6458_v34  ;;  %v6156_v34 = vunpack.c.h.s8.bf16 %v5820_v33 }
 0x863   : > { %6684 = vmatpush2.bf16.msra.mxu0 %v6329_v49  ;;  %v6027_v49 = vunpack.c.h.s8.bf16 %v5755_v18 }
 0x864   : > { %6725 = vmatpush2.bf16.msra.mxu1 %v6457_v29  ;;  %6685 = vmatprep.subr.bf16.mxu0 %v6322_v48  ;;  %v6155_v29 = vunpack.c.h.s8.bf16 %v5819_v60  ;;  %v6020_v48 = vunpack.c.l.s8.bf16 %v5756_v44 }
 0x865   : > { %6726 = vmatprep.subr.bf16.mxu1 %v6450_v62  ;;  %v6148_v62 = vunpack.c.l.s8.bf16 %v5820_v33 }
 0x867   : > { %6686 = vmatpush2.bf16.msra.mxu0 %v6321_v12  ;;  %v6019_v12 = vunpack.c.l.s8.bf16 %v5755_v18 }
 0x868   : > { %6727 = vmatpush2.bf16.msra.mxu1 %v6449_v51  ;;  %6737 = vmatprep.subr.bf16.mxu0 %v6060_v4  ;;  %v6147_v51 = vunpack.c.l.s8.bf16 %v5819_v60  ;;  %v6012_v4 = vunpack.c.h.s8.bf16 %v5748_v58 }
 0x869   : > { %6778 = vmatprep.subr.bf16.mxu1 %v6188_v46  ;;  %v6140_v46 = vunpack.c.h.s8.bf16 %v5812_v38 }
 0x86a   : > { %v5607_v9 = vpop.f32.mrf.mxu0  ;;  %6688 = vmatmul.mubr.bf16.vlgmr.msra.gmra.mxu0 %v11252_v40 }
 0x86b   : > { %v5648_v2 = vpop.f32.mrf.mxu1  ;;  %6729 = vmatmul.mubr.bf16.vlgmr.msra.gmra.mxu1 %v11258_v47  ;;  %6738 = vmatpush1.bf16.msra.mxu0 %v6059_v37  ;;  %v6011_v37 = vunpack.c.h.s8.bf16 %v5747_v50 }
 0x86c   : > { %v11264_v13 = vadd.f32 %v5648_v2, %v5607_v9  ;;  %6779 = vmatpush1.bf16.msra.mxu1 %v6187_v55  ;;  %v5609_v39 = vpop.f32.mrf.mxu0  ;;  %6739 = vmatprep.subr.bf16.mxu0 %v6052_v26  ;;  %v6139_v55 = vunpack.c.h.s8.bf16 %v5811_v8  ;;  %v6004_v26 = vunpack.c.l.s8.bf16 %v5748_v58  ;;  %v6003_v9 = vunpack.c.l.s8.bf16 %v5747_v50 }
 0x86d   : > { %v5650_v43 = vpop.f32.mrf.mxu1  ;;  %6780 = vmatprep.subr.bf16.mxu1 %v6180_v25  ;;  %6769 = vmatprep.mubr.bf16.mxu0 %v11140_v0  ;;  %v6132_v25 = vunpack.c.l.s8.bf16 %v5812_v38  ;;  %v6131_v2 = vunpack.c.l.s8.bf16 %v5811_v8 }
 0x86e   : > { %v11268_v3 = vadd.f32 %v5650_v43, %v5609_v39  ;;  %6810 = vmatprep.mubr.bf16.mxu1 %v11146_v23  ;;  %v5611_v45 = vpop.f32.mrf.mxu0  ;;  %v5803_v39 = vld [vmem:[%s9892_s2 + $0x19d0] sm:$0xff] }
 0x86f   : > { %v5652_v27 = vpop.f32.mrf.mxu1  ;;  %6740 = vmatpush1.bf16.msra.mxu0 %v6051_v21  ;;  %v6124_v21 = vunpack.c.h.s8.bf16 %v5804_v54  ;;  %v5867_v43 = vld [vmem:[%s9892_s2 + $0x1bd0] sm:$0xff]  ;;  %v5796_v45 = vld [vmem:[%s9892_s2 + $0x1998] sm:$0xff] }
 0x870   : > { %6781 = vmatpush1.bf16.msra.mxu1 %v6179_v52  ;;  %v5612_v10 = vpop.f32.mrf.mxu0  ;;  %6741 = vmatprep.subr.bf16.mxu0 %v6044_v32  ;;  %v6252_v52 = vunpack.c.h.s8.bf16 %v5868_v31  ;;  %v6123_v32 = vunpack.c.h.s8.bf16 %v5803_v39  ;;  %v5860_v27 = vld [vmem:[%s9892_s2 + $0x1b98] sm:$0xff] }
 0x871   : > { %v5653_v16 = vpop.f32.mrf.mxu1  ;;  %6782 = vmatprep.subr.bf16.mxu1 %v6172_v19  ;;  %v6251_v19 = vunpack.c.h.s8.bf16 %v5867_v43  ;;  %v6108_v10 = vunpack.c.h.s8.bf16 %v5796_v45 }
 0x872   : > { %v6236_v16 = vunpack.c.h.s8.bf16 %v5860_v27 }
 0x873   : > { %6742 = vmatpush1.bf16.msra.mxu0 %v6043_v6  ;;  %v6115_v6 = vunpack.c.l.s8.bf16 %v5803_v39 }
 0x874   : > { %6783 = vmatpush1.bf16.msra.mxu1 %v6171_v20  ;;  %6743 = vmatprep.subr.bf16.mxu0 %v6036_v42  ;;  %v6243_v20 = vunpack.c.l.s8.bf16 %v5867_v43  ;;  %v5795_v42 = vld [vmem:[%s9892_s2 + $0x1990] sm:$0xff] }
 0x875   : > { %6784 = vmatprep.subr.bf16.mxu1 %v6164_v57  ;;  %v5859_v57 = vld [vmem:[%s9892_s2 + $0x1b90] sm:$0xff]  ;;  %v6107_v44 = vunpack.c.h.s8.bf16 %v5795_v42  ;;  %v6099_v18 = vunpack.c.l.s8.bf16 %v5795_v42 }
 0x876   : > { %v6235_v33 = vunpack.c.h.s8.bf16 %v5859_v57  ;;  %v6227_v60 = vunpack.c.l.s8.bf16 %v5859_v57 }
 0x877   : > { %6744 = vmatpush1.bf16.msra.mxu0 %v6035_v30  ;;  %v6100_v30 = vunpack.c.l.s8.bf16 %v5796_v45 }
 0x878   : > { %6785 = vmatpush1.bf16.msra.mxu1 %v6163_v24  ;;  %6745 = vmatprep.subr.bf16.mxu0 %v6028_v1  ;;  %v6228_v24 = vunpack.c.l.s8.bf16 %v5860_v27  ;;  %v5788_v1 = vld [vmem:[%s9892_s2 + $0x1958] sm:$0xff] }
 0x879   : > { %6786 = vmatprep.subr.bf16.mxu1 %v6156_v34  ;;  %v5852_v34 = vld [vmem:[%s9892_s2 + $0x1b58] sm:$0xff] }
 0x87b   : > { %6746 = vmatpush1.bf16.msra.mxu0 %v6027_v49  ;;  %v6092_v49 = vunpack.c.h.s8.bf16 %v5788_v1 }
 0x87c   : > { %6787 = vmatpush1.bf16.msra.mxu1 %v6155_v29  ;;  %6747 = vmatprep.subr.bf16.mxu0 %v6020_v48  ;;  %v6220_v29 = vunpack.c.h.s8.bf16 %v5852_v34  ;;  %v5787_v48 = vld [vmem:[%s9892_s2 + $0x1950] sm:$0xff] }
 0x87d   : > { %6788 = vmatprep.subr.bf16.mxu1 %v6148_v62  ;;  %v5851_v62 = vld [vmem:[%s9892_s2 + $0x1b50] sm:$0xff]  ;;  %v6091_v58 = vunpack.c.h.s8.bf16 %v5787_v48  ;;  %v6083_v50 = vunpack.c.l.s8.bf16 %v5787_v48 }
 0x87e   : > { %v6219_v38 = vunpack.c.h.s8.bf16 %v5851_v62  ;;  %v6211_v8 = vunpack.c.l.s8.bf16 %v5851_v62 }
 0x87f   : > { %6748 = vmatpush1.bf16.msra.mxu0 %v6019_v12  ;;  %v6084_v12 = vunpack.c.l.s8.bf16 %v5788_v1 }
 0x880   : > { %6789 = vmatpush1.bf16.msra.mxu1 %v6147_v51  ;;  %6749 = vmatprep.subr.bf16.mxu0 %v6012_v4  ;;  %v6212_v51 = vunpack.c.l.s8.bf16 %v5852_v34  ;;  %v5780_v4 = vld [vmem:[%s9892_s2 + $0x1918] sm:$0xff] }
 0x881   : > { %6790 = vmatprep.subr.bf16.mxu1 %v6140_v46  ;;  %v5844_v46 = vld [vmem:[%s9892_s2 + $0x1b18] sm:$0xff] }
 0x883   : > { %6750 = vmatpush1.bf16.msra.mxu0 %v6011_v37  ;;  %v6076_v37 = vunpack.c.h.s8.bf16 %v5780_v4 }
 0x884   : > { %6791 = vmatpush1.bf16.msra.mxu1 %v6139_v55  ;;  %6751 = vmatprep.subr.bf16.mxu0 %v6004_v26  ;;  %v6204_v55 = vunpack.c.h.s8.bf16 %v5844_v46  ;;  %v5779_v26 = vld [vmem:[%s9892_s2 + $0x1910] sm:$0xff] }
 0x885   : > { %6792 = vmatprep.subr.bf16.mxu1 %v6132_v25  ;;  %v5843_v25 = vld [vmem:[%s9892_s2 + $0x1b10] sm:$0xff]  ;;  %v6075_v54 = vunpack.c.h.s8.bf16 %v5779_v26  ;;  %v6067_v39 = vunpack.c.l.s8.bf16 %v5779_v26 }
 0x886   : > { %v6203_v31 = vunpack.c.h.s8.bf16 %v5843_v25  ;;  %v6195_v43 = vunpack.c.l.s8.bf16 %v5843_v25 }
 0x887   : > { %6752 = vmatpush1.bf16.msra.mxu0 %v6003_v9  ;;  %v6068_v9 = vunpack.c.l.s8.bf16 %v5780_v4 }
 0x888   : > { %6793 = vmatpush1.bf16.msra.mxu1 %v6131_v2  ;;  %6753 = vmatprep.subr.bf16.mxu0 %v6124_v21  ;;  %v6196_v2 = vunpack.c.l.s8.bf16 %v5844_v46  ;;  %v5900_v21 = vld [vmem:[%s9892_s2 + $0x1cd8] sm:$0xff] }
 0x889   : > { %6794 = vmatprep.subr.bf16.mxu1 %v6252_v52  ;;  %v5964_v52 = vld [vmem:[%s9892_s2 + $0x1ed8] sm:$0xff] }
 0x88b   : > { %6754 = vmatpush2.bf16.msra.mxu0 %v6123_v32  ;;  %v6316_v32 = vunpack.c.h.s8.bf16 %v5900_v21 }
 0x88c   : > { %6795 = vmatpush2.bf16.msra.mxu1 %v6251_v19  ;;  %6755 = vmatprep.subr.bf16.mxu0 %v6116_v59  ;;  %v6444_v19 = vunpack.c.h.s8.bf16 %v5964_v52  ;;  %v5899_v59 = vld [vmem:[%s9892_s2 + $0x1cd0] sm:$0xff] }
 0x88d   : > { %6796 = vmatprep.subr.bf16.mxu1 %v6244_v5  ;;  %v5963_v5 = vld [vmem:[%s9892_s2 + $0x1ed0] sm:$0xff]  ;;  %v6315_v45 = vunpack.c.h.s8.bf16 %v5899_v59 }
 0x88e   : > { %v6443_v27 = vunpack.c.h.s8.bf16 %v5963_v5 }
 0x88f   : > { %6756 = vmatpush2.bf16.msra.mxu0 %v6115_v6  ;;  %v6308_v6 = vunpack.c.l.s8.bf16 %v5900_v21 }
 0x890   : > { %6797 = vmatpush2.bf16.msra.mxu1 %v6243_v20  ;;  %6757 = vmatprep.subr.bf16.mxu0 %v6108_v10  ;;  %v6436_v20 = vunpack.c.l.s8.bf16 %v5964_v52  ;;  %v5892_v10 = vld [vmem:[%s9892_s2 + $0x1c98] sm:$0xff] }
 0x891   : > { %6798 = vmatprep.subr.bf16.mxu1 %v6236_v16  ;;  %v5956_v16 = vld [vmem:[%s9892_s2 + $0x1e98] sm:$0xff]  ;;  %v6300_v34 = vunpack.c.h.s8.bf16 %v5892_v10 }
 0x893   : > { %6758 = vmatpush2.bf16.msra.mxu0 %v6107_v44 }
 0x894   : > { %6799 = vmatpush2.bf16.msra.mxu1 %v6235_v33  ;;  %6759 = vmatprep.subr.bf16.mxu0 %v6100_v30  ;;  %v6307_v33 = vunpack.c.l.s8.bf16 %v5899_v59  ;;  %v6435_v30 = vunpack.c.l.s8.bf16 %v5963_v5 }
 0x895   : > { %6800 = vmatprep.subr.bf16.mxu1 %v6228_v24 }
 0x897   : > { %6760 = vmatpush2.bf16.msra.mxu0 %v6099_v18  ;;  %v6428_v18 = vunpack.c.h.s8.bf16 %v5956_v16 }
 0x898   : > { %6801 = vmatpush2.bf16.msra.mxu1 %v6227_v60  ;;  %6761 = vmatprep.subr.bf16.mxu0 %v6092_v49  ;;  %v5891_v60 = vld [vmem:[%s9892_s2 + $0x1c90] sm:$0xff] }
 0x899   : > { %6802 = vmatprep.subr.bf16.mxu1 %v6220_v29  ;;  %v5955_v49 = vld [vmem:[%s9892_s2 + $0x1e90] sm:$0xff] }
 0x89a   : > { %v6419_v26 = vunpack.c.l.s8.bf16 %v5955_v49 }
 0x89b   : > { %6762 = vmatpush2.bf16.msra.mxu0 %v6091_v58 }
 0x89c   : > { %6803 = vmatpush2.bf16.msra.mxu1 %v6219_v38  ;;  %6763 = vmatprep.subr.bf16.mxu0 %v6084_v12  ;;  %v6299_v12 = vunpack.c.h.s8.bf16 %v5891_v60 }
 0x89d   : > { %6804 = vmatprep.subr.bf16.mxu1 %v6212_v51  ;;  %v6427_v51 = vunpack.c.h.s8.bf16 %v5955_v49 }
 0x89f   : > { %6764 = vmatpush2.bf16.msra.mxu0 %v6083_v50  ;;  %v6420_v50 = vunpack.c.l.s8.bf16 %v5956_v16 }
 0x8a0   : > { %6805 = vmatpush2.bf16.msra.mxu1 %v6211_v8  ;;  %6765 = vmatprep.subr.bf16.mxu0 %v6076_v37  ;;  %v5884_v37 = vld [vmem:[%s9892_s2 + $0x1c58] sm:$0xff] }
 0x8a1   : > { %6806 = vmatprep.subr.bf16.mxu1 %v6204_v55  ;;  %v5948_v55 = vld [vmem:[%s9892_s2 + $0x1e58] sm:$0xff]  ;;  %v6284_v25 = vunpack.c.h.s8.bf16 %v5884_v37  ;;  %v6276_v21 = vunpack.c.l.s8.bf16 %v5884_v37 }
 0x8a2   : > { %v6404_v52 = vunpack.c.l.s8.bf16 %v5948_v55 }
 0x8a3   : > { %6766 = vmatpush2.bf16.msra.mxu0 %v6075_v54  ;;  %v6412_v54 = vunpack.c.h.s8.bf16 %v5948_v55 }
 0x8a4   : > { %6807 = vmatpush2.bf16.msra.mxu1 %v6203_v31  ;;  %6767 = vmatprep.subr.bf16.mxu0 %v6068_v9  ;;  %v5883_v31 = vld [vmem:[%s9892_s2 + $0x1c50] sm:$0xff] }
 0x8a5   : > { %6808 = vmatprep.subr.bf16.mxu1 %v6196_v2  ;;  %v5947_v9 = vld [vmem:[%s9892_s2 + $0x1e50] sm:$0xff]  ;;  %v6283_v2 = vunpack.c.h.s8.bf16 %v5883_v31 }
 0x8a7   : > { %6768 = vmatpush2.bf16.msra.mxu0 %v6067_v39  ;;  %v5876_v39 = vld [vmem:[%s9892_s2 + $0x1c18] sm:$0xff] }
 0x8a8   : > { %6809 = vmatpush2.bf16.msra.mxu1 %v6195_v43  ;;  %6819 = vmatprep.subr.bf16.mxu0 %v6316_v32  ;;  %v5940_v43 = vld [vmem:[%s9892_s2 + $0x1e18] sm:$0xff]  ;;  %v6275_v32 = vunpack.c.l.s8.bf16 %v5883_v31  ;;  %v6268_v59 = vunpack.c.h.s8.bf16 %v5876_v39 }
 0x8a9   : > { %6860 = vmatprep.subr.bf16.mxu1 %v6444_v19  ;;  %v6403_v19 = vunpack.c.l.s8.bf16 %v5947_v9  ;;  %v6396_v5 = vunpack.c.h.s8.bf16 %v5940_v43  ;;  %v6388_v16 = vunpack.c.l.s8.bf16 %v5940_v43 }
 0x8aa   : > { %v5689_v42 = vpop.f32.mrf.mxu0  ;;  %6770 = vmatmul.mubr.bf16.vlgmr.msra.gmra.mxu0 %v11193_v61 }
 0x8ab   : > { %v5730_v57 = vpop.f32.mrf.mxu1  ;;  %6811 = vmatmul.mubr.bf16.vlgmr.msra.gmra.mxu1 %v11202_v56  ;;  %v5690_v44 = vadd.f32 %v5689_v42, %v11264_v13  ;;  %6820 = vmatpush1.bf16.msra.mxu0 %v6315_v45  ;;  %v5875_v45 = vld [vmem:[%s9892_s2 + $0x1c10] sm:$0xff]  ;;  %v5932_v42 = vld [vmem:[%s9892_s2 + $0x1dd8] sm:$0xff] }
 0x8ac   : > { %6861 = vmatpush1.bf16.msra.mxu1 %v6443_v27  ;;  %v5691_v24 = vpop.f32.mrf.mxu0  ;;  %6821 = vmatprep.subr.bf16.mxu0 %v6308_v6  ;;  %v5939_v27 = vld [vmem:[%s9892_s2 + $0x1e10] sm:$0xff]  ;;  %v6267_v6 = vunpack.c.h.s8.bf16 %v5875_v45  ;;  %v6372_v49 = vunpack.c.l.s8.bf16 %v5932_v42 }
 0x8ad   : > { %v5732_v1 = vpop.f32.mrf.mxu1  ;;  %6862 = vmatprep.subr.bf16.mxu1 %v6436_v20  ;;  %v5731_v29 = vadd.f32 %v5730_v57, %v5690_v44  ;;  %v5692_v48 = vadd.f32 %v5691_v24, %v11268_v3  ;;  %6851 = vmatprep.mubr.bf16.mxu0 %v11198_v53  ;;  %v6292_v3 = vunpack.c.l.s8.bf16 %v5892_v10  ;;  %v6395_v20 = vunpack.c.h.s8.bf16 %v5939_v27  ;;  %v5996_v57 = vld [vmem:[%s9892_s2 + $0x1fd8] sm:$0xff] }
 0x8ae   : > { %6892 = vmatprep.mubr.bf16.mxu1 %v11208_v22  ;;  %v5693_v13 = vpop.f32.mrf.mxu0  ;;  %v6260_v10 = vunpack.c.l.s8.bf16 %v5876_v39  ;;  %v6259_v44 = vunpack.c.l.s8.bf16 %v5875_v45  ;;  %v6508_v24 = vunpack.c.h.s8.bf16 %v5996_v57 }
 0x8af   : > { %v5734_v62 = vpop.f32.mrf.mxu1  ;;  %v11311_v58 = vadd.f32 %v5731_v29, %v10928_v36  ;;  %v5733_v38 = vadd.f32 %v5732_v1, %v5692_v48  ;;  %6822 = vmatpush1.bf16.msra.mxu0 %v6307_v33  ;;  %v6291_v36 = vunpack.c.l.s8.bf16 %v5891_v60  ;;  %v6387_v33 = vunpack.c.l.s8.bf16 %v5939_v27  ;;  %v5931_v1 = vld [vmem:[%s9892_s2 + $0x1dd0] sm:$0xff]  ;;  %v5924_v48 = vld [vmem:[%s9892_s2 + $0x1d98] sm:$0xff] }
 0x8b0   : > { %6863 = vmatpush1.bf16.msra.mxu1 %v6435_v30  ;;  %v5694_v4 = vpop.f32.mrf.mxu0  ;;  %6823 = vmatprep.subr.bf16.mxu0 %v6300_v34  ;;  %v6380_v30 = vunpack.c.h.s8.bf16 %v5932_v42  ;;  %v5995_v34 = vld [vmem:[%s9892_s2 + $0x1fd0] sm:$0xff]  ;;  %v6500_v29 = vunpack.c.l.s8.bf16 %v5996_v57  ;;  %v5988_v13 = vld [vmem:[%s9892_s2 + $0x1f98] sm:$0xff]  ;;  %v6371_v62 = vunpack.c.l.s8.bf16 %v5931_v1  ;;  %v6356_v37 = vunpack.c.l.s8.bf16 %v5924_v48 }
 0x8b1   : > { %v5735_v46 = vpop.f32.mrf.mxu1  ;;  %6864 = vmatprep.subr.bf16.mxu1 %v6428_v18  ;;  %v11314_v8 = vadd.f32 %v5733_v38, %v10933_v7  ;;  %v6411_v7 = vunpack.c.h.s8.bf16 %v5947_v9  ;;  %v6379_v18 = vunpack.c.h.s8.bf16 %v5931_v1  ;;  %v6507_v60 = vunpack.c.h.s8.bf16 %v5995_v34  ;;  %v5923_v4 = vld [vmem:[%s9892_s2 + $0x1d90] sm:$0xff] }
 0x8b2   : > { %v6499_v38 = vunpack.c.l.s8.bf16 %v5995_v34  ;;  %v5987_v46 = vld [vmem:[%s9892_s2 + $0x1f90] sm:$0xff]  ;;  %v6484_v55 = vunpack.c.l.s8.bf16 %v5988_v13 }
 0x8b3   : > { %6824 = vmatpush1.bf16.msra.mxu0 %v6299_v12  ;;  %v6364_v12 = vunpack.c.h.s8.bf16 %v5924_v48 }
 0x8b4   : > { %6865 = vmatpush1.bf16.msra.mxu1 %v6427_v51  ;;  %6825 = vmatprep.subr.bf16.mxu0 %v6292_v3  ;;  %v6492_v51 = vunpack.c.h.s8.bf16 %v5988_v13  ;;  %v6363_v3 = vunpack.c.h.s8.bf16 %v5923_v4 }
 0x8b5   : > { %6866 = vmatprep.subr.bf16.mxu1 %v6420_v50  ;;  %v6491_v50 = vunpack.c.h.s8.bf16 %v5987_v46 }
 0x8b7   : > { %6826 = vmatpush1.bf16.msra.mxu0 %v6291_v36  ;;  %v5916_v36 = vld [vmem:[%s9892_s2 + $0x1d58] sm:$0xff] }
 0x8b8   : > { %6867 = vmatpush1.bf16.msra.mxu1 %v6419_v26  ;;  %6827 = vmatprep.subr.bf16.mxu0 %v6284_v25  ;;  %v5980_v26 = vld [vmem:[%s9892_s2 + $0x1f58] sm:$0xff]  ;;  %v6355_v25 = vunpack.c.l.s8.bf16 %v5923_v4  ;;  %v6348_v31 = vunpack.c.h.s8.bf16 %v5916_v36  ;;  %v6340_v39 = vunpack.c.l.s8.bf16 %v5916_v36 }
 0x8b9   : > { %6868 = vmatprep.subr.bf16.mxu1 %v6412_v54  ;;  %v6483_v54 = vunpack.c.l.s8.bf16 %v5987_v46  ;;  %v6476_v9 = vunpack.c.h.s8.bf16 %v5980_v26  ;;  %v6468_v43 = vunpack.c.l.s8.bf16 %v5980_v26  ;;  %v5765_v26 = vld [vmem:[%s9892_s2 + $0x18a0] sm:$0xff] }
 0x8bb   : > { %6828 = vmatpush1.bf16.msra.mxu0 %v6283_v2  ;;  %v5915_v2 = vld [vmem:[%s9892_s2 + $0x1d50] sm:$0xff] }
 0x8bc   : > { %6869 = vmatpush1.bf16.msra.mxu1 %v6411_v7  ;;  %6829 = vmatprep.subr.bf16.mxu0 %v6276_v21  ;;  %v5979_v7 = vld [vmem:[%s9892_s2 + $0x1f50] sm:$0xff]  ;;  %v6347_v21 = vunpack.c.h.s8.bf16 %v5915_v2 }
 0x8bd   : > { %6870 = vmatprep.subr.bf16.mxu1 %v6404_v52  ;;  %v6475_v52 = vunpack.c.h.s8.bf16 %v5979_v7 }
 0x8bf   : > { %6830 = vmatpush1.bf16.msra.mxu0 %v6275_v32  ;;  %v5908_v32 = vld [vmem:[%s9892_s2 + $0x1d18] sm:$0xff] }
 0x8c0   : > { %6871 = vmatpush1.bf16.msra.mxu1 %v6403_v19  ;;  %6831 = vmatprep.subr.bf16.mxu0 %v6268_v59  ;;  %v5972_v19 = vld [vmem:[%s9892_s2 + $0x1f18] sm:$0xff]  ;;  %v6339_v59 = vunpack.c.l.s8.bf16 %v5915_v2  ;;  %v6332_v45 = vunpack.c.h.s8.bf16 %v5908_v32  ;;  %v6324_v42 = vunpack.c.l.s8.bf16 %v5908_v32  ;;  %v6045_v2 = vunpack.c.h.s8.bf16 %v5765_v26  ;;  %v5758_v32 = vld [vmem:[%s9892_s2 + $0x1868] sm:$0xff] }
 0x8c1   : > { %6872 = vmatprep.subr.bf16.mxu1 %v6396_v5  ;;  %v6467_v5 = vunpack.c.l.s8.bf16 %v5979_v7  ;;  %v6460_v27 = vunpack.c.h.s8.bf16 %v5972_v19  ;;  %v6452_v57 = vunpack.c.l.s8.bf16 %v5972_v19  ;;  %v5822_v19 = vld [vmem:[%s9892_s2 + $0x1a68] sm:$0xff] }
 0x8c3   : > { %6832 = vmatpush1.bf16.msra.mxu0 %v6267_v6  ;;  %v5907_v6 = vld [vmem:[%s9892_s2 + $0x1d10] sm:$0xff] }
 0x8c4   : > { %6873 = vmatpush1.bf16.msra.mxu1 %v6395_v20  ;;  %6833 = vmatprep.subr.bf16.mxu0 %v6260_v10  ;;  %v5971_v20 = vld [vmem:[%s9892_s2 + $0x1f10] sm:$0xff]  ;;  %v6331_v10 = vunpack.c.h.s8.bf16 %v5907_v6 }
 0x8c5   : > { %6874 = vmatprep.subr.bf16.mxu1 %v6388_v16  ;;  %v6459_v16 = vunpack.c.h.s8.bf16 %v5971_v20 }
 0x8c7   : > { %6834 = vmatpush1.bf16.msra.mxu0 %v6259_v44  ;;  %v5774_v44 = vld [vmem:[%s9892_s2 + $0x18e8] sm:$0xff] }
 0x8c8   : > { %6875 = vmatpush1.bf16.msra.mxu1 %v6387_v33  ;;  %6835 = vmatprep.subr.bf16.mxu0 %v6380_v30  ;;  %v5838_v33 = vld [vmem:[%s9892_s2 + $0x1ae8] sm:$0xff]  ;;  %v6323_v30 = vunpack.c.l.s8.bf16 %v5907_v6  ;;  %v6062_v1 = vunpack.c.h.s8.bf16 %v5774_v44  ;;  %v6054_v48 = vunpack.c.l.s8.bf16 %v5774_v44  ;;  %v5757_v6 = vld [vmem:[%s9892_s2 + $0x1860] sm:$0xff] }
 0x8c9   : > { %6876 = vmatprep.subr.bf16.mxu1 %v6508_v24  ;;  %v6451_v24 = vunpack.c.l.s8.bf16 %v5971_v20  ;;  %v6190_v34 = vunpack.c.h.s8.bf16 %v5838_v33  ;;  %v6182_v13 = vunpack.c.l.s8.bf16 %v5838_v33  ;;  %v5821_v20 = vld [vmem:[%s9892_s2 + $0x1a60] sm:$0xff]  ;;  %v5750_v44 = vld [vmem:[%s9892_s2 + $0x1828] sm:$0xff] }
 0x8ca   : > { %v5814_v33 = vld [vmem:[%s9892_s2 + $0x1a28] sm:$0xff] }
 0x8cb   : > { %6836 = vmatpush2.bf16.msra.mxu0 %v6379_v18  ;;  %v5773_v18 = vld [vmem:[%s9892_s2 + $0x18e0] sm:$0xff] }
 0x8cc   : > { %6877 = vmatpush2.bf16.msra.mxu1 %v6507_v60  ;;  %6837 = vmatprep.subr.bf16.mxu0 %v6372_v49  ;;  %v5837_v60 = vld [vmem:[%s9892_s2 + $0x1ae0] sm:$0xff]  ;;  %v6061_v49 = vunpack.c.h.s8.bf16 %v5773_v18  ;;  %v6053_v46 = vunpack.c.l.s8.bf16 %v5773_v18 }
 0x8cd   : > { %6878 = vmatprep.subr.bf16.mxu1 %v6500_v29  ;;  %v6189_v29 = vunpack.c.h.s8.bf16 %v5837_v60  ;;  %v5749_v18 = vld [vmem:[%s9892_s2 + $0x1820] sm:$0xff] }
 0x8cf   : > { %6838 = vmatpush2.bf16.msra.mxu0 %v6371_v62  ;;  %v5766_v62 = vld [vmem:[%s9892_s2 + $0x18a8] sm:$0xff] }
 0x8d0   : > { %6879 = vmatpush2.bf16.msra.mxu1 %v6499_v38  ;;  %6839 = vmatprep.subr.bf16.mxu0 %v6364_v12  ;;  %v5830_v38 = vld [vmem:[%s9892_s2 + $0x1aa8] sm:$0xff] }
 0x8d1   : > { %6880 = vmatprep.subr.bf16.mxu1 %v6492_v51  ;;  %v6174_v36 = vunpack.c.h.s8.bf16 %v5830_v38 }
 0x8d3   : > { %6840 = vmatpush2.bf16.msra.mxu0 %v6363_v3  ;;  %v6181_v3 = vunpack.c.l.s8.bf16 %v5837_v60  ;;  %v5813_v60 = vld [vmem:[%s9892_s2 + $0x1a20] sm:$0xff] }
 0x8d4   : > { %6881 = vmatpush2.bf16.msra.mxu1 %v6491_v50  ;;  %6841 = vmatprep.subr.bf16.mxu0 %v6356_v37 }
 0x8d5   : > { %6882 = vmatprep.subr.bf16.mxu1 %v6484_v55  ;;  %v6046_v55 = vunpack.c.h.s8.bf16 %v5766_v62 }
 0x8d7   : > { %6842 = vmatpush2.bf16.msra.mxu0 %v6355_v25  ;;  %v5829_v25 = vld [vmem:[%s9892_s2 + $0x1aa0] sm:$0xff] }
 0x8d8   : > { %6883 = vmatpush2.bf16.msra.mxu1 %v6483_v54  ;;  %6843 = vmatprep.subr.bf16.mxu0 %v6348_v31  ;;  %v6173_v7 = vunpack.c.h.s8.bf16 %v5829_v25 }
 0x8d9   : > { %6884 = vmatprep.subr.bf16.mxu1 %v6476_v9 }
 0x8db   : > { %6844 = vmatpush2.bf16.msra.mxu0 %v6347_v21 }
 0x8dc   : > { %6885 = vmatpush2.bf16.msra.mxu1 %v6475_v52  ;;  %6845 = vmatprep.subr.bf16.mxu0 %v6340_v39  ;;  %v6038_v39 = vunpack.c.l.s8.bf16 %v5766_v62  ;;  %v5806_v62 = vld [vmem:[%s9892_s2 + $0x19e8] sm:$0xff] }
 0x8dd   : > { %6886 = vmatprep.subr.bf16.mxu1 %v6468_v43  ;;  %v6166_v43 = vunpack.c.l.s8.bf16 %v5830_v38  ;;  %v5870_v38 = vld [vmem:[%s9892_s2 + $0x1be8] sm:$0xff] }
 0x8df   : > { %6846 = vmatpush2.bf16.msra.mxu0 %v6339_v59  ;;  %v6037_v59 = vunpack.c.l.s8.bf16 %v5765_v26  ;;  %v6118_v26 = vunpack.c.l.s8.bf16 %v5806_v62 }
 0x8e0   : > { %6887 = vmatpush2.bf16.msra.mxu1 %v6467_v5  ;;  %6847 = vmatprep.subr.bf16.mxu0 %v6332_v45  ;;  %v6165_v5 = vunpack.c.l.s8.bf16 %v5829_v25  ;;  %v6030_v45 = vunpack.c.h.s8.bf16 %v5758_v32  ;;  %v6246_v25 = vunpack.c.l.s8.bf16 %v5870_v38 }
 0x8e1   : > { %6888 = vmatprep.subr.bf16.mxu1 %v6460_v27  ;;  %v6158_v27 = vunpack.c.h.s8.bf16 %v5822_v19 }
 0x8e3   : > { %6848 = vmatpush2.bf16.msra.mxu0 %v6331_v10  ;;  %v6029_v10 = vunpack.c.h.s8.bf16 %v5757_v6 }
 0x8e4   : > { %6889 = vmatpush2.bf16.msra.mxu1 %v6459_v16  ;;  %6849 = vmatprep.subr.bf16.mxu0 %v6324_v42  ;;  %v6157_v16 = vunpack.c.h.s8.bf16 %v5821_v20  ;;  %v6022_v42 = vunpack.c.l.s8.bf16 %v5758_v32 }
 0x8e5   : > { %6890 = vmatprep.subr.bf16.mxu1 %v6452_v57  ;;  %v6150_v57 = vunpack.c.l.s8.bf16 %v5822_v19 }
 0x8e7   : > { %6850 = vmatpush2.bf16.msra.mxu0 %v6323_v30  ;;  %v6021_v30 = vunpack.c.l.s8.bf16 %v5757_v6 }
 0x8e8   : > { %6891 = vmatpush2.bf16.msra.mxu1 %v6451_v24  ;;  %6901 = vmatprep.subr.bf16.mxu0 %v6062_v1  ;;  %v6149_v24 = vunpack.c.l.s8.bf16 %v5821_v20  ;;  %v6014_v1 = vunpack.c.h.s8.bf16 %v5750_v44 }
 0x8e9   : > { %6942 = vmatprep.subr.bf16.mxu1 %v6190_v34  ;;  %v6142_v34 = vunpack.c.h.s8.bf16 %v5814_v33 }
 0x8ea   : > { %v6607_v12 = vpop.f32.mrf.mxu0  ;;  %6852 = vmatmul.mubr.bf16.vlgmr.msra.gmra.mxu0 %v11252_v40 }
 0x8eb   : > { %v6648_v51 = vpop.f32.mrf.mxu1  ;;  %6893 = vmatmul.mubr.bf16.vlgmr.msra.gmra.mxu1 %v11258_v47  ;;  %6902 = vmatpush1.bf16.msra.mxu0 %v6061_v49  ;;  %v6013_v49 = vunpack.c.h.s8.bf16 %v5749_v18 }
 0x8ec   : > { %v11348_v4 = vadd.f32 %v6648_v51, %v6607_v12  ;;  %6943 = vmatpush1.bf16.msra.mxu1 %v6189_v29  ;;  %v6609_v50 = vpop.f32.mrf.mxu0  ;;  %6903 = vmatprep.subr.bf16.mxu0 %v6054_v48  ;;  %v6141_v29 = vunpack.c.h.s8.bf16 %v5813_v60  ;;  %v6006_v48 = vunpack.c.l.s8.bf16 %v5750_v44  ;;  %v6005_v12 = vunpack.c.l.s8.bf16 %v5749_v18 }
 0x8ed   : > { %v6650_v37 = vpop.f32.mrf.mxu1  ;;  %6944 = vmatprep.subr.bf16.mxu1 %v6182_v13  ;;  %6933 = vmatprep.mubr.bf16.mxu0 %v11140_v0  ;;  %v6134_v13 = vunpack.c.l.s8.bf16 %v5814_v33  ;;  %v6133_v51 = vunpack.c.l.s8.bf16 %v5813_v60 }
 0x8ee   : > { %v11352_v54 = vadd.f32 %v6650_v37, %v6609_v50  ;;  %6974 = vmatprep.mubr.bf16.mxu1 %v11146_v23  ;;  %v6611_v31 = vpop.f32.mrf.mxu0  ;;  %v5805_v50 = vld [vmem:[%s9892_s2 + $0x19e0] sm:$0xff] }
 0x8ef   : > { %v6652_v9 = vpop.f32.mrf.mxu1  ;;  %6904 = vmatpush1.bf16.msra.mxu0 %v6053_v46  ;;  %v6126_v46 = vunpack.c.h.s8.bf16 %v5806_v62  ;;  %v5869_v37 = vld [vmem:[%s9892_s2 + $0x1be0] sm:$0xff]  ;;  %v5798_v31 = vld [vmem:[%s9892_s2 + $0x19a8] sm:$0xff] }
 0x8f0   : > { %6945 = vmatpush1.bf16.msra.mxu1 %v6181_v3  ;;  %v6612_v21 = vpop.f32.mrf.mxu0  ;;  %6905 = vmatprep.subr.bf16.mxu0 %v6046_v55  ;;  %v6254_v3 = vunpack.c.h.s8.bf16 %v5870_v38  ;;  %v6125_v55 = vunpack.c.h.s8.bf16 %v5805_v50  ;;  %v5862_v9 = vld [vmem:[%s9892_s2 + $0x1ba8] sm:$0xff] }
 0x8f1   : > { %v6653_v52 = vpop.f32.mrf.mxu1  ;;  %6946 = vmatprep.subr.bf16.mxu1 %v6174_v36  ;;  %v6253_v36 = vunpack.c.h.s8.bf16 %v5869_v37  ;;  %v6110_v21 = vunpack.c.h.s8.bf16 %v5798_v31 }
 0x8f2   : > { %v6238_v52 = vunpack.c.h.s8.bf16 %v5862_v9 }
 0x8f3   : > { %6906 = vmatpush1.bf16.msra.mxu0 %v6045_v2  ;;  %v6117_v2 = vunpack.c.l.s8.bf16 %v5805_v50 }
 0x8f4   : > { %6947 = vmatpush1.bf16.msra.mxu1 %v6173_v7  ;;  %6907 = vmatprep.subr.bf16.mxu0 %v6038_v39  ;;  %v6245_v7 = vunpack.c.l.s8.bf16 %v5869_v37  ;;  %v5797_v39 = vld [vmem:[%s9892_s2 + $0x19a0] sm:$0xff] }
 0x8f5   : > { %6948 = vmatprep.subr.bf16.mxu1 %v6166_v43  ;;  %v5861_v43 = vld [vmem:[%s9892_s2 + $0x1ba0] sm:$0xff]  ;;  %v6109_v32 = vunpack.c.h.s8.bf16 %v5797_v39  ;;  %v6101_v6 = vunpack.c.l.s8.bf16 %v5797_v39  ;;  %v5958_v39 = vld [vmem:[%s9892_s2 + $0x1ea8] sm:$0xff] }
 0x8f6   : > { %v6237_v19 = vunpack.c.h.s8.bf16 %v5861_v43  ;;  %v6229_v20 = vunpack.c.l.s8.bf16 %v5861_v43 }
 0x8f7   : > { %6908 = vmatpush1.bf16.msra.mxu0 %v6037_v59  ;;  %v6102_v59 = vunpack.c.l.s8.bf16 %v5798_v31 }
 0x8f8   : > { %6949 = vmatpush1.bf16.msra.mxu1 %v6165_v5  ;;  %6909 = vmatprep.subr.bf16.mxu0 %v6030_v45  ;;  %v6230_v5 = vunpack.c.l.s8.bf16 %v5862_v9  ;;  %v5790_v45 = vld [vmem:[%s9892_s2 + $0x1968] sm:$0xff] }
 0x8f9   : > { %6950 = vmatprep.subr.bf16.mxu1 %v6158_v27  ;;  %v5854_v27 = vld [vmem:[%s9892_s2 + $0x1b68] sm:$0xff] }
 0x8fb   : > { %6910 = vmatpush1.bf16.msra.mxu0 %v6029_v10  ;;  %v6094_v10 = vunpack.c.h.s8.bf16 %v5790_v45 }
 0x8fc   : > { %6951 = vmatpush1.bf16.msra.mxu1 %v6157_v16  ;;  %6911 = vmatprep.subr.bf16.mxu0 %v6022_v42  ;;  %v6222_v16 = vunpack.c.h.s8.bf16 %v5854_v27  ;;  %v5789_v42 = vld [vmem:[%s9892_s2 + $0x1960] sm:$0xff] }
 0x8fd   : > { %6952 = vmatprep.subr.bf16.mxu1 %v6150_v57  ;;  %v5853_v57 = vld [vmem:[%s9892_s2 + $0x1b60] sm:$0xff]  ;;  %v6093_v44 = vunpack.c.h.s8.bf16 %v5789_v42  ;;  %v6085_v18 = vunpack.c.l.s8.bf16 %v5789_v42  ;;  %v6430_v42 = vunpack.c.h.s8.bf16 %v5958_v39 }
 0x8fe   : > { %v6221_v33 = vunpack.c.h.s8.bf16 %v5853_v57  ;;  %v6213_v60 = vunpack.c.l.s8.bf16 %v5853_v57  ;;  %v5893_v57 = vld [vmem:[%s9892_s2 + $0x1ca0] sm:$0xff] }
 0x8ff   : > { %6912 = vmatpush1.bf16.msra.mxu0 %v6021_v30  ;;  %v6086_v30 = vunpack.c.l.s8.bf16 %v5790_v45  ;;  %v11395_v45 = vld [vmem:[%s9915_s21 + $0x1] ss:$2 sm:$0xff] }
 0x900   : > { %6953 = vmatpush1.bf16.msra.mxu1 %v6149_v24  ;;  %6913 = vmatprep.subr.bf16.mxu0 %v6014_v1  ;;  %v6214_v24 = vunpack.c.l.s8.bf16 %v5854_v27  ;;  %v5782_v1 = vld [vmem:[%s9892_s2 + $0x1928] sm:$0xff] }
 0x901   : > { %6954 = vmatprep.subr.bf16.mxu1 %v6142_v34  ;;  %v5846_v34 = vld [vmem:[%s9892_s2 + $0x1b28] sm:$0xff] }
 0x903   : > { %6914 = vmatpush1.bf16.msra.mxu0 %v6013_v49  ;;  %v6078_v49 = vunpack.c.h.s8.bf16 %v5782_v1 }
 0x904   : > { %6955 = vmatpush1.bf16.msra.mxu1 %v6141_v29  ;;  %6915 = vmatprep.subr.bf16.mxu0 %v6006_v48  ;;  %v6206_v29 = vunpack.c.h.s8.bf16 %v5846_v34  ;;  %v5781_v48 = vld [vmem:[%s9892_s2 + $0x1920] sm:$0xff] }
 0x905   : > { %6956 = vmatprep.subr.bf16.mxu1 %v6134_v13  ;;  %v5845_v13 = vld [vmem:[%s9892_s2 + $0x1b20] sm:$0xff]  ;;  %v6077_v62 = vunpack.c.h.s8.bf16 %v5781_v48  ;;  %v6069_v50 = vunpack.c.l.s8.bf16 %v5781_v48 }
 0x906   : > { %v6205_v38 = vunpack.c.h.s8.bf16 %v5845_v13  ;;  %v6197_v37 = vunpack.c.l.s8.bf16 %v5845_v13 }
 0x907   : > { %6916 = vmatpush1.bf16.msra.mxu0 %v6005_v12  ;;  %v6070_v12 = vunpack.c.l.s8.bf16 %v5782_v1 }
 0x908   : > { %6957 = vmatpush1.bf16.msra.mxu1 %v6133_v51  ;;  %6917 = vmatprep.subr.bf16.mxu0 %v6126_v46  ;;  %v6198_v51 = vunpack.c.l.s8.bf16 %v5846_v34  ;;  %v5902_v46 = vld [vmem:[%s9892_s2 + $0x1ce8] sm:$0xff] }
 0x909   : > { %6958 = vmatprep.subr.bf16.mxu1 %v6254_v3  ;;  %v5966_v3 = vld [vmem:[%s9892_s2 + $0x1ee8] sm:$0xff] }
 0x90b   : > { %6918 = vmatpush2.bf16.msra.mxu0 %v6125_v55  ;;  %v6318_v55 = vunpack.c.h.s8.bf16 %v5902_v46 }
 0x90c   : > { %6959 = vmatpush2.bf16.msra.mxu1 %v6253_v36  ;;  %6919 = vmatprep.subr.bf16.mxu0 %v6118_v26  ;;  %v6446_v36 = vunpack.c.h.s8.bf16 %v5966_v3  ;;  %v5901_v26 = vld [vmem:[%s9892_s2 + $0x1ce0] sm:$0xff] }
 0x90d   : > { %6960 = vmatprep.subr.bf16.mxu1 %v6246_v25  ;;  %v5965_v25 = vld [vmem:[%s9892_s2 + $0x1ee0] sm:$0xff]  ;;  %v6317_v31 = vunpack.c.h.s8.bf16 %v5901_v26  ;;  %v6309_v27 = vunpack.c.l.s8.bf16 %v5901_v26 }
 0x90e   : > { %v6445_v9 = vunpack.c.h.s8.bf16 %v5965_v25 }
 0x90f   : > { %6920 = vmatpush2.bf16.msra.mxu0 %v6117_v2  ;;  %v6310_v2 = vunpack.c.l.s8.bf16 %v5902_v46 }
 0x910   : > { %6961 = vmatpush2.bf16.msra.mxu1 %v6245_v7  ;;  %6921 = vmatprep.subr.bf16.mxu0 %v6110_v21  ;;  %v6438_v7 = vunpack.c.l.s8.bf16 %v5966_v3  ;;  %v7241_v21 = vsub.s32 0, %v10025_v63  ;;  %v5950_v3 = vld [vmem:[%s9892_s2 + $0x1e68] sm:$0xff] }
 0x911   : > { %6962 = vmatprep.subr.bf16.mxu1 %v6238_v52  ;;  %v5894_v52 = vld [vmem:[%s9892_s2 + $0x1ca8] sm:$0xff] }
 0x913   : > { %6922 = vmatpush2.bf16.msra.mxu0 %v6109_v32 }
 0x914   : > { %6963 = vmatpush2.bf16.msra.mxu1 %v6237_v19  ;;  %6923 = vmatprep.subr.bf16.mxu0 %v6102_v59  ;;  %v11388_v19 = vld [vmem:[%s9915_s21] ss:$2 sm:$0xff]  ;;  %v7245_v59 = vsub.s32 1, %v10025_v63 }
 0x915   : > { %6964 = vmatprep.subr.bf16.mxu1 %v6230_v5 }
 0x916   : > { %v7246_v1 = vrot.slane %v11388_v19, %v7245_v59  ;;  %v7297_v46 = vrot.slane %v11395_v45, %v7245_v59  ;;  %v5878_v59 = vld [vmem:[%s9892_s2 + $0x1c28] sm:$0xff] }
 0x917   : > { %6924 = vmatpush2.bf16.msra.mxu0 %v6101_v6  ;;  %v6437_v6 = vunpack.c.l.s8.bf16 %v5965_v25  ;;  %v6414_v25 = vunpack.c.h.s8.bf16 %v5950_v3 }
 0x918   : > { %6965 = vmatpush2.bf16.msra.mxu1 %v6229_v20  ;;  %6925 = vmatprep.subr.bf16.mxu0 %v6094_v10 }
 0x919   : > { %6966 = vmatprep.subr.bf16.mxu1 %v6222_v16  ;;  %v6302_v16 = vunpack.c.h.s8.bf16 %v5894_v52 }
 0x91b   : > { %6926 = vmatpush2.bf16.msra.mxu0 %v6093_v44  ;;  %v5957_v44 = vld [vmem:[%s9892_s2 + $0x1ea0] sm:$0xff] }
 0x91c   : > { %6967 = vmatpush2.bf16.msra.mxu1 %v6221_v33  ;;  %6927 = vmatprep.subr.bf16.mxu0 %v6086_v30  ;;  %v7242_v30 = vrot.slane %v11388_v19, %v7241_v21  ;;  %v6429_v48 = vunpack.c.h.s8.bf16 %v5957_v44 }
 0x91d   : > { %6968 = vmatprep.subr.bf16.mxu1 %v6214_v24 }
 0x91f   : > { %6928 = vmatpush2.bf16.msra.mxu0 %v6085_v18 }
 0x920   : > { %6969 = vmatpush2.bf16.msra.mxu1 %v6213_v60  ;;  %6929 = vmatprep.subr.bf16.mxu0 %v6078_v49 }
 0x921   : > { %6970 = vmatprep.subr.bf16.mxu1 %v6206_v29  ;;  %v6301_v29 = vunpack.c.h.s8.bf16 %v5893_v57 }
 0x923   : > { %6930 = vmatpush2.bf16.msra.mxu0 %v6077_v62  ;;  %v6294_v62 = vunpack.c.l.s8.bf16 %v5894_v52 }
 0x924   : > { %6971 = vmatpush2.bf16.msra.mxu1 %v6205_v38  ;;  %6931 = vmatprep.subr.bf16.mxu0 %v6070_v12  ;;  %v6422_v38 = vunpack.c.l.s8.bf16 %v5958_v39 }
 0x925   : > { %6972 = vmatprep.subr.bf16.mxu1 %v6198_v51 }
 0x927   : > { %6932 = vmatpush2.bf16.msra.mxu0 %v6069_v50 }
 0x928   : > { %6973 = vmatpush2.bf16.msra.mxu1 %v6197_v37  ;;  %6983 = vmatprep.subr.bf16.mxu0 %v6318_v55  ;;  %v6293_v55 = vunpack.c.l.s8.bf16 %v5893_v57 }
 0x929   : > { %7024 = vmatprep.subr.bf16.mxu1 %v6446_v36  ;;  %v6421_v36 = vunpack.c.l.s8.bf16 %v5957_v44 }
 0x92a   : > { %v6689_v43 = vpop.f32.mrf.mxu0  ;;  %6934 = vmatmul.mubr.bf16.vlgmr.msra.gmra.mxu0 %v11193_v61 }
 0x92b   : > { %v6730_v32 = vpop.f32.mrf.mxu1  ;;  %6975 = vmatmul.mubr.bf16.vlgmr.msra.gmra.mxu1 %v11202_v56  ;;  %v6690_v5 = vadd.f32 %v6689_v43, %v11348_v4  ;;  %6984 = vmatpush1.bf16.msra.mxu0 %v6317_v31  ;;  %v7293_v4 = vrot.slane %v11395_v45, %v7241_v21  ;;  %v5885_v31 = vld [vmem:[%s9892_s2 + $0x1c60] sm:$0xff]  ;;  %v6406_v43 = vunpack.c.l.s8.bf16 %v5950_v3 }
 0x92c   : > { %7025 = vmatpush1.bf16.msra.mxu1 %v6445_v9  ;;  %v6691_v20 = vpop.f32.mrf.mxu0  ;;  %6985 = vmatprep.subr.bf16.mxu0 %v6310_v2  ;;  %v5949_v9 = vld [vmem:[%s9892_s2 + $0x1e60] sm:$0xff]  ;;  %v6285_v21 = vunpack.c.h.s8.bf16 %v5885_v31 }
 0x92d   : > { %v6732_v10 = vpop.f32.mrf.mxu1  ;;  %7026 = vmatprep.subr.bf16.mxu1 %v6438_v7  ;;  %v6731_v33 = vadd.f32 %v6730_v32, %v6690_v5  ;;  %v6692_v24 = vadd.f32 %v6691_v20, %v11352_v54  ;;  %7015 = vmatprep.mubr.bf16.mxu0 %v11198_v53  ;;  %v6413_v52 = vunpack.c.h.s8.bf16 %v5949_v9  ;;  %v5942_v5 = vld [vmem:[%s9892_s2 + $0x1e28] sm:$0xff]  ;;  %v6270_v20 = vunpack.c.h.s8.bf16 %v5878_v59 }
 0x92e   : > { %7056 = vmatprep.mubr.bf16.mxu1 %v11208_v22  ;;  %v6693_v34 = vpop.f32.mrf.mxu0 }
 0x92f   : > { %v6734_v18 = vpop.f32.mrf.mxu1  ;;  %v7229_v60 = vadd.f32 %v6731_v33, %v11014_v17  ;;  %v6733_v49 = vadd.f32 %v6732_v10, %v6692_v24  ;;  %6986 = vmatpush1.bf16.msra.mxu0 %v6309_v27  ;;  %v5886_v17 = vld [vmem:[%s9892_s2 + $0x1c68] sm:$0xff]  ;;  %v6277_v27 = vunpack.c.l.s8.bf16 %v5885_v31  ;;  %v6398_v10 = vunpack.c.h.s8.bf16 %v5942_v5 }
 0x930   : > { %7027 = vmatpush1.bf16.msra.mxu1 %v6437_v6  ;;  %v6694_v54 = vpop.f32.mrf.mxu0  ;;  %6987 = vmatprep.subr.bf16.mxu0 %v6302_v16  ;;  %v6286_v26 = vunpack.c.h.s8.bf16 %v5886_v17  ;;  %v6278_v39 = vunpack.c.l.s8.bf16 %v5886_v17  ;;  %v6405_v6 = vunpack.c.l.s8.bf16 %v5949_v9  ;;  %v5877_v16 = vld [vmem:[%s9892_s2 + $0x1c20] sm:$0xff]  ;;  %v6262_v33 = vunpack.c.l.s8.bf16 %v5878_v59  ;;  %v5934_v24 = vld [vmem:[%s9892_s2 + $0x1de8] sm:$0xff] }
 0x931   : > { %v6735_v13 = vpop.f32.mrf.mxu1  ;;  %7028 = vmatprep.subr.bf16.mxu1 %v6430_v42  ;;  %v7279_v12 = vmul.f32 %v7242_v30, %v7229_v60  ;;  %v7230_v51 = vadd.f32 %v6733_v49, %v11017_v28  ;;  %v5941_v42 = vld [vmem:[%s9892_s2 + $0x1e20] sm:$0xff]  ;;  %v6269_v57 = vunpack.c.h.s8.bf16 %v5877_v16  ;;  %v6390_v30 = vunpack.c.l.s8.bf16 %v5942_v5  ;;  %v5918_v31 = vld [vmem:[%s9892_s2 + $0x1d68] sm:$0xff] }
 0x932   : > { %v6397_v44 = vunpack.c.h.s8.bf16 %v5941_v42  ;;  %v6389_v34 = vunpack.c.l.s8.bf16 %v5941_v42  ;;  %v6382_v18 = vunpack.c.h.s8.bf16 %v5934_v24  ;;  %v5933_v49 = vld [vmem:[%s9892_s2 + $0x1de0] sm:$0xff]  ;;  %v6374_v13 = vunpack.c.l.s8.bf16 %v5934_v24  ;;  %v5982_v9 = vld [vmem:[%s9892_s2 + $0x1f68] sm:$0xff] }
 0x933   : > { %v7330_v50 = vadd.f32 %v7293_v4, %v7279_v12  ;;  %v7280_v37 = vmul.f32 %v7246_v1, %v7230_v51  ;;  %6988 = vmatpush1.bf16.msra.mxu0 %v6301_v29  ;;  %v5998_v4 = vld [vmem:[%s9892_s2 + $0x1fe8] sm:$0xff]  ;;  %v6261_v1 = vunpack.c.l.s8.bf16 %v5877_v16  ;;  %v5997_v29 = vld [vmem:[%s9892_s2 + $0x1fe0] sm:$0xff]  ;;  %v6373_v51 = vunpack.c.l.s8.bf16 %v5933_v49 }
 0x934   : > { %7029 = vmatpush1.bf16.msra.mxu1 %v6429_v48  ;;  %6989 = vmatprep.subr.bf16.mxu0 %v6294_v62  ;;  %v6510_v60 = vunpack.c.h.s8.bf16 %v5998_v4  ;;  %v6381_v48 = vunpack.c.h.s8.bf16 %v5933_v49  ;;  %v6509_v54 = vunpack.c.h.s8.bf16 %v5997_v29  ;;  %v6502_v62 = vunpack.c.l.s8.bf16 %v5998_v4  ;;  %v5990_v12 = vld [vmem:[%s9892_s2 + $0x1fa8] sm:$0xff] }
 0x935   : > { %7030 = vmatprep.subr.bf16.mxu1 %v6422_v38  ;;  %v7331_v2 = vadd.f32 %v7297_v46, %v7280_v37  ;;  %v7338_v28 = vmax.f32 %v7330_v50, 0.0  ;;  %v5926_v38 = vld [vmem:[%s9892_s2 + $0x1da8] sm:$0xff]  ;;  %v6501_v46 = vunpack.c.l.s8.bf16 %v5997_v29  ;;  %v6494_v3 = vunpack.c.h.s8.bf16 %v5990_v12  ;;  %v5925_v50 = vld [vmem:[%s9892_s2 + $0x1da0] sm:$0xff] }
 0x936   : > { %v6366_v17 = vunpack.c.h.s8.bf16 %v5926_v38  ;;  %v5989_v37 = vld [vmem:[%s9892_s2 + $0x1fa0] sm:$0xff]  ;;  %v6342_v5 = vunpack.c.l.s8.bf16 %v5918_v31 }
 0x937   : > { %v7339_v7 = vmax.f32 %v7331_v2, 0.0  ;;  %6990 = vmatpush1.bf16.msra.mxu0 %v6293_v55  ;;  %v6365_v55 = vunpack.c.h.s8.bf16 %v5925_v50  ;;  %v6357_v2 = vunpack.c.l.s8.bf16 %v5925_v50 }
 0x938   : > { %7031 = vmatpush1.bf16.msra.mxu1 %v6421_v36  ;;  %6991 = vmatprep.subr.bf16.mxu0 %v6286_v26  ;;  %v6493_v36 = vunpack.c.h.s8.bf16 %v5989_v37  ;;  %v6358_v26 = vunpack.c.l.s8.bf16 %v5926_v38 }
 0x939   : > { %7032 = vmatprep.subr.bf16.mxu1 %v6414_v25  ;;  %v11412_v32 = vpack.c.bf16 %v7339_v7, %v7338_v28  ;;  %v6486_v25 = vunpack.c.l.s8.bf16 %v5990_v12  ;;  %v6485_v28 = vunpack.c.l.s8.bf16 %v5989_v37  ;;  %v6350_v7 = vunpack.c.h.s8.bf16 %v5918_v31 }
 0x93b   : > { %6992 = vmatpush1.bf16.msra.mxu0 %v6285_v21  ;;  %v6478_v21 = vunpack.c.h.s8.bf16 %v5982_v9 }
 0x93c   : > { %7033 = vmatpush1.bf16.msra.mxu1 %v6413_v52  ;;  %6993 = vmatprep.subr.bf16.mxu0 %v6278_v39  ;;  %v5917_v52 = vld [vmem:[%s9892_s2 + $0x1d60] sm:$0xff] }
 0x93d   : > { %7034 = vmatprep.subr.bf16.mxu1 %v6406_v43  ;;  %v5981_v39 = vld [vmem:[%s9892_s2 + $0x1f60] sm:$0xff]  ;;  %v6349_v43 = vunpack.c.h.s8.bf16 %v5917_v52 }
 0x93e   : > { %v6477_v59 = vunpack.c.h.s8.bf16 %v5981_v39  ;;  %v6469_v16 = vunpack.c.l.s8.bf16 %v5981_v39 }
 0x93f   : > { %6994 = vmatpush1.bf16.msra.mxu0 %v6277_v27  ;;  %v6470_v27 = vunpack.c.l.s8.bf16 %v5982_v9 }
 0x940   : > { %7035 = vmatpush1.bf16.msra.mxu1 %v6405_v6  ;;  %6995 = vmatprep.subr.bf16.mxu0 %v6270_v20  ;;  %v5910_v6 = vld [vmem:[%s9892_s2 + $0x1d28] sm:$0xff] }
 0x941   : > { %7036 = vmatprep.subr.bf16.mxu1 %v6398_v10  ;;  %v5974_v20 = vld [vmem:[%s9892_s2 + $0x1f28] sm:$0xff]  ;;  %v6341_v10 = vunpack.c.l.s8.bf16 %v5917_v52  ;;  %v6334_v42 = vunpack.c.h.s8.bf16 %v5910_v6  ;;  %v6326_v4 = vunpack.c.l.s8.bf16 %v5910_v6 }
 0x943   : > { %6996 = vmatpush1.bf16.msra.mxu0 %v6269_v57  ;;  %v6462_v57 = vunpack.c.h.s8.bf16 %v5974_v20 }
 0x944   : > { %7037 = vmatpush1.bf16.msra.mxu1 %v6397_v44  ;;  %6997 = vmatprep.subr.bf16.mxu0 %v6262_v33  ;;  %v5909_v44 = vld [vmem:[%s9892_s2 + $0x1d20] sm:$0xff] }
 0x945   : > { %7038 = vmatprep.subr.bf16.mxu1 %v6390_v30  ;;  %v5973_v33 = vld [vmem:[%s9892_s2 + $0x1f20] sm:$0xff]  ;;  %v6333_v30 = vunpack.c.h.s8.bf16 %v5909_v44 }
 0x946   : > { %v6461_v24 = vunpack.c.h.s8.bf16 %v5973_v33  ;;  %v6453_v49 = vunpack.c.l.s8.bf16 %v5973_v33 }
 0x947   : > { %6998 = vmatpush1.bf16.msra.mxu0 %v6261_v1  ;;  %v6454_v1 = vunpack.c.l.s8.bf16 %v5974_v20  ;;  %v5760_v20 = vld [vmem:[%s9892_s2 + $0x1878] sm:$0xff] }
 0x948   : > { %7039 = vmatpush1.bf16.msra.mxu1 %v6389_v34  ;;  %6999 = vmatprep.subr.bf16.mxu0 %v6382_v18  ;;  %v5776_v34 = vld [vmem:[%s9892_s2 + $0x18f8] sm:$0xff] }
 0x949   : > { %7040 = vmatprep.subr.bf16.mxu1 %v6510_v60  ;;  %v5840_v18 = vld [vmem:[%s9892_s2 + $0x1af8] sm:$0xff]  ;;  %v6325_v60 = vunpack.c.l.s8.bf16 %v5909_v44  ;;  %v6064_v29 = vunpack.c.h.s8.bf16 %v5776_v34  ;;  %v6056_v12 = vunpack.c.l.s8.bf16 %v5776_v34  ;;  %v5823_v44 = vld [vmem:[%s9892_s2 + $0x1a70] sm:$0xff] }
 0x94a   : > { %v5816_v34 = vld [vmem:[%s9892_s2 + $0x1a38] sm:$0xff] }
 0x94b   : > { %7000 = vmatpush2.bf16.msra.mxu0 %v6381_v48  ;;  %v6192_v48 = vunpack.c.h.s8.bf16 %v5840_v18 }
 0x94c   : > { %7041 = vmatpush2.bf16.msra.mxu1 %v6509_v54  ;;  %7001 = vmatprep.subr.bf16.mxu0 %v6374_v13  ;;  %v5775_v54 = vld [vmem:[%s9892_s2 + $0x18f0] sm:$0xff] }
 0x94d   : > { %7042 = vmatprep.subr.bf16.mxu1 %v6502_v62  ;;  %v5839_v13 = vld [vmem:[%s9892_s2 + $0x1af0] sm:$0xff]  ;;  %v6063_v62 = vunpack.c.h.s8.bf16 %v5775_v54 }
 0x94e   : > { %v6191_v38 = vunpack.c.h.s8.bf16 %v5839_v13 }
 0x94f   : > { %7002 = vmatpush2.bf16.msra.mxu0 %v6373_v51  ;;  %v6184_v51 = vunpack.c.l.s8.bf16 %v5840_v18 }
 0x950   : > { %7043 = vmatpush2.bf16.msra.mxu1 %v6501_v46  ;;  %7003 = vmatprep.subr.bf16.mxu0 %v6366_v17  ;;  %v5768_v46 = vld [vmem:[%s9892_s2 + $0x18b8] sm:$0xff] }
 0x951   : > { %7044 = vmatprep.subr.bf16.mxu1 %v6494_v3  ;;  %v5832_v17 = vld [vmem:[%s9892_s2 + $0x1ab8] sm:$0xff]  ;;  %v6048_v31 = vunpack.c.h.s8.bf16 %v5768_v46 }
 0x952   : > { %v6176_v9 = vunpack.c.h.s8.bf16 %v5832_v17  ;;  %v6168_v6 = vunpack.c.l.s8.bf16 %v5832_v17 }
 0x953   : > { %7004 = vmatpush2.bf16.msra.mxu0 %v6365_v55  ;;  %v6055_v55 = vunpack.c.l.s8.bf16 %v5775_v54  ;;  %v5815_v54 = vld [vmem:[%s9892_s2 + $0x1a30] sm:$0xff] }
 0x954   : > { %7045 = vmatpush2.bf16.msra.mxu1 %v6493_v36  ;;  %7005 = vmatprep.subr.bf16.mxu0 %v6358_v26  ;;  %v6183_v36 = vunpack.c.l.s8.bf16 %v5839_v13 }
 0x955   : > { %7046 = vmatprep.subr.bf16.mxu1 %v6486_v25 }
 0x957   : > { %7006 = vmatpush2.bf16.msra.mxu0 %v6357_v2  ;;  %v5767_v2 = vld [vmem:[%s9892_s2 + $0x18b0] sm:$0xff] }
 0x958   : > { %7047 = vmatpush2.bf16.msra.mxu1 %v6485_v28  ;;  %7007 = vmatprep.subr.bf16.mxu0 %v6350_v7  ;;  %v5831_v28 = vld [vmem:[%s9892_s2 + $0x1ab0] sm:$0xff]  ;;  %v6047_v39 = vunpack.c.h.s8.bf16 %v5767_v2 }
 0x959   : > { %7048 = vmatprep.subr.bf16.mxu1 %v6478_v21 }
 0x95b   : > { %7008 = vmatpush2.bf16.msra.mxu0 %v6349_v43  ;;  %v6175_v43 = vunpack.c.h.s8.bf16 %v5831_v28 }
 0x95c   : > { %7049 = vmatpush2.bf16.msra.mxu1 %v6477_v59  ;;  %7009 = vmatprep.subr.bf16.mxu0 %v6342_v5 }
 0x95d   : > { %7050 = vmatprep.subr.bf16.mxu1 %v6470_v27  ;;  %v6040_v27 = vunpack.c.l.s8.bf16 %v5768_v46  ;;  %v5872_v46 = vld [vmem:[%s9892_s2 + $0x1bf8] sm:$0xff] }
 0x95f   : > { %7010 = vmatpush2.bf16.msra.mxu0 %v6341_v10  ;;  %v5824_v10 = vld [vmem:[%s9892_s2 + $0x1a78] sm:$0xff] }
 0x960   : > { %7051 = vmatpush2.bf16.msra.mxu1 %v6469_v16  ;;  %7011 = vmatprep.subr.bf16.mxu0 %v6334_v42  ;;  %v6032_v16 = vunpack.c.h.s8.bf16 %v5760_v20  ;;  %v6160_v42 = vunpack.c.h.s8.bf16 %v5824_v10 }
 0x961   : > { %7052 = vmatprep.subr.bf16.mxu1 %v6462_v57  ;;  %v5759_v57 = vld [vmem:[%s9892_s2 + $0x1870] sm:$0xff] }
 0x962   : > { %v6031_v33 = vunpack.c.h.s8.bf16 %v5759_v57  ;;  %v6023_v18 = vunpack.c.l.s8.bf16 %v5759_v57 }
 0x963   : > { %7012 = vmatpush2.bf16.msra.mxu0 %v6333_v30  ;;  %v6159_v30 = vunpack.c.h.s8.bf16 %v5823_v44 }
 0x964   : > { %7053 = vmatpush2.bf16.msra.mxu1 %v6461_v24  ;;  %7013 = vmatprep.subr.bf16.mxu0 %v6326_v4  ;;  %v6024_v24 = vunpack.c.l.s8.bf16 %v5760_v20  ;;  %v6152_v4 = vunpack.c.l.s8.bf16 %v5824_v10 }
 0x965   : > { %7054 = vmatprep.subr.bf16.mxu1 %v6454_v1  ;;  %v5752_v1 = vld [vmem:[%s9892_s2 + $0x1838] sm:$0xff] }
 0x967   : > { %7014 = vmatpush2.bf16.msra.mxu0 %v6325_v60  ;;  %v6151_v60 = vunpack.c.l.s8.bf16 %v5823_v44 }
 0x968   : > { %7055 = vmatpush2.bf16.msra.mxu1 %v6453_v49  ;;  %7065 = vmatprep.subr.bf16.mxu0 %v6064_v29  ;;  %v6016_v49 = vunpack.c.h.s8.bf16 %v5752_v1  ;;  %v6144_v29 = vunpack.c.h.s8.bf16 %v5816_v34 }
 0x969   : > { %7106 = vmatprep.subr.bf16.mxu1 %v6192_v48  ;;  %v5751_v48 = vld [vmem:[%s9892_s2 + $0x1830] sm:$0xff] }
 0x96a   : > { %v6771_v3 = vpop.f32.mrf.mxu0  ;;  %7016 = vmatmul.mubr.bf16.vlgmr.msra.gmra.mxu0 %v11252_v40  ;;  %v6015_v13 = vunpack.c.h.s8.bf16 %v5751_v48  ;;  %v6007_v17 = vunpack.c.l.s8.bf16 %v5751_v48 }
 0x96b   : > { %v6812_v50 = vpop.f32.mrf.mxu1  ;;  %7057 = vmatmul.mubr.bf16.vlgmr.msra.gmra.mxu1 %v11258_v47  ;;  %7066 = vmatpush1.bf16.msra.mxu0 %v6063_v62  ;;  %v6143_v62 = vunpack.c.h.s8.bf16 %v5815_v54 }
 0x96c   : > { %v11442_v37 = vadd.f32 %v6812_v50, %v6771_v3  ;;  %7107 = vmatpush1.bf16.msra.mxu1 %v6191_v38  ;;  %v6773_v26 = vpop.f32.mrf.mxu0  ;;  %7067 = vmatprep.subr.bf16.mxu0 %v6056_v12  ;;  %v6008_v38 = vunpack.c.l.s8.bf16 %v5752_v1  ;;  %v6136_v12 = vunpack.c.l.s8.bf16 %v5816_v34  ;;  %v6135_v3 = vunpack.c.l.s8.bf16 %v5815_v54 }
 0x96d   : > { %v6814_v25 = vpop.f32.mrf.mxu1  ;;  %7108 = vmatprep.subr.bf16.mxu1 %v6184_v51  ;;  %7097 = vmatprep.mubr.bf16.mxu0 %v11140_v0  ;;  %v6039_v0 = vunpack.c.l.s8.bf16 %v5767_v2  ;;  %v5808_v51 = vld [vmem:[%s9892_s2 + $0x19f8] sm:$0xff]  ;;  %v6248_v2 = vunpack.c.l.s8.bf16 %v5872_v46 }
 0x96e   : > { %v11446_v7 = vadd.f32 %v6814_v25, %v6773_v26  ;;  %7138 = vmatprep.mubr.bf16.mxu1 %v11146_v23  ;;  %v6775_v21 = vpop.f32.mrf.mxu0  ;;  %v6167_v23 = vunpack.c.l.s8.bf16 %v5831_v28  ;;  %v6128_v50 = vunpack.c.h.s8.bf16 %v5808_v51  ;;  %v5871_v26 = vld [vmem:[%s9892_s2 + $0x1bf0] sm:$0xff]  ;;  %v5800_v28 = vld [vmem:[%s9892_s2 + $0x19b8] sm:$0xff] }
 0x96f   : > { %v6816_v52 = vpop.f32.mrf.mxu1  ;;  %7068 = vmatpush1.bf16.msra.mxu0 %v6055_v55  ;;  %v6256_v55 = vunpack.c.h.s8.bf16 %v5872_v46  ;;  %v5864_v21 = vld [vmem:[%s9892_s2 + $0x1bb8] sm:$0xff]  ;;  %v6104_v10 = vunpack.c.l.s8.bf16 %v5800_v28 }
 0x970   : > { %7109 = vmatpush1.bf16.msra.mxu1 %v6183_v36  ;;  %v6776_v59 = vpop.f32.mrf.mxu0  ;;  %7069 = vmatprep.subr.bf16.mxu0 %v6048_v31  ;;  %v5807_v36 = vld [vmem:[%s9892_s2 + $0x19f0] sm:$0xff]  ;;  %v6255_v31 = vunpack.c.h.s8.bf16 %v5871_v26 }
 0x971   : > { %v6817_v5 = vpop.f32.mrf.mxu1  ;;  %7110 = vmatprep.subr.bf16.mxu1 %v6176_v9  ;;  %v6127_v25 = vunpack.c.h.s8.bf16 %v5807_v36  ;;  %v6120_v9 = vunpack.c.l.s8.bf16 %v5808_v51  ;;  %v6119_v52 = vunpack.c.l.s8.bf16 %v5807_v36  ;;  %v6240_v59 = vunpack.c.h.s8.bf16 %v5864_v21 }
 0x972   : > { %v5799_v5 = vld [vmem:[%s9892_s2 + $0x19b0] sm:$0xff] }
 0x973   : > { %7070 = vmatpush1.bf16.msra.mxu0 %v6047_v39  ;;  %v6247_v39 = vunpack.c.l.s8.bf16 %v5871_v26 }
 0x974   : > { %7111 = vmatpush1.bf16.msra.mxu1 %v6175_v43  ;;  %7071 = vmatprep.subr.bf16.mxu0 %v6040_v27  ;;  %v6112_v43 = vunpack.c.h.s8.bf16 %v5800_v28  ;;  %v5863_v27 = vld [vmem:[%s9892_s2 + $0x1bb0] sm:$0xff] }
 0x975   : > { %7112 = vmatprep.subr.bf16.mxu1 %v6168_v6  ;;  %v6111_v6 = vunpack.c.h.s8.bf16 %v5799_v5  ;;  %v6239_v20 = vunpack.c.h.s8.bf16 %v5863_v27  ;;  %v6231_v57 = vunpack.c.l.s8.bf16 %v5863_v27 }
 0x977   : > { %7072 = vmatpush1.bf16.msra.mxu0 %v6039_v0  ;;  %v6232_v0 = vunpack.c.l.s8.bf16 %v5864_v21 }
 0x978   : > { %7113 = vmatpush1.bf16.msra.mxu1 %v6167_v23  ;;  %7073 = vmatprep.subr.bf16.mxu0 %v6032_v16  ;;  %v5792_v23 = vld [vmem:[%s9892_s2 + $0x1978] sm:$0xff] }
 0x979   : > { %7114 = vmatprep.subr.bf16.mxu1 %v6160_v42  ;;  %v5856_v16 = vld [vmem:[%s9892_s2 + $0x1b78] sm:$0xff]  ;;  %v6103_v42 = vunpack.c.l.s8.bf16 %v5799_v5  ;;  %v6096_v44 = vunpack.c.h.s8.bf16 %v5792_v23  ;;  %v6088_v34 = vunpack.c.l.s8.bf16 %v5792_v23 }
 0x97b   : > { %7074 = vmatpush1.bf16.msra.mxu0 %v6031_v33  ;;  %v6224_v33 = vunpack.c.h.s8.bf16 %v5856_v16 }
 0x97c   : > { %7115 = vmatpush1.bf16.msra.mxu1 %v6159_v30  ;;  %7075 = vmatprep.subr.bf16.mxu0 %v6024_v24  ;;  %v5791_v30 = vld [vmem:[%s9892_s2 + $0x1970] sm:$0xff] }
 0x97d   : > { %7116 = vmatprep.subr.bf16.mxu1 %v6152_v4  ;;  %v5855_v24 = vld [vmem:[%s9892_s2 + $0x1b70] sm:$0xff]  ;;  %v6095_v4 = vunpack.c.h.s8.bf16 %v5791_v30 }
 0x97e   : > { %v6223_v1 = vunpack.c.h.s8.bf16 %v5855_v24  ;;  %v6215_v48 = vunpack.c.l.s8.bf16 %v5855_v24 }
 0x97f   : > { %7076 = vmatpush1.bf16.msra.mxu0 %v6023_v18  ;;  %v6216_v18 = vunpack.c.l.s8.bf16 %v5856_v16 }
 0x980   : > { %7117 = vmatpush1.bf16.msra.mxu1 %v6151_v60  ;;  %7077 = vmatprep.subr.bf16.mxu0 %v6016_v49  ;;  %v5784_v60 = vld [vmem:[%s9892_s2 + $0x1938] sm:$0xff] }
 0x981   : > { %7118 = vmatprep.subr.bf16.mxu1 %v6144_v29  ;;  %v5848_v49 = vld [vmem:[%s9892_s2 + $0x1b38] sm:$0xff]  ;;  %v6087_v29 = vunpack.c.l.s8.bf16 %v5791_v30  ;;  %v6080_v54 = vunpack.c.h.s8.bf16 %v5784_v60  ;;  %v6072_v46 = vunpack.c.l.s8.bf16 %v5784_v60 }
 0x983   : > { %7078 = vmatpush1.bf16.msra.mxu0 %v6015_v13  ;;  %v6208_v13 = vunpack.c.h.s8.bf16 %v5848_v49 }
 0x984   : > { %7119 = vmatpush1.bf16.msra.mxu1 %v6143_v62  ;;  %7079 = vmatprep.subr.bf16.mxu0 %v6008_v38  ;;  %v5783_v62 = vld [vmem:[%s9892_s2 + $0x1930] sm:$0xff] }
 0x985   : > { %7120 = vmatprep.subr.bf16.mxu1 %v6136_v12  ;;  %v5847_v38 = vld [vmem:[%s9892_s2 + $0x1b30] sm:$0xff]  ;;  %v6079_v12 = vunpack.c.h.s8.bf16 %v5783_v62 }
 0x986   : > { %v6207_v51 = vunpack.c.h.s8.bf16 %v5847_v38  ;;  %v6199_v36 = vunpack.c.l.s8.bf16 %v5847_v38 }
 0x987   : > { %7080 = vmatpush1.bf16.msra.mxu0 %v6007_v17  ;;  %v6200_v17 = vunpack.c.l.s8.bf16 %v5848_v49 }
 0x988   : > { %7121 = vmatpush1.bf16.msra.mxu1 %v6135_v3  ;;  %7081 = vmatprep.subr.bf16.mxu0 %v6128_v50  ;;  %v5904_v3 = vld [vmem:[%s9892_s2 + $0x1cf8] sm:$0xff] }
 0x989   : > { %7122 = vmatprep.subr.bf16.mxu1 %v6256_v55  ;;  %v5968_v50 = vld [vmem:[%s9892_s2 + $0x1ef8] sm:$0xff]  ;;  %v6071_v55 = vunpack.c.l.s8.bf16 %v5783_v62  ;;  %v6320_v26 = vunpack.c.h.s8.bf16 %v5904_v3  ;;  %v6312_v21 = vunpack.c.l.s8.bf16 %v5904_v3  ;;  %v5887_v3 = vld [vmem:[%s9892_s2 + $0x1c70] sm:$0xff] }
 0x98b   : > { %7082 = vmatpush2.bf16.msra.mxu0 %v6127_v25  ;;  %v6448_v25 = vunpack.c.h.s8.bf16 %v5968_v50 }
 0x98c   : > { %7123 = vmatpush2.bf16.msra.mxu1 %v6255_v31  ;;  %7083 = vmatprep.subr.bf16.mxu0 %v6120_v9  ;;  %v5903_v31 = vld [vmem:[%s9892_s2 + $0x1cf0] sm:$0xff] }
 0x98d   : > { %7124 = vmatprep.subr.bf16.mxu1 %v6248_v2  ;;  %v5967_v9 = vld [vmem:[%s9892_s2 + $0x1ef0] sm:$0xff]  ;;  %v6319_v2 = vunpack.c.h.s8.bf16 %v5903_v31 }
 0x98e   : > { %v6447_v28 = vunpack.c.h.s8.bf16 %v5967_v9 }
 0x98f   : > { %7084 = vmatpush2.bf16.msra.mxu0 %v6119_v52  ;;  %v6440_v52 = vunpack.c.l.s8.bf16 %v5968_v50  ;;  %v5951_v50 = vld [vmem:[%s9892_s2 + $0x1e70] sm:$0xff] }
 0x990   : > { %7125 = vmatpush2.bf16.msra.mxu1 %v6247_v39  ;;  %7085 = vmatprep.subr.bf16.mxu0 %v6112_v43  ;;  %v7249_v39 = vsub.s32 2, %v10025_v63  ;;  %v5896_v43 = vld [vmem:[%s9892_s2 + $0x1cb8] sm:$0xff] }
 0x991   : > { %7126 = vmatprep.subr.bf16.mxu1 %v6240_v59  ;;  %v5960_v59 = vld [vmem:[%s9892_s2 + $0x1eb8] sm:$0xff] }
 0x993   : > { %7086 = vmatpush2.bf16.msra.mxu0 %v6111_v6  ;;  %v7253_v6 = vsub.s32 3, %v10025_v63 }
 0x994   : > { %7127 = vmatpush2.bf16.msra.mxu1 %v6239_v20  ;;  %7087 = vmatprep.subr.bf16.mxu0 %v6104_v10  ;;  %v6311_v10 = vunpack.c.l.s8.bf16 %v5903_v31 }
 0x995   : > { %7128 = vmatprep.subr.bf16.mxu1 %v6232_v0  ;;  %v6439_v0 = vunpack.c.l.s8.bf16 %v5967_v9  ;;  %v7254_v24 = vrot.slane %v11388_v19, %v7253_v6 }
 0x997   : > { %7088 = vmatpush2.bf16.msra.mxu0 %v6103_v42  ;;  %v6304_v42 = vunpack.c.h.s8.bf16 %v5896_v43 }
 0x998   : > { %7129 = vmatpush2.bf16.msra.mxu1 %v6231_v57  ;;  %7089 = vmatprep.subr.bf16.mxu0 %v6096_v44  ;;  %v6432_v57 = vunpack.c.h.s8.bf16 %v5960_v59  ;;  %v5895_v44 = vld [vmem:[%s9892_s2 + $0x1cb0] sm:$0xff] }
 0x999   : > { %7130 = vmatprep.subr.bf16.mxu1 %v6224_v33  ;;  %v5959_v33 = vld [vmem:[%s9892_s2 + $0x1eb0] sm:$0xff]  ;;  %v6303_v60 = vunpack.c.h.s8.bf16 %v5895_v44 }
 0x99a   : > { %v6431_v49 = vunpack.c.h.s8.bf16 %v5959_v33 }
 0x99b   : > { %7090 = vmatpush2.bf16.msra.mxu0 %v6095_v4 }
 0x99c   : > { %7131 = vmatpush2.bf16.msra.mxu1 %v6223_v1  ;;  %7091 = vmatprep.subr.bf16.mxu0 %v6088_v34 }
 0x99d   : > { %7132 = vmatprep.subr.bf16.mxu1 %v6216_v18 }
 0x99f   : > { %7092 = vmatpush2.bf16.msra.mxu0 %v6087_v29 }
 0x9a0   : > { %7133 = vmatpush2.bf16.msra.mxu1 %v6215_v48  ;;  %7093 = vmatprep.subr.bf16.mxu0 %v6080_v54  ;;  %v7305_v54 = vrot.slane %v11395_v45, %v7253_v6  ;;  %v5943_v6 = vld [vmem:[%s9892_s2 + $0x1e30] sm:$0xff] }
 0x9a1   : > { %7134 = vmatprep.subr.bf16.mxu1 %v6208_v13  ;;  %v5952_v13 = vld [vmem:[%s9892_s2 + $0x1e78] sm:$0xff] }
 0x9a2   : > { %v6408_v31 = vunpack.c.l.s8.bf16 %v5952_v13 }
 0x9a3   : > { %7094 = vmatpush2.bf16.msra.mxu0 %v6079_v12  ;;  %v6295_v12 = vunpack.c.l.s8.bf16 %v5895_v44  ;;  %v6391_v44 = vunpack.c.l.s8.bf16 %v5943_v6 }
 0x9a4   : > { %7135 = vmatpush2.bf16.msra.mxu1 %v6207_v51  ;;  %7095 = vmatprep.subr.bf16.mxu0 %v6072_v46  ;;  %v6423_v51 = vunpack.c.l.s8.bf16 %v5959_v33 }
 0x9a5   : > { %7136 = vmatprep.subr.bf16.mxu1 %v6200_v17  ;;  %v6416_v17 = vunpack.c.h.s8.bf16 %v5952_v13  ;;  %v5920_v13 = vld [vmem:[%s9892_s2 + $0x1d78] sm:$0xff] }
 0x9a7   : > { %7096 = vmatpush2.bf16.msra.mxu0 %v6071_v55 }
 0x9a8   : > { %7137 = vmatpush2.bf16.msra.mxu1 %v6199_v36  ;;  %7147 = vmatprep.subr.bf16.mxu0 %v6320_v26  ;;  %v6415_v26 = vunpack.c.h.s8.bf16 %v5951_v50 }
 0x9a9   : > { %7188 = vmatprep.subr.bf16.mxu1 %v6448_v25 }
 0x9aa   : > { %v6853_v5 = vpop.f32.mrf.mxu0  ;;  %7098 = vmatmul.mubr.bf16.vlgmr.msra.gmra.mxu0 %v11193_v61  ;;  %v7250_v61 = vrot.slane %v11388_v19, %v7249_v39 }
 0x9ab   : > { %v6894_v27 = vpop.f32.mrf.mxu1  ;;  %7139 = vmatmul.mubr.bf16.vlgmr.msra.gmra.mxu1 %v11202_v56  ;;  %v6854_v20 = vadd.f32 %v6853_v5, %v11442_v37  ;;  %7148 = vmatpush1.bf16.msra.mxu0 %v6319_v2  ;;  %v7301_v37 = vrot.slane %v11395_v45, %v7249_v39  ;;  %v6287_v45 = vunpack.c.h.s8.bf16 %v5887_v3  ;;  %v5880_v2 = vld [vmem:[%s9892_s2 + $0x1c38] sm:$0xff]  ;;  %v6279_v39 = vunpack.c.l.s8.bf16 %v5887_v3  ;;  %v5983_v3 = vld [vmem:[%s9892_s2 + $0x1f70] sm:$0xff] }
 0x9ac   : > { %7189 = vmatpush1.bf16.msra.mxu1 %v6447_v28  ;;  %v6855_v23 = vpop.f32.mrf.mxu0  ;;  %7149 = vmatprep.subr.bf16.mxu0 %v6312_v21  ;;  %v5944_v28 = vld [vmem:[%s9892_s2 + $0x1e38] sm:$0xff]  ;;  %v7373_v21 = vrot.slane %v11412_v32, %v10034_v11  ;;  %v6399_v32 = vunpack.c.h.s8.bf16 %v5943_v6 }
 0x9ad   : > { %v6896_v16 = vpop.f32.mrf.mxu1  ;;  %7190 = vmatprep.subr.bf16.mxu1 %v6440_v52  ;;  %v6895_v30 = vadd.f32 %v6894_v27, %v6854_v20  ;;  %v6856_v56 = vadd.f32 %v6855_v23, %v11446_v7  ;;  %7179 = vmatprep.mubr.bf16.mxu0 %v11198_v53  ;;  %v6296_v53 = vunpack.c.l.s8.bf16 %v5896_v43  ;;  %v6407_v43 = vunpack.c.l.s8.bf16 %v5951_v50  ;;  %v5879_v27 = vld [vmem:[%s9892_s2 + $0x1c30] sm:$0xff] }
 0x9ae   : > { %7220 = vmatprep.mubr.bf16.mxu1 %v11208_v22  ;;  %v6857_v4 = vpop.f32.mrf.mxu0  ;;  %v6424_v22 = vunpack.c.l.s8.bf16 %v5960_v59  ;;  %v6272_v59 = vunpack.c.h.s8.bf16 %v5880_v2  ;;  %v6400_v5 = vunpack.c.h.s8.bf16 %v5944_v28  ;;  %v6392_v23 = vunpack.c.l.s8.bf16 %v5944_v28  ;;  %v5911_v28 = vld [vmem:[%s9892_s2 + $0x1d30] sm:$0xff] }
 0x9af   : > { %v6898_v1 = vpop.f32.mrf.mxu1  ;;  %v7231_v34 = vadd.f32 %v6895_v30, %v11098_v35  ;;  %v6897_v18 = vadd.f32 %v6896_v16, %v6856_v56  ;;  %7150 = vmatpush1.bf16.msra.mxu0 %v6311_v10  ;;  %v5888_v35 = vld [vmem:[%s9892_s2 + $0x1c78] sm:$0xff]  ;;  %v6271_v10 = vunpack.c.h.s8.bf16 %v5879_v27  ;;  %v5999_v56 = vld [vmem:[%s9892_s2 + $0x1ff0] sm:$0xff] }
 0x9b0   : > { %7191 = vmatpush1.bf16.msra.mxu1 %v6439_v0  ;;  %v6858_v7 = vpop.f32.mrf.mxu0  ;;  %7151 = vmatprep.subr.bf16.mxu0 %v6304_v42  ;;  %v6288_v46 = vunpack.c.h.s8.bf16 %v5888_v35  ;;  %v6280_v25 = vunpack.c.l.s8.bf16 %v5888_v35  ;;  %v6264_v0 = vunpack.c.l.s8.bf16 %v5880_v2  ;;  %v5936_v16 = vld [vmem:[%s9892_s2 + $0x1df8] sm:$0xff] }
 0x9b1   : > { %v6899_v29 = vpop.f32.mrf.mxu1  ;;  %7192 = vmatprep.subr.bf16.mxu1 %v6432_v57  ;;  %v7281_v48 = vmul.f32 %v7250_v61, %v7231_v34  ;;  %v7232_v19 = vadd.f32 %v6897_v18, %v11101_v14  ;;  %v6000_v42 = vld [vmem:[%s9892_s2 + $0x1ff8] sm:$0xff]  ;;  %v6263_v57 = vunpack.c.l.s8.bf16 %v5879_v27  ;;  %v6384_v33 = vunpack.c.h.s8.bf16 %v5936_v16  ;;  %v5935_v61 = vld [vmem:[%s9892_s2 + $0x1df0] sm:$0xff] }
 0x9b2   : > { %v6512_v30 = vunpack.c.h.s8.bf16 %v6000_v42  ;;  %v6376_v4 = vunpack.c.l.s8.bf16 %v5936_v16  ;;  %v6504_v1 = vunpack.c.l.s8.bf16 %v6000_v42  ;;  %v5928_v34 = vld [vmem:[%s9892_s2 + $0x1db8] sm:$0xff] }
 0x9b3   : > { %v7332_v62 = vadd.f32 %v7301_v37, %v7281_v48  ;;  %v7282_v38 = vmul.f32 %v7254_v24, %v7232_v19  ;;  %7152 = vmatpush1.bf16.msra.mxu0 %v6303_v60  ;;  %v6383_v37 = vunpack.c.h.s8.bf16 %v5935_v61  ;;  %v6511_v24 = vunpack.c.h.s8.bf16 %v5999_v56  ;;  %v5992_v18 = vld [vmem:[%s9892_s2 + $0x1fb8] sm:$0xff] }
 0x9b4   : > { %7193 = vmatpush1.bf16.msra.mxu1 %v6431_v49  ;;  %7153 = vmatprep.subr.bf16.mxu0 %v6296_v53  ;;  %v6375_v60 = vunpack.c.l.s8.bf16 %v5935_v61  ;;  %v6503_v49 = vunpack.c.l.s8.bf16 %v5999_v56  ;;  %v6368_v7 = vunpack.c.h.s8.bf16 %v5928_v34  ;;  %v6496_v29 = vunpack.c.h.s8.bf16 %v5992_v18  ;;  %v5927_v53 = vld [vmem:[%s9892_s2 + $0x1db0] sm:$0xff] }
 0x9b5   : > { %7194 = vmatprep.subr.bf16.mxu1 %v6424_v22  ;;  %v7333_v55 = vadd.f32 %v7305_v54, %v7282_v38  ;;  %v7340_v14 = vmax.f32 %v7332_v62, 0.0  ;;  %v5991_v22 = vld [vmem:[%s9892_s2 + $0x1fb0] sm:$0xff]  ;;  %v6367_v48 = vunpack.c.h.s8.bf16 %v5927_v53  ;;  %v6360_v54 = vunpack.c.l.s8.bf16 %v5928_v34  ;;  %v5984_v62 = vld [vmem:[%s9892_s2 + $0x1f78] sm:$0xff] }
 0x9b6   : > { %v6495_v19 = vunpack.c.h.s8.bf16 %v5991_v22  ;;  %v6488_v35 = vunpack.c.l.s8.bf16 %v5992_v18  ;;  %v6359_v38 = vunpack.c.l.s8.bf16 %v5927_v53 }
 0x9b7   : > { %v7341_v36 = vmax.f32 %v7333_v55, 0.0  ;;  %7154 = vmatpush1.bf16.msra.mxu0 %v6295_v12  ;;  %v6487_v12 = vunpack.c.l.s8.bf16 %v5991_v22  ;;  %v6479_v55 = vunpack.c.h.s8.bf16 %v5983_v3 }
 0x9b8   : > { %7195 = vmatpush1.bf16.msra.mxu1 %v6423_v51  ;;  %7155 = vmatprep.subr.bf16.mxu0 %v6288_v46  ;;  %v6352_v51 = vunpack.c.h.s8.bf16 %v5920_v13  ;;  %v6480_v46 = vunpack.c.h.s8.bf16 %v5984_v62 }
 0x9b9   : > { %7196 = vmatprep.subr.bf16.mxu1 %v6416_v17  ;;  %v9001_v9 = vpack.c.bf16 %v7341_v36, %v7340_v14  ;;  %v5919_v17 = vld [vmem:[%s9892_s2 + $0x1d70] sm:$0xff]  ;;  %v6344_v14 = vunpack.c.l.s8.bf16 %v5920_v13  ;;  %v6472_v36 = vunpack.c.l.s8.bf16 %v5984_v62 }
 0x9ba   : > { %v6351_v50 = vunpack.c.h.s8.bf16 %v5919_v17 }
 0x9bb   : > { %v7380_v52 = vrot.slane %v9001_v9, %v10034_v11  ;;  %7156 = vmatpush1.bf16.msra.mxu0 %v6287_v45  ;;  %v5912_v45 = vld [vmem:[%s9892_s2 + $0x1d38] sm:$0xff] }
 0x9bc   : > { %7197 = vmatpush1.bf16.msra.mxu1 %v6415_v26  ;;  %7157 = vmatprep.subr.bf16.mxu0 %v6280_v25  ;;  %v5976_v26 = vld [vmem:[%s9892_s2 + $0x1f38] sm:$0xff]  ;;  %v6343_v25 = vunpack.c.l.s8.bf16 %v5919_v17  ;;  %v6336_v9 = vunpack.c.h.s8.bf16 %v5912_v45 }
 0x9bd   : > { %7198 = vmatprep.subr.bf16.mxu1 %v6408_v31  ;;  %v11507_v20 = vcombine.low %v7373_v21, %v7380_v52  ;;  %v6471_v31 = vunpack.c.l.s8.bf16 %v5983_v3  ;;  %v6464_v2 = vunpack.c.h.s8.bf16 %v5976_v26  ;;  %v5975_v21 = vld [vmem:[%s9892_s2 + $0x1f30] sm:$0xff]  ;;  %v6335_v52 = vunpack.c.h.s8.bf16 %v5911_v28  ;;  %s9004_s2 = sshll.u32 %s9901_s27, 3 }
 0x9be   : > { %v6455_v27 = vunpack.c.l.s8.bf16 %v5975_v21  ;;  %s7414_s17 = scalar_lea.vmem [#allocation3], %s9004_s2 }
 0x9bf   : > { %7158 = vmatpush1.bf16.msra.mxu0 %v6279_v39  ;;  %v6463_v39 = vunpack.c.h.s8.bf16 %v5975_v21 }
 0x9c0   : > { %7199 = vmatpush1.bf16.msra.mxu1 %v6407_v43  ;;  %7159 = vmatprep.subr.bf16.mxu0 %v6272_v59  ;;  %v6328_v43 = vunpack.c.l.s8.bf16 %v5912_v45  ;;  %v6456_v59 = vunpack.c.l.s8.bf16 %v5976_v26 }
 0x9c1   : > { %7200 = vmatprep.subr.bf16.mxu1 %v6400_v5  ;;  %v6327_v5 = vunpack.c.l.s8.bf16 %v5911_v28 }
 0x9c3   : > { %7160 = vmatpush1.bf16.msra.mxu0 %v6271_v10 }
 0x9c4   : > { %7201 = vmatpush1.bf16.msra.mxu1 %v6399_v32  ;;  %7161 = vmatprep.subr.bf16.mxu0 %v6264_v0 }
 0x9c5   : > { %7202 = vmatprep.subr.bf16.mxu1 %v6392_v23 }
 0x9c7   : > { %7162 = vmatpush1.bf16.msra.mxu0 %v6263_v57 }
 0x9c8   : > { %7203 = vmatpush1.bf16.msra.mxu1 %v6391_v44  ;;  %7163 = vmatprep.subr.bf16.mxu0 %v6384_v33 }
 0x9c9   : > { %7204 = vmatprep.subr.bf16.mxu1 %v6512_v30  ;;  %v7257_v30 = vsub.s32 4, %v10025_v63 }
 0x9cb   : > { %7164 = vmatpush2.bf16.msra.mxu0 %v6383_v37 }
 0x9cc   : > { %7205 = vmatpush2.bf16.msra.mxu1 %v6511_v24  ;;  %7165 = vmatprep.subr.bf16.mxu0 %v6376_v4  ;;  %v7261_v24 = vsub.s32 5, %v10025_v63 }
 0x9cd   : > { %7206 = vmatprep.subr.bf16.mxu1 %v6504_v1  ;;  %v9464_v1 = vld [vmem:[%s9915_s21] ss:$2 sm:$0xff] }
 0x9ce   : > { %v7258_v34 = vrot.slane %v9464_v1, %v7257_v30 }
 0x9cf   : > { %7166 = vmatpush2.bf16.msra.mxu0 %v6375_v60 }
 0x9d0   : > { %7207 = vmatpush2.bf16.msra.mxu1 %v6503_v49  ;;  %7167 = vmatprep.subr.bf16.mxu0 %v6368_v7 }
 0x9d1   : > { %7208 = vmatprep.subr.bf16.mxu1 %v6496_v29  ;;  %v9465_v29 = vld [vmem:[%s9915_s21 + $0x1] ss:$2 sm:$0xff] }
 0x9d2   : > { %v7309_v53 = vrot.slane %v9465_v29, %v7257_v30  ;;  %v7313_v62 = vrot.slane %v9465_v29, %v7261_v24 }
 0x9d3   : > { %7168 = vmatpush2.bf16.msra.mxu0 %v6367_v48  ;;  %v7262_v48 = vrot.slane %v9464_v1, %v7261_v24 }
 0x9d4   : > { %7209 = vmatpush2.bf16.msra.mxu1 %v6495_v19  ;;  %7169 = vmatprep.subr.bf16.mxu0 %v6360_v54 }
 0x9d5   : > { %7210 = vmatprep.subr.bf16.mxu1 %v6488_v35 }
 0x9d7   : > { %7170 = vmatpush2.bf16.msra.mxu0 %v6359_v38 }
 0x9d8   : > { %7211 = vmatpush2.bf16.msra.mxu1 %v6487_v12  ;;  %7171 = vmatprep.subr.bf16.mxu0 %v6352_v51 }
 0x9d9   : > { %7212 = vmatprep.subr.bf16.mxu1 %v6480_v46 }
 0x9db   : > { %7172 = vmatpush2.bf16.msra.mxu0 %v6351_v50 }
 0x9dc   : > { %7213 = vmatpush2.bf16.msra.mxu1 %v6479_v55  ;;  %7173 = vmatprep.subr.bf16.mxu0 %v6344_v14 }
 0x9dd   : > { %7214 = vmatprep.subr.bf16.mxu1 %v6472_v36 }
 0x9df   : > { %7174 = vmatpush2.bf16.msra.mxu0 %v6343_v25 }
 0x9e0   : > { %7215 = vmatpush2.bf16.msra.mxu1 %v6471_v31  ;;  %7175 = vmatprep.subr.bf16.mxu0 %v6336_v9  ;;  %v7265_v9 = vsub.s32 6, %v10025_v63 }
 0x9e1   : > { %7216 = vmatprep.subr.bf16.mxu1 %v6464_v2 }
 0x9e3   : > { %7176 = vmatpush2.bf16.msra.mxu0 %v6335_v52  ;;  %v7269_v52 = vsub.s32 7, %v10025_v63 }
 0x9e4   : > { %7217 = vmatpush2.bf16.msra.mxu1 %v6463_v39  ;;  %7177 = vmatprep.subr.bf16.mxu0 %v6328_v43 }
 0x9e5   : > { %7218 = vmatprep.subr.bf16.mxu1 %v6456_v59  ;;  %v7321_v30 = vrot.slane %v9465_v29, %v7269_v52 }
 0x9e7   : > { %7178 = vmatpush2.bf16.msra.mxu0 %v6327_v5  ;;  %v7266_v5 = vrot.slane %v9464_v1, %v7265_v9 }
 0x9e8   : > { %7219 = vmatpush2.bf16.msra.mxu1 %v6455_v27 }
 0x9ea   : > { %v6935_v6 = vpop.f32.mrf.mxu0  ;;  %7180 = vmatmul.mubr.bf16.vlgmr.msra.gmra.mxu0 %v11252_v40 }
 0x9eb   : > { %v6976_v10 = vpop.f32.mrf.mxu1  ;;  %7221 = vmatmul.mubr.bf16.vlgmr.msra.gmra.mxu1 %v11258_v47 }
 0x9ec   : > { %v6977_v32 = vadd.f32 %v6976_v10, %v6935_v6  ;;  %v6937_v0 = vpop.f32.mrf.mxu0 }
 0x9ed   : > { %v6978_v23 = vpop.f32.mrf.mxu1 }
 0x9ee   : > { %v6979_v16 = vadd.f32 %v6978_v23, %v6937_v0  ;;  %v6939_v42 = vpop.f32.mrf.mxu0  ;;  %v7317_v0 = vrot.slane %v9465_v29, %v7265_v9 }
 0x9ef   : > { %v6980_v57 = vpop.f32.mrf.mxu1 }
 0x9f0   : > { %v6940_v44 = vpop.f32.mrf.mxu0 }
 0x9f1   : > { %v6981_v33 = vpop.f32.mrf.mxu1 }
 0xa2a   : > { %v7017_v61 = vpop.f32.mrf.mxu0 }
 0xa2b   : > { %v7058_v56 = vpop.f32.mrf.mxu1  ;;  %v7018_v37 = vadd.f32 %v7017_v61, %v6977_v32 }
 0xa2c   : > { %v7019_v40 = vpop.f32.mrf.mxu0 }
 0xa2d   : > { %v7060_v4 = vpop.f32.mrf.mxu1  ;;  %v7059_v47 = vadd.f32 %v7058_v56, %v7018_v37  ;;  %v7020_v18 = vadd.f32 %v7019_v40, %v6979_v16  ;;  %v7270_v16 = vrot.slane %v9464_v1, %v7269_v52  ;;  %v7403_v1 = vrot.slane %v11507_v20, %v10034_v11 }
 0xa2e   : > { %v7021_v60 = vpop.f32.mrf.mxu0 }
 0xa2f   : > { %v7062_v49 = vpop.f32.mrf.mxu1  ;;  %v7233_v7 = vadd.f32 %v7059_v47, %v11219_v41  ;;  %v7061_v22 = vadd.f32 %v7060_v4, %v7020_v18 }
 0xa30   : > { %v7022_v19 = vpop.f32.mrf.mxu0 }
 0xa31   : > { %v7063_v54 = vpop.f32.mrf.mxu1  ;;  %v7283_v35 = vmul.f32 %v7258_v34, %v7233_v7  ;;  %v7234_v13 = vadd.f32 %v7061_v22, %v11222_v15 }
 0xa33   : > { %v7334_v38 = vadd.f32 %v7309_v53, %v7283_v35  ;;  %v7284_v12 = vmul.f32 %v7262_v48, %v7234_v13 }
 0xa35   : > { %v7335_v51 = vadd.f32 %v7313_v62, %v7284_v12  ;;  %v7342_v46 = vmax.f32 %v7334_v38, 0.0 }
 0xa37   : > { %v7343_v17 = vmax.f32 %v7335_v51, 0.0 }
 0xa39   : > { %v9002_v3 = vpack.c.bf16 %v7343_v17, %v7342_v46 }
 0xa3b   : > { %v7387_v4 = vrot.slane %v9002_v3, %v10034_v11 }
 0xa6a   : > { %v7099_v50 = vpop.f32.mrf.mxu0 }
 0xa6b   : > { %v7140_v55 = vpop.f32.mrf.mxu1 }
 0xa6c   : > { %v7141_v14 = vadd.f32 %v7140_v55, %v7099_v50  ;;  %v7101_v41 = vpop.f32.mrf.mxu0 }
 0xa6d   : > { %v7142_v36 = vpop.f32.mrf.mxu1 }
 0xa6e   : > { %v7103_v45 = vpop.f32.mrf.mxu0  ;;  %v7143_v28 = vadd.f32 %v7142_v36, %v7101_v41 }
 0xa6f   : > { %v7144_v26 = vpop.f32.mrf.mxu1 }
 0xa70   : > { %v7104_v25 = vpop.f32.mrf.mxu0 }
 0xa71   : > { %v7145_v31 = vpop.f32.mrf.mxu1 }
 0xaaa   : > { %v7181_v2 = vpop.f32.mrf.mxu0 }
 0xaab   : > { %v7222_v15 = vpop.f32.mrf.mxu1  ;;  %v7182_v21 = vadd.f32 %v7181_v2, %v7141_v14 }
 0xaac   : > { %v7183_v39 = vpop.f32.mrf.mxu0 }
 0xaad   : > { %v7224_v43 = vpop.f32.mrf.mxu1  ;;  %v7223_v59 = vadd.f32 %v7222_v15, %v7182_v21  ;;  %v7184_v27 = vadd.f32 %v7183_v39, %v7143_v28 }
 0xaae   : > { %v7185_v6 = vpop.f32.mrf.mxu0 }
 0xaaf   : > { %v7226_v10 = vpop.f32.mrf.mxu1  ;;  %v7235_v32 = vadd.f32 %v7223_v59, %v11311_v58  ;;  %v7225_v23 = vadd.f32 %v7224_v43, %v7184_v27 }
 0xab0   : > { %v7186_v42 = vpop.f32.mrf.mxu0 }
 0xab1   : > { %v7227_v57 = vpop.f32.mrf.mxu1  ;;  %v7285_v44 = vmul.f32 %v7266_v5, %v7235_v32  ;;  %v7236_v33 = vadd.f32 %v7225_v23, %v11314_v8 }
 0xab3   : > { %v7336_v63 = vadd.f32 %v7317_v0, %v7285_v44  ;;  %v7286_v61 = vmul.f32 %v7270_v16, %v7236_v33 }
 0xab5   : > { %v7337_v56 = vadd.f32 %v7321_v30, %v7286_v61  ;;  %v7344_v37 = vmax.f32 %v7336_v63, 0.0 }
 0xab7   : > { %v7345_v24 = vmax.f32 %v7337_v56, 0.0 }
 0xab9   : > { %v9003_v40 = vpack.c.bf16 %v7345_v24, %v7344_v37 }
 0xabb   : > { %v7394_v58 = vrot.slane %v9003_v40, %v10034_v11 }
 0xabd   : > { %v7396_v47 = vcombine.low %v7387_v4, %v7394_v58 }
 0xabf   : > { %v7410_v34 = vrot.slane %v7396_v47, %v10034_v11 }
 0xac1   : > { %v7411_v18 = vcombine.low %v7403_v1, %v7410_v34 }
 0xac3   : > { %7415 = vst [vmem:[%s7414_s17] sm:$0xff] %v7411_v18 }
 0xac4 PF: > { %7419 = sbr.rel (%p1281_p7) target bundleno = 3229 (0xc9d), region = 87 }
 0xac9   : > { %v7524_v8 = vld [vmem:[%s12046_s3 + $0x138] sm:$0xff]  ;;  %v7523_v19 = vld [vmem:[%s12046_s3 + $0x130] sm:$0xff]  ;;  %v7620_v46 = vlaneseq  ;;  %v9582_v14 = vmov 1966171168   ;;  %v7522_v45 = vld [vmem:[%s12046_s3 + $0x128] sm:$0xff] }
 0xaca   : > { %v7532_v60 = vld [vmem:[%s12046_s3 + $0x178] sm:$0xff]  ;;  %v7563_v11 = vunpack.c.l.s8.bf16 %v7524_v8  ;;  %v7564_v49 = vunpack.c.h.s8.bf16 %v7524_v8  ;;  %v7531_v54 = vld [vmem:[%s12046_s3 + $0x170] sm:$0xff]  ;;  %v7562_v62 = vunpack.c.h.s8.bf16 %v7523_v19  ;;  %v7561_v50 = vunpack.c.l.s8.bf16 %v7523_v19  ;;  %v7530_v26 = vld [vmem:[%s12046_s3 + $0x168] sm:$0xff] }
 0xacb   : > { %v7520_v20 = vld [vmem:[%s12046_s3 + $0x118] sm:$0xff]  ;;  %v7579_v7 = vunpack.c.l.s8.bf16 %v7532_v60  ;;  %v7580_v29 = vunpack.c.h.s8.bf16 %v7532_v60  ;;  %v7578_v38 = vunpack.c.h.s8.bf16 %v7531_v54  ;;  %v7519_v12 = vld [vmem:[%s12046_s3 + $0x110] sm:$0xff]  ;;  %v7577_v55 = vunpack.c.l.s8.bf16 %v7531_v54  ;;  %v7614_v2 = vld [vmem:[#allocation3 + $0x8] sm:$0xff] }
 0xacc   : > { %v7528_v53 = vld [vmem:[%s12046_s3 + $0x158] sm:$0xff]  ;;  %v7556_v22 = vunpack.c.h.s8.bf16 %v7520_v20  ;;  %9044 = vmatprep.subr.bf16.mxu0 %v7564_v49  ;;  %v7555_v35 = vunpack.c.l.s8.bf16 %v7520_v20  ;;  %v7527_v51 = vld [vmem:[%s12046_s3 + $0x150] sm:$0xff]  ;;  %v7554_v17 = vunpack.c.h.s8.bf16 %v7519_v12  ;;  %v7618_v41 = vunpack.c.l.s4 %v9582_v14  ;;  %v7518_v21 = vld [vmem:[%s12046_s3 + $0x108] sm:$0xff] }
 0xacd   : > { %v7572_v48 = vunpack.c.h.s8.bf16 %v7528_v53  ;;  %9066 = vmatprep.subr.bf16.mxu1 %v7580_v29  ;;  %v7571_v13 = vunpack.c.l.s8.bf16 %v7528_v53  ;;  %v7570_v3 = vunpack.c.h.s8.bf16 %v7527_v51  ;;  %v7621_v36 = vshrl.u32 %v7620_v46, 7  ;;  %v7526_v52 = vld [vmem:[%s12046_s3 + $0x148] sm:$0xff]  ;;  %v7521_v32 = vld [vmem:[%s12046_s3 + $0x120] sm:$0xff]  ;;  %v7540_v58 = vld [vmem:[%s12046_s3 + $0x1b8] sm:$0xff] }
 0xace   : > { %9045 = vmatpush3.bf16.msra.mxu0 %v7556_v22  ;;  %v7619_v25 = vunpack.c.0.s8 %v7618_v41  ;;  %v7553_v31 = vunpack.c.l.s8.bf16 %v7519_v12  ;;  %v7569_v9 = vunpack.c.l.s8.bf16 %v7527_v51  ;;  %v7560_v15 = vunpack.c.h.s8.bf16 %v7522_v45  ;;  %v7529_v0 = vld [vmem:[%s12046_s3 + $0x160] sm:$0xff]  ;;  %v7548_v47 = vld [vmem:[%s12046_s3 + $0x1f8] sm:$0xff]  ;;  %v7539_v54 = vld [vmem:[%s12046_s3 + $0x1b0] sm:$0xff] }
 0xacf   : > { %9067 = vmatpush3.bf16.msra.mxu1 %v7572_v48  ;;  %9046 = vmatprep.subr.bf16.mxu0 %v7563_v11  ;;  %v7576_v28 = vunpack.c.h.s8.bf16 %v7530_v26  ;;  %v7552_v59 = vunpack.c.h.s8.bf16 %v7518_v21  ;;  %v7568_v5 = vunpack.c.h.s8.bf16 %v7526_v52  ;;  %v7559_v27 = vunpack.c.l.s8.bf16 %v7522_v45  ;;  %v7517_v30 = vld [vmem:[%s12046_s3 + $0x100] sm:$0xff]  ;;  %v7536_v11 = vld [vmem:[%s12046_s3 + $0x198] sm:$0xff]  ;;  %v7535_v46 = vld [vmem:[%s12046_s3 + $0x190] sm:$0xff] }
 0xad0   : > { %9068 = vmatprep.subr.bf16.mxu1 %v7579_v7  ;;  %v11581_v39 = vsub.s32 %v7619_v25, %v7621_v36  ;;  %v7575_v6 = vunpack.c.l.s8.bf16 %v7530_v26  ;;  %v7616_v23 = vcombine.high %v7614_v2, %v7614_v2  ;;  %v7551_v42 = vunpack.c.l.s8.bf16 %v7518_v21  ;;  %v7525_v63 = vld [vmem:[%s12046_s3 + $0x140] sm:$0xff]  ;;  %v7544_v49 = vld [vmem:[%s12046_s3 + $0x1d8] sm:$0xff]  ;;  %v7538_v41 = vld [vmem:[%s12046_s3 + $0x1a8] sm:$0xff] }
 0xad1   : > { %v7567_v57 = vunpack.c.l.s8.bf16 %v7526_v52  ;;  %v7558_v44 = vunpack.c.h.s8.bf16 %v7521_v32  ;;  %v7574_v33 = vunpack.c.h.s8.bf16 %v7529_v0  ;;  %v7550_v37 = vunpack.c.h.s8.bf16 %v7517_v30  ;;  %v7546_v36 = vld [vmem:[%s12046_s3 + $0x1e8] sm:$0xff] }
 0xad2   : > { %9047 = vmatpush3.bf16.msra.mxu0 %v7555_v35  ;;  %v7623_v43 = vrot.slane %v7614_v2, %v11581_v39  ;;  %v11598_v56 = vrot.slane %v7616_v23, %v11581_v39  ;;  %v7566_v24 = vunpack.c.h.s8.bf16 %v7525_v63  ;;  %v7557_v40 = vunpack.c.l.s8.bf16 %v7521_v32  ;;  %v7547_v35 = vld [vmem:[%s12046_s3 + $0x1f0] sm:$0xff]  ;;  %v7542_v2 = vld [vmem:[%s12046_s3 + $0x1c8] sm:$0xff]  ;;  %v7541_v23 = vld [vmem:[%s12046_s3 + $0x1c0] sm:$0xff] }
 0xad3   : > { %9069 = vmatpush3.bf16.msra.mxu1 %v7571_v13  ;;  %9048 = vmatprep.subr.bf16.mxu0 %v7562_v62  ;;  %v7573_v4 = vunpack.c.l.s8.bf16 %v7529_v0  ;;  %v7549_v18 = vunpack.c.l.s8.bf16 %v7517_v30  ;;  %v7565_v8 = vunpack.c.l.s8.bf16 %v7525_v63  ;;  %v7596_v60 = vunpack.c.h.s8.bf16 %v7540_v58  ;;  %v7533_v0 = vld [vmem:[%s12046_s3 + $0x180] sm:$0xff]  ;;  %v7427_v30 = vld [vmem:[%s12046_s3 + $0x38] sm:$0xff] }
 0xad4   : > { %9070 = vmatprep.subr.bf16.mxu1 %v7578_v38  ;;  %v7631_v10 = vcombine.high %v7623_v43, %v7623_v43  ;;  %v7632_v1 = vcombine.high %v11598_v56, %v11598_v56  ;;  %v7639_v34 = vrot.slane %v7623_v43, %v11581_v39  ;;  %v7612_v20 = vunpack.c.h.s8.bf16 %v7548_v47  ;;  %v7537_v43 = vld [vmem:[%s12046_s3 + $0x1a0] sm:$0xff]  ;;  %v7435_v63 = vld [vmem:[%s12046_s3 + $0x78] sm:$0xff] }
 0xad5   : > { %v7588_v53 = vunpack.c.h.s8.bf16 %v7536_v11  ;;  %v7604_v22 = vunpack.c.h.s8.bf16 %v7544_v49  ;;  %v7595_v48 = vunpack.c.l.s8.bf16 %v7540_v58  ;;  %v7611_v19 = vunpack.c.l.s8.bf16 %v7548_v47  ;;  %v7423_v47 = vld [vmem:[%s12046_s3 + $0x18] sm:$0xff] }
 0xad6   : > { %9049 = vmatpush3.bf16.msra.mxu0 %v7554_v17  ;;  %v7653_v16 = vrot.slane %v7631_v10, %v11581_v39  ;;  %v7660_v7 = vrot.slane %v7632_v1, %v11581_v39  ;;  %v7661_v29 = vcombine.high %v7639_v34, %v7639_v34  ;;  %v7587_v62 = vunpack.c.l.s8.bf16 %v7536_v11  ;;  %v7543_v17 = vld [vmem:[%s12046_s3 + $0x1d0] sm:$0xff]  ;;  %v7431_v1 = vld [vmem:[%s12046_s3 + $0x58] sm:$0xff] }
 0xad7   : > { %9071 = vmatpush3.bf16.msra.mxu1 %v7570_v3  ;;  %9050 = vmatprep.subr.bf16.mxu0 %v7561_v50  ;;  %v7603_v38 = vunpack.c.l.s8.bf16 %v7544_v49  ;;  %v7594_v12 = vunpack.c.h.s8.bf16 %v7539_v54  ;;  %v7610_v51 = vunpack.c.h.s8.bf16 %v7547_v35  ;;  %v7586_v3 = vunpack.c.h.s8.bf16 %v7535_v46  ;;  %v7426_v11 = vld [vmem:[%s12046_s3 + $0x30] sm:$0xff] }
 0xad8   : > { %9072 = vmatprep.subr.bf16.mxu1 %v7577_v55  ;;  %v7663_v61 = vcombine.high %v7653_v16, %v7653_v16  ;;  %7705 = vmatprep.mubr.bf16.mxu0 %v7653_v16  ;;  %v7664_v13 = vcombine.high %v7660_v7, %v7660_v7  ;;  %v7602_v50 = vunpack.c.h.s8.bf16 %v7543_v17  ;;  %v7593_v55 = vunpack.c.l.s8.bf16 %v7539_v54  ;;  %v7434_v49 = vld [vmem:[%s12046_s3 + $0x70] sm:$0xff] }
 0xad9   : > { %v7609_v14 = vunpack.c.l.s8.bf16 %v7547_v35  ;;  %v7585_v45 = vunpack.c.l.s8.bf16 %v7535_v46  ;;  %v7601_v26 = vunpack.c.l.s8.bf16 %v7543_v17  ;;  %v7592_v25 = vunpack.c.h.s8.bf16 %v7538_v41  ;;  %v7430_v54 = vld [vmem:[%s12046_s3 + $0x50] sm:$0xff] }
 0xada   : > { %9051 = vmatpush3.bf16.msra.mxu0 %v7553_v31  ;;  %7745 = vmatprep.mubr.bf16.mxu1 %v7663_v61  ;;  %v7608_v31 = vunpack.c.h.s8.bf16 %v7546_v36  ;;  %v7591_v21 = vunpack.c.l.s8.bf16 %v7538_v41  ;;  %v7607_v52 = vunpack.c.l.s8.bf16 %v7546_v36  ;;  %v7590_v10 = vunpack.c.h.s8.bf16 %v7537_v43 }
 0xadb   : > { %9073 = vmatpush3.bf16.msra.mxu1 %v7569_v9  ;;  %9052 = vmatprep.subr.bf16.mxu0 %v7560_v15  ;;  %v7534_v9 = vld [vmem:[%s12046_s3 + $0x188] sm:$0xff]  ;;  %v7483_v58 = vunpack.c.h.s8.bf16 %v7435_v63  ;;  %v7472_v17 = vunpack.c.l.s8.bf16 %v7430_v54 }
 0xadc   : > { %9074 = vmatprep.subr.bf16.mxu1 %v7576_v28  ;;  %v7584_v15 = vunpack.c.h.s8.bf16 %v7534_v9  ;;  %v7600_v28 = vunpack.c.h.s8.bf16 %v7542_v2 }
 0xade   : > { %9053 = vmatpush3.bf16.msra.mxu0 %v7552_v59  ;;  %v7545_v59 = vld [vmem:[%s12046_s3 + $0x1e0] sm:$0xff] }
 0xadf   : > { %9075 = vmatpush3.bf16.msra.mxu1 %v7568_v5  ;;  %9054 = vmatprep.subr.bf16.mxu0 %v7559_v27  ;;  %v11646_v5 = vld [vmem:[#allocation3] sm:$0xff]  ;;  %v7583_v27 = vunpack.c.l.s8.bf16 %v7534_v9  ;;  %v7606_v32 = vunpack.c.h.s8.bf16 %v7545_v59 }
 0xae0   : > { %9076 = vmatprep.subr.bf16.mxu1 %v7575_v6  ;;  %v7599_v6 = vunpack.c.l.s8.bf16 %v7542_v2  ;;  %v11656_v16 = vrot.slane %v11646_v5, %v11581_v39  ;;  %v7834_v9 = vcombine.high %v11646_v5, %v11646_v5 }
 0xae2   : > { %9055 = vmatpush3.bf16.msra.mxu0 %v7551_v42  ;;  %v7582_v42 = vunpack.c.h.s8.bf16 %v7533_v0  ;;  %v7849_v61 = vcombine.high %v11656_v16, %v11656_v16 }
 0xae3   : > { %9077 = vmatpush3.bf16.msra.mxu1 %v7567_v57  ;;  %9056 = vmatprep.subr.bf16.mxu0 %v7558_v44  ;;  %v7598_v57 = vunpack.c.h.s8.bf16 %v7541_v23  ;;  %v7589_v44 = vunpack.c.l.s8.bf16 %v7537_v43  ;;  %v7428_v43 = vld [vmem:[%s12046_s3 + $0x40] sm:$0xff] }
 0xae4   : > { %9078 = vmatprep.subr.bf16.mxu1 %v7574_v33  ;;  %v7605_v33 = vunpack.c.l.s8.bf16 %v7545_v59  ;;  %v11714_v59 = vrot.slane %v7834_v9, %v11581_v39 }
 0xae6   : > { %9057 = vmatpush3.bf16.msra.mxu0 %v7550_v37  ;;  %v7646_v37 = vrot.slane %v11598_v56, %v11581_v39  ;;  %v7459_v56 = vunpack.c.h.s8.bf16 %v7423_v47 }
 0xae7   : > { %9079 = vmatpush3.bf16.msra.mxu1 %v7566_v24  ;;  %9058 = vmatprep.subr.bf16.mxu0 %v7557_v40  ;;  %v7581_v24 = vunpack.c.l.s8.bf16 %v7533_v0  ;;  %v7597_v40 = vunpack.c.l.s8.bf16 %v7541_v23  ;;  %v7451_v0 = vld [vmem:[%s12046_s3 + $0xf8] sm:$0xff]  ;;  %v7850_v23 = vcombine.high %v11714_v59, %v11714_v59 }
 0xae8   : > { %9080 = vmatprep.subr.bf16.mxu1 %v7573_v4  ;;  %v7467_v4 = vunpack.c.h.s8.bf16 %v7427_v30 }
 0xaea   : > { %9059 = vmatpush3.bf16.msra.mxu0 %v7549_v18  ;;  %v7662_v18 = vcombine.high %v7646_v37, %v7646_v37 }
 0xaeb   : > { %9081 = vmatpush3.bf16.msra.mxu1 %v7565_v8  ;;  %9088 = vmatprep.subr.bf16.mxu0 %v7596_v60  ;;  %v7475_v8 = vunpack.c.h.s8.bf16 %v7431_v1  ;;  %v7466_v60 = vunpack.c.l.s8.bf16 %v7427_v30  ;;  %v7515_v30 = vunpack.c.h.s8.bf16 %v7451_v0 }
 0xaec   : > { %9110 = vmatprep.subr.bf16.mxu1 %v7612_v20  ;;  %v7482_v20 = vunpack.c.l.s8.bf16 %v7435_v63  ;;  %v7439_v63 = vld [vmem:[%s12046_s3 + $0x98] sm:$0xff] }
 0xaed   : > { %7706 = vmatmul.mubr.bf16.vlgmr.msra.gmra.mxu0 %v7639_v34  ;;  %v7871_v34 = vrot.slane %v7849_v61, %v11581_v39  ;;  %v7447_v61 = vld [vmem:[%s12046_s3 + $0xd8] sm:$0xff] }
 0xaee   : > { %7746 = vmatmul.mubr.bf16.vlgmr.msra.gmra.mxu1 %v7661_v29  ;;  %9089 = vmatpush3.bf16.msra.mxu0 %v7588_v53  ;;  %v7458_v29 = vunpack.c.l.s8.bf16 %v7423_v47  ;;  %v7474_v53 = vunpack.c.l.s8.bf16 %v7431_v1  ;;  %v7442_v47 = vld [vmem:[%s12046_s3 + $0xb0] sm:$0xff] }
 0xaef   : > { %9111 = vmatpush3.bf16.msra.mxu1 %v7604_v22  ;;  %9090 = vmatprep.subr.bf16.mxu0 %v7595_v48  ;;  %v7465_v22 = vunpack.c.h.s8.bf16 %v7426_v11  ;;  %v7481_v48 = vunpack.c.h.s8.bf16 %v7434_v49  ;;  %v7450_v1 = vld [vmem:[%s12046_s3 + $0xf0] sm:$0xff] }
 0xaf0   : > { %9112 = vmatprep.subr.bf16.mxu1 %v7611_v19  ;;  %7785 = vmatprep.mubr.bf16.mxu0 %v7660_v7  ;;  %v7881_v7 = vcombine.high %v7871_v34, %v7871_v34  ;;  %v7422_v19 = vld [vmem:[%s12046_s3 + $0x10] sm:$0xff] }
 0xaf1   : > { %7825 = vmatprep.mubr.bf16.mxu1 %v7664_v13  ;;  %v7457_v35 = vunpack.c.h.s8.bf16 %v7422_v19  ;;  %v7473_v13 = vunpack.c.h.s8.bf16 %v7430_v54  ;;  %v7456_v46 = vunpack.c.l.s8.bf16 %v7422_v19 }
 0xaf2   : > { %9091 = vmatpush3.bf16.msra.mxu0 %v7587_v62  ;;  %v7464_v62 = vunpack.c.l.s8.bf16 %v7426_v11  ;;  %v7446_v11 = vld [vmem:[%s12046_s3 + $0xd0] sm:$0xff] }
 0xaf3   : > { %9113 = vmatpush3.bf16.msra.mxu1 %v7603_v38  ;;  %9092 = vmatprep.subr.bf16.mxu0 %v7594_v12  ;;  %v7480_v38 = vunpack.c.l.s8.bf16 %v7434_v49  ;;  %v7425_v12 = vld [vmem:[%s12046_s3 + $0x28] sm:$0xff]  ;;  %v7504_v54 = vunpack.c.l.s8.bf16 %v7446_v11 }
 0xaf4   : > { %9114 = vmatprep.subr.bf16.mxu1 %v7610_v51  ;;  %v7433_v51 = vld [vmem:[%s12046_s3 + $0x68] sm:$0xff] }
 0xaf6   : > { %9093 = vmatpush3.bf16.msra.mxu0 %v7586_v3  ;;  %v7463_v3 = vunpack.c.h.s8.bf16 %v7425_v12 }
 0xaf7   : > { %9115 = vmatpush3.bf16.msra.mxu1 %v7602_v50  ;;  %9094 = vmatprep.subr.bf16.mxu0 %v7593_v55  ;;  %v7479_v50 = vunpack.c.h.s8.bf16 %v7433_v51  ;;  %v7421_v55 = vld [vmem:[%s12046_s3 + $0x8] sm:$0xff] }
 0xaf8   : > { %9116 = vmatprep.subr.bf16.mxu1 %v7609_v14  ;;  %v7429_v14 = vld [vmem:[%s12046_s3 + $0x48] sm:$0xff]  ;;  %v7455_v41 = vunpack.c.h.s8.bf16 %v7421_v55  ;;  %v7454_v2 = vunpack.c.l.s8.bf16 %v7421_v55  ;;  %v11763_v55 = vld [vmem:[#allocation3 + $0x10] sm:$0xff] }
 0xaf9   : > { %v7471_v36 = vunpack.c.h.s8.bf16 %v7429_v14 }
 0xafa   : > { %9095 = vmatpush3.bf16.msra.mxu0 %v7585_v45  ;;  %v7462_v45 = vunpack.c.l.s8.bf16 %v7425_v12 }
 0xafb   : > { %9117 = vmatpush3.bf16.msra.mxu1 %v7601_v26  ;;  %9096 = vmatprep.subr.bf16.mxu0 %v7592_v25  ;;  %v7478_v26 = vunpack.c.l.s8.bf16 %v7433_v51  ;;  %v7424_v25 = vld [vmem:[%s12046_s3 + $0x20] sm:$0xff] }
 0xafc   : > { %9118 = vmatprep.subr.bf16.mxu1 %v7608_v31  ;;  %v7432_v31 = vld [vmem:[%s12046_s3 + $0x60] sm:$0xff] }
 0xafe   : > { %9097 = vmatpush3.bf16.msra.mxu0 %v7584_v15  ;;  %v7470_v15 = vunpack.c.l.s8.bf16 %v7429_v14 }
 0xaff   : > { %9119 = vmatpush3.bf16.msra.mxu1 %v7600_v28  ;;  %9098 = vmatprep.subr.bf16.mxu0 %v7591_v21  ;;  %v7461_v28 = vunpack.c.h.s8.bf16 %v7424_v25  ;;  %v7477_v21 = vunpack.c.h.s8.bf16 %v7432_v31 }
 0xb00   : > { %9120 = vmatprep.subr.bf16.mxu1 %v7607_v52  ;;  %v7420_v52 = vld [vmem:[%s12046_s3] sm:$0xff] }
 0xb01   : > { %v7453_v5 = vunpack.c.h.s8.bf16 %v7420_v52 }
 0xb02   : > { %9099 = vmatpush3.bf16.msra.mxu0 %v7583_v27  ;;  %v7469_v27 = vunpack.c.h.s8.bf16 %v7428_v43 }
 0xb03   : > { %9121 = vmatpush3.bf16.msra.mxu1 %v7599_v6  ;;  %9100 = vmatprep.subr.bf16.mxu0 %v7590_v10  ;;  %v7460_v6 = vunpack.c.l.s8.bf16 %v7424_v25  ;;  %v7476_v10 = vunpack.c.l.s8.bf16 %v7432_v31  ;;  %v7444_v25 = vld [vmem:[%s12046_s3 + $0xc0] sm:$0xff]  ;;  %v11773_v31 = vrot.slane %v11763_v55, %v11581_v39 }
 0xb04   : > { %9122 = vmatprep.subr.bf16.mxu1 %v7606_v32  ;;  %v7443_v32 = vld [vmem:[%s12046_s3 + $0xb8] sm:$0xff] }
 0xb06   : > { %9101 = vmatpush3.bf16.msra.mxu0 %v7582_v42  ;;  %v7857_v42 = vrot.slane %v11656_v16, %v11581_v39  ;;  %v7491_v16 = vunpack.c.h.s8.bf16 %v7439_v63 }
 0xb07   : > { %9123 = vmatpush3.bf16.msra.mxu1 %v7598_v57  ;;  %9102 = vmatprep.subr.bf16.mxu0 %v7589_v44  ;;  %v7452_v57 = vunpack.c.l.s8.bf16 %v7420_v52  ;;  %v7468_v44 = vunpack.c.l.s8.bf16 %v7428_v43  ;;  %v8066_v52 = vld [vmem:[%s12046_s3 + $0x278] sm:$0xff]  ;;  %v8165_v43 = vcombine.high %v11773_v31, %v11773_v31 }
 0xb08   : > { %9124 = vmatprep.subr.bf16.mxu1 %v7605_v33  ;;  %v7499_v33 = vunpack.c.h.s8.bf16 %v7443_v32 }
 0xb0a   : > { %9103 = vmatpush3.bf16.msra.mxu0 %v7581_v24  ;;  %v7879_v24 = vcombine.high %v7857_v42, %v7857_v42 }
 0xb0b   : > { %9125 = vmatpush3.bf16.msra.mxu1 %v7597_v40  ;;  %9132 = vmatprep.subr.bf16.mxu0 %v7467_v4  ;;  %v7507_v40 = vunpack.c.h.s8.bf16 %v7447_v61  ;;  %v7498_v4 = vunpack.c.l.s8.bf16 %v7443_v32  ;;  %v8114_v32 = vunpack.c.h.s8.bf16 %v8066_v52 }
 0xb0c   : > { %9154 = vmatprep.subr.bf16.mxu1 %v7483_v58  ;;  %v7514_v58 = vunpack.c.l.s8.bf16 %v7451_v0  ;;  %v8054_v0 = vld [vmem:[%s12046_s3 + $0x218] sm:$0xff] }
 0xb0d   : > { %7786 = vmatmul.mubr.bf16.vlgmr.msra.gmra.mxu0 %v7646_v37  ;;  %v7878_v37 = vrot.slane %v7850_v23, %v11581_v39  ;;  %v8062_v23 = vld [vmem:[%s12046_s3 + $0x258] sm:$0xff] }
 0xb0e   : > { %7826 = vmatmul.mubr.bf16.vlgmr.msra.gmra.mxu1 %v7662_v18  ;;  %9133 = vmatpush3.bf16.msra.mxu0 %v7459_v56  ;;  %v7490_v18 = vunpack.c.l.s8.bf16 %v7439_v63  ;;  %v7506_v56 = vunpack.c.l.s8.bf16 %v7447_v61  ;;  %v8057_v63 = vld [vmem:[%s12046_s3 + $0x230] sm:$0xff] }
 0xb0f   : > { %9155 = vmatpush3.bf16.msra.mxu1 %v7475_v8  ;;  %9134 = vmatprep.subr.bf16.mxu0 %v7466_v60  ;;  %v7497_v8 = vunpack.c.h.s8.bf16 %v7442_v47  ;;  %v7513_v60 = vunpack.c.h.s8.bf16 %v7450_v1  ;;  %v8065_v61 = vld [vmem:[%s12046_s3 + $0x270] sm:$0xff] }
 0xb10   : > { %9156 = vmatprep.subr.bf16.mxu1 %v7482_v20  ;;  %7923 = vmatprep.mubr.bf16.mxu0 %v7871_v34  ;;  %v7882_v34 = vcombine.high %v7878_v37, %v7878_v37  ;;  %v7438_v20 = vld [vmem:[%s12046_s3 + $0x90] sm:$0xff] }
 0xb11   : > { %7963 = vmatprep.mubr.bf16.mxu1 %v7881_v7  ;;  %v7489_v49 = vunpack.c.h.s8.bf16 %v7438_v20  ;;  %v7505_v7 = vunpack.c.h.s8.bf16 %v7446_v11  ;;  %v7488_v19 = vunpack.c.l.s8.bf16 %v7438_v20 }
 0xb12   : > { %9135 = vmatpush3.bf16.msra.mxu0 %v7458_v29  ;;  %v7496_v29 = vunpack.c.l.s8.bf16 %v7442_v47  ;;  %v8061_v47 = vld [vmem:[%s12046_s3 + $0x250] sm:$0xff] }
 0xb13   : > { %9157 = vmatpush3.bf16.msra.mxu1 %v7474_v53  ;;  %9136 = vmatprep.subr.bf16.mxu0 %v7465_v22  ;;  %v7512_v53 = vunpack.c.l.s8.bf16 %v7450_v1  ;;  %v7441_v22 = vld [vmem:[%s12046_s3 + $0xa8] sm:$0xff]  ;;  %v8103_v11 = vunpack.c.l.s8.bf16 %v8061_v47 }
 0xb14   : > { %9158 = vmatprep.subr.bf16.mxu1 %v7481_v48  ;;  %v7449_v48 = vld [vmem:[%s12046_s3 + $0xe8] sm:$0xff] }
 0xb16   : > { %9137 = vmatpush3.bf16.msra.mxu0 %v7457_v35  ;;  %v7495_v35 = vunpack.c.h.s8.bf16 %v7441_v22 }
 0xb17   : > { %9159 = vmatpush3.bf16.msra.mxu1 %v7473_v13  ;;  %9138 = vmatprep.subr.bf16.mxu0 %v7464_v62  ;;  %v7511_v13 = vunpack.c.h.s8.bf16 %v7449_v48  ;;  %v7437_v62 = vld [vmem:[%s12046_s3 + $0x88] sm:$0xff] }
 0xb18   : > { %9160 = vmatprep.subr.bf16.mxu1 %v7480_v38  ;;  %v7445_v38 = vld [vmem:[%s12046_s3 + $0xc8] sm:$0xff]  ;;  %v7487_v12 = vunpack.c.h.s8.bf16 %v7437_v62  ;;  %v7486_v14 = vunpack.c.l.s8.bf16 %v7437_v62  ;;  %v8150_v62 = vcombine.high %v11763_v55, %v11763_v55 }
 0xb19   : > { %v7503_v51 = vunpack.c.h.s8.bf16 %v7445_v38 }
 0xb1a   : > { %9139 = vmatpush3.bf16.msra.mxu0 %v7456_v46  ;;  %v7494_v46 = vunpack.c.l.s8.bf16 %v7441_v22 }
 0xb1b   : > { %9161 = vmatpush3.bf16.msra.mxu1 %v7472_v17  ;;  %9140 = vmatprep.subr.bf16.mxu0 %v7463_v3  ;;  %v7510_v17 = vunpack.c.l.s8.bf16 %v7449_v48  ;;  %v7440_v3 = vld [vmem:[%s12046_s3 + $0xa0] sm:$0xff] }
 0xb1c   : > { %9162 = vmatprep.subr.bf16.mxu1 %v7479_v50  ;;  %v7448_v50 = vld [vmem:[%s12046_s3 + $0xe0] sm:$0xff] }
 0xb1e   : > { %9141 = vmatpush3.bf16.msra.mxu0 %v7455_v41  ;;  %v7502_v41 = vunpack.c.l.s8.bf16 %v7445_v38 }
 0xb1f   : > { %9163 = vmatpush3.bf16.msra.mxu1 %v7471_v36  ;;  %9142 = vmatprep.subr.bf16.mxu0 %v7462_v45  ;;  %v7493_v36 = vunpack.c.h.s8.bf16 %v7440_v3  ;;  %v7509_v45 = vunpack.c.h.s8.bf16 %v7448_v50 }
 0xb20   : > { %9164 = vmatprep.subr.bf16.mxu1 %v7478_v26  ;;  %v7436_v26 = vld [vmem:[%s12046_s3 + $0x80] sm:$0xff] }
 0xb21   : > { %v7485_v9 = vunpack.c.h.s8.bf16 %v7436_v26 }
 0xb22   : > { %9143 = vmatpush3.bf16.msra.mxu0 %v7454_v2  ;;  %v7501_v2 = vunpack.c.h.s8.bf16 %v7444_v25 }
 0xb23   : > { %9165 = vmatpush3.bf16.msra.mxu1 %v7470_v15  ;;  %9144 = vmatprep.subr.bf16.mxu0 %v7461_v28  ;;  %v7492_v15 = vunpack.c.l.s8.bf16 %v7440_v3  ;;  %v7508_v28 = vunpack.c.l.s8.bf16 %v7448_v50  ;;  %v8059_v3 = vld [vmem:[%s12046_s3 + $0x240] sm:$0xff]  ;;  %v11831_v50 = vrot.slane %v8150_v62, %v11581_v39 }
 0xb24   : > { %9166 = vmatprep.subr.bf16.mxu1 %v7477_v21  ;;  %v8058_v21 = vld [vmem:[%s12046_s3 + $0x238] sm:$0xff] }
 0xb26   : > { %9145 = vmatpush3.bf16.msra.mxu0 %v7453_v5  ;;  %v7864_v5 = vrot.slane %v11714_v59, %v11581_v39  ;;  %v8090_v59 = vunpack.c.h.s8.bf16 %v8054_v0 }
 0xb27   : > { %9167 = vmatpush3.bf16.msra.mxu1 %v7469_v27  ;;  %9146 = vmatprep.subr.bf16.mxu0 %v7460_v6  ;;  %v7484_v27 = vunpack.c.l.s8.bf16 %v7436_v26  ;;  %v7500_v6 = vunpack.c.l.s8.bf16 %v7444_v25  ;;  %v8082_v26 = vld [vmem:[%s12046_s3 + $0x2f8] sm:$0xff]  ;;  %v8166_v25 = vcombine.high %v11831_v50, %v11831_v50 }
 0xb28   : > { %9168 = vmatprep.subr.bf16.mxu1 %v7476_v10  ;;  %v8098_v10 = vunpack.c.h.s8.bf16 %v8058_v21 }
 0xb2a   : > { %9147 = vmatpush3.bf16.msra.mxu0 %v7452_v57  ;;  %v7880_v57 = vcombine.high %v7864_v5, %v7864_v5 }
 0xb2b   : > { %9169 = vmatpush3.bf16.msra.mxu1 %v7468_v44  ;;  %9176 = vmatprep.subr.bf16.mxu0 %v7499_v33  ;;  %v8106_v44 = vunpack.c.h.s8.bf16 %v8062_v23  ;;  %v8097_v33 = vunpack.c.l.s8.bf16 %v8058_v21  ;;  %v8146_v21 = vunpack.c.h.s8.bf16 %v8082_v26 }
 0xb2c   : > { %9198 = vmatprep.subr.bf16.mxu1 %v7515_v30  ;;  %v8113_v30 = vunpack.c.l.s8.bf16 %v8066_v52  ;;  %v8070_v52 = vld [vmem:[%s12046_s3 + $0x298] sm:$0xff] }
 0xb2d   : > { %7924 = vmatmul.mubr.bf16.vlgmr.msra.gmra.mxu0 %v7857_v42  ;;  %v8187_v42 = vrot.slane %v8165_v43, %v11581_v39  ;;  %v8078_v43 = vld [vmem:[%s12046_s3 + $0x2d8] sm:$0xff] }
 0xb2e   : > { %7964 = vmatmul.mubr.bf16.vlgmr.msra.gmra.mxu1 %v7879_v24  ;;  %9177 = vmatpush3.bf16.msra.mxu0 %v7491_v16  ;;  %v8089_v24 = vunpack.c.l.s8.bf16 %v8054_v0  ;;  %v8105_v16 = vunpack.c.l.s8.bf16 %v8062_v23  ;;  %v8073_v0 = vld [vmem:[%s12046_s3 + $0x2b0] sm:$0xff] }
 0xb2f   : > { %9199 = vmatpush3.bf16.msra.mxu1 %v7507_v40  ;;  %9178 = vmatprep.subr.bf16.mxu0 %v7498_v4  ;;  %v8096_v40 = vunpack.c.h.s8.bf16 %v8057_v63  ;;  %v8112_v4 = vunpack.c.h.s8.bf16 %v8065_v61  ;;  %v8081_v23 = vld [vmem:[%s12046_s3 + $0x2f0] sm:$0xff] }
 0xb30   : > { %9200 = vmatprep.subr.bf16.mxu1 %v7514_v58  ;;  %8003 = vmatprep.mubr.bf16.mxu0 %v7878_v37  ;;  %v8197_v37 = vcombine.high %v8187_v42, %v8187_v42  ;;  %v8053_v58 = vld [vmem:[%s12046_s3 + $0x210] sm:$0xff] }
 0xb31   : > { %8043 = vmatprep.mubr.bf16.mxu1 %v7882_v34  ;;  %v8088_v1 = vunpack.c.h.s8.bf16 %v8053_v58  ;;  %v8104_v34 = vunpack.c.h.s8.bf16 %v8061_v47  ;;  %v8087_v20 = vunpack.c.l.s8.bf16 %v8053_v58 }
 0xb32   : > { %9179 = vmatpush3.bf16.msra.mxu0 %v7490_v18  ;;  %v8095_v18 = vunpack.c.l.s8.bf16 %v8057_v63  ;;  %v8077_v63 = vld [vmem:[%s12046_s3 + $0x2d0] sm:$0xff] }
 0xb33   : > { %9201 = vmatpush3.bf16.msra.mxu1 %v7506_v56  ;;  %9180 = vmatprep.subr.bf16.mxu0 %v7497_v8  ;;  %v8111_v56 = vunpack.c.l.s8.bf16 %v8065_v61  ;;  %v8056_v8 = vld [vmem:[%s12046_s3 + $0x228] sm:$0xff]  ;;  %v8135_v47 = vunpack.c.l.s8.bf16 %v8077_v63 }
 0xb34   : > { %9202 = vmatprep.subr.bf16.mxu1 %v7513_v60  ;;  %v8064_v60 = vld [vmem:[%s12046_s3 + $0x268] sm:$0xff] }
 0xb36   : > { %9181 = vmatpush3.bf16.msra.mxu0 %v7489_v49  ;;  %v8094_v49 = vunpack.c.h.s8.bf16 %v8056_v8 }
 0xb37   : > { %9203 = vmatpush3.bf16.msra.mxu1 %v7505_v7  ;;  %9182 = vmatprep.subr.bf16.mxu0 %v7496_v29  ;;  %v8110_v7 = vunpack.c.h.s8.bf16 %v8064_v60  ;;  %v8052_v29 = vld [vmem:[%s12046_s3 + $0x208] sm:$0xff] }
 0xb38   : > { %9204 = vmatprep.subr.bf16.mxu1 %v7512_v53  ;;  %v8060_v53 = vld [vmem:[%s12046_s3 + $0x248] sm:$0xff]  ;;  %v8086_v22 = vunpack.c.h.s8.bf16 %v8052_v29  ;;  %v8085_v38 = vunpack.c.l.s8.bf16 %v8052_v29  ;;  %v11880_v29 = vld [vmem:[#allocation3 + $0x18] sm:$0xff] }
 0xb39   : > { %v8102_v48 = vunpack.c.h.s8.bf16 %v8060_v53 }
 0xb3a   : > { %9183 = vmatpush3.bf16.msra.mxu0 %v7488_v19  ;;  %v8093_v19 = vunpack.c.l.s8.bf16 %v8056_v8 }
 0xb3b   : > { %9205 = vmatpush3.bf16.msra.mxu1 %v7504_v54  ;;  %9184 = vmatprep.subr.bf16.mxu0 %v7495_v35  ;;  %v8109_v54 = vunpack.c.l.s8.bf16 %v8064_v60  ;;  %v8055_v35 = vld [vmem:[%s12046_s3 + $0x220] sm:$0xff] }
 0xb3c   : > { %9206 = vmatprep.subr.bf16.mxu1 %v7511_v13  ;;  %v8063_v13 = vld [vmem:[%s12046_s3 + $0x260] sm:$0xff] }
 0xb3e   : > { %9185 = vmatpush3.bf16.msra.mxu0 %v7487_v12  ;;  %v8101_v12 = vunpack.c.l.s8.bf16 %v8060_v53 }
 0xb3f   : > { %9207 = vmatpush3.bf16.msra.mxu1 %v7503_v51  ;;  %9186 = vmatprep.subr.bf16.mxu0 %v7494_v46  ;;  %v8092_v51 = vunpack.c.h.s8.bf16 %v8055_v35  ;;  %v8108_v46 = vunpack.c.h.s8.bf16 %v8063_v13 }
 0xb40   : > { %9208 = vmatprep.subr.bf16.mxu1 %v7510_v17  ;;  %v8051_v17 = vld [vmem:[%s12046_s3 + $0x200] sm:$0xff] }
 0xb41   : > { %v8084_v55 = vunpack.c.h.s8.bf16 %v8051_v17 }
 0xb42   : > { %9187 = vmatpush3.bf16.msra.mxu0 %v7486_v14  ;;  %v8100_v14 = vunpack.c.h.s8.bf16 %v8059_v3 }
 0xb43   : > { %9209 = vmatpush3.bf16.msra.mxu1 %v7502_v41  ;;  %9188 = vmatprep.subr.bf16.mxu0 %v7493_v36  ;;  %v8091_v41 = vunpack.c.l.s8.bf16 %v8055_v35  ;;  %v8107_v36 = vunpack.c.l.s8.bf16 %v8063_v13  ;;  %v8075_v35 = vld [vmem:[%s12046_s3 + $0x2c0] sm:$0xff]  ;;  %v11890_v13 = vrot.slane %v11880_v29, %v11581_v39 }
 0xb44   : > { %9210 = vmatprep.subr.bf16.mxu1 %v7509_v45  ;;  %v8074_v45 = vld [vmem:[%s12046_s3 + $0x2b8] sm:$0xff] }
 0xb46   : > { %9189 = vmatpush3.bf16.msra.mxu0 %v7485_v9  ;;  %v8173_v9 = vrot.slane %v11773_v31, %v11581_v39  ;;  %v8122_v31 = vunpack.c.h.s8.bf16 %v8070_v52 }
 0xb47   : > { %9211 = vmatpush3.bf16.msra.mxu1 %v7501_v2  ;;  %9190 = vmatprep.subr.bf16.mxu0 %v7492_v15  ;;  %v8083_v2 = vunpack.c.l.s8.bf16 %v8051_v17  ;;  %v8099_v15 = vunpack.c.l.s8.bf16 %v8059_v3  ;;  %v8383_v17 = vld [vmem:[%s12046_s3 + $0x378] sm:$0xff]  ;;  %v8482_v3 = vcombine.high %v11890_v13, %v11890_v13 }
 0xb48   : > { %9212 = vmatprep.subr.bf16.mxu1 %v7508_v28  ;;  %v8130_v28 = vunpack.c.h.s8.bf16 %v8074_v45 }
 0xb4a   : > { %9191 = vmatpush3.bf16.msra.mxu0 %v7484_v27  ;;  %v8195_v27 = vcombine.high %v8173_v9, %v8173_v9 }
 0xb4b   : > { %9213 = vmatpush3.bf16.msra.mxu1 %v7500_v6  ;;  %9220 = vmatprep.subr.bf16.mxu0 %v8098_v10  ;;  %v8138_v6 = vunpack.c.h.s8.bf16 %v8078_v43  ;;  %v8129_v10 = vunpack.c.l.s8.bf16 %v8074_v45  ;;  %v8431_v45 = vunpack.c.h.s8.bf16 %v8383_v17 }
 0xb4c   : > { %9242 = vmatprep.subr.bf16.mxu1 %v8114_v32  ;;  %v8145_v32 = vunpack.c.l.s8.bf16 %v8082_v26  ;;  %v8371_v26 = vld [vmem:[%s12046_s3 + $0x318] sm:$0xff] }
 0xb4d   : > { %8004 = vmatmul.mubr.bf16.vlgmr.msra.gmra.mxu0 %v7864_v5  ;;  %v8194_v5 = vrot.slane %v8166_v25, %v11581_v39  ;;  %v8379_v25 = vld [vmem:[%s12046_s3 + $0x358] sm:$0xff] }
 0xb4e   : > { %8044 = vmatmul.mubr.bf16.vlgmr.msra.gmra.mxu1 %v7880_v57  ;;  %9221 = vmatpush3.bf16.msra.mxu0 %v8090_v59  ;;  %v8121_v57 = vunpack.c.l.s8.bf16 %v8070_v52  ;;  %v8137_v59 = vunpack.c.l.s8.bf16 %v8078_v43  ;;  %v8374_v52 = vld [vmem:[%s12046_s3 + $0x330] sm:$0xff] }
 0xb4f   : > { %9243 = vmatpush3.bf16.msra.mxu1 %v8106_v44  ;;  %9222 = vmatprep.subr.bf16.mxu0 %v8097_v33  ;;  %v8128_v44 = vunpack.c.h.s8.bf16 %v8073_v0  ;;  %v8144_v33 = vunpack.c.h.s8.bf16 %v8081_v23  ;;  %v8382_v43 = vld [vmem:[%s12046_s3 + $0x370] sm:$0xff] }
 0xb50   : > { %9244 = vmatprep.subr.bf16.mxu1 %v8113_v30  ;;  %8239 = vmatprep.mubr.bf16.mxu0 %v8187_v42  ;;  %v8198_v42 = vcombine.high %v8194_v5, %v8194_v5  ;;  %v8069_v30 = vld [vmem:[%s12046_s3 + $0x290] sm:$0xff] }
 0xb51   : > { %8279 = vmatprep.mubr.bf16.mxu1 %v8197_v37  ;;  %v8120_v61 = vunpack.c.h.s8.bf16 %v8069_v30  ;;  %v8136_v37 = vunpack.c.h.s8.bf16 %v8077_v63  ;;  %v8119_v58 = vunpack.c.l.s8.bf16 %v8069_v30 }
 0xb52   : > { %9223 = vmatpush3.bf16.msra.mxu0 %v8089_v24  ;;  %v8127_v24 = vunpack.c.l.s8.bf16 %v8073_v0  ;;  %v8378_v0 = vld [vmem:[%s12046_s3 + $0x350] sm:$0xff] }
 0xb53   : > { %9245 = vmatpush3.bf16.msra.mxu1 %v8105_v16  ;;  %9224 = vmatprep.subr.bf16.mxu0 %v8096_v40  ;;  %v8143_v16 = vunpack.c.l.s8.bf16 %v8081_v23  ;;  %v8072_v40 = vld [vmem:[%s12046_s3 + $0x2a8] sm:$0xff]  ;;  %v8420_v63 = vunpack.c.l.s8.bf16 %v8378_v0 }
 0xb54   : > { %9246 = vmatprep.subr.bf16.mxu1 %v8112_v4  ;;  %v8080_v4 = vld [vmem:[%s12046_s3 + $0x2e8] sm:$0xff] }
 0xb56   : > { %9225 = vmatpush3.bf16.msra.mxu0 %v8088_v1  ;;  %v8126_v1 = vunpack.c.h.s8.bf16 %v8072_v40 }
 0xb57   : > { %9247 = vmatpush3.bf16.msra.mxu1 %v8104_v34  ;;  %9226 = vmatprep.subr.bf16.mxu0 %v8095_v18  ;;  %v8142_v34 = vunpack.c.h.s8.bf16 %v8080_v4  ;;  %v8068_v18 = vld [vmem:[%s12046_s3 + $0x288] sm:$0xff] }
 0xb58   : > { %9248 = vmatprep.subr.bf16.mxu1 %v8111_v56  ;;  %v8076_v56 = vld [vmem:[%s12046_s3 + $0x2c8] sm:$0xff]  ;;  %v8118_v8 = vunpack.c.h.s8.bf16 %v8068_v18  ;;  %v8117_v53 = vunpack.c.l.s8.bf16 %v8068_v18  ;;  %v8467_v18 = vcombine.high %v11880_v29, %v11880_v29 }
 0xb59   : > { %v8134_v60 = vunpack.c.h.s8.bf16 %v8076_v56 }
 0xb5a   : > { %9227 = vmatpush3.bf16.msra.mxu0 %v8087_v20  ;;  %v8125_v20 = vunpack.c.l.s8.bf16 %v8072_v40 }
 0xb5b   : > { %9249 = vmatpush3.bf16.msra.mxu1 %v8103_v11  ;;  %9228 = vmatprep.subr.bf16.mxu0 %v8094_v49  ;;  %v8141_v11 = vunpack.c.l.s8.bf16 %v8080_v4  ;;  %v8071_v49 = vld [vmem:[%s12046_s3 + $0x2a0] sm:$0xff] }
 0xb5c   : > { %9250 = vmatprep.subr.bf16.mxu1 %v8110_v7  ;;  %v8079_v7 = vld [vmem:[%s12046_s3 + $0x2e0] sm:$0xff] }
 0xb5e   : > { %9229 = vmatpush3.bf16.msra.mxu0 %v8086_v22  ;;  %v8133_v22 = vunpack.c.l.s8.bf16 %v8076_v56 }
 0xb5f   : > { %9251 = vmatpush3.bf16.msra.mxu1 %v8102_v48  ;;  %9230 = vmatprep.subr.bf16.mxu0 %v8093_v19  ;;  %v8124_v48 = vunpack.c.h.s8.bf16 %v8071_v49  ;;  %v8140_v19 = vunpack.c.h.s8.bf16 %v8079_v7 }
 0xb60   : > { %9252 = vmatprep.subr.bf16.mxu1 %v8109_v54  ;;  %v8067_v54 = vld [vmem:[%s12046_s3 + $0x280] sm:$0xff] }
 0xb61   : > { %v8116_v62 = vunpack.c.h.s8.bf16 %v8067_v54 }
 0xb62   : > { %9231 = vmatpush3.bf16.msra.mxu0 %v8085_v38  ;;  %v8132_v38 = vunpack.c.h.s8.bf16 %v8075_v35 }
 0xb63   : > { %9253 = vmatpush3.bf16.msra.mxu1 %v8101_v12  ;;  %9232 = vmatprep.subr.bf16.mxu0 %v8092_v51  ;;  %v8123_v12 = vunpack.c.l.s8.bf16 %v8071_v49  ;;  %v8139_v51 = vunpack.c.l.s8.bf16 %v8079_v7  ;;  %v8376_v49 = vld [vmem:[%s12046_s3 + $0x340] sm:$0xff]  ;;  %v11948_v7 = vrot.slane %v8467_v18, %v11581_v39 }
 0xb64   : > { %9254 = vmatprep.subr.bf16.mxu1 %v8108_v46  ;;  %v8375_v46 = vld [vmem:[%s12046_s3 + $0x338] sm:$0xff] }
 0xb66   : > { %9233 = vmatpush3.bf16.msra.mxu0 %v8084_v55  ;;  %v8180_v55 = vrot.slane %v11831_v50, %v11581_v39  ;;  %v8407_v50 = vunpack.c.h.s8.bf16 %v8371_v26 }
 0xb67   : > { %9255 = vmatpush3.bf16.msra.mxu1 %v8100_v14  ;;  %9234 = vmatprep.subr.bf16.mxu0 %v8091_v41  ;;  %v8115_v14 = vunpack.c.l.s8.bf16 %v8067_v54  ;;  %v8131_v41 = vunpack.c.l.s8.bf16 %v8075_v35  ;;  %v8399_v54 = vld [vmem:[%s12046_s3 + $0x3f8] sm:$0xff]  ;;  %v8483_v35 = vcombine.high %v11948_v7, %v11948_v7 }
 0xb68   : > { %9256 = vmatprep.subr.bf16.mxu1 %v8107_v36  ;;  %v8415_v36 = vunpack.c.h.s8.bf16 %v8375_v46 }
 0xb6a   : > { %9235 = vmatpush3.bf16.msra.mxu0 %v8083_v2  ;;  %v8196_v2 = vcombine.high %v8180_v55, %v8180_v55 }
 0xb6b   : > { %9257 = vmatpush3.bf16.msra.mxu1 %v8099_v15  ;;  %9264 = vmatprep.subr.bf16.mxu0 %v8130_v28  ;;  %v8423_v15 = vunpack.c.h.s8.bf16 %v8379_v25  ;;  %v8414_v28 = vunpack.c.l.s8.bf16 %v8375_v46  ;;  %v8463_v46 = vunpack.c.h.s8.bf16 %v8399_v54 }
 0xb6c   : > { %9286 = vmatprep.subr.bf16.mxu1 %v8146_v21  ;;  %v8430_v21 = vunpack.c.l.s8.bf16 %v8383_v17  ;;  %v8387_v17 = vld [vmem:[%s12046_s3 + $0x398] sm:$0xff] }
 0xb6d   : > { %8240 = vmatmul.mubr.bf16.vlgmr.msra.gmra.mxu0 %v8173_v9  ;;  %v8504_v9 = vrot.slane %v8482_v3, %v11581_v39  ;;  %v8395_v3 = vld [vmem:[%s12046_s3 + $0x3d8] sm:$0xff] }
 0xb6e   : > { %8280 = vmatmul.mubr.bf16.vlgmr.msra.gmra.mxu1 %v8195_v27  ;;  %9265 = vmatpush3.bf16.msra.mxu0 %v8122_v31  ;;  %v8406_v27 = vunpack.c.l.s8.bf16 %v8371_v26  ;;  %v8422_v31 = vunpack.c.l.s8.bf16 %v8379_v25  ;;  %v8390_v26 = vld [vmem:[%s12046_s3 + $0x3b0] sm:$0xff] }
 0xb6f   : > { %9287 = vmatpush3.bf16.msra.mxu1 %v8138_v6  ;;  %9266 = vmatprep.subr.bf16.mxu0 %v8129_v10  ;;  %v8413_v6 = vunpack.c.h.s8.bf16 %v8374_v52  ;;  %v8429_v10 = vunpack.c.h.s8.bf16 %v8382_v43  ;;  %v8398_v25 = vld [vmem:[%s12046_s3 + $0x3f0] sm:$0xff] }
 0xb70   : > { %9288 = vmatprep.subr.bf16.mxu1 %v8145_v32  ;;  %8319 = vmatprep.mubr.bf16.mxu0 %v8194_v5  ;;  %v8514_v5 = vcombine.high %v8504_v9, %v8504_v9  ;;  %v8370_v32 = vld [vmem:[%s12046_s3 + $0x310] sm:$0xff] }
 0xb71   : > { %8359 = vmatprep.mubr.bf16.mxu1 %v8198_v42  ;;  %v8405_v23 = vunpack.c.h.s8.bf16 %v8370_v32  ;;  %v8421_v42 = vunpack.c.h.s8.bf16 %v8378_v0  ;;  %v8404_v30 = vunpack.c.l.s8.bf16 %v8370_v32 }
 0xb72   : > { %9267 = vmatpush3.bf16.msra.mxu0 %v8121_v57  ;;  %v8412_v57 = vunpack.c.l.s8.bf16 %v8374_v52 }
 0xb73   : > { %9289 = vmatpush3.bf16.msra.mxu1 %v8137_v59  ;;  %9268 = vmatprep.subr.bf16.mxu0 %v8128_v44  ;;  %v8428_v59 = vunpack.c.l.s8.bf16 %v8382_v43  ;;  %v8373_v44 = vld [vmem:[%s12046_s3 + $0x328] sm:$0xff]  ;;  %v8445_v43 = vunpack.c.h.s8.bf16 %v8390_v26 }
 0xb74   : > { %9290 = vmatprep.subr.bf16.mxu1 %v8144_v33  ;;  %v8381_v33 = vld [vmem:[%s12046_s3 + $0x368] sm:$0xff] }
 0xb76   : > { %9269 = vmatpush3.bf16.msra.mxu0 %v8120_v61  ;;  %v8411_v61 = vunpack.c.h.s8.bf16 %v8373_v44 }
 0xb77   : > { %9291 = vmatpush3.bf16.msra.mxu1 %v8136_v37  ;;  %9270 = vmatprep.subr.bf16.mxu0 %v8127_v24  ;;  %v8427_v37 = vunpack.c.h.s8.bf16 %v8381_v33  ;;  %v8369_v24 = vld [vmem:[%s12046_s3 + $0x308] sm:$0xff] }
 0xb78   : > { %9292 = vmatprep.subr.bf16.mxu1 %v8143_v16  ;;  %v8377_v16 = vld [vmem:[%s12046_s3 + $0x348] sm:$0xff]  ;;  %v8403_v40 = vunpack.c.h.s8.bf16 %v8369_v24  ;;  %v8402_v56 = vunpack.c.l.s8.bf16 %v8369_v24 }
 0xb79   : > { %v8419_v4 = vunpack.c.h.s8.bf16 %v8377_v16 }
 0xb7a   : > { %9271 = vmatpush3.bf16.msra.mxu0 %v8119_v58  ;;  %v8410_v58 = vunpack.c.l.s8.bf16 %v8373_v44 }
 0xb7b   : > { %9293 = vmatpush3.bf16.msra.mxu1 %v8135_v47  ;;  %9272 = vmatprep.subr.bf16.mxu0 %v8126_v1  ;;  %v8426_v47 = vunpack.c.l.s8.bf16 %v8381_v33  ;;  %v8372_v1 = vld [vmem:[%s12046_s3 + $0x320] sm:$0xff]  ;;  %v8444_v33 = vunpack.c.l.s8.bf16 %v8390_v26 }
 0xb7c   : > { %9294 = vmatprep.subr.bf16.mxu1 %v8142_v34  ;;  %v8380_v34 = vld [vmem:[%s12046_s3 + $0x360] sm:$0xff] }
 0xb7e   : > { %9273 = vmatpush3.bf16.msra.mxu0 %v8118_v8  ;;  %v8418_v8 = vunpack.c.l.s8.bf16 %v8377_v16 }
 0xb7f   : > { %9295 = vmatpush3.bf16.msra.mxu1 %v8134_v60  ;;  %9274 = vmatprep.subr.bf16.mxu0 %v8125_v20  ;;  %v8409_v60 = vunpack.c.h.s8.bf16 %v8372_v1  ;;  %v8425_v20 = vunpack.c.h.s8.bf16 %v8380_v34 }
 0xb80   : > { %9296 = vmatprep.subr.bf16.mxu1 %v8141_v11  ;;  %v8368_v11 = vld [vmem:[%s12046_s3 + $0x300] sm:$0xff] }
 0xb81   : > { %v8401_v29 = vunpack.c.h.s8.bf16 %v8368_v11 }
 0xb82   : > { %9275 = vmatpush3.bf16.msra.mxu0 %v8117_v53  ;;  %v8417_v53 = vunpack.c.h.s8.bf16 %v8376_v49 }
 0xb83   : > { %9297 = vmatpush3.bf16.msra.mxu1 %v8133_v22  ;;  %9276 = vmatprep.subr.bf16.mxu0 %v8124_v48  ;;  %v8408_v22 = vunpack.c.l.s8.bf16 %v8372_v1  ;;  %v8424_v48 = vunpack.c.l.s8.bf16 %v8380_v34 }
 0xb84   : > { %9298 = vmatprep.subr.bf16.mxu1 %v8140_v19  ;;  %v8391_v19 = vld [vmem:[%s12046_s3 + $0x3b8] sm:$0xff] }
 0xb86   : > { %9277 = vmatpush3.bf16.msra.mxu0 %v8116_v62  ;;  %v8490_v62 = vrot.slane %v11890_v13, %v11581_v39  ;;  %v8439_v13 = vunpack.c.h.s8.bf16 %v8387_v17 }
 0xb87   : > { %9299 = vmatpush3.bf16.msra.mxu1 %v8132_v38  ;;  %9278 = vmatprep.subr.bf16.mxu0 %v8123_v12  ;;  %v8400_v38 = vunpack.c.l.s8.bf16 %v8368_v11  ;;  %v8416_v12 = vunpack.c.l.s8.bf16 %v8376_v49 }
 0xb88   : > { %9300 = vmatprep.subr.bf16.mxu1 %v8139_v51  ;;  %v8447_v51 = vunpack.c.h.s8.bf16 %v8391_v19 }
 0xb8a   : > { %9279 = vmatpush3.bf16.msra.mxu0 %v8115_v14  ;;  %v8512_v14 = vcombine.high %v8490_v62, %v8490_v62 }
 0xb8b   : > { %9301 = vmatpush3.bf16.msra.mxu1 %v8131_v41  ;;  %9308 = vmatprep.subr.bf16.mxu0 %v8415_v36  ;;  %v8455_v41 = vunpack.c.h.s8.bf16 %v8395_v3  ;;  %v8446_v36 = vunpack.c.l.s8.bf16 %v8391_v19 }
 0xb8c   : > { %9330 = vmatprep.subr.bf16.mxu1 %v8431_v45  ;;  %v8462_v45 = vunpack.c.l.s8.bf16 %v8399_v54 }
 0xb8d   : > { %8320 = vmatmul.mubr.bf16.vlgmr.msra.gmra.mxu0 %v8180_v55  ;;  %v8511_v55 = vrot.slane %v8483_v35, %v11581_v39  ;;  %v8497_v35 = vrot.slane %v11948_v7, %v11581_v39 }
 0xb8e   : > { %8360 = vmatmul.mubr.bf16.vlgmr.msra.gmra.mxu1 %v8196_v2  ;;  %9309 = vmatpush3.bf16.msra.mxu0 %v8407_v50 }
 0xb8f   : > { %9331 = vmatpush3.bf16.msra.mxu1 %v8423_v15  ;;  %9310 = vmatprep.subr.bf16.mxu0 %v8414_v28  ;;  %v8438_v15 = vunpack.c.l.s8.bf16 %v8387_v17  ;;  %v8454_v28 = vunpack.c.l.s8.bf16 %v8395_v3 }
 0xb90   : > { %9332 = vmatprep.subr.bf16.mxu1 %v8430_v21  ;;  %8556 = vmatprep.mubr.bf16.mxu0 %v8504_v9  ;;  %v8515_v9 = vcombine.high %v8511_v55, %v8511_v55 }
 0xb91   : > { %8596 = vmatprep.mubr.bf16.mxu1 %v8514_v5  ;;  %v8461_v5 = vunpack.c.h.s8.bf16 %v8398_v25 }
 0xb92   : > { %9311 = vmatpush3.bf16.msra.mxu0 %v8406_v27  ;;  %v8386_v27 = vld [vmem:[%s12046_s3 + $0x390] sm:$0xff] }
 0xb93   : > { %9333 = vmatpush3.bf16.msra.mxu1 %v8422_v31  ;;  %9312 = vmatprep.subr.bf16.mxu0 %v8413_v6  ;;  %v8394_v31 = vld [vmem:[%s12046_s3 + $0x3d0] sm:$0xff] }
 0xb94   : > { %9334 = vmatprep.subr.bf16.mxu1 %v8429_v10  ;;  %v8452_v24 = vunpack.c.l.s8.bf16 %v8394_v31 }
 0xb96   : > { %9313 = vmatpush3.bf16.msra.mxu0 %v8405_v23 }
 0xb97   : > { %9335 = vmatpush3.bf16.msra.mxu1 %v8421_v42  ;;  %9314 = vmatprep.subr.bf16.mxu0 %v8412_v57  ;;  %v8437_v42 = vunpack.c.h.s8.bf16 %v8386_v27  ;;  %v8453_v57 = vunpack.c.h.s8.bf16 %v8394_v31 }
 0xb98   : > { %9336 = vmatprep.subr.bf16.mxu1 %v8428_v59 }
 0xb9a   : > { %9315 = vmatpush3.bf16.msra.mxu0 %v8404_v30  ;;  %v8460_v30 = vunpack.c.l.s8.bf16 %v8398_v25 }
 0xb9b   : > { %9337 = vmatpush3.bf16.msra.mxu1 %v8420_v63  ;;  %9316 = vmatprep.subr.bf16.mxu0 %v8411_v61  ;;  %v8389_v63 = vld [vmem:[%s12046_s3 + $0x3a8] sm:$0xff] }
 0xb9c   : > { %9338 = vmatprep.subr.bf16.mxu1 %v8427_v37  ;;  %v8397_v61 = vld [vmem:[%s12046_s3 + $0x3e8] sm:$0xff]  ;;  %v8436_v37 = vunpack.c.l.s8.bf16 %v8386_v27  ;;  %v8443_v16 = vunpack.c.h.s8.bf16 %v8389_v63  ;;  %v8442_v34 = vunpack.c.l.s8.bf16 %v8389_v63 }
 0xb9d   : > { %v8458_v18 = vunpack.c.l.s8.bf16 %v8397_v61 }
 0xb9e   : > { %9317 = vmatpush3.bf16.msra.mxu0 %v8403_v40  ;;  %v8459_v40 = vunpack.c.h.s8.bf16 %v8397_v61 }
 0xb9f   : > { %9339 = vmatpush3.bf16.msra.mxu1 %v8419_v4  ;;  %9318 = vmatprep.subr.bf16.mxu0 %v8410_v58  ;;  %v8385_v4 = vld [vmem:[%s12046_s3 + $0x388] sm:$0xff] }
 0xba0   : > { %9340 = vmatprep.subr.bf16.mxu1 %v8426_v47  ;;  %v8393_v58 = vld [vmem:[%s12046_s3 + $0x3c8] sm:$0xff]  ;;  %v8435_v47 = vunpack.c.h.s8.bf16 %v8385_v4 }
 0xba1   : > { %v8451_v1 = vunpack.c.h.s8.bf16 %v8393_v58 }
 0xba2   : > { %9319 = vmatpush3.bf16.msra.mxu0 %v8402_v56  ;;  %v8388_v56 = vld [vmem:[%s12046_s3 + $0x3a0] sm:$0xff] }
 0xba3   : > { %9341 = vmatpush3.bf16.msra.mxu1 %v8418_v8  ;;  %9320 = vmatprep.subr.bf16.mxu0 %v8409_v60  ;;  %v8396_v8 = vld [vmem:[%s12046_s3 + $0x3e0] sm:$0xff]  ;;  %v8434_v60 = vunpack.c.l.s8.bf16 %v8385_v4  ;;  %v8441_v11 = vunpack.c.h.s8.bf16 %v8388_v56  ;;  %v8440_v19 = vunpack.c.l.s8.bf16 %v8388_v56 }
 0xba4   : > { %9342 = vmatprep.subr.bf16.mxu1 %v8425_v20  ;;  %v8450_v20 = vunpack.c.l.s8.bf16 %v8393_v58  ;;  %v8457_v49 = vunpack.c.h.s8.bf16 %v8396_v8  ;;  %v8456_v54 = vunpack.c.l.s8.bf16 %v8396_v8 }
 0xba6   : > { %9321 = vmatpush3.bf16.msra.mxu0 %v8401_v29  ;;  %v8384_v29 = vld [vmem:[%s12046_s3 + $0x380] sm:$0xff] }
 0xba7   : > { %9343 = vmatpush3.bf16.msra.mxu1 %v8417_v53  ;;  %9322 = vmatprep.subr.bf16.mxu0 %v8408_v22  ;;  %v8392_v53 = vld [vmem:[%s12046_s3 + $0x3c0] sm:$0xff]  ;;  %v8433_v22 = vunpack.c.h.s8.bf16 %v8384_v29 }
 0xba8   : > { %9344 = vmatprep.subr.bf16.mxu1 %v8424_v48  ;;  %v8449_v48 = vunpack.c.h.s8.bf16 %v8392_v53 }
 0xbaa   : > { %9323 = vmatpush3.bf16.msra.mxu0 %v8400_v38  ;;  %v8448_v38 = vunpack.c.l.s8.bf16 %v8392_v53 }
 0xbab   : > { %9345 = vmatpush3.bf16.msra.mxu1 %v8416_v12  ;;  %9352 = vmatprep.subr.bf16.mxu0 %v8447_v51  ;;  %v8513_v12 = vcombine.high %v8497_v35, %v8497_v35 }
 0xbac   : > { %9374 = vmatprep.subr.bf16.mxu1 %v8463_v46 }
 0xbad   : > { %v9060_v2 = vpop.f32.mrf.mxu0  ;;  %8557 = vmatmul.mubr.bf16.vlgmr.msra.gmra.mxu0 %v8490_v62  ;;  %v8432_v62 = vunpack.c.l.s8.bf16 %v8384_v29 }
 0xbae   : > { %v9082_v50 = vpop.f32.mrf.mxu1  ;;  %8597 = vmatmul.mubr.bf16.vlgmr.msra.gmra.mxu1 %v8512_v14  ;;  %9353 = vmatpush3.bf16.msra.mxu0 %v8439_v13 }
 0xbaf   : > { %9375 = vmatpush3.bf16.msra.mxu1 %v8455_v41  ;;  %v9061_v21 = vpop.f32.mrf.mxu0  ;;  %9354 = vmatprep.subr.bf16.mxu0 %v8446_v36 }
 0xbb0   : > { %v9083_v52 = vpop.f32.mrf.mxu1  ;;  %9376 = vmatprep.subr.bf16.mxu1 %v8462_v45  ;;  %v9062_v6 = vadd.f32 %v9061_v21, %v9060_v2  ;;  %8636 = vmatprep.mubr.bf16.mxu0 %v8511_v55 }
 0xbb1   : > { %v9084_v10 = vadd.f32 %v9083_v52, %v9082_v50  ;;  %8676 = vmatprep.mubr.bf16.mxu1 %v8515_v9  ;;  %v9063_v32 = vpop.f32.mrf.mxu0 }
 0xbb2   : > { %v9085_v0 = vpop.f32.mrf.mxu1  ;;  %9355 = vmatpush3.bf16.msra.mxu0 %v8438_v15 }
 0xbb3   : > { %v11979_v23 = vadd.f32 %v9084_v10, %v9062_v6  ;;  %9377 = vmatpush3.bf16.msra.mxu1 %v8454_v28  ;;  %v9064_v59 = vpop.f32.mrf.mxu0  ;;  %9356 = vmatprep.subr.bf16.mxu0 %v8445_v43 }
 0xbb4   : > { %v9086_v44 = vpop.f32.mrf.mxu1  ;;  %9378 = vmatprep.subr.bf16.mxu1 %v8461_v5 }
 0xbb6   : > { %9357 = vmatpush3.bf16.msra.mxu0 %v8437_v42 }
 0xbb7   : > { %9379 = vmatpush3.bf16.msra.mxu1 %v8453_v57  ;;  %9358 = vmatprep.subr.bf16.mxu0 %v8444_v33 }
 0xbb8   : > { %9380 = vmatprep.subr.bf16.mxu1 %v8460_v30 }
 0xbba   : > { %9359 = vmatpush3.bf16.msra.mxu0 %v8436_v37 }
 0xbbb   : > { %9381 = vmatpush3.bf16.msra.mxu1 %v8452_v24  ;;  %9360 = vmatprep.subr.bf16.mxu0 %v8443_v16 }
 0xbbc   : > { %9382 = vmatprep.subr.bf16.mxu1 %v8459_v40 }
 0xbbe   : > { %9361 = vmatpush3.bf16.msra.mxu0 %v8435_v47 }
 0xbbf   : > { %9383 = vmatpush3.bf16.msra.mxu1 %v8451_v1  ;;  %9362 = vmatprep.subr.bf16.mxu0 %v8442_v34 }
 0xbc0   : > { %9384 = vmatprep.subr.bf16.mxu1 %v8458_v18 }
 0xbc2   : > { %9363 = vmatpush3.bf16.msra.mxu0 %v8434_v60 }
 0xbc3   : > { %9385 = vmatpush3.bf16.msra.mxu1 %v8450_v20  ;;  %9364 = vmatprep.subr.bf16.mxu0 %v8441_v11 }
 0xbc4   : > { %9386 = vmatprep.subr.bf16.mxu1 %v8457_v49 }
 0xbc6   : > { %9365 = vmatpush3.bf16.msra.mxu0 %v8433_v22 }
 0xbc7   : > { %9387 = vmatpush3.bf16.msra.mxu1 %v8449_v48  ;;  %9366 = vmatprep.subr.bf16.mxu0 %v8440_v19 }
 0xbc8   : > { %9388 = vmatprep.subr.bf16.mxu1 %v8456_v54 }
 0xbca   : > { %9367 = vmatpush3.bf16.msra.mxu0 %v8432_v62 }
 0xbcb   : > { %9389 = vmatpush3.bf16.msra.mxu1 %v8448_v38 }
 0xbcd   : > { %v9104_v51 = vpop.f32.mrf.mxu0  ;;  %8637 = vmatmul.mubr.bf16.vlgmr.msra.gmra.mxu0 %v8497_v35 }
 0xbce   : > { %v9126_v46 = vpop.f32.mrf.mxu1  ;;  %8677 = vmatmul.mubr.bf16.vlgmr.msra.gmra.mxu1 %v8513_v12 }
 0xbcf   : > { %v9105_v17 = vpop.f32.mrf.mxu0 }
 0xbd0   : > { %v9127_v3 = vpop.f32.mrf.mxu1  ;;  %v9106_v55 = vadd.f32 %v9105_v17, %v9104_v51 }
 0xbd1   : > { %v9128_v14 = vadd.f32 %v9127_v3, %v9126_v46  ;;  %v9107_v13 = vpop.f32.mrf.mxu0 }
 0xbd2   : > { %v9129_v41 = vpop.f32.mrf.mxu1  ;;  %v7788_v39 = vadd.f32 %v9106_v55, %v11979_v23 }
 0xbd3   : > { %v9108_v7 = vpop.f32.mrf.mxu0 }
 0xbd4   : > { %v9130_v36 = vpop.f32.mrf.mxu1  ;;  %v7828_v45 = vadd.f32 %v9128_v14, %v7788_v39 }
 0xbed   : > { %v9148_v26 = vpop.f32.mrf.mxu0 }
 0xbee   : > { %v9170_v25 = vpop.f32.mrf.mxu1 }
 0xbef   : > { %v9149_v9 = vpop.f32.mrf.mxu0 }
 0xbf0   : > { %v9171_v2 = vpop.f32.mrf.mxu1  ;;  %v9150_v50 = vadd.f32 %v9149_v9, %v9148_v26 }
 0xbf1   : > { %v9172_v15 = vadd.f32 %v9171_v2, %v9170_v25  ;;  %v9151_v28 = vpop.f32.mrf.mxu0 }
 0xbf2   : > { %v9173_v21 = vpop.f32.mrf.mxu1  ;;  %v7926_v52 = vadd.f32 %v9150_v50, %v7828_v45 }
 0xbf3   : > { %v9152_v43 = vpop.f32.mrf.mxu0  ;;  %v9006_v21 = vld [vmem:[%s12049_s6] ss:$0 sm:$0xff] }
 0xbf4   : > { %v9174_v5 = vpop.f32.mrf.mxu1  ;;  %v7966_v27 = vadd.f32 %v9172_v15, %v7926_v52  ;;  %v9007_v43 = vld [vmem:[%s12049_s6 + $0x1] ss:$0 sm:$0xff] }
 0xc0d   : > { %v9192_v31 = vpop.f32.mrf.mxu0 }
 0xc0e   : > { %v9214_v6 = vpop.f32.mrf.mxu1 }
 0xc0f   : > { %v9193_v10 = vpop.f32.mrf.mxu0 }
 0xc10   : > { %v9215_v32 = vpop.f32.mrf.mxu1  ;;  %v9194_v0 = vadd.f32 %v9193_v10, %v9192_v31 }
 0xc11   : > { %v9216_v23 = vadd.f32 %v9215_v32, %v9214_v6  ;;  %v9195_v42 = vpop.f32.mrf.mxu0 }
 0xc12   : > { %v9217_v57 = vpop.f32.mrf.mxu1  ;;  %v8006_v59 = vadd.f32 %v9194_v0, %v7966_v27 }
 0xc13   : > { %v9196_v44 = vpop.f32.mrf.mxu0 }
 0xc14   : > { %v9218_v33 = vpop.f32.mrf.mxu1  ;;  %v8046_v30 = vadd.f32 %v9216_v23, %v8006_v59 }
 0xc2d   : > { %v9236_v63 = vpop.f32.mrf.mxu0 }
 0xc2e   : > { %v9258_v61 = vpop.f32.mrf.mxu1 }
 0xc2f   : > { %v9237_v37 = vpop.f32.mrf.mxu0 }
 0xc30   : > { %v9259_v24 = vpop.f32.mrf.mxu1  ;;  %v9238_v16 = vadd.f32 %v9237_v37, %v9236_v63 }
 0xc31   : > { %v9260_v40 = vadd.f32 %v9259_v24, %v9258_v61  ;;  %v9239_v4 = vpop.f32.mrf.mxu0 }
 0xc32   : > { %v9261_v58 = vpop.f32.mrf.mxu1 }
 0xc33   : > { %v8282_v47 = vadd.f32 %v9260_v40, %v9238_v16  ;;  %v9240_v1 = vpop.f32.mrf.mxu0 }
 0xc34   : > { %v9262_v34 = vpop.f32.mrf.mxu1 }
 0xc4d   : > { %v9280_v18 = vpop.f32.mrf.mxu0 }
 0xc4e   : > { %v9302_v56 = vpop.f32.mrf.mxu1 }
 0xc4f   : > { %v9281_v8 = vpop.f32.mrf.mxu0 }
 0xc50   : > { %v9303_v60 = vpop.f32.mrf.mxu1  ;;  %v9282_v20 = vadd.f32 %v9281_v8, %v9280_v18 }
 0xc51   : > { %v9304_v11 = vadd.f32 %v9303_v60, %v9302_v56  ;;  %v9283_v49 = vpop.f32.mrf.mxu0 }
 0xc52   : > { %v9305_v29 = vpop.f32.mrf.mxu1  ;;  %v8322_v53 = vadd.f32 %v9282_v20, %v8282_v47 }
 0xc53   : > { %v9284_v22 = vpop.f32.mrf.mxu0 }
 0xc54   : > { %v9306_v48 = vpop.f32.mrf.mxu1  ;;  %v8362_v19 = vadd.f32 %v9304_v11, %v8322_v53 }
 0xc56   : > { %v8367_v54 = vadd.f32 %v8362_v19, %v8046_v30 }
 0xc6d   : > { %v9324_v35 = vpop.f32.mrf.mxu0 }
 0xc6e   : > { %v9346_v62 = vpop.f32.mrf.mxu1 }
 0xc6f   : > { %v9325_v38 = vpop.f32.mrf.mxu0 }
 0xc70   : > { %v9347_v12 = vpop.f32.mrf.mxu1  ;;  %v9326_v55 = vadd.f32 %v9325_v38, %v9324_v35 }
 0xc71   : > { %v9327_v51 = vpop.f32.mrf.mxu0  ;;  %v9348_v14 = vadd.f32 %v9347_v12, %v9346_v62 }
 0xc72   : > { %v9349_v46 = vpop.f32.mrf.mxu1 }
 0xc73   : > { %v9328_v17 = vpop.f32.mrf.mxu0  ;;  %v8599_v36 = vadd.f32 %v9348_v14, %v9326_v55 }
 0xc74   : > { %v9350_v3 = vpop.f32.mrf.mxu1 }
 0xc8d   : > { %v9368_v13 = vpop.f32.mrf.mxu0 }
 0xc8e   : > { %v9390_v41 = vpop.f32.mrf.mxu1 }
 0xc8f   : > { %v9369_v39 = vpop.f32.mrf.mxu0 }
 0xc90   : > { %v9391_v7 = vpop.f32.mrf.mxu1  ;;  %v9370_v45 = vadd.f32 %v9369_v39, %v9368_v13 }
 0xc91   : > { %v9371_v26 = vpop.f32.mrf.mxu0  ;;  %v9392_v2 = vadd.f32 %v9391_v7, %v9390_v41 }
 0xc92   : > { %v9393_v25 = vpop.f32.mrf.mxu1  ;;  %v8639_v9 = vadd.f32 %v9370_v45, %v8599_v36 }
 0xc93   : > { %v9372_v50 = vpop.f32.mrf.mxu0 }
 0xc94   : > { %v9394_v15 = vpop.f32.mrf.mxu1  ;;  %v8679_v28 = vadd.f32 %v9392_v2, %v8639_v9 }
 0xc96   : > { %v8684_v52 = vadd.f32 %v8679_v28, %v8367_v54 }
 0xc98   : > { %v8690_v5 = vmul.f32 %v9006_v21, %v8684_v52 }
 0xc9a   : > { %v8696_v27 = vadd.f32 %v9007_v43, %v8690_v5 }
 0xc9c   : > { %8697 = vst [vmem:[#allocation8] sm:$0x3] %v8696_v27 }
 0xc9d PF: > { %s9583_s27 = smov [#allocation8]   ;;  %p12059_p8 = scmp.eq.s32.totalorder %s9655_s30, 8 }
 0xc9e   : > { %s8717_s24 = sshll.u32 %s9583_s27, 4  ;;  %s8718_s24 = int_to_ptr.vmem [resolvable:$true] %s8717_s24 }
 0xc9f   : > { %s9496_s18 = scalar_lea.vmem %s8718_s24, 32  ;;  %s9502_s11 = scalar_lea.vmem %s8718_s24, 64 }
 0xca0   : > { %p9497_p6 = scmp.ne.s32.totalorder %s8718_s24, %s9496_s18  ;;  %p9503_p11 = scmp.lt.s32.totalorder %s8718_s24, %s8718_s24 }
 0xca1   : > { %p9504_p0 = scmp.lt.s32.totalorder %s9502_s11, %s9496_s18 }
 0xca2   : > { %p9498_p9 = pnand %p9497_p6, %p12059_p8 }
 0xca3   : > { %p9505_p3 = por %p9504_p0, %p9503_p11 }
 0xca4   : > { %p9499_p10 = pneg %p9498_p9 }
 0xca6   : > { %p9506_p4 = pnand %p9505_p3, %p9499_p10 }
 0xca8   : > { %9509 = shalt.err (!%p9506_p4)
}
 0xca9   : > { %p12060_p12 = pmov %p12059_p8 }
 0xcab   : > { %9398 = dma.vmem_to_hbm [thread:$0]  (%p12060_p12), %s8718_s24, 32, %s12050_s7, [#allocation7]  }
 0xcac PF: > { %p9404_p13 = scmp.ge.s32.totalorder %s9574_s29, 2  ;;  %p12061_p2 = scmp.ne.s32.totalorder %s12056_s22, 0 }
 0xcae   : > { %p9401_p1 = pnand %p9404_p13, %p12061_p2 }
 0xcb0   : > { %p9402_p7 = pneg %p9401_p1 }
 0xcb2   : > { %9549 = dma.done.wait (%p9402_p7), [#allocation7], 32  }
 0xcb3   : > { %9551 = vsyncadd (%p9402_p7), [#allocation7], 4294967264  ;;  %p20_p5 = scmp.ge.s32.totalorder %s9659_s9, 11   ;;  %s12062_s24 = smov %s9558_s25 }
 0xcb4   : > { %s12063_s25 = smov %s9562_s26  ;;  %s12064_s26 = smov %s9712_s23 }
 0xcb5   : > { %s12065_s27 = smov %s9570_s28  ;;  %s12066_s28 = smov %s9682_s16 }
 0xcb6   : > { %s12067_s29 = smov %s9659_s9  ;;  %22 = sbr.rel (!%p20_p5) target bundleno = 9 (0x9), region = 158 }
 0xcbb   :  { %8735 = vsyncpa [#allocation6], 1 }
 0xcbc   :  { %8737 = vsyncpa [#allocation6 + $0x1], 1 }
 0xcbd   :  { %8738 = vsyncpa [#allocation7], 1 }
 0xcbe   :  { %8740 = vsyncpa [#allocation7 + $0x1], 1 }

</bundles_post_ra>
